<compile_context>
chip_gen: v6e
topology: v6e:2x2x1
jax: 0.10.0
libtpu: 0.0.40
codegen_flags: <defaults>
</compile_context>

<pallas_src>
import jax
import jax.numpy as jnp
from jax.experimental import pallas as pl
from jax.experimental.pallas import tpu as pltpu


def _bottleneck_kernel(xp_ref, w1_ref, w2_ref, w3_ref, o_ref):
    # xp_ref: (1, H+2, W+2, Cin) f32  spatially zero-padded input (NHWC)
    # w1_ref: (Cin, P)          bf16  1x1 conv weight
    # w2_ref: (9*P, P)          bf16  3x3 conv weight, rows = (dy*3+dx)*P + pin
    # w3_ref: (P, Cout)         bf16  1x1 conv weight
    # o_ref : (1, H, W, Cout)   f32
    _, Hp, Wp, Cin = xp_ref.shape
    H, W = Hp - 2, Wp - 2
    P = w1_ref.shape[1]
    Cout = w3_ref.shape[1]

    xp = xp_ref[0]                                        # (H+2, W+2, Cin) f32

    # ---- conv1 (1x1) + ReLU on the padded frame (border pixels stay zero,
    #      since conv1 has no bias and relu(0) == 0) ----
    h1 = jnp.dot(xp.reshape(Hp * Wp, Cin).astype(jnp.bfloat16), w1_ref[...],
                 preferred_element_type=jnp.float32)
    h1 = jnp.maximum(h1, 0.0).reshape(Hp, Wp, P)          # (H+2, W+2, P) f32

    # ---- conv2 (3x3, stride=1, pad=1) + ReLU as a single im2col matmul ----
    # 9 static slices of the already-padded conv1 output, concatenated along
    # the (lane) channel axis; each piece is P=128 lanes -> aligned concat.
    taps = [h1[dy:dy + H, dx:dx + W, :] for dy in range(3) for dx in range(3)]
    im2col = jnp.concatenate(taps, axis=-1).reshape(H * W, 9 * P)
    h2 = jnp.dot(im2col.astype(jnp.bfloat16), w2_ref[...],
                 preferred_element_type=jnp.float32)
    h2 = jnp.maximum(h2, 0.0)                             # (H*W, P) f32

    # ---- conv3 (1x1) + residual add + ReLU (all f32 elementwise) ----
    h3 = jnp.dot(h2.astype(jnp.bfloat16), w3_ref[...],
                 preferred_element_type=jnp.float32)      # (H*W, Cout) f32
    out = h3.reshape(H, W, Cout) + xp[1:H + 1, 1:W + 1, :]   # residual = x
    o_ref[0] = jnp.maximum(out, 0.0).astype(o_ref.dtype)


def bottleneck_forward(x_nchw, w1, w2, w3):
    """x_nchw: (N, Cin, H, W) f32.  w1: (P, Cin, 1, 1), w2: (P, P, 3, 3),
    w3: (Cout, P, 1, 1) in PyTorch OIHW convention.  Returns (N, Cout, H, W)."""
    N, Cin, H, W = x_nchw.shape
    P = w1.shape[0]
    Cout = w3.shape[0]
    assert Cout == Cin, "downsample=None requires inplanes == planes*expansion"

    # Wrapper glue (plain JAX): NCHW -> NHWC, spatial zero-pad for the 3x3 conv,
    # and OIHW weights -> bf16 matmul layouts.
    x = jnp.transpose(x_nchw, (0, 2, 3, 1))                             # (N,H,W,Cin)
    xp = jnp.pad(x, ((0, 0), (1, 1), (1, 1), (0, 0)))                   # (N,H+2,W+2,Cin)
    w1_m = jnp.transpose(w1[:, :, 0, 0], (1, 0)).astype(jnp.bfloat16)   # (Cin, P)
    w2_m = jnp.transpose(w2, (2, 3, 1, 0)).reshape(9 * P, P).astype(jnp.bfloat16)
    w3_m = jnp.transpose(w3[:, :, 0, 0], (1, 0)).astype(jnp.bfloat16)   # (P, Cout)

    out_nhwc = pl.pallas_call(
        _bottleneck_kernel,
        out_shape=jax.ShapeDtypeStruct((N, H, W, Cout), x_nchw.dtype),
        grid_spec=pltpu.PrefetchScalarGridSpec(
            num_scalar_prefetch=0,
            grid=(N,),
            in_specs=[
                pl.BlockSpec((1, H + 2, W + 2, Cin), lambda n: (n, 0, 0, 0)),
                pl.BlockSpec((Cin, P), lambda n: (0, 0)),
                pl.BlockSpec((9 * P, P), lambda n: (0, 0)),
                pl.BlockSpec((P, Cout), lambda n: (0, 0)),
            ],
            out_specs=pl.BlockSpec((1, H, W, Cout), lambda n: (n, 0, 0, 0)),
        ),
        compiler_params=pltpu.CompilerParams(
            dimension_semantics=("parallel",),
            vmem_limit_bytes=32 * 1024 * 1024),
    )(xp, w1_m, w2_m, w3_m)

    return jnp.transpose(out_nhwc, (0, 3, 1, 2))  # back to NCHW


def _reference_forward(x_nchw, w1, w2, w3):
    """Module forward in plain JAX (NCHW/OIHW lax convs).  Operands are rounded
    to bf16 (accumulation stays f32) to match the kernel's MXU input precision;
    residual add uses the original f32 x, like the kernel."""
    b = lambda t: t.astype(jnp.bfloat16).astype(jnp.float32)
    dn = lambda lhs, rhs: jax.lax.conv_dimension_numbers(
        lhs.shape, rhs.shape, ("NCHW", "OIHW", "NCHW"))
    out = jax.lax.conv_general_dilated(b(x_nchw), b(w1), (1, 1), "VALID",
                                       dimension_numbers=dn(x_nchw, w1))
    out = jnp.maximum(out, 0.0)
    out = jax.lax.conv_general_dilated(b(out), b(w2), (1, 1), ((1, 1), (1, 1)),
                                       dimension_numbers=dn(out, w2))
    out = jnp.maximum(out, 0.0)
    out = jax.lax.conv_general_dilated(b(out), b(w3), (1, 1), "VALID",
                                       dimension_numbers=dn(out, w3))
    out = out + x_nchw
    return jnp.maximum(out, 0.0)


if __name__ == "__main__":
    # Small but lane-dense shapes: planes=128, inplanes=planes*4=512 (so the
    # downsample=None residual is valid and every channel dim is a multiple of
    # 128 lanes), spatial 16x16, batch 2.
    N, H, W = 2, 16, 16
    planes = 128
    Cin = Cout = planes * 4  # 512

    key = jax.random.PRNGKey(0)
    kx, k1, k2, k3 = jax.random.split(key, 4)
    x = jax.random.normal(kx, (N, Cin, H, W), dtype=jnp.float32)
    # Weights in OIHW, matching nn.Conv2d(bias=False) shapes.
    w1 = jax.random.normal(k1, (planes, Cin, 1, 1), dtype=jnp.float32) * 0.1
    w2 = jax.random.normal(k2, (planes, planes, 3, 3), dtype=jnp.float32) * 0.1
    w3 = jax.random.normal(k3, (Cout, planes, 1, 1), dtype=jnp.float32) * 0.1
    # TODO(synk): bn1/bn2/bn3 are defined in __init__ but never used in forward(); omitted.

    out = jax.block_until_ready(bottleneck_forward(x, w1, w2, w3))
    ref = _reference_forward(x, w1, w2, w3)

    assert out.shape == (N, Cout, H, W)
    max_diff = float(jnp.max(jnp.abs(out - ref)))
    assert bool(jnp.allclose(out, ref, atol=2e-2, rtol=2e-2)), f"max|diff|={max_diff}"
    print("KERNEL_OK")
</pallas_src>

<mosaic_0001>
module attributes {stable_mosaic.version = 11 : i64} {
  func.func @_bottleneck_kernel(%arg0: i32, %arg1: memref<1x18x18x512xf32, #tpu.memory_space<vmem>>, %arg2: memref<512x128xbf16, #tpu.memory_space<vmem>>, %arg3: memref<1152x128xbf16, #tpu.memory_space<vmem>>, %arg4: memref<128x512xbf16, #tpu.memory_space<vmem>>, %arg5: memref<1x16x16x512xf32, #tpu.memory_space<vmem>>) attributes {dimension_semantics = [#tpu.dimension_semantics<parallel>], iteration_bounds = array<i64: 2>, scalar_prefetch = 0 : i64, scratch_operands = 0 : i64, tpu.core_type = #tpu.core_type<tc>, window_params = [{transform_indices = @transform_0, window_bounds = array<i64: 1, 18, 18, 512>}, {pipeline_mode = #tpu.pipeline_mode<synchronous>, transform_indices = @transform_1, window_bounds = array<i64: 512, 128>}, {pipeline_mode = #tpu.pipeline_mode<synchronous>, transform_indices = @transform_2, window_bounds = array<i64: 1152, 128>}, {pipeline_mode = #tpu.pipeline_mode<synchronous>, transform_indices = @transform_3, window_bounds = array<i64: 128, 512>}, {transform_indices = @transform_4, window_bounds = array<i64: 1, 16, 16, 512>}]} {
    %c0 = arith.constant 0 : index
    %c0_0 = arith.constant 0 : index
    %c0_1 = arith.constant 0 : index
    %c0_2 = arith.constant 0 : index
    %0 = vector.load %arg1[%c0, %c0_0, %c0_1, %c0_2] : memref<1x18x18x512xf32, #tpu.memory_space<vmem>>, vector<1x18x18x512xf32>
    %1 = vector.shape_cast %0 : vector<1x18x18x512xf32> to vector<18x18x512xf32>
    %2 = vector.shape_cast %1 : vector<18x18x512xf32> to vector<324x512xf32>
    %3 = arith.truncf %2 : vector<324x512xf32> to vector<324x512xbf16>
    %c0_3 = arith.constant 0 : index
    %c0_4 = arith.constant 0 : index
    %4 = vector.load %arg2[%c0_3, %c0_4] : memref<512x128xbf16, #tpu.memory_space<vmem>>, vector<512x128xbf16>
    %cst = arith.constant dense<0.000000e+00> : vector<324x128xf32>
    %5 = tpu.matmul %3, %4, %cst {dimension_numbers = #tpu.dot_dimension_numbers<[1], [0], [0], [1], [0, 0, 1, 1], [], []>} : vector<324x512xbf16>, vector<512x128xbf16>, vector<324x128xf32> -> vector<324x128xf32>
    %cst_5 = arith.constant 0.000000e+00 : f32
    %6 = vector.broadcast %cst_5 : f32 to vector<324x128xf32>
    %7 = arith.maximumf %5, %6 : vector<324x128xf32>
    %8 = vector.shape_cast %7 : vector<324x128xf32> to vector<18x18x128xf32>
    %9 = vector.extract_strided_slice %8 {offsets = [0, 0, 0], sizes = [16, 16, 128], strides = [1, 1, 1]} : vector<18x18x128xf32> to vector<16x16x128xf32>
    %10 = vector.extract_strided_slice %8 {offsets = [0, 1, 0], sizes = [16, 16, 128], strides = [1, 1, 1]} : vector<18x18x128xf32> to vector<16x16x128xf32>
    %11 = vector.extract_strided_slice %8 {offsets = [0, 2, 0], sizes = [16, 16, 128], strides = [1, 1, 1]} : vector<18x18x128xf32> to vector<16x16x128xf32>
    %12 = vector.extract_strided_slice %8 {offsets = [1, 0, 0], sizes = [16, 16, 128], strides = [1, 1, 1]} : vector<18x18x128xf32> to vector<16x16x128xf32>
    %13 = vector.extract_strided_slice %8 {offsets = [1, 1, 0], sizes = [16, 16, 128], strides = [1, 1, 1]} : vector<18x18x128xf32> to vector<16x16x128xf32>
    %14 = vector.extract_strided_slice %8 {offsets = [1, 2, 0], sizes = [16, 16, 128], strides = [1, 1, 1]} : vector<18x18x128xf32> to vector<16x16x128xf32>
    %15 = vector.extract_strided_slice %8 {offsets = [2, 0, 0], sizes = [16, 16, 128], strides = [1, 1, 1]} : vector<18x18x128xf32> to vector<16x16x128xf32>
    %16 = vector.extract_strided_slice %8 {offsets = [2, 1, 0], sizes = [16, 16, 128], strides = [1, 1, 1]} : vector<18x18x128xf32> to vector<16x16x128xf32>
    %17 = vector.extract_strided_slice %8 {offsets = [2, 2, 0], sizes = [16, 16, 128], strides = [1, 1, 1]} : vector<18x18x128xf32> to vector<16x16x128xf32>
    %18 = tpu.concatenate %9, %10, %11, %12, %13, %14, %15, %16, %17 in 2 : vector<16x16x128xf32>, vector<16x16x128xf32>, vector<16x16x128xf32>, vector<16x16x128xf32>, vector<16x16x128xf32>, vector<16x16x128xf32>, vector<16x16x128xf32>, vector<16x16x128xf32>, vector<16x16x128xf32> -> vector<16x16x1152xf32>
    %19 = vector.shape_cast %18 : vector<16x16x1152xf32> to vector<256x1152xf32>
    %20 = arith.truncf %19 : vector<256x1152xf32> to vector<256x1152xbf16>
    %c0_6 = arith.constant 0 : index
    %c0_7 = arith.constant 0 : index
    %21 = vector.load %arg3[%c0_6, %c0_7] : memref<1152x128xbf16, #tpu.memory_space<vmem>>, vector<1152x128xbf16>
    %cst_8 = arith.constant dense<0.000000e+00> : vector<256x128xf32>
    %22 = tpu.matmul %20, %21, %cst_8 {dimension_numbers = #tpu.dot_dimension_numbers<[1], [0], [0], [1], [0, 0, 1, 1], [], []>} : vector<256x1152xbf16>, vector<1152x128xbf16>, vector<256x128xf32> -> vector<256x128xf32>
    %cst_9 = arith.constant 0.000000e+00 : f32
    %23 = vector.broadcast %cst_9 : f32 to vector<256x128xf32>
    %24 = arith.maximumf %22, %23 : vector<256x128xf32>
    %25 = arith.truncf %24 : vector<256x128xf32> to vector<256x128xbf16>
    %c0_10 = arith.constant 0 : index
    %c0_11 = arith.constant 0 : index
    %26 = vector.load %arg4[%c0_10, %c0_11] : memref<128x512xbf16, #tpu.memory_space<vmem>>, vector<128x512xbf16>
    %cst_12 = arith.constant dense<0.000000e+00> : vector<256x512xf32>
    %27 = tpu.matmul %25, %26, %cst_12 {dimension_numbers = #tpu.dot_dimension_numbers<[1], [0], [0], [1], [0, 0, 1, 1], [], []>} : vector<256x128xbf16>, vector<128x512xbf16>, vector<256x512xf32> -> vector<256x512xf32>
    %28 = vector.shape_cast %27 : vector<256x512xf32> to vector<16x16x512xf32>
    %29 = vector.extract_strided_slice %1 {offsets = [1, 1, 0], sizes = [16, 16, 512], strides = [1, 1, 1]} : vector<18x18x512xf32> to vector<16x16x512xf32>
    %30 = arith.addf %28, %29 : vector<16x16x512xf32>
    %cst_13 = arith.constant 0.000000e+00 : f32
    %31 = vector.broadcast %cst_13 : f32 to vector<16x16x512xf32>
    %32 = arith.maximumf %30, %31 : vector<16x16x512xf32>
    %c0_14 = arith.constant 0 : index
    %c0_15 = arith.constant 0 : index
    %c0_16 = arith.constant 0 : index
    %c0_17 = arith.constant 0 : index
    %33 = vector.load %arg5[%c0_14, %c0_15, %c0_16, %c0_17] : memref<1x16x16x512xf32, #tpu.memory_space<vmem>>, vector<1x16x16x512xf32>
    %34 = vector.shape_cast %33 : vector<1x16x16x512xf32> to vector<16x16x512xf32>
    %35 = vector.shape_cast %32 : vector<16x16x512xf32> to vector<1x16x16x512xf32>
    tpu.vector_store %arg5[%c0_14, %c0_15, %c0_16, %c0_17], %35 {strides = array<i32>} : memref<1x16x16x512xf32, #tpu.memory_space<vmem>>, vector<1x16x16x512xf32>,
    return
  }
  func.func @transform_0(%arg0: i32) -> (i32, i32, i32, i32) {
    %c0_i32 = arith.constant 0 : i32
    %c0_i32_0 = arith.constant 0 : i32
    %c0_i32_1 = arith.constant 0 : i32
    %c0_i32_2 = arith.constant 0 : i32
    return %arg0, %c0_i32, %c0_i32_0, %c0_i32_1 : i32, i32, i32, i32
  }
  func.func @transform_1(%arg0: i32) -> (i32, i32) {
    %c0_i32 = arith.constant 0 : i32
    %c0_i32_0 = arith.constant 0 : i32
    %c0_i32_1 = arith.constant 0 : i32
    return %c0_i32, %c0_i32_0 : i32, i32
  }
  func.func @transform_2(%arg0: i32) -> (i32, i32) {
    %c0_i32 = arith.constant 0 : i32
    %c0_i32_0 = arith.constant 0 : i32
    %c0_i32_1 = arith.constant 0 : i32
    return %c0_i32, %c0_i32_0 : i32, i32
  }
  func.func @transform_3(%arg0: i32) -> (i32, i32) {
    %c0_i32 = arith.constant 0 : i32
    %c0_i32_0 = arith.constant 0 : i32
    %c0_i32_1 = arith.constant 0 : i32
    return %c0_i32, %c0_i32_0 : i32, i32
  }
  func.func @transform_4(%arg0: i32) -> (i32, i32, i32, i32) {
    %c0_i32 = arith.constant 0 : i32
    %c0_i32_0 = arith.constant 0 : i32
    %c0_i32_1 = arith.constant 0 : i32
    %c0_i32_2 = arith.constant 0 : i32
    return %arg0, %c0_i32, %c0_i32_0, %c0_i32_1 : i32, i32, i32, i32
  }
}

</mosaic_0001>

<bundles_post_ra>
// kernel: tpu_custom_call.1
= control target key start
LH: loop header
LB: loop body
LE: loop exit
PB: predicated region body
PF: predicated region fallthrough
CT: control target
= control target key end

     0   :  { %9 = vsyncpa [#allocation3], 0  ;;  %s14706_s0 = inlined_call_operand.vmem [shape: f32[2,18,18,512], index: 0, kind: input, shape index: {}]   ;;  %s14707_s1 = inlined_call_operand.vmem [shape: bf16[512,128], index: 1, kind: input, shape index: {}]   ;;  %s14708_s2 = inlined_call_operand.vmem [shape: bf16[1152,128], index: 2, kind: input, shape index: {}]   ;;  %s14709_s3 = inlined_call_operand.vmem [shape: bf16[128,512], index: 3, kind: input, shape index: {}]   ;;  %s14710_s4 = inlined_call_operand.hbm [shape: f32[2,16,16,512], index: 4, kind: output, shape index: {}]  }
   0x1   :  { %11 = vsyncpa [#allocation3 + $0x1], 0  ;;  %s11323_s15 = smov 0   ;;  %s11325_s16 = smov 0  }
   0x2   :  { %s11327_s17 = smov 0   ;;  %s11329_s18 = smov 0  }
   0x3 LB: > { %s11344_s19 = sadd.s32 4294967295, %s11291_s18   ;;  %s9881_s20 = sadd.s32 4294967294, %s11291_s18   ;;  %s11291_s18 = sphi %s11329_s18, %s14817_s18   ;;  %s11287_s17 = sphi %s11327_s17, %s14816_s17   ;;  %s11283_s16 = sphi %s11325_s16, %s14815_s16   ;;  %s11279_s15 = sphi %s11323_s15, %s14814_s15  }
   0x4   : > { %s11348_s21 = sadd.s32 1, %s11291_s18   ;;  %s113_s22 = sadd.s32 1, %s11287_s17 }
   0x5   : > { %s110_s23 = ssub.s32 %s11291_s18, %s11348_s21  ;;  %p123_p0 = scmp.ne.s32.totalorder %s11287_s17, %s11283_s16 }
   0x6   : > { %p111_p1 = scmp.eq.s32.totalorder %s110_s23, 0  ;;  %p124_p2 = scmp.eq.s32.totalorder %s11344_s19, 1 }
   0x7   : > { %p129_p3 = scmp.ne.s32.totalorder %s11283_s16, %s11279_s15  ;;  %p130_p4 = scmp.eq.s32.totalorder %s9881_s20, 1 }
   0x8   : > { %s11359_s24 = scalar_select %p111_p1, %s11287_s17, %s113_s22  }
   0x9   : > { %p11361_p5 = por %p124_p2, %p123_p0  ;;  %p11365_p6 = por %p130_p4, %p129_p3 }
   0xa   : > { %p9884_p7 = scmp.ge.s32.totalorder %s11291_s18, 1  ;;  %p165_p8 = scmp.lt.s32.totalorder %s11291_s18, 3 }
   0xc   : > { %p166_p9 = pnand %p9884_p7, %p165_p8 }
   0xe   : > { %169 = sbr.rel (%p166_p9) target bundleno = 1165 (0x48d), region = 36 }
  0x13   : > { %v10699_v0 = vld [vmem:[%s14707_s1 + $0x38] sm:$0xff]   ;;  %v14711_v1 = vmov 0   ;;  %v10701_v3 = vld [vmem:[%s14707_s1 + $0x30] sm:$0xff]   ;;  %v10703_v5 = vld [vmem:[%s14707_s1 + $0x28] sm:$0xff]   ;;  %p191_p10 = scmp.lt.s32.totalorder %s11344_s19, 1  ;;  %v636_v17 = vlaneseq  ;;  %vm6051_vm0 = vcmask 1046528  }
  0x14   : > { %4193 = vmatprep.subr.bf16.mxu0 %v14711_v1  ;;  %4393 = vmatprep.subr.bf16.mxu1 %v14711_v1  ;;  %v10700_v2 = vld [vmem:[%s14707_s1 + $0xb8] sm:$0xff]   ;;  %v10702_v4 = vld [vmem:[%s14707_s1 + $0xb0] sm:$0xff]   ;;  %v10704_v6 = vld [vmem:[%s14707_s1 + $0xa8] sm:$0xff]   ;;  %v11294_v24 = vmov 1983009808   ;;  %s188_s29 = sand.u32 1, %s11283_s16  }
  0x15   : > { %4194 = vmatpush1.bf16.msra.mxu0 %v10699_v0  ;;  %4394 = vmatpush1.bf16.msra.mxu1 %v10700_v2  ;;  %v10705_v7 = vld [vmem:[%s14707_s1 + $0x20] sm:$0xff]   ;;  %v10707_v9 = vld [vmem:[%s14707_s1 + $0x18] sm:$0xff]   ;;  %v10709_v11 = vld [vmem:[%s14707_s1 + $0x10] sm:$0xff]   ;;  %s192_s10 = scalar_select %p191_p10, %s11344_s19, 1  ;;  %v634_v25 = vunpack.c.l.s4 %v11294_v24  ;;  %v637_v26 = vshrl.u32 %v636_v17, 7 }
  0x16   : > { %4195 = vmatprep.subr.bf16.mxu0 %v14711_v1  ;;  %4395 = vmatprep.subr.bf16.mxu1 %v14711_v1  ;;  %v10706_v8 = vld [vmem:[%s14707_s1 + $0xa0] sm:$0xff]   ;;  %v10708_v10 = vld [vmem:[%s14707_s1 + $0x98] sm:$0xff]   ;;  %v10710_v12 = vld [vmem:[%s14707_s1 + $0x90] sm:$0xff]   ;;  %s13994_s30 = sshll.u32 %s188_s29, 10  ;;  %s11295_s12 = smov [#allocation2]  }
  0x17   : > { %v10711_v13 = vld [vmem:[%s14707_s1 + $0x8] sm:$0xff]   ;;  %v10713_v15 = vld [vmem:[%s14707_s1] sm:$0xff]   ;;  %s10655_s20 = smul.u32 1728, %s192_s10  ;;  %v10715_v18 = vld [vmem:[%s14707_s1 + $0x78] sm:$0xff]   ;;  %v635_v29 = vunpack.c.0.s8 %v634_v25  ;;  %s14045_s6 = scalar_lea.vmem [#allocation2], %s13994_s30 }
  0x18   : > { %v10712_v14 = vld [vmem:[%s14707_s1 + $0x88] sm:$0xff]   ;;  %v10714_v16 = vld [vmem:[%s14707_s1 + $0x80] sm:$0xff]   ;;  %v10716_v19 = vld [vmem:[%s14707_s1 + $0xf8] sm:$0xff]   ;;  %s9819_s7 = sshll.u32 %s14045_s6, 4  ;;  %s11235_s13 = sshll.u32 %s11295_s12, 4  ;;  %s14658_s7 = int_to_ptr.vmem [resolvable:$true] %s9819_s7  ;;  %s11236_s13 = int_to_ptr.vmem [resolvable:$false] %s11235_s13 }
  0x19   : > { %4196 = vmatpush1.bf16.msra.mxu0 %v10701_v3  ;;  %4396 = vmatpush1.bf16.msra.mxu1 %v10702_v4  ;;  %s11443_s5 = scalar_lea.vmem %s14706_s0, %s10655_s20  ;;  %v10717_v20 = vld [vmem:[%s14707_s1 + $0x70] sm:$0xff]   ;;  %v11465_v33 = vsub.s32 %v635_v29, %v637_v26  ;;  %v10719_v35 = vld [vmem:[%s14707_s1 + $0x68] sm:$0xff]   ;;  %v10721_v49 = vld [vmem:[%s14707_s1 + $0x60] sm:$0xff]   ;;  %s11231_s11 = scalar_lea.vmem %s14658_s7, 16384 }
  0x1a   : > { %4197 = vmatprep.subr.bf16.mxu0 %v14711_v1  ;;  %4397 = vmatprep.subr.bf16.mxu1 %v14711_v1  ;;  %v10718_v21 = vld [vmem:[%s14707_s1 + $0xf0] sm:$0xff]   ;;  %v10731_v22 = vld [vmem:[%s11443_s5] ss:$8 sps:$4 sm:$0xff]   ;;  %v10733_v23 = vld [vmem:[%s11443_s5 + $0x4] ss:$8 sps:$4 sm:$0xff]   ;;  %p11232_p11 = scmp.ne.s32.totalorder %s14658_s7, %s11231_s11  ;;  %s11237_s14 = scalar_lea.vmem %s11236_s13, 32768 }
  0x1b   : > { %v10734_v27 = vld [vmem:[%s11443_s5 + $0x20] ss:$8 sps:$4 sm:$0xff]   ;;  %v10736_v28 = vld [vmem:[%s11443_s5 + $0x24] ss:$8 sps:$4 sm:$0xff]   ;;  %v10737_v30 = vld [vmem:[%s11443_s5 + $0x10] ss:$8 sps:$4 sm:$0xff]   ;;  %v639_v37 = vrot.slane %v10731_v22, %v11465_v33  ;;  %v646_v38 = vrot.slane %v10733_v23, %v11465_v33  ;;  %p11238_p0 = scmp.lt.s32.totalorder %s14658_s7, %s11236_s13  ;;  %p11239_p1 = scmp.lt.s32.totalorder %s11237_s14, %s11231_s11 }
  0x1c   : > { %v10739_v31 = vld [vmem:[%s11443_s5 + $0x14] ss:$8 sps:$4 sm:$0xff]   ;;  %v10740_v32 = vld [vmem:[%s11443_s5 + $0x30] ss:$8 sps:$4 sm:$0xff]   ;;  %v10720_v36 = vld [vmem:[%s14707_s1 + $0xe8] sm:$0xff]   ;;  %v675_v39 = vrot.slane %v10734_v27, %v11465_v33  ;;  %v682_v40 = vrot.slane %v10736_v28, %v11465_v33  ;;  %v653_v41 = vrot.slane %v10737_v30, %v11465_v33  ;;  %p11233_p12 = pnand %p11232_p11, %p11361_p5 }
  0x1d   : > { %4198 = vmatpush1.bf16.msra.mxu0 %v10703_v5  ;;  %4398 = vmatpush1.bf16.msra.mxu1 %v10704_v6  ;;  %v10742_v34 = vld [vmem:[%s11443_s5 + $0x34] ss:$8 sps:$4 sm:$0xff]   ;;  %v660_v42 = vrot.slane %v10739_v31, %v11465_v33  ;;  %v689_v43 = vrot.slane %v10740_v32, %v11465_v33  ;;  %v10743_v44 = vld [vmem:[%s11443_s5 + $0x40] ss:$8 sps:$4 sm:$0x33]   ;;  %v2241_v45 = vrot.slane %v639_v37, %v11465_v33  ;;  %p11240_p2 = por %p11239_p1, %p11238_p0 }
  0x1e   : > { %4199 = vmatprep.subr.bf16.mxu0 %v14711_v1  ;;  %4399 = vmatprep.subr.bf16.mxu1 %v14711_v1  ;;  %v2255_v46 = vrot.slane %v646_v38, %v11465_v33  ;;  %v2277_v47 = vrot.slane %v675_v39, %v11465_v33  ;;  %v696_v48 = vrot.slane %v10742_v34, %v11465_v33  ;;  %v209_v54 = vld [vmem:[%s11443_s5 + $0x60] sm:$0xff]  ;;  %v210_v55 = vld [vmem:[%s11443_s5 + $0x68] sm:$0xff]  ;;  %v211_v60 = vld [vmem:[%s11443_s5 + $0x70] sm:$0xff]  ;;  %p11234_p13 = pneg %p11233_p12 }
  0x1f   : > { %v2291_v50 = vrot.slane %v682_v40, %v11465_v33  ;;  %v2248_v51 = vrot.slane %v653_v41, %v11465_v33  ;;  %v2262_v52 = vrot.slane %v660_v42, %v11465_v33  ;;  %v2284_v53 = vrot.slane %v689_v43, %v11465_v33  ;;  %v10722_v56 = vld [vmem:[%s14707_s1 + $0xe0] sm:$0xff]   ;;  %v212_v61 = vld [vmem:[%s11443_s5 + $0x78] sm:$0xff]  ;;  %v10725_v28 = vld [vmem:[%s14707_s1 + $0x50] sm:$0xff]  }
  0x20   : > { %v2264_v57 = vcombine.high %v2241_v45, %v2255_v46  ;;  %v2298_v58 = vrot.slane %v696_v48, %v11465_v33  ;;  %v2263_v59 = vcombine.low %v2241_v45, %v2255_v46  ;;  %v10723_v3 = vld [vmem:[%s14707_s1 + $0x58] sm:$0xff]   ;;  %v213_v6 = vld [vmem:[%s11443_s5 + $0x80] sm:$0xff]  ;;  %v10727_v48 = vld [vmem:[%s14707_s1 + $0x48] sm:$0xff]   ;;  %p11241_p3 = pnand %p11240_p2, %p11234_p13 }
  0x21   : > { %4200 = vmatpush1.bf16.msra.mxu0 %v10705_v7  ;;  %4400 = vmatpush1.bf16.msra.mxu1 %v10706_v8  ;;  %v2300_v62 = vcombine.high %v2277_v47, %v2291_v50  ;;  %v2266_v63 = vcombine.high %v2248_v51, %v2262_v52  ;;  %v2299_v0 = vcombine.low %v2277_v47, %v2291_v50  ;;  %v214_v7 = vld [vmem:[%s11443_s5 + $0x88] sm:$0xff]  ;;  %v10724_v17 = vld [vmem:[%s14707_s1 + $0xd8] sm:$0xff]   ;;  %v217_v34 = vld [vmem:[%s11443_s5 + $0xa0] sm:$0x3] }
  0x22   : > { %4201 = vmatprep.subr.bf16.mxu0 %v14711_v1  ;;  %4401 = vmatprep.subr.bf16.mxu1 %v14711_v1  ;;  %v2265_v2 = vcombine.low %v2248_v51, %v2262_v52  ;;  %v2302_v4 = vcombine.high %v2284_v53, %v2298_v58  ;;  %v2301_v5 = vcombine.low %v2284_v53, %v2298_v58  ;;  %v10728_v53 = vld [vmem:[%s14707_s1 + $0xc8] sm:$0xff]  }
  0x23   : > { %v709_v8 = vrot.slane %v10743_v44, %v11465_v33  ;;  %v754_v25 = vcombine.low %v213_v6, %v214_v7  ;;  %v755_v26 = vcombine.high %v213_v6, %v214_v7  ;;  %v10729_v6 = vld [vmem:[%s14707_s1 + $0x40] sm:$0xff]  }
  0x25   : > { %4202 = vmatpush1.bf16.msra.mxu0 %v10707_v9  ;;  %4402 = vmatpush1.bf16.msra.mxu1 %v10708_v10  ;;  %v718_v9 = vcombine.low %v209_v54, %v210_v55  ;;  %v3854_v10 = vpack.c.bf16 %v2300_v62, %v2264_v57  ;;  %v764_v38 = vrot.slane %v754_v25, %v11465_v33  ;;  %v222_v62 = vld [vmem:[%s11443_s5 + $0xc8] sm:$0xff] }
  0x26   : > { %4203 = vmatprep.subr.bf16.mxu0 %v14711_v1  ;;  %4403 = vmatprep.subr.bf16.mxu1 %v14711_v1  ;;  %v771_v39 = vrot.slane %v755_v26, %v11465_v33  ;;  %v220_v26 = vld [vmem:[%s11443_s5 + $0xb8] sm:$0x3] }
  0x27   : > { %4225 = vmatprep.mubr.bf16.mxu0 %v3854_v10 }
  0x29   : > { %4204 = vmatpush1.bf16.msra.mxu0 %v10709_v11  ;;  %4404 = vmatpush1.bf16.msra.mxu1 %v10710_v12  ;;  %v11511_v11 = vpack.c.bf16 %v2299_v0, %v2263_v59  ;;  %v215_v12 = vld [vmem:[%s11443_s5 + $0x90] sm:$0xff] }
  0x2a   : > { %4205 = vmatprep.subr.bf16.mxu0 %v14711_v1  ;;  %4405 = vmatprep.subr.bf16.mxu1 %v14711_v1 }
  0x2d   : > { %4206 = vmatpush1.bf16.msra.mxu0 %v10711_v13  ;;  %4406 = vmatpush1.bf16.msra.mxu1 %v10712_v14  ;;  %v216_v13 = vld [vmem:[%s11443_s5 + $0x98] sm:$0xff]  ;;  %v719_v14 = vcombine.high %v209_v54, %v210_v55 }
  0x2e   : > { %4207 = vmatprep.subr.bf16.mxu0 %v14711_v1  ;;  %4407 = vmatprep.subr.bf16.mxu1 %v14711_v1  ;;  %v756_v27 = vcombine.low %v215_v12, %v216_v13  ;;  %v757_v32 = vcombine.high %v215_v12, %v216_v13  ;;  %v10730_v12 = vld [vmem:[%s14707_s1 + $0xc0] sm:$0xff]  }
  0x2f   : > { %v735_v22 = vrot.slane %v719_v14, %v11465_v33 }
  0x30   : > { %v778_v40 = vrot.slane %v756_v27, %v11465_v33  ;;  %v11543_v45 = vrot.slane %v757_v32, %v11465_v33  ;;  %v223_v27 = vld [vmem:[%s11443_s5 + $0xd0] sm:$0xff] }
  0x31   : > { %4208 = vmatpush1.bf16.msra.mxu0 %v10713_v15  ;;  %4408 = vmatpush1.bf16.msra.mxu1 %v10714_v16  ;;  %v720_v15 = vcombine.low %v211_v60, %v212_v61  ;;  %v10751_v16 = vld [vmem:[%s11443_s5 + $0x50] ss:$8 sps:$4 sm:$0x33]  }
  0x32   : > { %4209 = vmatprep.subr.bf16.mxu0 %v14711_v1  ;;  %4409 = vmatprep.subr.bf16.mxu1 %v14711_v1  ;;  %v716_v31 = vrot.slane %v10751_v16, %v11465_v33  ;;  %v786_v51 = vcombine.low %v764_v38, %v778_v40  ;;  %v788_v55 = vcombine.low %v771_v39, %v11543_v45 }
  0x33   : > { %v742_v23 = vrot.slane %v720_v15, %v11465_v33 }
  0x35   : > { %4210 = vmatpush2.bf16.msra.mxu0 %v10715_v18  ;;  %4410 = vmatpush2.bf16.msra.mxu1 %v10716_v19  ;;  %v3856_v18 = vpack.c.bf16 %v2302_v4, %v2266_v63  ;;  %v11520_v19 = vpack.c.bf16 %v2301_v5, %v2265_v2  ;;  %v9888_v46 = vcombine.low %v716_v31, %v742_v23  ;;  %v11561_v2 = vld [vmem:[%s11443_s5 + $0xe0] sm:$0xff] }
  0x36   : > { %4211 = vmatprep.subr.bf16.mxu0 %v14711_v1  ;;  %4411 = vmatprep.subr.bf16.mxu1 %v14711_v1  ;;  %v9894_v63 = vcombine.high %v778_v40, %v788_v55  ;;  %v789_v4 = vcombine.high %v771_v39, %v11543_v45 }
  0x37   : > { %4425 = vmatprep.mubr.bf16.mxu1 %v3856_v18 }
  0x38   : > { %v2370_v13 = vrot.slane %v9894_v63, %v11465_v33 }
  0x39   : > { %4212 = vmatpush2.bf16.msra.mxu0 %v10717_v20  ;;  %4412 = vmatpush2.bf16.msra.mxu1 %v10718_v21  ;;  %v721_v20 = vcombine.high %v211_v60, %v212_v61  ;;  %v728_v21 = vrot.slane %v718_v9, %v11465_v33  ;;  %v221_v61 = vld [vmem:[%s11443_s5 + $0xc0] sm:$0xff] }
  0x3a   : > { %4213 = vmatprep.subr.bf16.mxu0 %v14711_v1  ;;  %4413 = vmatprep.subr.bf16.mxu1 %v14711_v1  ;;  %v807_v14 = vcombine.low %v221_v61, %v222_v62  ;;  %v808_v15 = vcombine.high %v221_v61, %v222_v62 }
  0x3b   : > { %v749_v24 = vrot.slane %v721_v20, %v11465_v33  ;;  %v751_v29 = vcombine.high %v728_v21, %v742_v23  ;;  %v9887_v30 = vcombine.low %v709_v8, %v728_v21  ;;  %v219_v21 = vld [vmem:[%s11443_s5 + $0xb0] sm:$0x3] }
  0x3c   : > { %v824_v25 = vrot.slane %v808_v15, %v11465_v33 }
  0x3d   : > { %4214 = vmatpush2.bf16.msra.mxu0 %v10719_v35  ;;  %4414 = vmatpush2.bf16.msra.mxu1 %v10720_v36  ;;  %v218_v35 = vld [vmem:[%s11443_s5 + $0xa8] sm:$0x3]  ;;  %v10726_v36 = vld [vmem:[%s14707_s1 + $0xd0] sm:$0xff]   ;;  %v753_v37 = vcombine.high %v735_v22, %v749_v24  ;;  %v9889_v41 = vcombine.low %v751_v29, %v735_v22  ;;  %v2313_v42 = vrot.slane %v9887_v30, %v11465_v33 }
  0x3e   : > { %4215 = vmatprep.subr.bf16.mxu0 %v14711_v1  ;;  %4415 = vmatprep.subr.bf16.mxu1 %v14711_v1  ;;  %v752_v43 = vcombine.low %v735_v22, %v749_v24  ;;  %v790_v47 = vcombine.low %v217_v34, %v218_v35  ;;  %v9892_v60 = vcombine.high %v749_v24, %v786_v51  ;;  %v11593_v34 = vld [vmem:[%s11443_s5 + $0xf0] sm:$0xff]  ;;  %v11596_v35 = vld [vmem:[%s11443_s5 + $0xf8] sm:$0xff] }
  0x3f   : > { %v9891_v44 = vcombine.low %v753_v37, %v764_v38  ;;  %v2327_v50 = vrot.slane %v9889_v41, %v11465_v33  ;;  %v817_v24 = vrot.slane %v807_v14, %v11465_v33  ;;  %v791_v41 = vcombine.low %v219_v21, %v220_v26 }
  0x40   : > { %v9890_v52 = vcombine.high %v742_v23, %v752_v43  ;;  %v11568_v5 = vrot.slane %v790_v47, %v11465_v33  ;;  %v2356_v9 = vrot.slane %v9892_v60, %v11465_v33 }
  0x41   : > { %4216 = vmatpush2.bf16.msra.mxu0 %v10721_v49  ;;  %4416 = vmatpush2.bf16.msra.mxu1 %v10722_v56  ;;  %v787_v49 = vcombine.high %v764_v38, %v778_v40  ;;  %v2349_v54 = vrot.slane %v9891_v44, %v11465_v33  ;;  %v2320_v56 = vrot.slane %v9888_v46, %v11465_v33 }
  0x42   : > { %4217 = vmatprep.subr.bf16.mxu0 %v14711_v1  ;;  %4417 = vmatprep.subr.bf16.mxu1 %v14711_v1  ;;  %v2336_v57 = vcombine.high %v2313_v42, %v2327_v50  ;;  %v2334_v59 = vrot.slane %v9890_v52, %v11465_v33  ;;  %v2335_v0 = vcombine.low %v2313_v42, %v2327_v50 }
  0x43   : > { %v9893_v58 = vcombine.low %v787_v49, %v771_v39  ;;  %v9895_v20 = vcombine.low %v789_v4, %v11568_v5  ;;  %v2374_v22 = vcombine.high %v2356_v9, %v2370_v13  ;;  %v2373_v23 = vcombine.low %v2356_v9, %v2370_v13  ;;  %v230_v49 = vld [vmem:[%s11443_s5 + $0x108] sm:$0x3]  ;;  %v11623_v4 = vld [vmem:[%s11443_s5 + $0x140] sm:$0xff] }
  0x44   : > { %v2338_v8 = vcombine.high %v2320_v56, %v2334_v59  ;;  %v2337_v10 = vcombine.low %v2320_v56, %v2334_v59  ;;  %v2399_v38 = vrot.slane %v817_v24, %v11465_v33  ;;  %v2421_v39 = vrot.slane %v824_v25, %v11465_v33  ;;  %v236_v59 = vld [vmem:[%s11443_s5 + $0x138] sm:$0xff] }
  0x45   : > { %4218 = vmatpush2.bf16.msra.mxu0 %v10723_v3  ;;  %4418 = vmatpush2.bf16.msra.mxu1 %v10724_v17  ;;  %v11564_v3 = vld [vmem:[%s11443_s5 + $0xe8] sm:$0xff]  ;;  %v2363_v7 = vrot.slane %v9893_v58, %v11465_v33  ;;  %v2385_v32 = vrot.slane %v9895_v20, %v11465_v33  ;;  %v845_v46 = vcombine.low %v11593_v34, %v11596_v35  ;;  %v235_v58 = vld [vmem:[%s11443_s5 + $0x130] sm:$0xff]  ;;  %v232_v24 = vld [vmem:[%s11443_s5 + $0x118] sm:$0x3] }
  0x46   : > { %4219 = vmatprep.subr.bf16.mxu0 %v14711_v1  ;;  %4419 = vmatprep.subr.bf16.mxu1 %v14711_v1  ;;  %v843_v18 = vcombine.low %v11561_v2, %v11564_v3  ;;  %v3859_v37 = vpack.c.bf16 %v2373_v23, %v2337_v10  ;;  %v844_v50 = vcombine.high %v11561_v2, %v11564_v3  ;;  %v231_v23 = vld [vmem:[%s11443_s5 + $0x110] sm:$0x3] }
  0x47   : > { %v2372_v16 = vcombine.high %v2349_v54, %v2363_v7  ;;  %v2371_v17 = vcombine.low %v2349_v54, %v2363_v7  ;;  %v2408_v44 = vcombine.high %v2385_v32, %v2399_v38  ;;  %v2407_v47 = vcombine.low %v2385_v32, %v2399_v38  ;;  %v234_v54 = vld [vmem:[%s11443_s5 + $0x128] sm:$0xff] }
  0x48   : > { %v853_v31 = vrot.slane %v843_v18, %v11465_v33  ;;  %v805_v52 = vrot.slane %v791_v41, %v11465_v33  ;;  %v867_v56 = vrot.slane %v845_v46, %v11465_v33  ;;  %v898_v10 = vcombine.low %v235_v58, %v236_v59  ;;  %v242_v46 = vld [vmem:[%s11443_s5 + $0x168] sm:$0x3] }
  0x49   : > { %4220 = vmatpush2.bf16.msra.mxu0 %v10725_v28  ;;  %4420 = vmatpush2.bf16.msra.mxu1 %v10726_v36  ;;  %v224_v28 = vld [vmem:[%s11443_s5 + $0xd8] sm:$0xff]  ;;  %v3858_v29 = vpack.c.bf16 %v2372_v16, %v2336_v57  ;;  %v3857_v30 = vpack.c.bf16 %v2371_v17, %v2335_v0  ;;  %v3860_v36 = vpack.c.bf16 %v2374_v22, %v2338_v8 }
  0x4a   : > { %4221 = vmatprep.subr.bf16.mxu0 %v14711_v1  ;;  %4421 = vmatprep.subr.bf16.mxu1 %v14711_v1  ;;  %v2435_v40 = vrot.slane %v853_v31, %v11465_v33  ;;  %v809_v42 = vcombine.low %v223_v27, %v224_v28  ;;  %v810_v43 = vcombine.high %v223_v27, %v224_v28 }
  0x4b   : > { %v806_v61 = vcombine.low %v11568_v5, %v805_v52  ;;  %v2442_v2 = vrot.slane %v867_v56, %v11465_v33  ;;  %v899_v14 = vcombine.high %v235_v58, %v236_v59  ;;  %v920_v18 = vrot.slane %v898_v10, %v11465_v33 }
  0x4c   : > { %v2444_v51 = vcombine.high %v2421_v39, %v2435_v40  ;;  %v838_v55 = vrot.slane %v810_v43, %v11465_v33  ;;  %v2443_v57 = vcombine.low %v2421_v39, %v2435_v40  ;;  %v846_v25 = vcombine.high %v11593_v34, %v11596_v35  ;;  %v241_v40 = vld [vmem:[%s11443_s5 + $0x160] sm:$0x3] }
  0x4d   : > { %4222 = vmatpush2.bf16.msra.mxu0 %v10727_v48  ;;  %4422 = vmatpush2.bf16.msra.mxu1 %v10728_v53  ;;  %v229_v48 = vld [vmem:[%s11443_s5 + $0x100] sm:$0x3]  ;;  %v9896_v8 = vcombine.high %v11543_v45, %v806_v61  ;;  %v927_v20 = vrot.slane %v899_v14, %v11465_v33  ;;  %v968_v58 = vcombine.low %v241_v40, %v242_v46  ;;  %v10852_v14 = vld [vmem:[%s14708_s2 + $0x38] sm:$0xff]  }
  0x4e   : > { %4223 = vmatprep.subr.bf16.mxu0 %v14711_v1  ;;  %4423 = vmatprep.subr.bf16.mxu1 %v14711_v1  ;;  %v233_v53 = vld [vmem:[%s11443_s5 + $0x120] sm:$0xff]  ;;  %v3862_v60 = vpack.c.bf16 %v2444_v51, %v2408_v44  ;;  %v879_v63 = vcombine.low %v229_v48, %v230_v49  ;;  %v2428_v0 = vrot.slane %v838_v55, %v11465_v33  ;;  %v246_v48 = vld [vmem:[%s11443_s5 + $0x188] sm:$0xff] }
  0x4f   : > { %v3861_v3 = vpack.c.bf16 %v2443_v57, %v2407_v47  ;;  %v896_v7 = vcombine.low %v233_v53, %v234_v54  ;;  %v897_v5 = vcombine.high %v233_v53, %v234_v54  ;;  %v2392_v16 = vrot.slane %v9896_v8, %v11465_v33  ;;  %v245_v47 = vld [vmem:[%s11443_s5 + $0x180] sm:$0xff] }
  0x50   : > { %v887_v9 = vrot.slane %v879_v63, %v11465_v33  ;;  %v2445_v13 = vcombine.low %v2428_v0, %v2442_v2  ;;  %v874_v38 = vrot.slane %v846_v25, %v11465_v33  ;;  %v985_v59 = vcombine.low %v245_v47, %v246_v48  ;;  %v243_v63 = vld [vmem:[%s11443_s5 + $0x170] sm:$0x3]  ;;  %v249_v40 = vld [vmem:[%s11443_s5 + $0x1a0] sm:$0xff] }
  0x51   : > { %4224 = vmatpush2.bf16.msra.mxu0 %v10729_v6  ;;  %4424 = vmatpush2.bf16.msra.mxu1 %v10730_v12  ;;  %v11626_v6 = vld [vmem:[%s11443_s5 + $0x148] sm:$0xff]  ;;  %v2446_v12 = vcombine.high %v2428_v0, %v2442_v2  ;;  %v906_v15 = vrot.slane %v896_v7, %v11465_v33  ;;  %v913_v17 = vrot.slane %v897_v5, %v11465_v33  ;;  %v244_v0 = vld [vmem:[%s11443_s5 + $0x178] sm:$0x3]  ;;  %v247_v2 = vld [vmem:[%s11443_s5 + $0x190] sm:$0xff] }
  0x52   : > { %v932_v45 = vcombine.low %v11623_v4, %v11626_v6  ;;  %v2464_v51 = vrot.slane %v874_v38, %v11465_v33  ;;  %v933_v55 = vcombine.high %v11623_v4, %v11626_v6  ;;  %v248_v7 = vld [vmem:[%s11443_s5 + $0x198] sm:$0xff]  ;;  %v969_v25 = vcombine.low %v243_v63, %v244_v0 }
  0x53   : > { %v9897_v21 = vcombine.low %v887_v9, %v906_v15  ;;  %v929_v28 = vcombine.high %v906_v15, %v920_v18  ;;  %v931_v31 = vcombine.high %v913_v17, %v927_v20  ;;  %v930_v43 = vcombine.low %v913_v17, %v927_v20 }
  0x54   : > { %4226 = vmatmul.mubr.bf16.vlgmr.msra.gmra.mxu0 %v11511_v11  ;;  %4426 = vmatmul.mubr.bf16.vlgmr.msra.gmra.mxu1 %v11520_v19  ;;  %v831_v11 = vrot.slane %v809_v42, %v11465_v33  ;;  %v860_v19 = vrot.slane %v844_v50, %v11465_v33  ;;  %v942_v32 = vrot.slane %v932_v45, %v11465_v33 }
  0x55   : > { %4233 = vmatprep.mubr.bf16.mxu0 %v3858_v29  ;;  %4433 = vmatprep.mubr.bf16.mxu1 %v3860_v36  ;;  %v239_v29 = vld [vmem:[%s11443_s5 + $0x150] sm:$0xff]  ;;  %v2471_v36 = vrot.slane %v9897_v21, %v11465_v33  ;;  %v9899_v35 = vcombine.low %v929_v28, %v913_v17  ;;  %v9900_v54 = vcombine.high %v920_v18, %v930_v43 }
  0x56   : > { %v2406_v62 = vrot.slane %v831_v11, %v11465_v33  ;;  %v2457_v22 = vrot.slane %v860_v19, %v11465_v33  ;;  %v9901_v42 = vcombine.low %v931_v31, %v942_v32  ;;  %v949_v9 = vrot.slane %v933_v55, %v11465_v33 }
  0x57   : > { %v2493_v49 = vrot.slane %v9899_v35, %v11465_v33  ;;  %v2500_v61 = vrot.slane %v9900_v54, %v11465_v33  ;;  %v995_v21 = vrot.slane %v985_v59, %v11465_v33  ;;  %v988_v38 = vcombine.high %v247_v2, %v248_v7 }
  0x58   : > { %v2410_v26 = vcombine.high %v2392_v16, %v2406_v62  ;;  %v2409_v27 = vcombine.low %v2392_v16, %v2406_v62  ;;  %v2480_v41 = vcombine.high %v2457_v22, %v2471_v36  ;;  %v2479_v52 = vcombine.low %v2457_v22, %v2471_v36 }
  0x59   : > { %v2507_v11 = vrot.slane %v9901_v42, %v11465_v33  ;;  %v983_v36 = vrot.slane %v969_v25, %v11465_v33  ;;  %v253_v42 = vld [vmem:[%s11443_s5 + $0x1c0] sm:$0x3] }
  0x5a   : > { %v3864_v39 = vpack.c.bf16 %v2446_v12, %v2410_v26  ;;  %v3863_v34 = vpack.c.bf16 %v2445_v13, %v2409_v27  ;;  %v976_v13 = vrot.slane %v968_v58, %v11465_v33  ;;  %v987_v26 = vcombine.low %v247_v2, %v248_v7  ;;  %v260_v58 = vld [vmem:[%s11443_s5 + $0x1f8] sm:$0xff]  ;;  %v261_v25 = vld [vmem:[%s11443_s5 + $0x200] sm:$0xff] }
  0x5b   : > { %v2516_v19 = vcombine.high %v2493_v49, %v2507_v11  ;;  %v2515_v62 = vcombine.low %v2493_v49, %v2507_v11  ;;  %v257_v49 = vld [vmem:[%s11443_s5 + $0x1e0] sm:$0xff] }
  0x5c   : > { %4234 = vmatmul.mubr.bf16.gmra.mxu0 %v3857_v30  ;;  %4434 = vmatmul.mubr.bf16.gmra.mxu1 %v3859_v37  ;;  %v240_v30 = vld [vmem:[%s11443_s5 + $0x158] sm:$0xff]  ;;  %v880_v37 = vcombine.low %v231_v23, %v232_v24  ;;  %v1009_v35 = vrot.slane %v987_v26, %v11465_v33  ;;  %v984_v46 = vcombine.low %v976_v13, %v983_v36  ;;  %v262_v26 = vld [vmem:[%s11443_s5 + $0x208] sm:$0xff] }
  0x5d   : > { %4241 = vmatprep.mubr.bf16.mxu0 %v3862_v60  ;;  %v934_v44 = vcombine.low %v239_v29, %v240_v30  ;;  %4441 = vmatprep.mubr.bf16.mxu1 %v3864_v39  ;;  %v935_v57 = vcombine.high %v239_v29, %v240_v30  ;;  %v3866_v5 = vpack.c.bf16 %v2516_v19, %v2480_v41  ;;  %v250_v41 = vld [vmem:[%s11443_s5 + $0x1a8] sm:$0xff] }
  0x5e   : > { %v894_v50 = vrot.slane %v880_v37, %v11465_v33  ;;  %v3865_v12 = vpack.c.bf16 %v2515_v62, %v2479_v52  ;;  %v2565_v30 = vrot.slane %v995_v21, %v11465_v33  ;;  %v2572_v52 = vrot.slane %v1009_v35, %v11465_v33  ;;  %v10879_v35 = vld [vmem:[%s14708_s2 + $0x70] sm:$0xff]  }
  0x5f   : > { %v956_v53 = vrot.slane %v934_v44, %v11465_v33  ;;  %v963_v4 = vrot.slane %v935_v57, %v11465_v33  ;;  %v259_v57 = vld [vmem:[%s11443_s5 + $0x1f0] sm:$0xff]  ;;  %v1021_v59 = vcombine.low %v249_v40, %v250_v41 }
  0x60   : > { %v9898_v56 = vcombine.low %v894_v50, %v920_v18  ;;  %v986_v18 = vcombine.high %v245_v47, %v246_v48  ;;  %v1016_v47 = vrot.slane %v988_v38, %v11465_v33  ;;  %v254_v48 = vld [vmem:[%s11443_s5 + $0x1c8] sm:$0x3] }
  0x61   : > { %v964_v60 = vcombine.low %v942_v32, %v956_v53  ;;  %v965_v6 = vcombine.high %v942_v32, %v956_v53  ;;  %v967_v17 = vcombine.high %v949_v9, %v963_v4  ;;  %v966_v23 = vcombine.low %v949_v9, %v963_v4  ;;  %v258_v50 = vld [vmem:[%s11443_s5 + $0x1e8] sm:$0xff] }
  0x62   : > { %v2478_v8 = vrot.slane %v9898_v56, %v11465_v33  ;;  %v9906_v55 = vcombine.high %v963_v4, %v984_v46  ;;  %v2586_v56 = vrot.slane %v1016_v47, %v11465_v33  ;;  %v1074_v62 = vcombine.low %v257_v49, %v258_v50 }
  0x63   : > { %v9902_v10 = vcombine.high %v927_v20, %v964_v60  ;;  %v9903_v22 = vcombine.low %v965_v6, %v949_v9  ;;  %v1002_v20 = vrot.slane %v986_v18, %v11465_v33  ;;  %v9905_v24 = vcombine.low %v967_v17, %v976_v13  ;;  %v252_v9 = vld [vmem:[%s11443_s5 + $0x1b8] sm:$0xff] }
  0x64   : > { %4242 = vmatmul.mubr.bf16.gmra.mxu0 %v3861_v3  ;;  %4442 = vmatmul.mubr.bf16.gmra.mxu1 %v3863_v34  ;;  %v10851_v3 = vld [vmem:[%s14708_s2 + $0x78] sm:$0xff]   ;;  %v2482_v15 = vcombine.high %v2464_v51, %v2478_v8  ;;  %v2481_v16 = vcombine.low %v2464_v51, %v2478_v8  ;;  %v9904_v37 = vcombine.high %v956_v53, %v966_v23  ;;  %v251_v8 = vld [vmem:[%s11443_s5 + $0x1b0] sm:$0xff] }
  0x65   : > { %10119 = vmatprep.subr.bf16.mxu0 %v10851_v3  ;;  %4249 = vmatprep.mubr.bf16.mxu0 %v3866_v5  ;;  %v2514_v45 = vrot.slane %v9902_v10, %v11465_v33  ;;  %v2529_v29 = vrot.slane %v9903_v22, %v11465_v33  ;;  %v2543_v31 = vrot.slane %v9905_v24, %v11465_v33 }
  0x66   : > { %10120 = vmatpush3.bf16.msra.mxu0 %v10852_v14  ;;  %10639 = vmatprep.subr.bf16.mxu1 %v10851_v3  ;;  %v2579_v32 = vrot.slane %v1002_v20, %v11465_v33  ;;  %v2536_v51 = vrot.slane %v9904_v37, %v11465_v33  ;;  %v1022_v60 = vcombine.high %v249_v40, %v250_v41  ;;  %v10880_v37 = vld [vmem:[%s14708_s2 + $0x30] sm:$0xff]  }
  0x67   : > { %v2518_v27 = vcombine.high %v2500_v61, %v2514_v45  ;;  %v2517_v28 = vcombine.low %v2500_v61, %v2514_v45  ;;  %10647 = vmatpush3.bf16.msra.mxu1 %v10852_v14  ;;  %v2552_v43 = vcombine.high %v2529_v29, %v2543_v31  ;;  %v2551_v11 = vcombine.low %v2529_v29, %v2543_v31  ;;  %v263_v31 = vld [vmem:[%s11443_s5 + $0x210] sm:$0xff] }
  0x68   : > { %v2588_v44 = vcombine.high %v2565_v30, %v2579_v32  ;;  %v2587_v53 = vcombine.low %v2565_v30, %v2579_v32  ;;  %v1057_v61 = vcombine.low %v253_v42, %v254_v48  ;;  %v2550_v63 = vrot.slane %v9906_v55, %v11465_v33  ;;  %v264_v32 = vld [vmem:[%s11443_s5 + $0x218] sm:$0xff]  ;;  %10121 = vmatprep.subr.bf16.mxu0 %v10879_v35 }
  0x69   : > { %v3868_v39 = vpack.c.bf16 %v2518_v27, %v2482_v15  ;;  %v3867_v34 = vpack.c.bf16 %v2517_v28, %v2481_v16  ;;  %v2590_v0 = vcombine.high %v2572_v52, %v2586_v56  ;;  %v2589_v2 = vcombine.low %v2572_v52, %v2586_v56  ;;  %v255_v15 = vld [vmem:[%s11443_s5 + $0x1d0] sm:$0x3]  ;;  %v256_v16 = vld [vmem:[%s11443_s5 + $0x1d8] sm:$0x3]  ;;  %v266_v52 = vld [vmem:[%s11443_s5 + $0x228] sm:$0x3]  ;;  %10640 = vmatprep.subr.bf16.mxu1 %v10879_v35 }
  0x6a   : > { %v3870_v54 = vpack.c.bf16 %v2588_v44, %v2552_v43  ;;  %v3869_v19 = vpack.c.bf16 %v2587_v53, %v2551_v11  ;;  %v1031_v7 = vrot.slane %v1021_v59, %v11465_v33  ;;  %v1038_v4 = vrot.slane %v1022_v60, %v11465_v33  ;;  %10122 = vmatpush3.bf16.msra.mxu0 %v10880_v37 }
  0x6b   : > { %4449 = vmatprep.mubr.bf16.mxu1 %v3868_v39  ;;  %v1065_v6 = vrot.slane %v1057_v61, %v11465_v33  ;;  %v1075_v3 = vcombine.high %v257_v49, %v258_v50  ;;  %v1076_v5 = vcombine.low %v259_v57, %v260_v58  ;;  %v2554_v10 = vcombine.high %v2536_v51, %v2550_v63 }
  0x6c   : > { %4250 = vmatmul.mubr.bf16.gmra.mxu0 %v3865_v12  ;;  %4450 = vmatmul.mubr.bf16.gmra.mxu1 %v3867_v34  ;;  %v2553_v12 = vcombine.low %v2536_v51, %v2550_v63  ;;  %v1084_v13 = vrot.slane %v1074_v62, %v11465_v33  ;;  %v11702_v14 = vrot.slane %v1031_v7, %v11465_v33  ;;  %v265_v51 = vld [vmem:[%s11443_s5 + $0x220] sm:$0x3] }
  0x6d   : > { %4257 = vmatprep.mubr.bf16.mxu0 %v3870_v54  ;;  %v11707_v17 = vrot.slane %v1075_v3, %v11465_v33  ;;  %v1098_v18 = vrot.slane %v1076_v5, %v11465_v33  ;;  %v2615_v45 = vrot.slane %v1038_v4, %v11465_v33  ;;  %v1023_v21 = vcombine.low %v251_v8, %v252_v9  ;;  %v11750_v4 = vld [vmem:[%s11443_s5 + $0x250] sm:$0xff] }
  0x6e   : > { %v3872_v22 = vpack.c.bf16 %v2590_v0, %v2554_v10  ;;  %v3871_v23 = vpack.c.bf16 %v2589_v2, %v2553_v12  ;;  %v9907_v20 = vcombine.low %v1065_v6, %v1084_v13  ;;  %v1024_v24 = vcombine.high %v251_v8, %v252_v9  ;;  %10648 = vmatpush3.bf16.msra.mxu1 %v10880_v37  ;;  %v267_v8 = vld [vmem:[%s11443_s5 + $0x230] sm:$0x3]  ;;  %v268_v9 = vld [vmem:[%s11443_s5 + $0x238] sm:$0x3] }
  0x6f   : > { %v1107_v27 = vcombine.high %v1084_v13, %v1098_v18  ;;  %v2624_v28 = vcombine.high %v11702_v14, %v2615_v45  ;;  %v1045_v29 = vrot.slane %v1023_v21, %v11465_v33  ;;  %v1058_v30 = vcombine.low %v255_v15, %v256_v16  ;;  %v11753_v6 = vld [vmem:[%s11443_s5 + $0x258] sm:$0xff] }
  0x70   : > { %4457 = vmatprep.mubr.bf16.mxu1 %v3872_v22  ;;  %v2637_v36 = vrot.slane %v9907_v20, %v11465_v33  ;;  %v1052_v38 = vrot.slane %v1024_v24, %v11465_v33  ;;  %v1077_v39 = vcombine.high %v259_v57, %v260_v58  ;;  %v2623_v34 = vcombine.low %v11702_v14, %v2615_v45  ;;  %v11737_v57 = vld [vmem:[%s11443_s5 + $0x240] sm:$0xff]  ;;  %v11740_v58 = vld [vmem:[%s11443_s5 + $0x248] sm:$0xff] }
  0x71   : > { %v9909_v40 = vcombine.low %v1107_v27, %v11707_v17  ;;  %v1072_v41 = vrot.slane %v1058_v30, %v11465_v33  ;;  %v2608_v42 = vrot.slane %v1045_v29, %v11465_v33  ;;  %v1110_v43 = vcombine.low %v261_v25, %v262_v26  ;;  %v273_v29 = vld [vmem:[%s11443_s5 + $0x260] sm:$0xff]  ;;  %v274_v30 = vld [vmem:[%s11443_s5 + $0x268] sm:$0xff] }
  0x72   : > { %v1105_v44 = vrot.slane %v1077_v39, %v11465_v33  ;;  %v2622_v46 = vrot.slane %v1052_v38, %v11465_v33  ;;  %v1111_v47 = vcombine.high %v261_v25, %v262_v26  ;;  %v1112_v48 = vcombine.low %v263_v31, %v264_v32 }
  0x73   : > { %v2651_v49 = vrot.slane %v9909_v40, %v11465_v33  ;;  %v9908_v50 = vcombine.low %v1072_v41, %v1098_v18  ;;  %v1113_v11 = vcombine.high %v263_v31, %v264_v32  ;;  %v1120_v53 = vrot.slane %v1110_v43, %v11465_v33  ;;  %v277_v40 = vld [vmem:[%s11443_s5 + $0x280] sm:$0x3]  ;;  %v278_v41 = vld [vmem:[%s11443_s5 + $0x288] sm:$0x3] }
  0x74   : > { %4258 = vmatmul.mubr.bf16.gmra.mxu0 %v3869_v19  ;;  %4458 = vmatmul.mubr.bf16.gmra.mxu1 %v3871_v23  ;;  %v1108_v54 = vcombine.low %v11707_v17, %v1105_v44  ;;  %v2626_v55 = vcombine.high %v2608_v42, %v2622_v46  ;;  %v2625_v56 = vcombine.low %v2608_v42, %v2622_v46  ;;  %v11774_v42 = vld [vmem:[%s11443_s5 + $0x2a0] sm:$0xff]  ;;  %v11777_v43 = vld [vmem:[%s11443_s5 + $0x2a8] sm:$0xff] }
  0x75   : > { %v1109_v59 = vcombine.high %v11707_v17, %v1105_v44  ;;  %v2660_v19 = vcombine.high %v2637_v36, %v2651_v49  ;;  %v2644_v60 = vrot.slane %v9908_v50, %v11465_v33  ;;  %v2659_v61 = vcombine.low %v2637_v36, %v2651_v49  ;;  %v275_v49 = vld [vmem:[%s11443_s5 + $0x270] sm:$0xff]  ;;  %v276_v50 = vld [vmem:[%s11443_s5 + $0x278] sm:$0xff] }
  0x76   : > { %v1127_v62 = vrot.slane %v1111_v47, %v11465_v33  ;;  %v9910_v63 = vcombine.high %v1098_v18, %v1108_v54  ;;  %v1134_v0 = vrot.slane %v1112_v48, %v11465_v33  ;;  %v1141_v2 = vrot.slane %v1113_v11, %v11465_v33 }
  0x77   : > { %v1146_v7 = vcombine.low %v265_v51, %v266_v52  ;;  %v3874_v3 = vpack.c.bf16 %v2660_v19, %v2624_v28  ;;  %v3873_v5 = vpack.c.bf16 %v2659_v61, %v2623_v34  ;;  %v1163_v10 = vcombine.low %v11737_v57, %v11740_v58 }
  0x78   : > { %v9911_v12 = vcombine.low %v1109_v59, %v1120_v53  ;;  %v2658_v13 = vrot.slane %v9910_v63, %v11465_v33  ;;  %v1143_v14 = vcombine.high %v1120_v53, %v1134_v0  ;;  %v1145_v15 = vcombine.high %v1127_v62, %v1141_v2  ;;  %v279_v63 = vld [vmem:[%s11443_s5 + $0x290] sm:$0x3] }
  0x79   : > { %v1154_v16 = vrot.slane %v1146_v7, %v11465_v33  ;;  %4265 = vmatprep.mubr.bf16.mxu0 %v3874_v3  ;;  %v1173_v17 = vrot.slane %v1163_v10, %v11465_v33  ;;  %v1142_v45 = vcombine.low %v1120_v53, %v1134_v0  ;;  %v1144_v21 = vcombine.low %v1127_v62, %v1141_v2  ;;  %v284_v3 = vld [vmem:[%s11443_s5 + $0x2b8] sm:$0xff] }
  0x7a   : > { %v2673_v18 = vrot.slane %v9911_v12, %v11465_v33  ;;  %v2662_v22 = vcombine.high %v2644_v60, %v2658_v13  ;;  %v2661_v23 = vcombine.low %v2644_v60, %v2658_v13  ;;  %v9913_v20 = vcombine.low %v1143_v14, %v1127_v62 }
  0x7b   : > { %v9915_v24 = vcombine.low %v1145_v15, %v1154_v16  ;;  %v2723_v25 = vrot.slane %v1173_v17, %v11465_v33  ;;  %v1147_v26 = vcombine.low %v267_v8, %v268_v9  ;;  %v1165_v27 = vcombine.low %v11750_v4, %v11753_v6 }
  0x7c   : > { %4266 = vmatmul.mubr.bf16.gmra.mxu0 %v3873_v5  ;;  %v9912_v28 = vcombine.high %v1105_v44, %v1142_v45  ;;  %v3876_v31 = vpack.c.bf16 %v2662_v22, %v2626_v55  ;;  %v3875_v32 = vpack.c.bf16 %v2661_v23, %v2625_v56  ;;  %v2687_v36 = vrot.slane %v9913_v20, %v11465_v33 }
  0x7d   : > { %v2709_v38 = vrot.slane %v9915_v24, %v11465_v33  ;;  %v1161_v39 = vrot.slane %v1147_v26, %v11465_v33  ;;  %v1187_v34 = vrot.slane %v1165_v27, %v11465_v33  ;;  %v9914_v35 = vcombine.high %v1134_v0, %v1144_v21  ;;  %v280_v0 = vld [vmem:[%s11443_s5 + $0x298] sm:$0x3]  ;;  %v285_v27 = vld [vmem:[%s11443_s5 + $0x2c0] sm:$0xff] }
  0x7e   : > { %v2680_v37 = vrot.slane %v9912_v28, %v11465_v33  ;;  %4465 = vmatprep.mubr.bf16.mxu1 %v3876_v31  ;;  %v2696_v44 = vcombine.high %v2673_v18, %v2687_v36  ;;  %v2695_v47 = vcombine.low %v2673_v18, %v2687_v36  ;;  %v1164_v53 = vcombine.high %v11737_v57, %v11740_v58  ;;  %v283_v58 = vld [vmem:[%s11443_s5 + $0x2b0] sm:$0xff]  ;;  %v286_v28 = vld [vmem:[%s11443_s5 + $0x2c8] sm:$0xff] }
  0x7f   : > { %v2732_v46 = vcombine.high %v2709_v38, %v2723_v25  ;;  %v2731_v48 = vcombine.low %v2709_v38, %v2723_v25  ;;  %4466 = vmatmul.mubr.bf16.gmra.mxu1 %v3875_v32  ;;  %v1162_v51 = vcombine.low %v1154_v16, %v1161_v39  ;;  %v2694_v52 = vrot.slane %v9914_v35, %v11465_v33  ;;  %v287_v36 = vld [vmem:[%s11443_s5 + $0x2d0] sm:$0xff]  ;;  %v288_v38 = vld [vmem:[%s11443_s5 + $0x2d8] sm:$0xff] }
  0x80   : > { %v2730_v11 = vrot.slane %v1187_v34, %v11465_v33  ;;  %v1199_v56 = vcombine.low %v273_v29, %v274_v30  ;;  %v1200_v59 = vcombine.high %v273_v29, %v274_v30  ;;  %v1180_v62 = vrot.slane %v1164_v53, %v11465_v33 }
  0x81   : > { %v3878_v54 = vpack.c.bf16 %v2732_v46, %v2696_v44  ;;  %v3877_v55 = vpack.c.bf16 %v2731_v48, %v2695_v47  ;;  %v2698_v19 = vcombine.high %v2680_v37, %v2694_v52  ;;  %v9916_v60 = vcombine.high %v1141_v2, %v1162_v51  ;;  %v11830_v44 = vld [vmem:[%s14708_s2 + $0x60] sm:$0xff]  }
  0x82   : > { %v2697_v61 = vcombine.low %v2680_v37, %v2694_v52  ;;  %v1209_v7 = vrot.slane %v1199_v56, %v11465_v33  ;;  %v1216_v8 = vrot.slane %v1200_v59, %v11465_v33  ;;  %v1235_v9 = vcombine.low %v277_v40, %v278_v41  ;;  %v10899_v40 = vld [vmem:[%s14708_s2 + $0x68] sm:$0xff]  }
  0x83   : > { %4273 = vmatprep.mubr.bf16.mxu0 %v3878_v54  ;;  %v1252_v57 = vcombine.low %v11774_v42, %v11777_v43  ;;  %v2716_v5 = vrot.slane %v9916_v60, %v11465_v33  ;;  %v2745_v2 = vrot.slane %v1180_v62, %v11465_v33  ;;  %v1166_v10 = vcombine.high %v11750_v4, %v11753_v6  ;;  %v11825_v41 = vld [vmem:[%s14708_s2 + $0x28] sm:$0xff]   ;;  %v11845_v54 = vld [vmem:[%s14708_s2 + $0x58] sm:$0xff]  }
  0x84   : > { %4274 = vmatmul.mubr.bf16.gmra.mxu0 %v3877_v55  ;;  %v1201_v12 = vcombine.low %v275_v49, %v276_v50  ;;  %v1243_v13 = vrot.slane %v1235_v9, %v11465_v33  ;;  %v2759_v15 = vrot.slane %v1209_v7, %v11465_v33  ;;  %v2781_v16 = vrot.slane %v1216_v8, %v11465_v33  ;;  %v292_v7 = vld [vmem:[%s11443_s5 + $0x2f8] sm:$0x3] }
  0x85   : > { %v1262_v14 = vrot.slane %v1252_v57, %v11465_v33  ;;  %v2734_v17 = vcombine.high %v2716_v5, %v2730_v11  ;;  %v2733_v18 = vcombine.low %v2716_v5, %v2730_v11  ;;  %v1194_v45 = vrot.slane %v1166_v10, %v11465_v33  ;;  %10123 = vmatprep.subr.bf16.mxu0 %v10899_v40  ;;  %v294_v5 = vld [vmem:[%s11443_s5 + $0x308] sm:$0xff] }
  0x86   : > { %v1202_v21 = vcombine.high %v275_v49, %v276_v50  ;;  %v2768_v22 = vcombine.high %v2745_v2, %v2759_v15  ;;  %v1223_v6 = vrot.slane %v1201_v12, %v11465_v33  ;;  %v1236_v23 = vcombine.low %v279_v63, %v280_v0  ;;  %v11837_v50 = vld [vmem:[%s14708_s2 + $0x20] sm:$0xff]   ;;  %10124 = vmatpush3.bf16.msra.mxu0 %v11825_v41  ;;  %v291_v0 = vld [vmem:[%s11443_s5 + $0x2f0] sm:$0x3] }
  0x87   : > { %v9917_v4 = vcombine.low %v1243_v13, %v1262_v14  ;;  %v3880_v20 = vpack.c.bf16 %v2734_v17, %v2698_v19  ;;  %v3879_v24 = vpack.c.bf16 %v2733_v18, %v2697_v61  ;;  %v1254_v26 = vcombine.low %v283_v58, %v284_v3  ;;  %10125 = vmatprep.subr.bf16.mxu0 %v11830_v44 }
  0x88   : > { %v1230_v25 = vrot.slane %v1202_v21, %v11465_v33  ;;  %v1250_v30 = vrot.slane %v1236_v23, %v11465_v33  ;;  %v2752_v31 = vrot.slane %v1194_v45, %v11465_v33  ;;  %v2766_v32 = vrot.slane %v1223_v6, %v11465_v33  ;;  %10641 = vmatprep.subr.bf16.mxu1 %v10899_v40 }
  0x89   : > { %v2795_v29 = vrot.slane %v9917_v4, %v11465_v33  ;;  %4473 = vmatprep.mubr.bf16.mxu1 %v3880_v20  ;;  %v11814_v39 = vrot.slane %v1254_v26, %v11465_v33  ;;  %v2767_v35 = vcombine.low %v2745_v2, %v2759_v15  ;;  %v1253_v37 = vcombine.high %v11774_v42, %v11777_v43  ;;  %v289_v42 = vld [vmem:[%s11443_s5 + $0x2e0] sm:$0x3]  ;;  %v290_v43 = vld [vmem:[%s11443_s5 + $0x2e8] sm:$0x3] }
  0x8a   : > { %v2788_v34 = vrot.slane %v1230_v25, %v11465_v33  ;;  %4474 = vmatmul.mubr.bf16.gmra.mxu1 %v3879_v24  ;;  %v2770_v47 = vcombine.high %v2752_v31, %v2766_v32  ;;  %v2769_v49 = vcombine.low %v2752_v31, %v2766_v32  ;;  %v1255_v52 = vcombine.high %v283_v58, %v284_v3  ;;  %v293_v3 = vld [vmem:[%s11443_s5 + $0x300] sm:$0xff]  ;;  %v298_v26 = vld [vmem:[%s11443_s5 + $0x328] sm:$0xff] }
  0x8b   : > { %v2804_v46 = vcombine.high %v2781_v16, %v2795_v29  ;;  %v2803_v48 = vcombine.low %v2781_v16, %v2795_v29  ;;  %v9918_v51 = vcombine.low %v1250_v30, %v11814_v39  ;;  %v1269_v11 = vrot.slane %v1253_v37, %v11465_v33  ;;  %10126 = vmatpush3.bf16.msra.mxu0 %v11837_v50  ;;  %v297_v25 = vld [vmem:[%s11443_s5 + $0x320] sm:$0xff] }
  0x8c   : > { %v1285_v53 = vcombine.high %v1262_v14, %v11814_v39  ;;  %v1288_v59 = vcombine.low %v285_v27, %v286_v28  ;;  %v1289_v19 = vcombine.high %v285_v27, %v286_v28  ;;  %v1283_v61 = vrot.slane %v1255_v52, %v11465_v33  ;;  %v11861_v14 = vld [vmem:[%s14708_s2 + $0x18] sm:$0xff]   ;;  %10127 = vmatprep.subr.bf16.mxu0 %v11845_v54 }
  0x8d   : > { %v3882_v55 = vpack.c.bf16 %v2804_v46, %v2768_v22  ;;  %v3881_v56 = vpack.c.bf16 %v2803_v48, %v2767_v35  ;;  %v2802_v60 = vrot.slane %v9918_v51, %v11465_v33  ;;  %v1290_v62 = vcombine.low %v287_v36, %v288_v38  ;;  %10649 = vmatpush3.bf16.msra.mxu1 %v11825_v41 }
  0x8e   : > { %v1291_v63 = vcombine.high %v287_v36, %v288_v38  ;;  %v1298_v8 = vrot.slane %v1288_v59, %v11465_v33  ;;  %v1305_v9 = vrot.slane %v1289_v19, %v11465_v33  ;;  %v1324_v57 = vcombine.low %v289_v42, %v290_v43  ;;  %v296_v42 = vld [vmem:[%s11443_s5 + $0x318] sm:$0xff]  ;;  %10642 = vmatprep.subr.bf16.mxu1 %v11830_v44 }
  0x8f   : > { %4281 = vmatprep.mubr.bf16.mxu0 %v3882_v55  ;;  %v9919_v58 = vcombine.low %v1285_v53, %v1269_v11  ;;  %v2806_v2 = vcombine.high %v2788_v34, %v2802_v60  ;;  %v2805_v10 = vcombine.low %v2788_v34, %v2802_v60  ;;  %v1287_v12 = vcombine.high %v1269_v11, %v1283_v61  ;;  %v299_v53 = vld [vmem:[%s11443_s5 + $0x330] sm:$0xff]  ;;  %v300_v55 = vld [vmem:[%s11443_s5 + $0x338] sm:$0xff] }
  0x90   : > { %4282 = vmatmul.mubr.bf16.gmra.mxu0 %v3881_v56  ;;  %v1312_v13 = vrot.slane %v1290_v62, %v11465_v33  ;;  %v1319_v15 = vrot.slane %v1291_v63, %v11465_v33  ;;  %v1332_v16 = vrot.slane %v1324_v57, %v11465_v33  ;;  %v1286_v18 = vcombine.low %v1269_v11, %v1283_v61 }
  0x91   : > { %v2817_v17 = vrot.slane %v9919_v58, %v11465_v33  ;;  %v3884_v45 = vpack.c.bf16 %v2806_v2, %v2770_v47  ;;  %v3883_v21 = vpack.c.bf16 %v2805_v10, %v2769_v49  ;;  %v9921_v4 = vcombine.low %v1287_v12, %v1298_v8  ;;  %10128 = vmatpush3.bf16.msra.mxu0 %v11861_v14  ;;  %v295_v49 = vld [vmem:[%s11443_s5 + $0x310] sm:$0xff] }
  0x92   : > { %v1321_v22 = vcombine.high %v1298_v8, %v1312_v13  ;;  %v1323_v6 = vcombine.high %v1305_v9, %v1319_v15  ;;  %v1320_v23 = vcombine.low %v1298_v8, %v1312_v13  ;;  %v1322_v20 = vcombine.low %v1305_v9, %v1319_v15  ;;  %10650 = vmatpush3.bf16.msra.mxu1 %v11837_v50 }
  0x93   : > { %v1325_v24 = vcombine.low %v291_v0, %v292_v7  ;;  %4481 = vmatprep.mubr.bf16.mxu1 %v3884_v45  ;;  %v2831_v27 = vrot.slane %v9921_v4, %v11465_v33  ;;  %v9920_v29 = vcombine.high %v11814_v39, %v1286_v18  ;;  %v1341_v30 = vcombine.low %v293_v3, %v294_v5  ;;  %v302_v18 = vld [vmem:[%s11443_s5 + $0x348] sm:$0x3]  ;;  %v305_v45 = vld [vmem:[%s11443_s5 + $0x360] sm:$0xff] }
  0x94   : > { %v9923_v28 = vcombine.low %v1321_v22, %v1305_v9  ;;  %4482 = vmatmul.mubr.bf16.gmra.mxu1 %v3883_v21  ;;  %v9925_v31 = vcombine.low %v1323_v6, %v1332_v16  ;;  %v9922_v36 = vcombine.high %v1283_v61, %v1320_v23  ;;  %v9924_v38 = vcombine.high %v1312_v13, %v1322_v20  ;;  %v306_v21 = vld [vmem:[%s11443_s5 + $0x368] sm:$0xff]  ;;  %v307_v23 = vld [vmem:[%s11443_s5 + $0x370] sm:$0xff]  ;;  %v308_v20 = vld [vmem:[%s11443_s5 + $0x378] sm:$0xff] }
  0x95   : > { %v1339_v32 = vrot.slane %v1325_v24, %v11465_v33  ;;  %v2840_v34 = vcombine.high %v2817_v17, %v2831_v27  ;;  %v2824_v37 = vrot.slane %v9920_v29, %v11465_v33  ;;  %v2839_v40 = vcombine.low %v2817_v17, %v2831_v27  ;;  %10643 = vmatprep.subr.bf16.mxu1 %v11845_v54  ;;  %v310_v29 = vld [vmem:[%s11443_s5 + $0x388] sm:$0xff] }
  0x96   : > { %v2853_v35 = vrot.slane %v9923_v28, %v11465_v33  ;;  %v2867_v39 = vrot.slane %v9925_v31, %v11465_v33  ;;  %v2838_v47 = vrot.slane %v9922_v36, %v11465_v33  ;;  %v2860_v48 = vrot.slane %v9924_v38, %v11465_v33  ;;  %10651 = vmatpush3.bf16.msra.mxu1 %v11861_v14  ;;  %v309_v28 = vld [vmem:[%s11443_s5 + $0x380] sm:$0xff] }
  0x97   : > { %v1340_v46 = vcombine.low %v1332_v16, %v1339_v32  ;;  %v1342_v43 = vcombine.high %v293_v3, %v294_v5  ;;  %v1351_v51 = vrot.slane %v1341_v30, %v11465_v33  ;;  %v1377_v52 = vcombine.low %v297_v25, %v298_v26  ;;  %v301_v5 = vld [vmem:[%s11443_s5 + $0x340] sm:$0x3] }
  0x98   : > { %v1378_v11 = vcombine.high %v297_v25, %v298_v26  ;;  %v2876_v56 = vcombine.high %v2853_v35, %v2867_v39  ;;  %v2842_v59 = vcombine.high %v2824_v37, %v2838_v47  ;;  %v2875_v60 = vcombine.low %v2853_v35, %v2867_v39 }
  0x99   : > { %v9926_v19 = vcombine.high %v1319_v15, %v1340_v46  ;;  %v2841_v61 = vcombine.low %v2824_v37, %v2838_v47  ;;  %v1358_v62 = vrot.slane %v1342_v43, %v11465_v33  ;;  %v1387_v63 = vrot.slane %v1377_v52, %v11465_v33 }
  0x9a   : > { %v1394_v41 = vrot.slane %v1378_v11, %v11465_v33  ;;  %v3886_v0 = vpack.c.bf16 %v2876_v56, %v2840_v34  ;;  %v3885_v8 = vpack.c.bf16 %v2875_v60, %v2839_v40  ;;  %v2889_v9 = vrot.slane %v1351_v51, %v11465_v33  ;;  %v304_v56 = vld [vmem:[%s11443_s5 + $0x358] sm:$0x3] }
  0x9b   : > { %v2874_v7 = vrot.slane %v9926_v19, %v11465_v33  ;;  %v2903_v44 = vrot.slane %v1358_v62, %v11465_v33  ;;  %v2925_v57 = vrot.slane %v1387_v63, %v11465_v33  ;;  %v1343_v3 = vcombine.low %v295_v49, %v296_v42  ;;  %v313_v62 = vld [vmem:[%s11443_s5 + $0x3a0] sm:$0x3]  ;;  %v314_v63 = vld [vmem:[%s11443_s5 + $0x3a8] sm:$0x3] }
  0x9c   : > { %v2939_v58 = vrot.slane %v1394_v41, %v11465_v33  ;;  %4289 = vmatprep.mubr.bf16.mxu0 %v3886_v0  ;;  %v1344_v12 = vcombine.high %v295_v49, %v296_v42  ;;  %v1379_v50 = vcombine.low %v299_v53, %v300_v55  ;;  %v1380_v17 = vcombine.high %v299_v53, %v300_v55  ;;  %v312_v49 = vld [vmem:[%s11443_s5 + $0x398] sm:$0xff]  ;;  %v303_v55 = vld [vmem:[%s11443_s5 + $0x350] sm:$0x3] }
  0x9d   : > { %v2878_v2 = vcombine.high %v2860_v48, %v2874_v7  ;;  %v2877_v10 = vcombine.low %v2860_v48, %v2874_v7  ;;  %4290 = vmatmul.mubr.bf16.gmra.mxu0 %v3885_v8  ;;  %v2912_v13 = vcombine.high %v2889_v9, %v2903_v44  ;;  %v1365_v16 = vrot.slane %v1343_v3, %v11465_v33  ;;  %v311_v48 = vld [vmem:[%s11443_s5 + $0x390] sm:$0xff] }
  0x9e   : > { %v2948_v15 = vcombine.high %v2925_v57, %v2939_v58  ;;  %v1372_v4 = vrot.slane %v1344_v12, %v11465_v33  ;;  %v1401_v6 = vrot.slane %v1379_v50, %v11465_v33  ;;  %v1408_v25 = vrot.slane %v1380_v17, %v11465_v33  ;;  %v317_v50 = vld [vmem:[%s11443_s5 + $0x3c0] sm:$0xff] }
  0x9f   : > { %v3888_v22 = vpack.c.bf16 %v2878_v2, %v2842_v59  ;;  %v3887_v54 = vpack.c.bf16 %v2877_v10, %v2841_v61  ;;  %v2896_v26 = vrot.slane %v1365_v16, %v11465_v33  ;;  %v2911_v27 = vcombine.low %v2889_v9, %v2903_v44  ;;  %v10921_v9 = vld [vmem:[%s14708_s2 + $0x50] sm:$0xff]  }
  0xa0   : > { %v3890_v24 = vpack.c.bf16 %v2948_v15, %v2912_v13  ;;  %v2910_v30 = vrot.slane %v1372_v4, %v11465_v33  ;;  %v2932_v31 = vrot.slane %v1401_v6, %v11465_v33  ;;  %v2947_v32 = vcombine.low %v2925_v57, %v2939_v58  ;;  %v10922_v44 = vld [vmem:[%s14708_s2 + $0x10] sm:$0xff]   ;;  %v318_v13 = vld [vmem:[%s11443_s5 + $0x3c8] sm:$0xff]  ;;  %10129 = vmatprep.subr.bf16.mxu0 %v10921_v9  ;;  %v11943_v4 = vld [vmem:[%s11443_s5 + $0x3e0] sm:$0xff] }
  0xa1   : > { %4489 = vmatprep.mubr.bf16.mxu1 %v3888_v22  ;;  %v1413_v36 = vcombine.low %v301_v5, %v302_v18  ;;  %v2946_v14 = vrot.slane %v1408_v25, %v11465_v33  ;;  %v1430_v38 = vcombine.low %v305_v45, %v306_v21  ;;  %v1431_v34 = vcombine.high %v305_v45, %v306_v21  ;;  %v11946_v6 = vld [vmem:[%s11443_s5 + $0x3e8] sm:$0xff] }
  0xa2   : > { %4490 = vmatmul.mubr.bf16.gmra.mxu1 %v3887_v54  ;;  %4297 = vmatprep.mubr.bf16.mxu0 %v3890_v24  ;;  %v2914_v35 = vcombine.high %v2896_v26, %v2910_v30  ;;  %v3889_v37 = vpack.c.bf16 %v2947_v32, %v2911_v27  ;;  %v2913_v40 = vcombine.low %v2896_v26, %v2910_v30 }
  0xa3   : > { %v1421_v39 = vrot.slane %v1413_v36, %v11465_v33  ;;  %v2950_v46 = vcombine.high %v2932_v31, %v2946_v14  ;;  %v2949_v47 = vcombine.low %v2932_v31, %v2946_v14  ;;  %v1432_v42 = vcombine.low %v307_v23, %v308_v20  ;;  %10130 = vmatpush3.bf16.msra.mxu0 %v10922_v44 }
  0xa4   : > { %v1433_v43 = vcombine.high %v307_v23, %v308_v20  ;;  %v1440_v51 = vrot.slane %v1430_v38, %v11465_v33  ;;  %v1447_v52 = vrot.slane %v1431_v34, %v11465_v33  ;;  %v1466_v11 = vcombine.low %v309_v28, %v310_v29  ;;  %10644 = vmatprep.subr.bf16.mxu1 %v10921_v9  ;;  %v315_v38 = vld [vmem:[%s11443_s5 + $0x3b0] sm:$0x3]  ;;  %v316_v34 = vld [vmem:[%s11443_s5 + $0x3b8] sm:$0x3] }
  0xa5   : > { %v1467_v53 = vcombine.high %v309_v28, %v310_v29  ;;  %v3892_v59 = vpack.c.bf16 %v2950_v46, %v2914_v35  ;;  %4298 = vmatmul.mubr.bf16.gmra.mxu0 %v3889_v37  ;;  %v3891_v19 = vpack.c.bf16 %v2949_v47, %v2913_v40  ;;  %v1454_v60 = vrot.slane %v1432_v42, %v11465_v33  ;;  %v10925_v35 = vld [vmem:[%s14708_s2 + $0x48] sm:$0xff]  }
  0xa6   : > { %v1461_v61 = vrot.slane %v1433_v43, %v11465_v33  ;;  %v1468_v41 = vcombine.low %v311_v48, %v312_v49  ;;  %v1476_v0 = vrot.slane %v1466_v11, %v11465_v33  ;;  %v9927_v8 = vcombine.low %v1421_v39, %v1440_v51  ;;  %10652 = vmatpush3.bf16.msra.mxu1 %v10922_v44  ;;  %v319_v43 = vld [vmem:[%s11443_s5 + $0x3d0] sm:$0xff] }
  0xa7   : > { %v11926_v7 = vrot.slane %v1467_v53, %v11465_v33  ;;  %4497 = vmatprep.mubr.bf16.mxu1 %v3892_v59  ;;  %v1463_v57 = vcombine.high %v1440_v51, %v1454_v60  ;;  %v1414_v3 = vcombine.low %v303_v55, %v304_v56  ;;  %v1469_v12 = vcombine.high %v311_v48, %v312_v49  ;;  %v320_v51 = vld [vmem:[%s11443_s5 + $0x3d8] sm:$0xff]  ;;  %v11975_v56 = vld [vmem:[%s11443_s5 + $0x3f0] sm:$0xff] }
  0xa8   : > { %v1465_v58 = vcombine.high %v1447_v52, %v1461_v61  ;;  %v1464_v5 = vcombine.low %v1447_v52, %v1461_v61  ;;  %v1490_v2 = vrot.slane %v1468_v41, %v11465_v33  ;;  %v2961_v10 = vrot.slane %v9927_v8, %v11465_v33  ;;  %10131 = vmatprep.subr.bf16.mxu0 %v10925_v35  ;;  %v11978_v59 = vld [vmem:[%s11443_s5 + $0x3f8] sm:$0xff] }
  0xa9   : > { %v1502_v15 = vcombine.low %v313_v62, %v314_v63  ;;  %v9929_v16 = vcombine.low %v1463_v57, %v1447_v52  ;;  %v1428_v18 = vrot.slane %v1414_v3, %v11465_v33  ;;  %v11940_v22 = vrot.slane %v1469_v12, %v11465_v33  ;;  %10645 = vmatprep.subr.bf16.mxu1 %v10925_v35 }
  0xaa   : > { %4498 = vmatmul.mubr.bf16.gmra.mxu1 %v3891_v19  ;;  %v9931_v17 = vcombine.low %v1465_v58, %v1476_v0  ;;  %v9930_v45 = vcombine.high %v1454_v60, %v1464_v5  ;;  %v1499_v21 = vcombine.high %v1476_v0, %v1490_v2  ;;  %v1498_v54 = vcombine.low %v1476_v0, %v1490_v2  ;;  %v10926_v19 = vld [vmem:[%s14708_s2 + $0x8] sm:$0xff]   ;;  %v325_v5 = vld [vmem:[%s11443_s5 + $0x400] sm:$0x3] }
  0xab   : > { %v11949_v23 = vrot.slane %v1502_v15, %v11465_v33  ;;  %v2975_v20 = vrot.slane %v9929_v16, %v11465_v33  ;;  %v9928_v25 = vcombine.low %v1428_v18, %v1454_v60  ;;  %v1500_v28 = vcombine.low %v11926_v7, %v11940_v22  ;;  %v11986_v60 = vld [vmem:[%s14708_s2 + $0x40] sm:$0xff]   ;;  %10132 = vmatpush3.bf16.msra.mxu0 %v10926_v19  ;;  %v330_v16 = vld [vmem:[%s11443_s5 + $0x428] sm:$0xff] }
  0xac   : > { %v2997_v24 = vrot.slane %v9931_v17, %v11465_v33  ;;  %v2982_v26 = vrot.slane %v9930_v45, %v11465_v33  ;;  %v9933_v27 = vcombine.low %v1499_v21, %v11926_v7  ;;  %v9932_v29 = vcombine.high %v1461_v61, %v1498_v54  ;;  %10133 = vmatprep.subr.bf16.mxu0 %v11986_v60  ;;  %v329_v15 = vld [vmem:[%s11443_s5 + $0x420] sm:$0xff] }
  0xad   : > { %v1501_v30 = vcombine.high %v11926_v7, %v11940_v22  ;;  %v2984_v31 = vcombine.high %v2961_v10, %v2975_v20  ;;  %v2968_v32 = vrot.slane %v9928_v25, %v11465_v33  ;;  %v2983_v36 = vcombine.low %v2961_v10, %v2975_v20  ;;  %v10928_v17 = vld [vmem:[%s14708_s2] sm:$0xff]   ;;  %v331_v20 = vld [vmem:[%s11443_s5 + $0x430] sm:$0xff]  ;;  %10653 = vmatpush3.bf16.msra.mxu1 %v10926_v19 }
  0xae   : > { %v1519_v14 = vcombine.low %v317_v50, %v318_v13  ;;  %v3011_v37 = vrot.slane %v9933_v27, %v11465_v33  ;;  %v9934_v40 = vcombine.high %v1490_v2, %v1500_v28  ;;  %v3004_v39 = vrot.slane %v9932_v29, %v11465_v33  ;;  %v326_v2 = vld [vmem:[%s11443_s5 + $0x408] sm:$0x3]  ;;  %10646 = vmatprep.subr.bf16.mxu1 %v11986_v60 }
  0xaf   : > { %v1520_v46 = vcombine.high %v317_v50, %v318_v13  ;;  %v2986_v47 = vcombine.high %v2968_v32, %v2982_v26  ;;  %v2985_v48 = vcombine.low %v2968_v32, %v2982_v26  ;;  %v1555_v42 = vcombine.low %v11943_v4, %v11946_v6  ;;  %10134 = vmatpush3.bf16.msra.mxu0 %v10928_v17 }
  0xb0   : > { %v1529_v49 = vrot.slane %v1519_v14, %v11465_v33  ;;  %v3020_v52 = vcombine.high %v2997_v24, %v3011_v37  ;;  %v3018_v11 = vrot.slane %v9934_v40, %v11465_v33  ;;  %v3019_v53 = vcombine.low %v2997_v24, %v3011_v37  ;;  %v332_v24 = vld [vmem:[%s11443_s5 + $0x438] sm:$0xff] }
  0xb1   : > { %v1536_v55 = vrot.slane %v1520_v46, %v11465_v33  ;;  %v1565_v61 = vrot.slane %v1555_v42, %v11465_v33  ;;  %v9935_v62 = vcombine.low %v1501_v30, %v11949_v23  ;;  %v1503_v41 = vcombine.low %v315_v38, %v316_v34  ;;  %10654 = vmatpush3.bf16.msra.mxu1 %v10928_v17  ;;  %v338_v17 = vld [vmem:[%s11443_s5 + $0x468] sm:$0x3] }
  0xb2   : > { %v3047_v63 = vrot.slane %v1529_v49, %v11465_v33  ;;  %v3894_v0 = vpack.c.bf16 %v3020_v52, %v2984_v31  ;;  %v3022_v7 = vcombine.high %v3004_v39, %v3018_v11  ;;  %v3893_v8 = vpack.c.bf16 %v3019_v53, %v2983_v36 }
  0xb3   : > { %v3021_v9 = vcombine.low %v3004_v39, %v3018_v11  ;;  %v3033_v44 = vrot.slane %v9935_v62, %v11465_v33  ;;  %v3069_v57 = vrot.slane %v1536_v55, %v11465_v33  ;;  %v3083_v58 = vrot.slane %v1565_v61, %v11465_v33  ;;  %v334_v39 = vld [vmem:[%s11443_s5 + $0x448] sm:$0xff]  ;;  %v328_v61 = vld [vmem:[%s11443_s5 + $0x418] sm:$0x3]  ;;  %v335_v62 = vld [vmem:[%s11443_s5 + $0x450] sm:$0xff] }
  0xb4   : > { %v1517_v3 = vrot.slane %v1503_v41, %v11465_v33  ;;  %4305 = vmatprep.mubr.bf16.mxu0 %v3894_v0  ;;  %v3896_v10 = vpack.c.bf16 %v3022_v7, %v2986_v47  ;;  %v1521_v50 = vcombine.low %v319_v43, %v320_v51  ;;  %v1522_v13 = vcombine.high %v319_v43, %v320_v51  ;;  %v327_v51 = vld [vmem:[%s11443_s5 + $0x410] sm:$0x3] }
  0xb5   : > { %v3895_v12 = vpack.c.bf16 %v3021_v9, %v2985_v48  ;;  %4306 = vmatmul.mubr.bf16.gmra.mxu0 %v3893_v8  ;;  %v3056_v18 = vcombine.high %v3033_v44, %v3047_v63  ;;  %v3092_v45 = vcombine.high %v3069_v57, %v3083_v58  ;;  %v1557_v54 = vcombine.low %v11975_v56, %v11978_v59 }
  0xb6   : > { %v1518_v21 = vcombine.low %v11949_v23, %v1517_v3  ;;  %4505 = vmatprep.mubr.bf16.mxu1 %v3896_v10  ;;  %v1543_v25 = vrot.slane %v1521_v50, %v11465_v33  ;;  %v1550_v26 = vrot.slane %v1522_v13, %v11465_v33  ;;  %v3055_v27 = vcombine.low %v3033_v44, %v3047_v63  ;;  %v336_v63 = vld [vmem:[%s11443_s5 + $0x458] sm:$0xff] }
  0xb7   : > { %v3091_v28 = vcombine.low %v3069_v57, %v3083_v58  ;;  %4506 = vmatmul.mubr.bf16.gmra.mxu1 %v3895_v12  ;;  %v3898_v29 = vpack.c.bf16 %v3092_v45, %v3056_v18  ;;  %v1579_v30 = vrot.slane %v1557_v54, %v11465_v33  ;;  %v1556_v31 = vcombine.high %v11943_v4, %v11946_v6 }
  0xb8   : > { %v9936_v23 = vcombine.high %v11940_v22, %v1518_v21  ;;  %v3054_v32 = vrot.slane %v1543_v25, %v11465_v33  ;;  %v3076_v36 = vrot.slane %v1550_v26, %v11465_v33  ;;  %v1591_v38 = vcombine.low %v325_v5, %v326_v2  ;;  %v333_v22 = vld [vmem:[%s11443_s5 + $0x440] sm:$0xff] }
  0xb9   : > { %v3897_v14 = vpack.c.bf16 %v3091_v28, %v3055_v27  ;;  %4313 = vmatprep.mubr.bf16.mxu0 %v3898_v29  ;;  %v3090_v35 = vrot.slane %v1579_v30, %v11465_v33  ;;  %v1572_v37 = vrot.slane %v1556_v31, %v11465_v33  ;;  %v1608_v40 = vcombine.low %v329_v15, %v330_v16  ;;  %v341_v27 = vld [vmem:[%s11443_s5 + $0x480] sm:$0xff]  ;;  %v342_v28 = vld [vmem:[%s11443_s5 + $0x488] sm:$0xff] }
  0xba   : > { %v3040_v34 = vrot.slane %v9936_v23, %v11465_v33  ;;  %v1599_v4 = vrot.slane %v1591_v38, %v11465_v33  ;;  %v1609_v6 = vcombine.high %v329_v15, %v330_v16  ;;  %v1610_v46 = vcombine.low %v331_v20, %v332_v24  ;;  %v337_v16 = vld [vmem:[%s11443_s5 + $0x460] sm:$0x3] }
  0xbb   : > { %v1611_v47 = vcombine.high %v331_v20, %v332_v24  ;;  %v3094_v49 = vcombine.high %v3076_v36, %v3090_v35  ;;  %v3093_v43 = vcombine.low %v3076_v36, %v3090_v35  ;;  %v1618_v52 = vrot.slane %v1608_v40, %v11465_v33 }
  0xbc   : > { %v3058_v48 = vcombine.high %v3040_v34, %v3054_v32  ;;  %v3057_v42 = vcombine.low %v3040_v34, %v3054_v32  ;;  %v1625_v11 = vrot.slane %v1609_v6, %v11465_v33  ;;  %v1632_v53 = vrot.slane %v1610_v46, %v11465_v33  ;;  %v339_v46 = vld [vmem:[%s11443_s5 + $0x470] sm:$0x3] }
  0xbd   : > { %v1639_v55 = vrot.slane %v1611_v47, %v11465_v33  ;;  %4314 = vmatmul.mubr.bf16.gmra.mxu0 %v3897_v14  ;;  %v1644_v0 = vcombine.low %v333_v22, %v334_v39  ;;  %v3105_v7 = vrot.slane %v1572_v37, %v11465_v33  ;;  %v9937_v60 = vcombine.low %v1599_v4, %v1618_v52  ;;  %v340_v47 = vld [vmem:[%s11443_s5 + $0x478] sm:$0x3] }
  0xbe   : > { %v3900_v41 = vpack.c.bf16 %v3094_v49, %v3058_v48  ;;  %v3899_v19 = vpack.c.bf16 %v3093_v43, %v3057_v42  ;;  %v1641_v8 = vcombine.high %v1618_v52, %v1632_v53  ;;  %v1558_v44 = vcombine.high %v11975_v56, %v11978_v59  ;;  %v344_v52 = vld [vmem:[%s11443_s5 + $0x498] sm:$0xff] }
  0xbf   : > { %v1643_v9 = vcombine.high %v1625_v11, %v1639_v55  ;;  %v1654_v57 = vrot.slane %v1644_v0, %v11465_v33  ;;  %v1592_v58 = vcombine.low %v327_v51, %v328_v61  ;;  %v1642_v3 = vcombine.low %v1625_v11, %v1639_v55  ;;  %v343_v51 = vld [vmem:[%s11443_s5 + $0x490] sm:$0xff]  ;;  %v345_v0 = vld [vmem:[%s11443_s5 + $0x4a0] sm:$0xff] }
  0xc0   : > { %4513 = vmatprep.mubr.bf16.mxu1 %v3900_v41  ;;  %v1646_v5 = vcombine.low %v335_v62, %v336_v63  ;;  %v3119_v2 = vrot.slane %v9937_v60, %v11465_v33  ;;  %v9939_v10 = vcombine.low %v1641_v8, %v1625_v11  ;;  %v1586_v12 = vrot.slane %v1558_v44, %v11465_v33 }
  0xc1   : > { %4514 = vmatmul.mubr.bf16.gmra.mxu1 %v3899_v19  ;;  %v1645_v50 = vcombine.high %v333_v22, %v334_v39  ;;  %v9941_v13 = vcombine.low %v1643_v9, %v1654_v57  ;;  %v1606_v56 = vrot.slane %v1592_v58, %v11465_v33  ;;  %v9940_v15 = vcombine.high %v1632_v53, %v1642_v3 }
  0xc2   : > { %v1668_v59 = vrot.slane %v1646_v5, %v11465_v33  ;;  %v3128_v18 = vcombine.high %v3105_v7, %v3119_v2  ;;  %v3141_v45 = vrot.slane %v9939_v10, %v11465_v33  ;;  %v3112_v21 = vrot.slane %v1586_v12, %v11465_v33 }
  0xc3   : > { %v3127_v54 = vcombine.low %v3105_v7, %v3119_v2  ;;  %v3155_v20 = vrot.slane %v9941_v13, %v11465_v33  ;;  %v9938_v25 = vcombine.low %v1606_v56, %v1632_v53  ;;  %v3148_v26 = vrot.slane %v9940_v15, %v11465_v33  ;;  %v346_v7 = vld [vmem:[%s11443_s5 + $0x4a8] sm:$0xff] }
  0xc4   : > { %v1676_v24 = vcombine.low %v1654_v57, %v1668_v59  ;;  %v1647_v29 = vcombine.high %v335_v62, %v336_v63  ;;  %v1661_v30 = vrot.slane %v1645_v50, %v11465_v33  ;;  %v1677_v23 = vcombine.high %v1654_v57, %v1668_v59  ;;  %v349_v50 = vld [vmem:[%s11443_s5 + $0x4c0] sm:$0x3] }
  0xc5   : > { %v1680_v31 = vcombine.low %v337_v16, %v338_v17  ;;  %v3164_v32 = vcombine.high %v3141_v45, %v3155_v20  ;;  %v3126_v36 = vrot.slane %v9938_v25, %v11465_v33  ;;  %v3163_v38 = vcombine.low %v3141_v45, %v3155_v20  ;;  %v353_v45 = vld [vmem:[%s11443_s5 + $0x4e0] sm:$0xff]  ;;  %v356_v25 = vld [vmem:[%s11443_s5 + $0x4f8] sm:$0xff] }
  0xc6   : > { %v9942_v14 = vcombine.high %v1639_v55, %v1676_v24  ;;  %v1675_v34 = vrot.slane %v1647_v29, %v11465_v33  ;;  %v1697_v37 = vcombine.low %v341_v27, %v342_v28  ;;  %v1698_v40 = vcombine.high %v341_v27, %v342_v28  ;;  %v355_v24 = vld [vmem:[%s11443_s5 + $0x4f0] sm:$0xff] }
  0xc7   : > { %v1688_v35 = vrot.slane %v1680_v31, %v11465_v33  ;;  %v3902_v22 = vpack.c.bf16 %v3164_v32, %v3128_v18  ;;  %v3130_v39 = vcombine.high %v3112_v21, %v3126_v36  ;;  %v3901_v6 = vpack.c.bf16 %v3163_v38, %v3127_v54  ;;  %v350_v18 = vld [vmem:[%s11443_s5 + $0x4c8] sm:$0x3] }
  0xc8   : > { %v3162_v4 = vrot.slane %v9942_v14, %v11465_v33  ;;  %v3129_v48 = vcombine.low %v3112_v21, %v3126_v36  ;;  %v1679_v49 = vcombine.high %v1661_v30, %v1675_v34  ;;  %v1707_v42 = vrot.slane %v1697_v37, %v11465_v33  ;;  %v354_v21 = vld [vmem:[%s11443_s5 + $0x4e8] sm:$0xff]  ;;  %v347_v14 = vld [vmem:[%s11443_s5 + $0x4b0] sm:$0xff] }
  0xc9   : > { %v1714_v43 = vrot.slane %v1698_v40, %v11465_v33  ;;  %4321 = vmatprep.mubr.bf16.mxu0 %v3902_v22  ;;  %v9943_v55 = vcombine.low %v1677_v23, %v1661_v30  ;;  %v1678_v61 = vcombine.low %v1661_v30, %v1675_v34  ;;  %v1681_v19 = vcombine.low %v339_v46, %v340_v47  ;;  %v348_v22 = vld [vmem:[%s11443_s5 + $0x4b8] sm:$0xff] }
  0xca   : > { %v3166_v11 = vcombine.high %v3148_v26, %v3162_v4  ;;  %v3165_v53 = vcombine.low %v3148_v26, %v3162_v4  ;;  %4322 = vmatmul.mubr.bf16.gmra.mxu0 %v3901_v6  ;;  %v9945_v62 = vcombine.low %v1679_v49, %v1688_v35  ;;  %v3213_v63 = vrot.slane %v1707_v42, %v11465_v33 }
  0xcb   : > { %v3227_v41 = vrot.slane %v1714_v43, %v11465_v33  ;;  %v3177_v60 = vrot.slane %v9943_v55, %v11465_v33  ;;  %v1699_v44 = vcombine.low %v343_v51, %v344_v52  ;;  %v1695_v3 = vrot.slane %v1681_v19, %v11465_v33  ;;  %v357_v55 = vld [vmem:[%s11443_s5 + $0x500] sm:$0xff] }
  0xcc   : > { %v3904_v8 = vpack.c.bf16 %v3166_v11, %v3130_v39  ;;  %v3903_v9 = vpack.c.bf16 %v3165_v53, %v3129_v48  ;;  %v3191_v57 = vrot.slane %v9945_v62, %v11465_v33  ;;  %v1700_v5 = vcombine.high %v343_v51, %v344_v52  ;;  %v351_v39 = vld [vmem:[%s11443_s5 + $0x4d0] sm:$0x3] }
  0xcd   : > { %v3236_v58 = vcombine.high %v3213_v63, %v3227_v41  ;;  %v1721_v2 = vrot.slane %v1699_v44, %v11465_v33  ;;  %v9944_v10 = vcombine.high %v1668_v59, %v1678_v61  ;;  %v3235_v12 = vcombine.low %v3213_v63, %v3227_v41  ;;  %v358_v61 = vld [vmem:[%s11443_s5 + $0x508] sm:$0xff]  ;;  %v360_v44 = vld [vmem:[%s11443_s5 + $0x518] sm:$0xff] }
  0xce   : > { %4521 = vmatprep.mubr.bf16.mxu1 %v3904_v8  ;;  %v1733_v13 = vcombine.low %v345_v0, %v346_v7  ;;  %v3200_v56 = vcombine.high %v3177_v60, %v3191_v57  ;;  %v1696_v15 = vcombine.low %v1688_v35, %v1695_v3  ;;  %v1728_v16 = vrot.slane %v1700_v5, %v11465_v33 }
  0xcf   : > { %4522 = vmatmul.mubr.bf16.gmra.mxu1 %v3903_v9  ;;  %v3199_v17 = vcombine.low %v3177_v60, %v3191_v57  ;;  %v3184_v54 = vrot.slane %v9944_v10, %v11465_v33  ;;  %v3220_v20 = vrot.slane %v1721_v2, %v11465_v33  ;;  %v1734_v59 = vcombine.high %v345_v0, %v346_v7  ;;  %v359_v60 = vld [vmem:[%s11443_s5 + $0x510] sm:$0xff] }
  0xd0   : > { %v1743_v26 = vrot.slane %v1733_v13, %v11465_v33  ;;  %v3906_v27 = vpack.c.bf16 %v3236_v58, %v3200_v56  ;;  %v9946_v28 = vcombine.high %v1675_v34, %v1696_v15  ;;  %v3234_v29 = vrot.slane %v1728_v16, %v11465_v33  ;;  %v352_v34 = vld [vmem:[%s11443_s5 + $0x4d8] sm:$0x3]  ;;  %v361_v15 = vld [vmem:[%s11443_s5 + $0x520] sm:$0x3]  ;;  %v362_v16 = vld [vmem:[%s11443_s5 + $0x528] sm:$0x3] }
  0xd1   : > { %v3905_v30 = vpack.c.bf16 %v3235_v12, %v3199_v17  ;;  %v1750_v23 = vrot.slane %v1734_v59, %v11465_v33  ;;  %v1769_v31 = vcombine.low %v349_v50, %v350_v18  ;;  %v1786_v32 = vcombine.low %v353_v45, %v354_v21 }
  0xd2   : > { %v1787_v36 = vcombine.high %v353_v45, %v354_v21  ;;  %4329 = vmatprep.mubr.bf16.mxu0 %v3906_v27  ;;  %v3198_v38 = vrot.slane %v9946_v28, %v11465_v33  ;;  %v3238_v35 = vcombine.high %v3220_v20, %v3234_v29  ;;  %v3237_v37 = vcombine.low %v3220_v20, %v3234_v29  ;;  %v12105_v20 = vld [vmem:[%s11443_s5 + $0x540] sm:$0xff] }
  0xd3   : > { %v1788_v40 = vcombine.low %v355_v24, %v356_v25  ;;  %4330 = vmatmul.mubr.bf16.gmra.mxu0 %v3905_v30  ;;  %v1777_v4 = vrot.slane %v1769_v31, %v11465_v33  ;;  %v1796_v6 = vrot.slane %v1786_v32, %v11465_v33  ;;  %v3249_v47 = vrot.slane %v1743_v26, %v11465_v33 }
  0xd4   : > { %v1803_v46 = vrot.slane %v1787_v36, %v11465_v33  ;;  %v3202_v48 = vcombine.high %v3184_v54, %v3198_v38  ;;  %v3201_v49 = vcombine.low %v3184_v54, %v3198_v38  ;;  %v3263_v43 = vrot.slane %v1750_v23, %v11465_v33 }
  0xd5   : > { %v1810_v42 = vrot.slane %v1788_v40, %v11465_v33  ;;  %v9947_v51 = vcombine.low %v1777_v4, %v1796_v6  ;;  %v1735_v52 = vcombine.low %v347_v14, %v348_v22  ;;  %v1736_v11 = vcombine.high %v347_v14, %v348_v22  ;;  %v12120_v4 = vld [vmem:[%s11443_s5 + $0x550] sm:$0xff] }
  0xd6   : > { %v1770_v53 = vcombine.low %v351_v39, %v352_v34  ;;  %v3908_v62 = vpack.c.bf16 %v3238_v35, %v3202_v48  ;;  %v3907_v63 = vpack.c.bf16 %v3237_v37, %v3201_v49  ;;  %v3272_v19 = vcombine.high %v3249_v47, %v3263_v43  ;;  %v363_v35 = vld [vmem:[%s11443_s5 + $0x530] sm:$0x3]  ;;  %v364_v37 = vld [vmem:[%s11443_s5 + $0x538] sm:$0x3] }
  0xd7   : > { %v1819_v41 = vcombine.high %v1796_v6, %v1810_v42  ;;  %v3285_v0 = vrot.slane %v9947_v51, %v11465_v33  ;;  %v1757_v7 = vrot.slane %v1735_v52, %v11465_v33  ;;  %v1764_v8 = vrot.slane %v1736_v11, %v11465_v33  ;;  %v12123_v6 = vld [vmem:[%s11443_s5 + $0x558] sm:$0xff] }
  0xd8   : > { %v1784_v9 = vrot.slane %v1770_v53, %v11465_v33  ;;  %4529 = vmatprep.mubr.bf16.mxu1 %v3908_v62  ;;  %v1789_v58 = vcombine.high %v355_v24, %v356_v25  ;;  %v3271_v3 = vcombine.low %v3249_v47, %v3263_v43  ;;  %v1822_v5 = vcombine.low %v357_v55, %v358_v61  ;;  %v12108_v24 = vld [vmem:[%s11443_s5 + $0x548] sm:$0xff] }
  0xd9   : > { %v9949_v57 = vcombine.low %v1819_v41, %v1803_v46  ;;  %4530 = vmatmul.mubr.bf16.gmra.mxu1 %v3907_v63  ;;  %v3256_v2 = vrot.slane %v1757_v7, %v11465_v33  ;;  %v3270_v10 = vrot.slane %v1764_v8, %v11465_v33  ;;  %v1823_v50 = vcombine.high %v357_v55, %v358_v61 }
  0xda   : > { %v9948_v12 = vcombine.low %v1784_v9, %v1810_v42  ;;  %v1817_v56 = vrot.slane %v1789_v58, %v11465_v33  ;;  %v1824_v17 = vcombine.low %v359_v60, %v360_v44  ;;  %v1825_v18 = vcombine.high %v359_v60, %v360_v44  ;;  %v369_v60 = vld [vmem:[%s11443_s5 + $0x560] sm:$0xff]  ;;  %v370_v44 = vld [vmem:[%s11443_s5 + $0x568] sm:$0xff] }
  0xdb   : > { %v3299_v13 = vrot.slane %v9949_v57, %v11465_v33  ;;  %v3274_v45 = vcombine.high %v3256_v2, %v3270_v10  ;;  %v3273_v54 = vcombine.low %v3256_v2, %v3270_v10  ;;  %v1832_v25 = vrot.slane %v1822_v5, %v11465_v33 }
  0xdc   : > { %v3292_v21 = vrot.slane %v9948_v12, %v11465_v33  ;;  %v1820_v26 = vcombine.low %v1803_v46, %v1817_v56  ;;  %v1821_v28 = vcombine.high %v1803_v46, %v1817_v56  ;;  %v1839_v29 = vrot.slane %v1823_v50, %v11465_v33 }
  0xdd   : > { %v3308_v59 = vcombine.high %v3285_v0, %v3299_v13  ;;  %v3307_v27 = vcombine.low %v3285_v0, %v3299_v13  ;;  %v1846_v30 = vrot.slane %v1824_v17, %v11465_v33  ;;  %v1853_v23 = vrot.slane %v1825_v18, %v11465_v33  ;;  %v373_v13 = vld [vmem:[%s11443_s5 + $0x580] sm:$0x3]  ;;  %v378_v18 = vld [vmem:[%s11443_s5 + $0x5a8] sm:$0xff] }
  0xde   : > { %v1858_v31 = vcombine.low %v361_v15, %v362_v16  ;;  %v9950_v36 = vcombine.high %v1810_v42, %v1820_v26  ;;  %v1875_v38 = vcombine.low %v12105_v20, %v12108_v24  ;;  %v9951_v34 = vcombine.low %v1821_v28, %v1832_v25  ;;  %v12143_v15 = vld [vmem:[%s11443_s5 + $0x5a0] sm:$0xff] }
  0xdf   : > { %v3910_v32 = vpack.c.bf16 %v3308_v59, %v3272_v19  ;;  %v3909_v14 = vpack.c.bf16 %v3307_v27, %v3271_v3  ;;  %v1855_v40 = vcombine.high %v1832_v25, %v1846_v30  ;;  %v1857_v22 = vcombine.high %v1839_v29, %v1853_v23 }
  0xe0   : > { %v1866_v39 = vrot.slane %v1858_v31, %v11465_v33  ;;  %v3306_v46 = vrot.slane %v9950_v36, %v11465_v33  ;;  %v1885_v47 = vrot.slane %v1875_v38, %v11465_v33  ;;  %v1854_v48 = vcombine.low %v1832_v25, %v1846_v30  ;;  %v372_v25 = vld [vmem:[%s11443_s5 + $0x578] sm:$0xff] }
  0xe1   : > { %4337 = vmatprep.mubr.bf16.mxu0 %v3910_v32  ;;  %v1856_v49 = vcombine.low %v1839_v29, %v1853_v23  ;;  %v9953_v42 = vcombine.low %v1855_v40, %v1839_v29  ;;  %v3321_v43 = vrot.slane %v9951_v34, %v11465_v33  ;;  %v1859_v52 = vcombine.low %v363_v35, %v364_v37  ;;  %v375_v32 = vld [vmem:[%s11443_s5 + $0x590] sm:$0x3]  ;;  %v380_v34 = vld [vmem:[%s11443_s5 + $0x5b8] sm:$0xff] }
  0xe2   : > { %4338 = vmatmul.mubr.bf16.gmra.mxu0 %v3909_v14  ;;  %v9955_v51 = vcombine.low %v1857_v22, %v1866_v39  ;;  %v3310_v11 = vcombine.high %v3292_v21, %v3306_v46  ;;  %v3309_v53 = vcombine.low %v3292_v21, %v3306_v46  ;;  %v3371_v55 = vrot.slane %v1885_v47, %v11465_v33  ;;  %v376_v22 = vld [vmem:[%s11443_s5 + $0x598] sm:$0x3] }
  0xe3   : > { %v1877_v61 = vcombine.low %v12120_v4, %v12123_v6  ;;  %v3335_v62 = vrot.slane %v9953_v42, %v11465_v33  ;;  %v1873_v41 = vrot.slane %v1859_v52, %v11465_v33  ;;  %v9952_v19 = vcombine.high %v1817_v56, %v1854_v48  ;;  %v374_v56 = vld [vmem:[%s11443_s5 + $0x588] sm:$0x3] }
  0xe4   : > { %v3357_v63 = vrot.slane %v9955_v51, %v11465_v33  ;;  %v3912_v0 = vpack.c.bf16 %v3310_v11, %v3274_v45  ;;  %v3911_v7 = vpack.c.bf16 %v3309_v53, %v3273_v54  ;;  %v9954_v9 = vcombine.high %v1846_v30, %v1856_v49  ;;  %v371_v54 = vld [vmem:[%s11443_s5 + $0x570] sm:$0xff] }
  0xe5   : > { %v1899_v8 = vrot.slane %v1877_v61, %v11465_v33  ;;  %v3344_v57 = vcombine.high %v3321_v43, %v3335_v62  ;;  %v1874_v3 = vcombine.low %v1866_v39, %v1873_v41  ;;  %v3328_v5 = vrot.slane %v9952_v19, %v11465_v33  ;;  %v379_v39 = vld [vmem:[%s11443_s5 + $0x5b0] sm:$0xff] }
  0xe6   : > { %v3380_v58 = vcombine.high %v3357_v63, %v3371_v55  ;;  %4537 = vmatprep.mubr.bf16.mxu1 %v3912_v0  ;;  %v3342_v2 = vrot.slane %v9954_v9, %v11465_v33  ;;  %v3343_v12 = vcombine.low %v3321_v43, %v3335_v62  ;;  %v3379_v50 = vcombine.low %v3357_v63, %v3371_v55 }
  0xe7   : > { %v3378_v10 = vrot.slane %v1899_v8, %v11465_v33  ;;  %4538 = vmatmul.mubr.bf16.gmra.mxu1 %v3911_v7  ;;  %v9956_v17 = vcombine.high %v1853_v23, %v1874_v3  ;;  %v1876_v45 = vcombine.high %v12105_v20, %v12108_v24  ;;  %v1911_v21 = vcombine.low %v369_v60, %v370_v44  ;;  %v381_v7 = vld [vmem:[%s11443_s5 + $0x5c0] sm:$0xff]  ;;  %v382_v8 = vld [vmem:[%s11443_s5 + $0x5c8] sm:$0xff]  ;;  %v384_v3 = vld [vmem:[%s11443_s5 + $0x5d8] sm:$0xff] }
  0xe8   : > { %v3914_v16 = vpack.c.bf16 %v3380_v58, %v3344_v57  ;;  %v3346_v59 = vcombine.high %v3328_v5, %v3342_v2  ;;  %v3913_v26 = vpack.c.bf16 %v3379_v50, %v3343_v12  ;;  %v3345_v27 = vcombine.low %v3328_v5, %v3342_v2  ;;  %v383_v58 = vld [vmem:[%s11443_s5 + $0x5d0] sm:$0xff] }
  0xe9   : > { %v1912_v28 = vcombine.high %v369_v60, %v370_v44  ;;  %v3364_v29 = vrot.slane %v9956_v17, %v11465_v33  ;;  %v1892_v30 = vrot.slane %v1876_v45, %v11465_v33  ;;  %v1921_v23 = vrot.slane %v1911_v21, %v11465_v33 }
  0xea   : > { %4345 = vmatprep.mubr.bf16.mxu0 %v3914_v16  ;;  %v1947_v31 = vcombine.low %v373_v13, %v374_v56  ;;  %v1964_v24 = vcombine.low %v12143_v15, %v378_v18  ;;  %v1878_v36 = vcombine.high %v12120_v4, %v12123_v6  ;;  %v1913_v14 = vcombine.low %v371_v54, %v372_v25  ;;  %v385_v13 = vld [vmem:[%s11443_s5 + $0x5e0] sm:$0x3]  ;;  %v386_v56 = vld [vmem:[%s11443_s5 + $0x5e8] sm:$0x3] }
  0xeb   : > { %4346 = vmatmul.mubr.bf16.gmra.mxu0 %v3913_v26  ;;  %v1928_v20 = vrot.slane %v1912_v28, %v11465_v33  ;;  %v3382_v38 = vcombine.high %v3364_v29, %v3378_v10  ;;  %v3381_v35 = vcombine.low %v3364_v29, %v3378_v10  ;;  %v3393_v40 = vrot.slane %v1892_v30, %v11465_v33 }
  0xec   : > { %v1955_v37 = vrot.slane %v1947_v31, %v11465_v33  ;;  %v1974_v46 = vrot.slane %v1964_v24, %v11465_v33  ;;  %v3407_v47 = vrot.slane %v1921_v23, %v11465_v33  ;;  %v1906_v49 = vrot.slane %v1878_v36, %v11465_v33  ;;  %v387_v36 = vld [vmem:[%s11443_s5 + $0x5f0] sm:$0x3] }
  0xed   : > { %v3429_v48 = vrot.slane %v1928_v20, %v11465_v33  ;;  %v3916_v42 = vpack.c.bf16 %v3382_v38, %v3346_v59  ;;  %v3915_v4 = vpack.c.bf16 %v3381_v35, %v3345_v27  ;;  %v1914_v6 = vcombine.high %v371_v54, %v372_v25 }
  0xee   : > { %v1935_v43 = vrot.slane %v1913_v14, %v11465_v33  ;;  %v3416_v51 = vcombine.high %v3393_v40, %v3407_v47  ;;  %v9957_v52 = vcombine.low %v1955_v37, %v1974_v46  ;;  %v1948_v11 = vcombine.low %v375_v32, %v376_v22  ;;  %v388_v14 = vld [vmem:[%s11443_s5 + $0x5f8] sm:$0x3] }
  0xef   : > { %v1966_v53 = vcombine.low %v379_v39, %v380_v34  ;;  %4545 = vmatprep.mubr.bf16.mxu1 %v3916_v42  ;;  %v1942_v55 = vrot.slane %v1914_v6, %v11465_v33  ;;  %v3400_v61 = vrot.slane %v1906_v49, %v11465_v33  ;;  %v3415_v63 = vcombine.low %v3393_v40, %v3407_v47  ;;  %v389_v6 = vld [vmem:[%s11443_s5 + $0x600] sm:$0xff] }
  0xf0   : > { %v3414_v62 = vrot.slane %v1935_v43, %v11465_v33  ;;  %4546 = vmatmul.mubr.bf16.gmra.mxu1 %v3915_v4  ;;  %v3443_v41 = vrot.slane %v9957_v52, %v11465_v33  ;;  %v1962_v19 = vrot.slane %v1948_v11, %v11465_v33  ;;  %v1965_v9 = vcombine.high %v12143_v15, %v378_v18  ;;  %v390_v43 = vld [vmem:[%s11443_s5 + $0x608] sm:$0xff] }
  0xf1   : > { %v1988_v0 = vrot.slane %v1966_v53, %v11465_v33  ;;  %v3436_v44 = vrot.slane %v1942_v55, %v11465_v33  ;;  %v1967_v5 = vcombine.high %v379_v39, %v380_v34  ;;  %v2000_v45 = vcombine.low %v381_v7, %v382_v8 }
  0xf2   : > { %v3418_v60 = vcombine.high %v3400_v61, %v3414_v62  ;;  %v3417_v57 = vcombine.low %v3400_v61, %v3414_v62  ;;  %v3452_v2 = vcombine.high %v3429_v48, %v3443_v41  ;;  %v3451_v12 = vcombine.low %v3429_v48, %v3443_v41  ;;  %v393_v61 = vld [vmem:[%s11443_s5 + $0x620] sm:$0xff]  ;;  %v394_v62 = vld [vmem:[%s11443_s5 + $0x628] sm:$0xff] }
  0xf3   : > { %v9958_v10 = vcombine.low %v1962_v19, %v1988_v0  ;;  %v1981_v50 = vrot.slane %v1965_v9, %v11465_v33  ;;  %v1995_v16 = vrot.slane %v1967_v5, %v11465_v33  ;;  %v1997_v17 = vcombine.high %v1974_v46, %v1988_v0  ;;  %v397_v5 = vld [vmem:[%s11443_s5 + $0x640] sm:$0x3] }
  0xf4   : > { %v2001_v21 = vcombine.high %v381_v7, %v382_v8  ;;  %v3918_v15 = vpack.c.bf16 %v3452_v2, %v3416_v51  ;;  %v3917_v54 = vpack.c.bf16 %v3451_v12, %v3415_v63  ;;  %v2002_v25 = vcombine.low %v383_v58, %v384_v3  ;;  %v10935_v51 = vld [vmem:[%s14708_s2 + $0x178] sm:$0xff]   ;;  %v398_v2 = vld [vmem:[%s11443_s5 + $0x648] sm:$0x3] }
  0xf5   : > { %v3450_v18 = vrot.slane %v9958_v10, %v11465_v33  ;;  %v1999_v59 = vcombine.high %v1981_v50, %v1995_v16  ;;  %v2003_v26 = vcombine.high %v383_v58, %v384_v3  ;;  %v2010_v27 = vrot.slane %v2000_v45, %v11465_v33  ;;  %10343 = vmatprep.subr.bf16.mxu0 %v10935_v51  ;;  %v391_v51 = vld [vmem:[%s11443_s5 + $0x610] sm:$0xff] }
  0xf6   : > { %v2017_v28 = vrot.slane %v2001_v21, %v11465_v33  ;;  %4353 = vmatprep.mubr.bf16.mxu0 %v3918_v15  ;;  %v2024_v23 = vrot.slane %v2002_v25, %v11465_v33  ;;  %v2036_v31 = vcombine.low %v385_v13, %v386_v56  ;;  %v9959_v24 = vcombine.low %v1997_v17, %v1981_v50  ;;  %v10910_v56 = vld [vmem:[%s11443_s5 + $0x660] ss:$8 sps:$4 sm:$0xff]  }
  0xf7   : > { %v3454_v29 = vcombine.high %v3436_v44, %v3450_v18  ;;  %v3453_v30 = vcombine.low %v3436_v44, %v3450_v18  ;;  %4354 = vmatmul.mubr.bf16.gmra.mxu0 %v3917_v54  ;;  %v2031_v20 = vrot.slane %v2003_v26, %v11465_v33  ;;  %v9961_v32 = vcombine.low %v1999_v59, %v2010_v27  ;;  %v10913_v26 = vld [vmem:[%s11443_s5 + $0x670] ss:$8 sps:$4 sm:$0xff]  }
  0xf8   : > { %v1998_v38 = vcombine.low %v1981_v50, %v1995_v16  ;;  %v2033_v40 = vcombine.high %v2010_v27, %v2024_v23  ;;  %v2044_v22 = vrot.slane %v2036_v31, %v11465_v33  ;;  %v3465_v34 = vrot.slane %v9959_v24, %v11465_v33  ;;  %v10916_v31 = vld [vmem:[%s11443_s5 + $0x680] ss:$8 sps:$4 sm:$0xff]  }
  0xf9   : > { %v3920_v35 = vpack.c.bf16 %v3454_v29, %v3418_v60  ;;  %v3919_v37 = vpack.c.bf16 %v3453_v30, %v3417_v57  ;;  %v2035_v39 = vcombine.high %v2017_v28, %v2031_v20  ;;  %v3479_v46 = vrot.slane %v9961_v32, %v11465_v33 }
  0xfa   : > { %v2032_v47 = vcombine.low %v2010_v27, %v2024_v23  ;;  %v9963_v48 = vcombine.low %v2033_v40, %v2017_v28  ;;  %v2034_v49 = vcombine.low %v2017_v28, %v2031_v20  ;;  %v2037_v42 = vcombine.low %v387_v36, %v388_v14  ;;  %v10915_v27 = vld [vmem:[%s11443_s5 + $0x674] ss:$8 sps:$4 sm:$0xff]  }
  0xfb   : > { %4553 = vmatprep.mubr.bf16.mxu1 %v3920_v35  ;;  %v9960_v4 = vcombine.high %v1988_v0, %v1998_v38  ;;  %v3488_v52 = vcombine.high %v3465_v34, %v3479_v46  ;;  %v9965_v11 = vcombine.low %v2035_v39, %v2044_v22  ;;  %v3487_v55 = vcombine.low %v3465_v34, %v3479_v46  ;;  %v10919_v38 = vld [vmem:[%s11443_s5 + $0x690] ss:$8 sps:$4 sm:$0xff]   ;;  %v10923_v39 = vld [vmem:[%s11443_s5 + $0x694] ss:$8 sps:$4 sm:$0xff]  }
  0xfc   : > { %4554 = vmatmul.mubr.bf16.gmra.mxu1 %v3919_v37  ;;  %v9962_v53 = vcombine.high %v1995_v16, %v2032_v47  ;;  %v3501_v63 = vrot.slane %v9963_v48, %v11465_v33  ;;  %v2051_v41 = vrot.slane %v2037_v42, %v11465_v33  ;;  %v9964_v0 = vcombine.high %v2024_v23, %v2034_v49  ;;  %v10912_v16 = vld [vmem:[%s11443_s5 + $0x664] ss:$8 sps:$4 sm:$0xff]   ;;  %v10924_v34 = vld [vmem:[%s11443_s5 + $0x6a0] ss:$8 sps:$4 sm:$0x33]  }
  0xfd   : > { %v3472_v19 = vrot.slane %v9960_v4, %v11465_v33  ;;  %v3515_v7 = vrot.slane %v9965_v11, %v11465_v33  ;;  %v2053_v9 = vcombine.low %v389_v6, %v390_v43  ;;  %v2054_v60 = vcombine.high %v389_v6, %v390_v43 }
  0xfe   : > { %v3486_v8 = vrot.slane %v9962_v53, %v11465_v33  ;;  %v2052_v44 = vcombine.low %v2044_v22, %v2051_v41  ;;  %v3508_v57 = vrot.slane %v9964_v0, %v11465_v33  ;;  %v2089_v58 = vcombine.low %v393_v61, %v394_v62  ;;  %v395_v0 = vld [vmem:[%s11443_s5 + $0x630] sm:$0xff] }
  0xff   : > { %v2090_v3 = vcombine.high %v393_v61, %v394_v62  ;;  %v3524_v10 = vcombine.high %v3501_v63, %v3515_v7  ;;  %v3523_v50 = vcombine.low %v3501_v63, %v3515_v7  ;;  %v2063_v45 = vrot.slane %v2053_v9, %v11465_v33  ;;  %v396_v7 = vld [vmem:[%s11443_s5 + $0x638] sm:$0xff] }
 0x100   : > { %v3490_v12 = vcombine.high %v3472_v19, %v3486_v8  ;;  %v3489_v13 = vcombine.low %v3472_v19, %v3486_v8  ;;  %v9966_v17 = vcombine.high %v2031_v20, %v2052_v44  ;;  %v2070_v21 = vrot.slane %v2054_v60, %v11465_v33  ;;  %v10918_v20 = vld [vmem:[%s11443_s5 + $0x684] ss:$8 sps:$4 sm:$0xff]  }
 0x101   : > { %v2099_v15 = vrot.slane %v2089_v58, %v11465_v33  ;;  %v3922_v18 = vpack.c.bf16 %v3524_v10, %v3488_v52  ;;  %v3921_v54 = vpack.c.bf16 %v3523_v50, %v3487_v55  ;;  %v2106_v25 = vrot.slane %v2090_v3, %v11465_v33  ;;  %v392_v52 = vld [vmem:[%s11443_s5 + $0x618] sm:$0xff] }
 0x102   : > { %v2125_v59 = vcombine.low %v397_v5, %v398_v2  ;;  %v3522_v28 = vrot.slane %v9966_v17, %v11465_v33  ;;  %v3537_v29 = vrot.slane %v2063_v45, %v11465_v33  ;;  %v3551_v30 = vrot.slane %v2070_v21, %v11465_v33  ;;  %v399_v17 = vld [vmem:[%s11443_s5 + $0x650] sm:$0x3]  ;;  %v400_v45 = vld [vmem:[%s11443_s5 + $0x658] sm:$0x3] }
 0x103   : > { %v3573_v23 = vrot.slane %v2099_v15, %v11465_v33  ;;  %4361 = vmatprep.mubr.bf16.mxu0 %v3922_v18  ;;  %v3587_v24 = vrot.slane %v2106_v25, %v11465_v33  ;;  %v2152_v36 = vrot.slane %v10910_v56, %v11465_v33  ;;  %v12227_v14 = vrot.slane %v10912_v16, %v11465_v33 }
 0x104   : > { %v2133_v32 = vrot.slane %v2125_v59, %v11465_v33  ;;  %v3526_v35 = vcombine.high %v3508_v57, %v3522_v28  ;;  %4362 = vmatmul.mubr.bf16.gmra.mxu0 %v3921_v54  ;;  %v3525_v37 = vcombine.low %v3508_v57, %v3522_v28  ;;  %v3560_v40 = vcombine.high %v3537_v29, %v3551_v30 }
 0x105   : > { %v3559_v22 = vcombine.low %v3537_v29, %v3551_v30  ;;  %v3596_v46 = vcombine.high %v3573_v23, %v3587_v24  ;;  %v3595_v47 = vcombine.low %v3573_v23, %v3587_v24  ;;  %v12233_v48 = vrot.slane %v10913_v26, %v11465_v33 }
 0x106   : > { %v12236_v49 = vrot.slane %v10915_v27, %v11465_v33  ;;  %v3924_v42 = vpack.c.bf16 %v3526_v35, %v3490_v12  ;;  %v3923_v4 = vpack.c.bf16 %v3525_v37, %v3489_v13  ;;  %v12239_v6 = vrot.slane %v10916_v31, %v11465_v33 }
 0x107   : > { %v12242_v43 = vrot.slane %v10918_v20, %v11465_v33  ;;  %v3926_v11 = vpack.c.bf16 %v3596_v46, %v3560_v40  ;;  %v3925_v53 = vpack.c.bf16 %v3595_v47, %v3559_v22  ;;  %v2175_v55 = vcombine.high %v2152_v36, %v12233_v48 }
 0x108   : > { %v2177_v61 = vcombine.high %v12227_v14, %v12236_v49  ;;  %4561 = vmatprep.mubr.bf16.mxu1 %v3924_v42  ;;  %v12250_v62 = vrot.slane %v10919_v38, %v11465_v33  ;;  %v9967_v63 = vcombine.low %v2133_v32, %v2152_v36  ;;  %v12253_v41 = vrot.slane %v10923_v39, %v11465_v33 }
 0x109   : > { %v12256_v19 = vrot.slane %v10924_v34, %v11465_v33  ;;  %4562 = vmatmul.mubr.bf16.gmra.mxu1 %v3923_v4  ;;  %4369 = vmatprep.mubr.bf16.mxu0 %v3926_v11  ;;  %v9969_v8 = vcombine.low %v2175_v55, %v12227_v14  ;;  %v2055_v60 = vcombine.low %v391_v51, %v392_v52 }
 0x10a   : > { %v9971_v9 = vcombine.low %v2177_v61, %v12239_v6  ;;  %v2211_v44 = vcombine.high %v12239_v6, %v12250_v62  ;;  %v3609_v57 = vrot.slane %v9967_v63, %v11465_v33  ;;  %v2213_v58 = vcombine.high %v12242_v43, %v12253_v41 }
 0x10b   : > { %v2056_v3 = vcombine.high %v391_v51, %v392_v52  ;;  %v3623_v5 = vrot.slane %v9969_v8, %v11465_v33  ;;  %v2077_v10 = vrot.slane %v2055_v60, %v11465_v33  ;;  %v2091_v12 = vcombine.low %v395_v0, %v396_v7 }
 0x10c   : > { %v3645_v2 = vrot.slane %v9971_v9, %v11465_v33  ;;  %4370 = vmatmul.mubr.bf16.gmra.mxu0 %v3925_v53  ;;  %v9973_v50 = vcombine.low %v2211_v44, %v12242_v43  ;;  %v9975_v13 = vcombine.low %v2213_v58, %v12256_v19  ;;  %v2092_v16 = vcombine.high %v395_v0, %v396_v7 }
 0x10d   : > { %v2084_v56 = vrot.slane %v2056_v3, %v11465_v33  ;;  %v3632_v15 = vcombine.high %v3609_v57, %v3623_v5  ;;  %v3631_v18 = vcombine.low %v3609_v57, %v3623_v5  ;;  %v2113_v54 = vrot.slane %v2091_v12, %v11465_v33 }
 0x10e   : > { %v3544_v25 = vrot.slane %v2077_v10, %v11465_v33  ;;  %v3659_v26 = vrot.slane %v9973_v50, %v11465_v33  ;;  %v12279_v27 = vrot.slane %v9975_v13, %v11465_v33  ;;  %v2120_v28 = vrot.slane %v2092_v16, %v11465_v33 }
 0x10f   : > { %v3558_v29 = vrot.slane %v2084_v56, %v11465_v33  ;;  %v3580_v31 = vrot.slane %v2113_v54, %v11465_v33  ;;  %v2126_v20 = vcombine.low %v399_v17, %v400_v45  ;;  %v2176_v24 = vcombine.low %v12227_v14, %v12236_v49 }
 0x110   : > { %v3668_v36 = vcombine.high %v3645_v2, %v3659_v26  ;;  %v3667_v38 = vcombine.low %v3645_v2, %v3659_v26  ;;  %v3687_v35 = vcombine.high %v12279_v27, %v12279_v27  ;;  %v3933_v37 = vpack.c.bf16 %v12279_v27, %v12279_v27 }
 0x111   : > { %v3562_v39 = vcombine.high %v3544_v25, %v3558_v29  ;;  %v3594_v34 = vrot.slane %v2120_v28, %v11465_v33  ;;  %v3561_v46 = vcombine.low %v3544_v25, %v3558_v29  ;;  %v2140_v14 = vrot.slane %v2126_v20, %v11465_v33 }
 0x112   : > { %v3930_v42 = vpack.c.bf16 %v3668_v36, %v3632_v15  ;;  %v3929_v4 = vpack.c.bf16 %v3667_v38, %v3631_v18  ;;  %v3934_v51 = vpack.c.bf16 %v3687_v35, %v3687_v35  ;;  %v2210_v7 = vcombine.low %v12239_v6, %v12250_v62 }
 0x113   : > { %v3598_v61 = vcombine.high %v3580_v31, %v3594_v34  ;;  %v3597_v0 = vcombine.low %v3580_v31, %v3594_v34  ;;  %v2212_v8 = vcombine.low %v12242_v43, %v12253_v41  ;;  %v9968_v9 = vcombine.low %v2140_v14, %v12233_v48 }
 0x114   : > { %v4227_v21 = vpop.f32.mrf.mxu0  ;;  %v4427_v59 = vpop.f32.mrf.mxu1  ;;  %4377 = vmatprep.mubr.bf16.mxu0 %v3930_v42  ;;  %v9970_v10 = vcombine.high %v12233_v48, %v2176_v24  ;;  %v9972_v6 = vcombine.high %v12236_v49, %v2210_v7 }
 0x115   : > { %v4428_v30 = vadd.f32 %v4427_v59, %v4227_v21  ;;  %4378 = vmatmul.mubr.bf16.gmra.mxu0 %v3929_v4  ;;  %v3928_v3 = vpack.c.bf16 %v3598_v61, %v3562_v39  ;;  %v3927_v2 = vpack.c.bf16 %v3597_v0, %v3561_v46  ;;  %v12301_v12 = vrot.slane %v9968_v9, %v11465_v33 }
 0x116   : > { %v4229_v23 = vpop.f32.mrf.mxu0  ;;  %v4429_v32 = vpop.f32.mrf.mxu1  ;;  %4385 = vmatprep.mubr.bf16.mxu0 %v3934_v51  ;;  %v12306_v15 = vrot.slane %v9970_v10, %v11465_v33  ;;  %v12309_v48 = vcombine.high %v12250_v62, %v2212_v8 }
 0x117   : > { %v4593_v40 = vmax.f32 %v4428_v30, 0.0  ;;  %4569 = vmatprep.mubr.bf16.mxu1 %v3928_v3  ;;  %v12320_v32 = vrot.slane %v9972_v6, %v11465_v33 }
 0x118   : > { %v4230_v22 = vpop.f32.mrf.mxu0  ;;  %v4430_v47 = vpop.f32.mrf.mxu1  ;;  %4570 = vmatmul.mubr.bf16.gmra.mxu1 %v3927_v2  ;;  %v3634_v23 = vcombine.high %v12301_v12, %v12306_v15 }
 0x119   : > { %v4675_v52 = vcombine.high %v4593_v40, %v4593_v40  ;;  %v4682_v11 = vrot.slane %v4593_v40, %v11465_v33  ;;  %v4431_v53 = vadd.f32 %v4430_v47, %v4230_v22 }
 0x11a   : > { %v4232_v55 = vpop.f32.mrf.mxu0  ;;  %v4432_v63 = vpop.f32.mrf.mxu1 }
 0x11b   : > { %v4689_v60 = vrot.slane %v4675_v52, %v11465_v33  ;;  %v4690_v44 = vcombine.high %v4682_v11, %v4682_v11  ;;  %v4594_v57 = vmax.f32 %v4431_v53, 0.0 }
 0x11c   : > { %v4235_v58 = vpop.f32.mrf.mxu0  ;;  %v4435_v5 = vpop.f32.mrf.mxu1 }
 0x11d   : > { %v4691_v43 = vcombine.high %v4689_v60, %v4689_v60  ;;  %v5363_v50 = vcombine.low %v4682_v11, %v4690_v44  ;;  %v6164_v13 = vcombine.low %v4690_v44, %v4689_v60  ;;  %v4692_v56 = vcombine.high %v4594_v57, %v4594_v57  ;;  %4386 = vmatmul.mubr.bf16.gmra.mxu0 %v3933_v37 }
 0x11e   : > { %v4237_v16 = vpop.f32.mrf.mxu0  ;;  %v4699_v17 = vrot.slane %v4594_v57, %v11465_v33  ;;  %v4436_v45 = vadd.f32 %v4435_v5, %v4235_v58  ;;  %v4437_v21 = vpop.f32.mrf.mxu1 }
 0x11f   : > { %v5364_v18 = vcombine.low %v4689_v60, %v4691_v43  ;;  %v5371_v49 = vrot.slane %v5363_v50, %v11465_v33  ;;  %v12313_v54 = vrot.slane %v6164_v13, %v11465_v33  ;;  %v4706_v25 = vrot.slane %v4692_v56, %v11465_v33 }
 0x120   : > { %v4238_v59 = vpop.f32.mrf.mxu0  ;;  %v4707_v26 = vcombine.high %v4699_v17, %v4699_v17  ;;  %v6165_v28 = vcombine.low %v4691_v43, %v4699_v17  ;;  %v4595_v29 = vmax.f32 %v4436_v45, 0.0  ;;  %v4438_v30 = vpop.f32.mrf.mxu1 }
 0x121   : > { %v5378_v31 = vrot.slane %v5364_v18, %v11465_v33  ;;  %v4708_v62 = vcombine.high %v4706_v25, %v4706_v25  ;;  %v4439_v20 = vadd.f32 %v4438_v30, %v4238_v59 }
 0x122   : > { %v4240_v24 = vpop.f32.mrf.mxu0  ;;  %v5380_v36 = vcombine.low %v4699_v17, %v4707_v26  ;;  %v12323_v38 = vrot.slane %v6165_v28, %v11465_v33  ;;  %v6181_v35 = vcombine.low %v4707_v26, %v4706_v25  ;;  %v4709_v40 = vcombine.high %v4595_v29, %v4595_v29  ;;  %v4440_v22 = vpop.f32.mrf.mxu1 }
 0x123   : > { %v12325_v39 = vcombine.low %v5371_v49, %v5378_v31  ;;  %v5381_v34 = vcombine.low %v4706_v25, %v4708_v62  ;;  %v4716_v46 = vrot.slane %v4595_v29, %v11465_v33  ;;  %v4596_v47 = vmax.f32 %v4439_v20, 0.0 }
 0x124   : > { %v4243_v42 = vpop.f32.mrf.mxu0  ;;  %v5388_v4 = vrot.slane %v5380_v36, %v11465_v33  ;;  %v12335_v14 = vrot.slane %v6181_v35, %v11465_v33  ;;  %v12338_v52 = vrot.slane %v4709_v40, %v11465_v33  ;;  %v4443_v11 = vpop.f32.mrf.mxu1 }
 0x125   : > { %v5395_v53 = vrot.slane %v5381_v34, %v11465_v33  ;;  %v4724_v55 = vcombine.high %v4716_v46, %v4716_v46  ;;  %v5945_v61 = vrot.slane %v4716_v46, %v11465_v33  ;;  %v6182_v27 = vcombine.low %v4708_v62, %v4716_v46 }
 0x126   : > { %v4245_v37 = vpop.f32.mrf.mxu0  ;;  %v12344_v63 = vcombine.high %v12338_v52, %v12338_v52  ;;  %v4726_v0 = vcombine.high %v4596_v47, %v4596_v47  ;;  %v12347_v7 = vrot.slane %v4596_v47, %v11465_v33  ;;  %v4444_v8 = vadd.f32 %v4443_v11, %v4243_v42  ;;  %v4445_v9 = vpop.f32.mrf.mxu1 }
 0x127   : > { %v5397_v60 = vcombine.low %v4724_v55, %v12338_v52  ;;  %v6055_v44 = vrot.slane %v5945_v61, 1  ;;  %v12351_v57 = vrot.slane %v6182_v27, %v11465_v33  ;;  %v5396_v3 = vcombine.low %v5388_v4, %v5395_v53 }
 0x128   : > { %v4246_v58 = vpop.f32.mrf.mxu0  ;;  %v6198_v5 = vcombine.low %v12338_v52, %v12344_v63  ;;  %v12356_v2 = vrot.slane %v4726_v0, %v11465_v33  ;;  %v12360_v10 = vcombine.high %v12347_v7, %v12347_v7  ;;  %v5398_v6 = vcombine.low %v12344_v63, %v12347_v7  ;;  %v4446_v43 = vpop.f32.mrf.mxu1 }
 0x129   : > { %v5405_v50 = vrot.slane %v5397_v60, %v11465_v33  ;;  %v4597_v56 = vmax.f32 %v4444_v8, 0.0  ;;  %v4447_v16 = vadd.f32 %v4446_v43, %v4246_v58  ;;  %v6052_v30 = vrot.slane %v12325_v39, 1 }
 0x12a   : > { %v4248_v17 = vpop.f32.mrf.mxu0  ;;  %v12369_v45 = vcombine.high %v12356_v2, %v12356_v2  ;;  %v5412_v21 = vrot.slane %v5398_v6, %v11465_v33  ;;  %v5414_v18 = vcombine.low %v12360_v10, %v12356_v2  ;;  %v6199_v49 = vcombine.low %v12347_v7, %v12360_v10  ;;  %v4448_v25 = vpop.f32.mrf.mxu1 }
 0x12b   : > { %v4743_v59 = vcombine.high %v4597_v56, %v4597_v56  ;;  %v12377_v26 = vrot.slane %v4597_v56, %v11465_v33  ;;  %v4598_v28 = vmax.f32 %v4447_v16, 0.0  ;;  %v6053_v20 = vrot.slane %v5396_v3, 1  ;;  %v10937_v56 = vld [vmem:[%s14708_s2 + $0x170] sm:$0xff]  }
 0x12c   : > { %v4251_v29 = vpop.f32.mrf.mxu0  ;;  %v5422_v31 = vrot.slane %v5414_v18, %v11465_v33  ;;  %v6215_v62 = vcombine.low %v12356_v2, %v12369_v45  ;;  %v6912_v24 = vpack.c.bf16 %v5396_v3, %v12325_v39  ;;  %v4451_v47 = vpop.f32.mrf.mxu1  ;;  %v5413_v39 = vcombine.low %v5405_v50, %v5412_v21 }
 0x12d   : > { %v4757_v36 = vrot.slane %v4743_v59, %v11465_v33  ;;  %v12387_v35 = vcombine.high %v12377_v26, %v12377_v26  ;;  %v5415_v40 = vcombine.low %v12369_v45, %v12377_v26  ;;  %v4760_v22 = vcombine.high %v4598_v28, %v4598_v28 }
 0x12e   : > { %v4253_v34 = vpop.f32.mrf.mxu0  ;;  %v12392_v46 = vrot.slane %v4598_v28, %v11465_v33  ;;  %v6054_v42 = vsel %vm6051_vm0, %v6052_v30, %v6053_v20  ;;  %v6056_v4 = vsel %vm6051_vm0, %v6053_v20, %v6055_v44  ;;  %v4452_v8 = vadd.f32 %v4451_v47, %v4251_v29  ;;  %v4453_v9 = vpop.f32.mrf.mxu1  ;;  %v10936_v44 = vld [vmem:[%s14708_s2 + $0x138] sm:$0xff]   ;;  %v10938_v47 = vld [vmem:[%s14708_s2 + $0x130] sm:$0xff]  }
 0x12f   : > { %v12396_v11 = vcombine.high %v4757_v36, %v4757_v36  ;;  %v5429_v53 = vrot.slane %v5415_v40, %v11465_v33  ;;  %v5952_v55 = vrot.slane %v12387_v35, %v11465_v33  ;;  %v6216_v61 = vcombine.low %v12377_v26, %v12387_v35 }
 0x130   : > { %v4254_v27 = vpop.f32.mrf.mxu0  ;;  %v12404_v37 = vrot.slane %v4760_v22, %v11465_v33  ;;  %v12408_v0 = vcombine.high %v12392_v46, %v12392_v46  ;;  %v6913_v60 = vpack.c.bf16 %v6056_v4, %v6054_v42  ;;  %v6057_v50 = vrot.slane %v5413_v39, 1  ;;  %v4454_v25 = vpop.f32.mrf.mxu1 }
 0x131   : > { %v5431_v58 = vcombine.low %v4757_v36, %v12396_v11  ;;  %v6232_v3 = vcombine.low %v12396_v11, %v12392_v46  ;;  %v5430_v43 = vcombine.low %v5422_v31, %v5429_v53  ;;  %v4599_v18 = vmax.f32 %v4452_v8, 0.0 }
 0x132   : > { %v4256_v6 = vpop.f32.mrf.mxu0  ;;  %v12421_v16 = vcombine.high %v12404_v37, %v12404_v37  ;;  %v5432_v17 = vcombine.low %v12392_v46, %v12408_v0  ;;  %7574 = vmatprep.mubr.bf16.mxu0 %v6913_v60  ;;  %v4455_v28 = vadd.f32 %v4454_v25, %v4254_v27  ;;  %v6060_v31 = vrot.slane %v5952_v55, 1  ;;  %v4456_v34 = vpop.f32.mrf.mxu1 }
 0x133   : > { %v5439_v59 = vrot.slane %v5431_v58, %v11465_v33  ;;  %7575 = vmatmul.mubr.bf16.vlgmr.msra.gmra.mxu0 %v6912_v24  ;;  %v6058_v30 = vrot.slane %v5430_v43, 1  ;;  %v4777_v40 = vcombine.high %v4599_v18, %v4599_v18  ;;  %v12432_v22 = vrot.slane %v4599_v18, %v11465_v33 }
 0x134   : > { %v4259_v29 = vpop.f32.mrf.mxu0  ;;  %v5446_v20 = vrot.slane %v5432_v17, %v11465_v33  ;;  %v5448_v36 = vcombine.low %v12404_v37, %v12421_v16  ;;  %10344 = vmatpush3.bf16.msra.mxu0 %v10936_v44  ;;  %v4600_v24 = vmax.f32 %v4455_v28, 0.0  ;;  %v12439_v55 = vpack.c.bf16 %v5430_v43, %v5413_v39  ;;  %v10939_v44 = vld [vmem:[%s14708_s2 + $0x168] sm:$0xff]   ;;  %v4459_v6 = vpop.f32.mrf.mxu1 }
 0x135   : > { %v6059_v4 = vsel %vm6051_vm0, %v6057_v50, %v6058_v30  ;;  %v6061_v53 = vsel %vm6051_vm0, %v6058_v30, %v6060_v31  ;;  %10345 = vmatprep.subr.bf16.mxu0 %v10937_v56  ;;  %v12443_v8 = vrot.slane %v4777_v40, %v11465_v33  ;;  %v12447_v9 = vcombine.high %v12432_v22, %v12432_v22  ;;  %v10940_v30 = vld [vmem:[%s14708_s2 + $0x128] sm:$0xff]  }
 0x136   : > { %v4261_v42 = vpop.f32.mrf.mxu0  ;;  %v5456_v27 = vrot.slane %v5448_v36, %v11465_v33  ;;  %v4794_v58 = vcombine.high %v4600_v24, %v4600_v24  ;;  %v12455_v39 = vrot.slane %v4600_v24, %v11465_v33  ;;  %v12457_v43 = vpack.c.bf16 %v6061_v53, %v6059_v4  ;;  %v4461_v40 = vpop.f32.mrf.mxu1 }
 0x137   : > { %v12461_v56 = vrot.slane %v12309_v48, %v11465_v33  ;;  %v5449_v17 = vcombine.low %v12432_v22, %v12447_v9  ;;  %v5959_v18 = vrot.slane %v12443_v8, %v11465_v33  ;;  %v4793_v28 = vcombine.high %v12443_v8, %v12443_v8  ;;  %v10944_v40 = vld [vmem:[%s14708_s2 + $0x118] sm:$0xff]  }
 0x138   : > { %v4262_v50 = vpop.f32.mrf.mxu0  ;;  %10346 = vmatpush3.bf16.msra.mxu0 %v10938_v47  ;;  %v12475_v48 = vrot.slane %v4794_v58, %v11465_v33  ;;  %v12479_v31 = vcombine.high %v12455_v39, %v12455_v39  ;;  %v4460_v36 = vadd.f32 %v4459_v6, %v4259_v29  ;;  %7582 = vmatprep.mubr.bf16.mxu0 %v12457_v43  ;;  %v10941_v47 = vld [vmem:[%s14708_s2 + $0x160] sm:$0xff]   ;;  %v4462_v1 = vpop.f32.mrf.mxu1 }
 0x139   : > { %v3670_v24 = vcombine.high %v12320_v32, %v12461_v56  ;;  %v5463_v42 = vrot.slane %v5449_v17, %v11465_v33  ;;  %v5465_v4 = vcombine.low %v4793_v28, %v12455_v39  ;;  %v5447_v53 = vcombine.low %v5439_v59, %v5446_v20  ;;  %10347 = vmatprep.subr.bf16.mxu0 %v10939_v44  ;;  %v10942_v44 = vld [vmem:[%s14708_s2 + $0x120] sm:$0xff]  }
 0x13a   : > { %v4264_v34 = vpop.f32.mrf.mxu0  ;;  %v6065_v58 = vrot.slane %v5959_v18, 1  ;;  %v12491_v29 = vcombine.high %v12475_v48, %v12475_v48  ;;  %v5466_v6 = vcombine.low %v12479_v31, %v12475_v48  ;;  %v4463_v28 = vadd.f32 %v4462_v1, %v4262_v50  ;;  %v4464_v1 = vpop.f32.mrf.mxu1 }
 0x13b   : > { %v4601_v34 = vmax.f32 %v4460_v36, 0.0  ;;  %7583 = vmatmul.mubr.bf16.gmra.mxu0 %v12439_v55  ;;  %v5473_v17 = vrot.slane %v5465_v4, %v11465_v33  ;;  %v3932_v59 = vpack.c.bf16 %v3670_v24, %v3634_v23  ;;  %v5464_v20 = vcombine.low %v5456_v27, %v5463_v42  ;;  %v10943_v23 = vld [vmem:[%s14708_s2 + $0x158] sm:$0xff]  }
 0x13c   : > { %10348 = vmatpush3.bf16.msra.mxu0 %v10940_v30  ;;  %v5480_v18 = vrot.slane %v5466_v6, %v11465_v33  ;;  %v4602_v27 = vmax.f32 %v4463_v28, 0.0  ;;  %v6062_v50 = vrot.slane %v5447_v53, 1  ;;  %v3633_v24 = vcombine.low %v12301_v12, %v12306_v15 }
 0x13d   : > { %v4811_v13 = vcombine.high %v4601_v34, %v4601_v34  ;;  %v12509_v51 = vrot.slane %v4601_v34, %v11465_v33  ;;  %10349 = vmatprep.subr.bf16.mxu0 %v10941_v47  ;;  %4577 = vmatprep.mubr.bf16.mxu1 %v3932_v59  ;;  %v6063_v30 = vrot.slane %v5464_v20, 1  ;;  %v3669_v6 = vcombine.low %v12320_v32, %v12461_v56  ;;  %v4267_v59 = vpop.f32.mrf.mxu0  ;;  %v10934_v56 = vld [vmem:[%s11443_s5 + $0x6b0] ss:$8 sps:$4 sm:$0x33]  }
 0x13e   : > { %v4828_v34 = vcombine.high %v4602_v27, %v4602_v27  ;;  %v4835_v28 = vrot.slane %v4602_v27, %v11465_v33  ;;  %v12553_v25 = vpack.c.bf16 %v5464_v20, %v5447_v53  ;;  %v14729_v46 = vcombine.low %v12421_v16, %v12432_v22 }
 0x13f   : > { %v12517_v42 = vrot.slane %v4811_v13, %v11465_v33  ;;  %v12521_v4 = vcombine.high %v12509_v51, %v12509_v51  ;;  %v5482_v47 = vcombine.low %v12491_v29, %v12509_v51  ;;  %v6064_v1 = vsel %vm6051_vm0, %v6062_v50, %v6063_v30  ;;  %v4467_v53 = vpop.f32.mrf.mxu1 }
 0x140   : > { %v6066_v12 = vsel %vm6051_vm0, %v6063_v30, %v6065_v58  ;;  %10350 = vmatpush3.bf16.msra.mxu0 %v10942_v44  ;;  %v12541_v27 = vrot.slane %v4828_v34, %v11465_v33  ;;  %v12543_v50 = vcombine.high %v4835_v28, %v4835_v28  ;;  %v4269_v58 = vpop.f32.mrf.mxu0  ;;  %v3931_v30 = vpack.c.bf16 %v3669_v6, %v3633_v24  ;;  %v10945_v34 = vld [vmem:[%s14708_s2 + $0x150] sm:$0xff]  }
 0x141   : > { %v12532_v15 = vcombine.high %v12517_v42, %v12517_v42  ;;  %v5483_v13 = vcombine.low %v12521_v4, %v12517_v42  ;;  %v5490_v36 = vrot.slane %v5482_v47, %v11465_v33  ;;  %10351 = vmatprep.subr.bf16.mxu0 %v10943_v23  ;;  %v12545_v44 = vpack.c.bf16 %v6066_v12, %v6064_v1  ;;  %v4469_v60 = vpop.f32.mrf.mxu1 }
 0x142   : > { %v5481_v23 = vcombine.low %v5473_v17, %v5480_v18  ;;  %v12560_v1 = vcombine.high %v12541_v27, %v12541_v27  ;;  %v5499_v24 = vcombine.low %v4835_v28, %v12543_v50  ;;  %v4270_v12 = vpop.f32.mrf.mxu0  ;;  %4578 = vmatmul.mubr.bf16.gmra.mxu1 %v3931_v30  ;;  %v2229_v18 = vrot.slane %v10934_v56, %v11465_v33  ;;  %v10946_v30 = vld [vmem:[%s14708_s2 + $0x110] sm:$0xff]   ;;  %v10947_v56 = vld [vmem:[%s14708_s2 + $0x148] sm:$0xff]  }
 0x143   : > { %14726 = vst [vmem:[#allocation5_spill] sm:$0xff] %v12545_v44  ;;  %v5497_v47 = vrot.slane %v5483_v13, %v11465_v33  ;;  %7590 = vmatprep.mubr.bf16.mxu0 %v12545_v44  ;;  %v5966_v20 = vrot.slane %v12532_v15, %v11465_v33  ;;  %v4468_v58 = vadd.f32 %v4467_v53, %v4267_v59 }
 0x144   : > { %7591 = vmatmul.mubr.bf16.gmra.mxu0 %v12553_v25  ;;  %v5500_v13 = vcombine.low %v12541_v27, %v12560_v1  ;;  %v5507_v28 = vrot.slane %v5499_v24, %v11465_v33  ;;  %v4272_v6 = vpop.f32.mrf.mxu0  ;;  %v6067_v32 = vrot.slane %v5481_v23, 1  ;;  %v2230_v21 = vcombine.low %v12256_v19, %v2229_v18 }
 0x145   : > { %v5498_v17 = vcombine.low %v5490_v36, %v5497_v47  ;;  %10352 = vmatpush3.bf16.msra.mxu0 %v10944_v40  ;;  %v6070_v47 = vrot.slane %v5966_v20, 1  ;;  %v6206_v59 = vrot.slane %v6198_v5, %v11465_v33  ;;  %v4603_v24 = vmax.f32 %v4468_v58, 0.0 }
 0x146   : > { %10353 = vmatprep.subr.bf16.mxu0 %v10945_v34  ;;  %v5514_v40 = vrot.slane %v5500_v13, %v11465_v33  ;;  %v6213_v60 = vrot.slane %v6199_v49, %v11465_v33  ;;  %v6223_v19 = vrot.slane %v6215_v62, %v11465_v33  ;;  %v4470_v34 = vpop.f32.mrf.mxu1  ;;  %v4275_v6 = vpop.f32.mrf.mxu0  ;;  %v9976_v63 = vcombine.high %v12253_v41, %v2230_v21  ;;  %v10948_v41 = vld [vmem:[%s14708_s2 + $0x108] sm:$0xff]  }
 0x147   : > { %v6068_v36 = vrot.slane %v5498_v17, 1  ;;  %v6230_v5 = vrot.slane %v6216_v61, %v11465_v33  ;;  %v4845_v7 = vcombine.high %v4603_v24, %v4603_v24  ;;  %v12601_v10 = vrot.slane %v4603_v24, %v11465_v33 }
 0x148   : > { %v4471_v49 = vadd.f32 %v4470_v34, %v4270_v12  ;;  %v12603_v2 = vpack.c.bf16 %v5498_v17, %v5481_v23  ;;  %v4472_v45 = vpop.f32.mrf.mxu1  ;;  %v4277_v62 = vpop.f32.mrf.mxu0  ;;  %v3686_v20 = vrot.slane %v9976_v63, %v11465_v33  ;;  %v6214_v26 = vcombine.low %v6206_v59, %v6213_v60  ;;  %v10949_v17 = vld [vmem:[%s14708_s2 + $0x140] sm:$0xff]   ;;  %v10951_v63 = vld [vmem:[%s14708_s2 + $0xf8] sm:$0xff]  }
 0x149   : > { %v6069_v53 = vsel %vm6051_vm0, %v6067_v32, %v6068_v36  ;;  %v6071_v52 = vsel %vm6051_vm0, %v6068_v36, %v6070_v47  ;;  %10354 = vmatpush3.bf16.msra.mxu0 %v10946_v30  ;;  %v6231_v35 = vcombine.low %v6223_v19, %v6230_v5  ;;  %v12612_v61 = vrot.slane %v4845_v7, %v11465_v33  ;;  %v10950_v19 = vld [vmem:[%s14708_s2 + $0x100] sm:$0xff]  }
 0x14a   : > { %v12605_v32 = vpack.c.bf16 %v6071_v52, %v6069_v53  ;;  %10355 = vmatprep.subr.bf16.mxu0 %v10947_v56  ;;  %v12616_v21 = vcombine.high %v12601_v10, %v12601_v10  ;;  %v6301_v23 = vcombine.low %v12560_v1, %v12601_v10  ;;  %v4604_v12 = vmax.f32 %v4471_v49, 0.0  ;;  %v4278_v13 = vpop.f32.mrf.mxu0  ;;  %v4475_v45 = vpop.f32.mrf.mxu1  ;;  %10231 = vmatprep.subr.bf16.mxu1 %v10951_v63 }
 0x14b   : > { %v12623_v18 = vcombine.low %v5507_v28, %v5514_v40  ;;  %v3688_v58 = vcombine.high %v3686_v20, %v3686_v20  ;;  %v3935_v30 = vpack.c.bf16 %v3686_v20, %v3686_v20  ;;  %v12626_v36 = vpack.c.bf16 %v6231_v35, %v6214_v26 }
 0x14c   : > { %14727 = vst [vmem:[#allocation6_spill] sm:$0xff] %v12605_v32  ;;  %7598 = vmatprep.mubr.bf16.mxu0 %v12605_v32  ;;  %v12630_v47 = vcombine.high %v12612_v61, %v12612_v61  ;;  %v5516_v56 = vcombine.low %v12601_v10, %v12616_v21  ;;  %v6317_v59 = vcombine.low %v12616_v21, %v12612_v61  ;;  %v4280_v40 = vpop.f32.mrf.mxu0  ;;  %v4477_v26 = vpop.f32.mrf.mxu1 }
 0x14d   : > { %v4862_v24 = vcombine.high %v4604_v12, %v4604_v12  ;;  %7599 = vmatmul.mubr.bf16.gmra.mxu0 %v12603_v2  ;;  %v12638_v28 = vrot.slane %v4604_v12, %v11465_v33  ;;  %v3936_v60 = vpack.c.bf16 %v3688_v58, %v3688_v58  ;;  %v6240_v34 = vrot.slane %v6232_v3, %v11465_v33 }
 0x14e   : > { %10356 = vmatpush3.bf16.msra.mxu0 %v10948_v41  ;;  %v14728_v53 = vcombine.low %v12408_v0, %v12404_v37  ;;  %v5517_v5 = vcombine.low %v12612_v61, %v12630_v47  ;;  %v5524_v7 = vrot.slane %v5516_v56, %v11465_v33  ;;  %v6257_v11 = vrot.slane %v14729_v46, %v11465_v33 }
 0x14f   : > { %v12658_v49 = vrot.slane %v4862_v24, %v11465_v33  ;;  %10357 = vmatprep.subr.bf16.mxu0 %v10949_v17  ;;  %v4877_v37 = vcombine.high %v12638_v28, %v12638_v28  ;;  %v5973_v0 = vrot.slane %v12638_v28, %v11465_v33  ;;  %v6318_v3 = vcombine.low %v12630_v47, %v12638_v28  ;;  %v4478_v24 = vpop.f32.mrf.mxu1 }
 0x150   : > { %v6247_v52 = vrot.slane %v14728_v53, %v11465_v33  ;;  %v4476_v62 = vadd.f32 %v4475_v45, %v4275_v6  ;;  %4585 = vmatprep.mubr.bf16.mxu1 %v3936_v60  ;;  %v5531_v20 = vrot.slane %v5517_v5, %v11465_v33  ;;  %v14730_v22 = vcombine.low %v12447_v9, %v12443_v8  ;;  %v4283_v63 = vpop.f32.mrf.mxu0 }
 0x151   : > { %v12673_v41 = vcombine.high %v12658_v49, %v12658_v49  ;;  %4586 = vmatmul.mubr.bf16.gmra.mxu1 %v3935_v30  ;;  %v5533_v12 = vcombine.low %v4877_v37, %v12658_v49  ;;  %v6072_v6 = vrot.slane %v12623_v18, 1  ;;  %v14731_v58 = vcombine.low %v12455_v39, %v12479_v31  ;;  %v4480_v31 = vpop.f32.mrf.mxu1 }
 0x152   : > { %v6248_v16 = vcombine.low %v6240_v34, %v6247_v52  ;;  %v6264_v35 = vrot.slane %v14730_v22, %v11465_v33  ;;  %v4605_v17 = vmax.f32 %v4476_v62, 0.0  ;;  %10358 = vmatpush3.bf16.msra.mxu0 %v10950_v19  ;;  %v5532_v40 = vcombine.low %v5524_v7, %v5531_v20 }
 0x153   : > { %v6274_v56 = vrot.slane %v14731_v58, %v11465_v33  ;;  %v6334_v30 = vcombine.low %v12658_v49, %v12673_v41  ;;  %v14732_v8 = vcombine.low %v12475_v48, %v12491_v29  ;;  %v6075_v34 = vrot.slane %v5973_v0, 1 }
 0x154   : > { %v6265_v60 = vcombine.low %v6257_v11, %v6264_v35  ;;  %v4879_v53 = vcombine.high %v4605_v17, %v4605_v17  ;;  %v12692_v19 = vrot.slane %v4605_v17, %v11465_v33  ;;  %v4479_v52 = vadd.f32 %v4478_v24, %v4278_v13  ;;  %v4285_v13 = vpop.f32.mrf.mxu0  ;;  %v4483_v58 = vpop.f32.mrf.mxu1 }
 0x155   : > { %v6281_v9 = vrot.slane %v14732_v8, %v11465_v33  ;;  %v5541_v39 = vrot.slane %v5533_v12, %v11465_v33  ;;  %v6073_v5 = vrot.slane %v5532_v40, 1  ;;  %v14733_v62 = vcombine.low %v12509_v51, %v12521_v4 }
 0x156   : > { %v12695_v45 = vpack.c.bf16 %v6265_v60, %v6248_v16  ;;  %v12698_v46 = vrot.slane %v4879_v53, %v11465_v33  ;;  %v12702_v48 = vcombine.high %v12692_v19, %v12692_v19  ;;  %v5534_v29 = vcombine.low %v12673_v41, %v12692_v19  ;;  %v4485_v31 = vpop.f32.mrf.mxu1 }
 0x157   : > { %v6282_v7 = vcombine.low %v6274_v56, %v6281_v9  ;;  %v4606_v11 = vmax.f32 %v4479_v52, 0.0  ;;  %v6074_v37 = vsel %vm6051_vm0, %v6072_v6, %v6073_v5  ;;  %v6076_v0 = vsel %vm6051_vm0, %v6073_v5, %v6075_v34  ;;  %v4286_v6 = vpop.f32.mrf.mxu0 }
 0x158   : > { %v6291_v20 = vrot.slane %v14733_v62, %v11465_v33  ;;  %v14734_v26 = vcombine.low %v12517_v42, %v12532_v15  ;;  %v12718_v22 = vcombine.high %v12698_v46, %v12698_v46  ;;  %v5548_v35 = vrot.slane %v5534_v29, %v11465_v33 }
 0x159   : > { %v5550_v12 = vcombine.low %v12702_v48, %v12698_v46  ;;  %v6335_v17 = vcombine.low %v12692_v19, %v12702_v48  ;;  %v4896_v51 = vcombine.high %v4606_v11, %v4606_v11  ;;  %v12726_v4 = vrot.slane %v4606_v11, %v11465_v33  ;;  %v4288_v60 = vpop.f32.mrf.mxu0 }
 0x15a   : > { %v6298_v16 = vrot.slane %v14734_v26, %v11465_v33  ;;  %v12728_v42 = vpack.c.bf16 %v6076_v0, %v6074_v37  ;;  %v6351_v56 = vcombine.low %v12698_v46, %v12718_v22  ;;  %v4484_v24 = vadd.f32 %v4483_v58, %v4283_v63  ;;  %v4486_v0 = vpop.f32.mrf.mxu1 }
 0x15b   : > { %v12733_v8 = vpack.c.bf16 %v5532_v40, %v12623_v18  ;;  %v5549_v9 = vcombine.low %v5541_v39, %v5548_v35  ;;  %v4910_v34 = vrot.slane %v4896_v51, %v11465_v33  ;;  %v12738_v53 = vcombine.high %v12726_v4, %v12726_v4 }
 0x15c   : > { %14735 = vst [vmem:[#allocation7_spill] sm:$0xff] %v12728_v42  ;;  %v6299_v15 = vcombine.low %v6291_v20, %v6298_v16  ;;  %v5551_v52 = vcombine.low %v12718_v22, %v12726_v4  ;;  %7606 = vmatprep.mubr.bf16.mxu0 %v12728_v42  ;;  %v5558_v63 = vrot.slane %v5550_v12, %v11465_v33  ;;  %v4607_v29 = vmax.f32 %v4484_v24, 0.0  ;;  %v4488_v16 = vpop.f32.mrf.mxu1 }
 0x15d   : > { %7607 = vmatmul.mubr.bf16.gmra.mxu0 %v12733_v8  ;;  %v14736_v18 = vcombine.low %v12543_v50, %v12541_v27  ;;  %v6315_v39 = vrot.slane %v6301_v23, %v11465_v33  ;;  %v4912_v11 = vcombine.high %v4910_v34, %v4910_v34  ;;  %v6352_v37 = vcombine.low %v12726_v4, %v12738_v53 }
 0x15e   : > { %v12743_v5 = vpack.c.bf16 %v6299_v15, %v6282_v7  ;;  %v5565_v13 = vrot.slane %v5551_v52, %v11465_v33  ;;  %v5980_v7 = vrot.slane %v12738_v53, %v11465_v33  ;;  %v4913_v62 = vcombine.high %v4607_v29, %v4607_v29  ;;  %v4291_v52 = vpop.f32.mrf.mxu0 }
 0x15f   : > { %v6308_v40 = vrot.slane %v14736_v18, %v11465_v33  ;;  %v4920_v20 = vrot.slane %v4607_v29, %v11465_v33  ;;  %v4487_v27 = vadd.f32 %v4486_v0, %v4286_v6  ;;  %v5567_v26 = vcombine.low %v4910_v34, %v4912_v11 }
 0x160   : > { %v5566_v35 = vcombine.low %v5558_v63, %v5565_v13  ;;  %v6077_v1 = vrot.slane %v5549_v9, 1  ;;  %v4927_v10 = vrot.slane %v4913_v62, %v11465_v33  ;;  %v6080_v15 = vrot.slane %v5980_v7, 1 }
 0x161   : > { %v6316_v50 = vcombine.low %v6308_v40, %v6315_v39  ;;  %v4928_v23 = vcombine.high %v4920_v20, %v4920_v20  ;;  %v6368_v12 = vcombine.low %v4912_v11, %v4920_v20  ;;  %v4608_v51 = vmax.f32 %v4487_v27, 0.0  ;;  %v4293_v40 = vpop.f32.mrf.mxu0 }
 0x162   : > { %v6078_v58 = vrot.slane %v5566_v35, 1  ;;  %v6325_v4 = vrot.slane %v6317_v59, %v11465_v33  ;;  %v6332_v6 = vrot.slane %v6318_v3, %v11465_v33  ;;  %v4929_v24 = vcombine.high %v4927_v10, %v4927_v10  ;;  %v4491_v62 = vpop.f32.mrf.mxu1 }
 0x163   : > { %v5568_v60 = vcombine.low %v4920_v20, %v4928_v23  ;;  %v6369_v34 = vcombine.low %v4928_v23, %v4927_v10  ;;  %v4930_v53 = vcombine.high %v4608_v51, %v4608_v51  ;;  %v4937_v31 = vrot.slane %v4608_v51, %v11465_v33  ;;  %v4294_v20 = vpop.f32.mrf.mxu0 }
 0x164   : > { %v6079_v63 = vsel %vm6051_vm0, %v6077_v1, %v6078_v58  ;;  %v6081_v29 = vsel %vm6051_vm0, %v6078_v58, %v6080_v15  ;;  %v6333_v18 = vcombine.low %v6325_v4, %v6332_v6  ;;  %v5584_v21 = vcombine.low %v4927_v10, %v4929_v24  ;;  %v4493_v1 = vpop.f32.mrf.mxu1 }
 0x165   : > { %v5582_v61 = vrot.slane %v5568_v60, %v11465_v33  ;;  %v4944_v59 = vrot.slane %v4930_v53, %v11465_v33  ;;  %v12775_v47 = vpack.c.bf16 %v6081_v29, %v6079_v63  ;;  %v4945_v28 = vcombine.high %v4937_v31, %v4937_v31  ;;  %v4296_v10 = vpop.f32.mrf.mxu0 }
 0x166   : > { %v6385_v3 = vcombine.low %v4929_v24, %v4937_v31  ;;  %v12777_v39 = vpack.c.bf16 %v5566_v35, %v5549_v9  ;;  %v12779_v11 = vpack.c.bf16 %v6333_v18, %v6316_v50  ;;  %v5575_v13 = vrot.slane %v5567_v26, %v11465_v33  ;;  %v4494_v4 = vpop.f32.mrf.mxu1 }
 0x167   : > { %14737 = vst [vmem:[#allocation8_spill] sm:$0xff] %v12775_v47  ;;  %v5592_v7 = vrot.slane %v5584_v21, %v11465_v33  ;;  %v5987_v0 = vrot.slane %v4944_v59, %v11465_v33  ;;  %7614 = vmatprep.mubr.bf16.mxu0 %v12775_v47  ;;  %v6342_v27 = vrot.slane %v6334_v30, %v11465_v33  ;;  %v4299_v19 = vpop.f32.mrf.mxu0 }
 0x168   : > { %v5585_v16 = vcombine.low %v4937_v31, %v4945_v28  ;;  %v6386_v9 = vcombine.low %v4945_v28, %v4944_v59  ;;  %v4492_v35 = vadd.f32 %v4491_v62, %v4291_v52  ;;  %7615 = vmatmul.mubr.bf16.gmra.mxu0 %v12777_v39  ;;  %v6349_v50 = vrot.slane %v6335_v17, %v11465_v33 }
 0x169   : > { %v4946_v26 = vcombine.high %v4944_v59, %v4944_v59  ;;  %v5583_v23 = vcombine.low %v5575_v13, %v5582_v61  ;;  %v6359_v49 = vrot.slane %v6351_v56, %v11465_v33  ;;  %v6366_v41 = vrot.slane %v6352_v37, %v11465_v33  ;;  %v4496_v37 = vpop.f32.mrf.mxu1  ;;  %v4301_v53 = vpop.f32.mrf.mxu0 }
 0x16a   : > { %v5599_v30 = vrot.slane %v5585_v16, %v11465_v33  ;;  %v4609_v51 = vmax.f32 %v4492_v35, 0.0  ;;  %v6350_v58 = vcombine.low %v6342_v27, %v6349_v50  ;;  %v6376_v15 = vrot.slane %v6368_v12, %v11465_v33 }
 0x16b   : > { %v6367_v48 = vcombine.low %v6359_v49, %v6366_v41  ;;  %v6383_v17 = vrot.slane %v6369_v34, %v11465_v33  ;;  %v6393_v6 = vrot.slane %v6385_v3, %v11465_v33  ;;  %v6400_v24 = vrot.slane %v6386_v9, %v11465_v33  ;;  %v4499_v40 = vpop.f32.mrf.mxu1  ;;  %v4302_v28 = vpop.f32.mrf.mxu0 }
 0x16c   : > { %v4947_v60 = vcombine.high %v4609_v51, %v4609_v51  ;;  %v4954_v46 = vrot.slane %v4609_v51, %v11465_v33  ;;  %v4495_v22 = vadd.f32 %v4494_v4, %v4294_v20  ;;  %v5600_v56 = vcombine.low %v5592_v7, %v5599_v30 }
 0x16d   : > { %v12805_v52 = vpack.c.bf16 %v6367_v48, %v6350_v58  ;;  %v6384_v31 = vcombine.low %v6376_v15, %v6383_v17  ;;  %v6401_v12 = vcombine.low %v6393_v6, %v6400_v24  ;;  %v14738_v63 = vcombine.low %v12313_v54, %v12323_v38  ;;  %v4501_v9 = vpop.f32.mrf.mxu1  ;;  %v4304_v35 = vpop.f32.mrf.mxu0 }
 0x16e   : > { %v14739_v34 = vcombine.low %v12335_v14, %v12351_v57  ;;  %v4961_v18 = vrot.slane %v4947_v60, %v11465_v33  ;;  %v4962_v61 = vcombine.high %v4954_v46, %v4954_v46  ;;  %v5601_v21 = vcombine.low %v4946_v26, %v4954_v46 }
 0x16f   : > { %v4610_v59 = vmax.f32 %v4495_v22, 0.0  ;;  %v6082_v3 = vrot.slane %v5583_v23, 1  ;;  %v6083_v13 = vrot.slane %v5600_v56, 1  ;;  %v6085_v7 = vrot.slane %v5987_v0, 1  ;;  %v4502_v58 = vpop.f32.mrf.mxu1 }
 0x170   : > { %v12813_v29 = vpack.c.bf16 %v14739_v34, %v14738_v63  ;;  %v12816_v62 = vpack.c.bf16 %v6401_v12, %v6384_v31  ;;  %v4963_v20 = vcombine.high %v4961_v18, %v4961_v18  ;;  %v5602_v27 = vcombine.low %v4962_v61, %v4961_v18 }
 0x171   : > { %v6402_v54 = vcombine.low %v4954_v46, %v4962_v61  ;;  %v12818_v38 = vpack.c.bf16 %v5600_v56, %v5583_v23  ;;  %v4964_v14 = vcombine.high %v4610_v59, %v4610_v59  ;;  %v4971_v57 = vrot.slane %v4610_v59, %v11465_v33  ;;  %v12828_v23 = vld [vmem:[%s14708_s2 + $0x238] sm:$0xff]   ;;  %v4504_v60 = vpop.f32.mrf.mxu1 }
 0x172   : > { %v4500_v16 = vadd.f32 %v4499_v40, %v4299_v19  ;;  %v6084_v50 = vsel %vm6051_vm0, %v6082_v3, %v6083_v13  ;;  %v5609_v26 = vrot.slane %v5601_v21, %v11465_v33  ;;  %v5616_v1 = vrot.slane %v5602_v27, %v11465_v33  ;;  %10591 = vmatprep.subr.bf16.mxu0 %v12828_v23 }
 0x173   : > { %v6403_v0 = vcombine.low %v4961_v18, %v4963_v20  ;;  %v6086_v10 = vsel %vm6051_vm0, %v6083_v13, %v6085_v7  ;;  %v4978_v49 = vrot.slane %v4964_v14, %v11465_v33  ;;  %v4979_v41 = vcombine.high %v4971_v57, %v4971_v57 }
 0x174   : > { %v5618_v30 = vcombine.low %v4963_v20, %v4971_v57  ;;  %v4611_v51 = vmax.f32 %v4500_v16, 0.0  ;;  %v4503_v15 = vadd.f32 %v4502_v58, %v4302_v28  ;;  %v12831_v4 = vpack.c.bf16 %v6086_v10, %v6084_v50 }
 0x175   : > { %v6410_v19 = vrot.slane %v6402_v54, %v11465_v33  ;;  %v6417_v48 = vrot.slane %v6403_v0, %v11465_v33  ;;  %v4980_v17 = vcombine.high %v4978_v49, %v4978_v49  ;;  %v5619_v6 = vcombine.low %v4979_v41, %v4978_v49  ;;  %v4307_v16 = vpop.f32.mrf.mxu0 }
 0x176   : > { %v6419_v24 = vcombine.low %v4971_v57, %v4979_v41  ;;  %v5617_v46 = vcombine.low %v5609_v26, %v5616_v1  ;;  %v5626_v22 = vrot.slane %v5618_v30, %v11465_v33  ;;  %v4981_v56 = vcombine.high %v4611_v51, %v4611_v51  ;;  %7622 = vmatprep.mubr.bf16.mxu0 %v12831_v4 }
 0x177   : > { %v4988_v37 = vrot.slane %v4611_v51, %v11465_v33  ;;  %v4612_v53 = vmax.f32 %v4503_v15, 0.0  ;;  %v5633_v31 = vrot.slane %v5619_v6, %v11465_v33  ;;  %v6420_v12 = vcombine.low %v4978_v49, %v4980_v17  ;;  %7623 = vmatmul.mubr.bf16.gmra.mxu0 %v12818_v38  ;;  %v4507_v41 = vpop.f32.mrf.mxu1  ;;  %v4309_v30 = vpop.f32.mrf.mxu0 }
 0x178   : > { %v5994_v63 = vrot.slane %v4980_v17, %v11465_v33  ;;  %v6418_v34 = vcombine.low %v6410_v19, %v6417_v48  ;;  %v4995_v18 = vrot.slane %v4981_v56, %v11465_v33  ;;  %v6087_v28 = vrot.slane %v5617_v46, 1 }
 0x179   : > { %v4996_v61 = vcombine.high %v4988_v37, %v4988_v37  ;;  %v4998_v21 = vcombine.high %v4612_v53, %v4612_v53  ;;  %v5005_v59 = vrot.slane %v4612_v53, %v11465_v33  ;;  %v5634_v40 = vcombine.low %v5626_v22, %v5633_v31  ;;  %v4310_v60 = vpop.f32.mrf.mxu0 }
 0x17a   : > { %v6427_v3 = vrot.slane %v6419_v24, %v11465_v33  ;;  %v6434_v13 = vrot.slane %v6420_v12, %v11465_v33  ;;  %v4997_v7 = vcombine.high %v4995_v18, %v4995_v18  ;;  %v6090_v54 = vrot.slane %v5994_v63, 1  ;;  %v4509_v24 = vpop.f32.mrf.mxu1 }
 0x17b   : > { %v6436_v20 = vcombine.low %v4996_v61, %v4995_v18  ;;  %v5012_v27 = vrot.slane %v4998_v21, %v11465_v33  ;;  %v5635_v14 = vcombine.low %v4988_v37, %v4996_v61  ;;  %v5013_v57 = vcombine.high %v5005_v59, %v5005_v59 }
 0x17c   : > { %v6088_v9 = vrot.slane %v5634_v40, 1  ;;  %v6435_v35 = vcombine.low %v6427_v3, %v6434_v13  ;;  %v5636_v50 = vcombine.low %v4995_v18, %v4997_v7  ;;  %v6437_v1 = vcombine.low %v4997_v7, %v5005_v59  ;;  %v4510_v63 = vpop.f32.mrf.mxu1  ;;  %v4312_v18 = vpop.f32.mrf.mxu0 }
 0x17d   : > { %v5014_v26 = vcombine.high %v5012_v27, %v5012_v27  ;;  %v12847_v0 = vpack.c.bf16 %v5634_v40, %v5617_v46  ;;  %v5652_v10 = vcombine.low %v5005_v59, %v5013_v57  ;;  %v6453_v49 = vcombine.low %v5013_v57, %v5012_v27 }
 0x17e   : > { %v6089_v51 = vsel %vm6051_vm0, %v6087_v28, %v6088_v9  ;;  %v6091_v58 = vsel %vm6051_vm0, %v6088_v9, %v6090_v54  ;;  %v5650_v15 = vrot.slane %v5636_v50, %v11465_v33  ;;  %v4508_v48 = vadd.f32 %v4507_v41, %v4307_v16  ;;  %v4512_v28 = vpop.f32.mrf.mxu1  ;;  %v4315_v3 = vpop.f32.mrf.mxu0 }
 0x17f   : > { %v5653_v19 = vcombine.low %v5012_v27, %v5014_v26  ;;  %v12852_v17 = vpack.c.bf16 %v6091_v58, %v6089_v51  ;;  %v5643_v6 = vrot.slane %v5635_v14, %v11465_v33  ;;  %v12855_v46 = vpack.c.bf16 %v6435_v35, %v6418_v34 }
 0x180   : > { %v6444_v22 = vrot.slane %v6436_v20, %v11465_v33  ;;  %v6451_v56 = vrot.slane %v6437_v1, %v11465_v33  ;;  %v5660_v37 = vrot.slane %v5652_v10, %v11465_v33  ;;  %v4613_v31 = vmax.f32 %v4508_v48, 0.0  ;;  %v4317_v14 = vpop.f32.mrf.mxu0 }
 0x181   : > { %v5667_v53 = vrot.slane %v5653_v19, %v11465_v33  ;;  %7630 = vmatprep.mubr.bf16.mxu0 %v12852_v17  ;;  %v5651_v12 = vcombine.low %v5643_v6, %v5650_v15  ;;  %v4511_v59 = vadd.f32 %v4510_v63, %v4310_v60  ;;  %v4515_v50 = vpop.f32.mrf.mxu1  ;;  %v6461_v1 = vrot.slane %v6453_v49, %v11465_v33 }
 0x182   : > { %7631 = vmatmul.mubr.bf16.gmra.mxu0 %v12847_v0  ;;  %v6452_v61 = vcombine.low %v6444_v22, %v6451_v56  ;;  %v5015_v21 = vcombine.high %v4613_v31, %v4613_v31  ;;  %v5022_v34 = vrot.slane %v4613_v31, %v11465_v33  ;;  %v4516_v51 = vadd.f32 %v4515_v50, %v4315_v3  ;;  %v4318_v58 = vpop.f32.mrf.mxu0 }
 0x183   : > { %v5668_v40 = vcombine.low %v5660_v37, %v5667_v53  ;;  %v4614_v54 = vmax.f32 %v4511_v59, 0.0  ;;  %v6092_v57 = vrot.slane %v5651_v12, 1  ;;  %v4517_v48 = vpop.f32.mrf.mxu1 }
 0x184   : > { %v5029_v13 = vrot.slane %v5015_v21, %v11465_v33  ;;  %v5030_v7 = vcombine.high %v5022_v34, %v5022_v34  ;;  %v6001_v20 = vrot.slane %v5022_v34, %v11465_v33  ;;  %v6454_v27 = vcombine.low %v5014_v26, %v5022_v34  ;;  %v4320_v37 = vpop.f32.mrf.mxu0 }
 0x185   : > { %v6093_v16 = vrot.slane %v5668_v40, 1  ;;  %v5032_v41 = vcombine.high %v4614_v54, %v4614_v54  ;;  %v5039_v30 = vrot.slane %v4614_v54, %v11465_v33  ;;  %v4615_v49 = vmax.f32 %v4516_v51, 0.0  ;;  %v4518_v53 = vpop.f32.mrf.mxu1 }
 0x186   : > { %v5031_v9 = vcombine.high %v5029_v13, %v5029_v13  ;;  %v6095_v35 = vrot.slane %v6001_v20, 1  ;;  %v6468_v10 = vrot.slane %v6454_v27, %v11465_v33  ;;  %v5669_v19 = vcombine.low %v5030_v7, %v5029_v13 }
 0x187   : > { %v6094_v15 = vsel %vm6051_vm0, %v6092_v57, %v6093_v16  ;;  %v5046_v60 = vrot.slane %v5032_v41, %v11465_v33  ;;  %v5047_v22 = vcombine.high %v5039_v30, %v5039_v30  ;;  %v12874_v63 = vpack.c.bf16 %v5668_v40, %v5651_v12  ;;  %v4520_v20 = vpop.f32.mrf.mxu1 }
 0x188   : > { %v6470_v26 = vcombine.low %v5029_v13, %v5031_v9  ;;  %v6096_v6 = vsel %vm6051_vm0, %v6093_v16, %v6095_v35  ;;  %v6469_v24 = vcombine.low %v6461_v1, %v6468_v10  ;;  %v5670_v56 = vcombine.low %v5031_v9, %v5039_v30 }
 0x189   : > { %v12872_v31 = vpack.c.bf16 %v6096_v6, %v6094_v15  ;;  %v5048_v21 = vcombine.high %v5046_v60, %v5046_v60  ;;  %v5686_v59 = vcombine.low %v5047_v22, %v5046_v60  ;;  %v6471_v28 = vcombine.low %v5039_v30, %v5047_v22 }
 0x18a   : > { %v12876_v18 = vpack.c.bf16 %v6469_v24, %v6452_v61  ;;  %v5684_v34 = vrot.slane %v5670_v56, %v11465_v33  ;;  %v5049_v3 = vcombine.high %v4615_v49, %v4615_v49  ;;  %v5056_v13 = vrot.slane %v4615_v49, %v11465_v33  ;;  %v4323_v51 = vpop.f32.mrf.mxu0 }
 0x18b   : > { %v4519_v7 = vadd.f32 %v4518_v53, %v4318_v58  ;;  %7638 = vmatprep.mubr.bf16.mxu0 %v12872_v31  ;;  %v5677_v27 = vrot.slane %v5669_v19, %v11465_v33  ;;  %v6487_v54 = vcombine.low %v5046_v60, %v5048_v21  ;;  %v6478_v12 = vrot.slane %v6470_v26, %v11465_v33 }
 0x18c   : > { %7639 = vmatmul.mubr.bf16.gmra.mxu0 %v12874_v63  ;;  %v6485_v61 = vrot.slane %v6471_v28, %v11465_v33  ;;  %v5063_v40 = vrot.slane %v5049_v3, %v11465_v33  ;;  %v5064_v14 = vcombine.high %v5056_v13, %v5056_v13  ;;  %v5687_v57 = vcombine.low %v5048_v21, %v5056_v13  ;;  %v4325_v19 = vpop.f32.mrf.mxu0 }
 0x18d   : > { %v4616_v16 = vmax.f32 %v4519_v7, 0.0  ;;  %v5694_v9 = vrot.slane %v5686_v59, %v11465_v33  ;;  %v5685_v35 = vcombine.low %v5677_v27, %v5684_v34  ;;  %v6495_v48 = vrot.slane %v6487_v54, %v11465_v33 }
 0x18e   : > { %v6486_v50 = vcombine.low %v6478_v12, %v6485_v61  ;;  %v5065_v1 = vcombine.high %v5063_v40, %v5063_v40  ;;  %v5701_v10 = vrot.slane %v5687_v57, %v11465_v33  ;;  %v6008_v41 = vrot.slane %v5064_v14, %v11465_v33  ;;  %v4326_v49 = vpop.f32.mrf.mxu0 }
 0x18f   : > { %v6488_v30 = vcombine.low %v5056_v13, %v5064_v14  ;;  %v5066_v58 = vcombine.high %v4616_v16, %v4616_v16  ;;  %v5073_v15 = vrot.slane %v4616_v16, %v11465_v33  ;;  %v4523_v56 = vpop.f32.mrf.mxu1  ;;  %v6097_v37 = vrot.slane %v5685_v35, 1 }
 0x190   : > { %v5702_v26 = vcombine.low %v5694_v9, %v5701_v10  ;;  %v6100_v21 = vrot.slane %v6008_v41, 1  ;;  %v4524_v3 = vadd.f32 %v4523_v56, %v4323_v51  ;;  %v4328_v20 = vpop.f32.mrf.mxu0  ;;  %v5703_v57 = vcombine.low %v5063_v40, %v5065_v1 }
 0x191   : > { %v6502_v6 = vrot.slane %v6488_v30, %v11465_v33  ;;  %v5080_v24 = vrot.slane %v5066_v58, %v11465_v33  ;;  %v5081_v60 = vcombine.high %v5073_v15, %v5073_v15  ;;  %v6504_v22 = vcombine.low %v5065_v1, %v5073_v15  ;;  %v4525_v7 = vpop.f32.mrf.mxu1 }
 0x192   : > { %v6098_v53 = vrot.slane %v5702_v26, 1  ;;  %v4617_v61 = vmax.f32 %v4524_v3, 0.0  ;;  %v12899_v9 = vpack.c.bf16 %v5702_v26, %v5685_v35 }
 0x193   : > { %v6503_v34 = vcombine.low %v6495_v48, %v6502_v6  ;;  %v5082_v59 = vcombine.high %v5080_v24, %v5080_v24  ;;  %v6505_v28 = vcombine.low %v5081_v60, %v5080_v24  ;;  %v5704_v13 = vcombine.low %v5073_v15, %v5081_v60  ;;  %v4526_v16 = vpop.f32.mrf.mxu1  ;;  %v4331_v15 = vpop.f32.mrf.mxu0 }
 0x194   : > { %v6099_v27 = vsel %vm6051_vm0, %v6097_v37, %v6098_v53  ;;  %v6101_v54 = vsel %vm6051_vm0, %v6098_v53, %v6100_v21  ;;  %v6512_v10 = vrot.slane %v6504_v22, %v11465_v33  ;;  %v5083_v30 = vcombine.high %v4617_v61, %v4617_v61 }
 0x195   : > { %v12895_v12 = vpack.c.bf16 %v6503_v34, %v6486_v50  ;;  %v12897_v14 = vpack.c.bf16 %v6101_v54, %v6099_v27  ;;  %v6519_v41 = vrot.slane %v6505_v28, %v11465_v33  ;;  %v5090_v51 = vrot.slane %v4617_v61, %v11465_v33  ;;  %v4528_v48 = vpop.f32.mrf.mxu1  ;;  %v4333_v60 = vpop.f32.mrf.mxu0 }
 0x196   : > { %v4527_v58 = vadd.f32 %v4526_v16, %v4326_v49  ;;  %v5718_v50 = vrot.slane %v5704_v13, %v11465_v33  ;;  %v5720_v19 = vcombine.low %v5080_v24, %v5082_v59  ;;  %v5097_v35 = vrot.slane %v5083_v30, %v11465_v33 }
 0x197   : > { %7646 = vmatprep.mubr.bf16.mxu0 %v12897_v14  ;;  %v6520_v40 = vcombine.low %v6512_v10, %v6519_v41  ;;  %v5098_v1 = vcombine.high %v5090_v51, %v5090_v51  ;;  %v6521_v26 = vcombine.low %v5082_v59, %v5090_v51  ;;  %v5711_v22 = vrot.slane %v5703_v57, %v11465_v33  ;;  %v4334_v37 = vpop.f32.mrf.mxu0 }
 0x198   : > { %7647 = vmatmul.mubr.bf16.gmra.mxu0 %v12899_v9  ;;  %v4618_v6 = vmax.f32 %v4527_v58, 0.0  ;;  %v5728_v53 = vrot.slane %v5720_v19, %v11465_v33  ;;  %v6015_v3 = vrot.slane %v5097_v35, %v11465_v33  ;;  %v5099_v27 = vcombine.high %v5097_v35, %v5097_v35 }
 0x199   : > { %v5721_v56 = vcombine.low %v5090_v51, %v5098_v1  ;;  %v6522_v49 = vcombine.low %v5098_v1, %v5097_v35  ;;  %v5719_v34 = vcombine.low %v5711_v22, %v5718_v50  ;;  %v4531_v13 = vpop.f32.mrf.mxu1  ;;  %v4336_v7 = vpop.f32.mrf.mxu0  ;;  %v6529_v59 = vrot.slane %v6521_v26, %v11465_v33 }
 0x19a   : > { %v5100_v21 = vcombine.high %v4618_v6, %v4618_v6  ;;  %v5107_v24 = vrot.slane %v4618_v6, %v11465_v33  ;;  %v4532_v57 = vadd.f32 %v4531_v13, %v4331_v15  ;;  %v6105_v6 = vrot.slane %v6015_v3, 1 }
 0x19b   : > { %v5735_v28 = vrot.slane %v5721_v56, %v11465_v33  ;;  %v6536_v20 = vrot.slane %v6522_v49, %v11465_v33  ;;  %v4533_v16 = vpop.f32.mrf.mxu1  ;;  %v6102_v50 = vrot.slane %v5719_v34, 1 }
 0x19c   : > { %v5114_v54 = vrot.slane %v5100_v21, %v11465_v33  ;;  %v5115_v61 = vcombine.high %v5107_v24, %v5107_v24  ;;  %v4619_v19 = vmax.f32 %v4532_v57, 0.0  ;;  %v5737_v26 = vcombine.low %v5099_v27, %v5107_v24 }
 0x19d   : > { %v5736_v10 = vcombine.low %v5728_v53, %v5735_v28  ;;  %v6537_v41 = vcombine.low %v6529_v59, %v6536_v20  ;;  %v4534_v48 = vpop.f32.mrf.mxu1 }
 0x19e   : > { %v5116_v30 = vcombine.high %v5114_v54, %v5114_v54  ;;  %v5738_v51 = vcombine.low %v5115_v61, %v5114_v54  ;;  %v6538_v58 = vcombine.low %v5107_v24, %v5115_v61  ;;  %v4535_v56 = vadd.f32 %v4534_v48, %v4334_v37 }
 0x19f   : > { %v6103_v1 = vrot.slane %v5736_v10, 1  ;;  %v12916_v60 = vpack.c.bf16 %v6537_v41, %v6520_v40  ;;  %v5117_v49 = vcombine.high %v4619_v19, %v4619_v19  ;;  %v5124_v15 = vrot.slane %v4619_v19, %v11465_v33  ;;  %v4536_v53 = vpop.f32.mrf.mxu1 }
 0x1a0   : > { %v5752_v35 = vrot.slane %v5738_v51, %v11465_v33  ;;  %v6539_v22 = vcombine.low %v5114_v54, %v5116_v30  ;;  %v4620_v13 = vmax.f32 %v4535_v56, 0.0  ;;  %v6546_v3 = vrot.slane %v6538_v58, %v11465_v33 }
 0x1a1   : > { %v6104_v21 = vsel %vm6051_vm0, %v6102_v50, %v6103_v1  ;;  %v6106_v28 = vsel %vm6051_vm0, %v6103_v1, %v6105_v6  ;;  %v5131_v24 = vrot.slane %v5117_v49, %v11465_v33  ;;  %v5132_v59 = vcombine.high %v5124_v15, %v5124_v15 }
 0x1a2   : > { %v12922_v7 = vpack.c.bf16 %v6106_v28, %v6104_v21  ;;  %v6553_v40 = vrot.slane %v6539_v22, %v11465_v33  ;;  %v5754_v20 = vcombine.low %v5116_v30, %v5124_v15  ;;  %v4339_v37 = vpop.f32.mrf.mxu0  ;;  %v12927_v27 = vpack.c.bf16 %v5736_v10, %v5719_v34 }
 0x1a3   : > { %v5745_v54 = vrot.slane %v5737_v26, %v11465_v33  ;;  %v5134_v61 = vcombine.high %v4620_v13, %v4620_v13  ;;  %v5141_v57 = vrot.slane %v4620_v13, %v11465_v33  ;;  %v5133_v41 = vcombine.high %v5131_v24, %v5131_v24 }
 0x1a4   : > { %7654 = vmatprep.mubr.bf16.mxu0 %v12922_v7  ;;  %v6554_v16 = vcombine.low %v6546_v3, %v6553_v40  ;;  %v5755_v51 = vcombine.low %v5132_v59, %v5131_v24  ;;  %v6555_v58 = vcombine.low %v5124_v15, %v5132_v59  ;;  %v4341_v50 = vpop.f32.mrf.mxu0  ;;  %v5762_v34 = vrot.slane %v5754_v20, %v11465_v33 }
 0x1a5   : > { %7655 = vmatmul.mubr.bf16.gmra.mxu0 %v12927_v27  ;;  %v5148_v19 = vrot.slane %v5134_v61, %v11465_v33  ;;  %v5149_v30 = vcombine.high %v5141_v57, %v5141_v57  ;;  %v5753_v48 = vcombine.low %v5745_v54, %v5752_v35  ;;  %v6556_v1 = vcombine.low %v5131_v24, %v5133_v41 }
 0x1a6   : > { %v5769_v10 = vrot.slane %v5755_v51, %v11465_v33  ;;  %v4342_v6 = vpop.f32.mrf.mxu0  ;;  %v6022_v26 = vrot.slane %v5133_v41, %v11465_v33  ;;  %v6563_v28 = vrot.slane %v6555_v58, %v11465_v33 }
 0x1a7   : > { %v5150_v22 = vcombine.high %v5148_v19, %v5148_v19  ;;  %v6572_v56 = vcombine.low %v5149_v30, %v5148_v19  ;;  %v5771_v49 = vcombine.low %v5141_v57, %v5149_v30  ;;  %v4539_v53 = vpop.f32.mrf.mxu1  ;;  %v6570_v13 = vrot.slane %v6556_v1, %v11465_v33 }
 0x1a8   : > { %v4344_v15 = vpop.f32.mrf.mxu0  ;;  %v5770_v21 = vcombine.low %v5762_v34, %v5769_v10  ;;  %v4540_v35 = vadd.f32 %v4539_v53, %v4339_v37  ;;  %v6107_v59 = vrot.slane %v5753_v48, 1  ;;  %v6110_v54 = vrot.slane %v6022_v26, 1 }
 0x1a9   : > { %v5772_v3 = vcombine.low %v5148_v19, %v5150_v22  ;;  %v4541_v40 = vpop.f32.mrf.mxu1  ;;  %v6571_v24 = vcombine.low %v6563_v28, %v6570_v13  ;;  %v5779_v57 = vrot.slane %v5771_v49, %v11465_v33 }
 0x1aa   : > { %v6108_v20 = vrot.slane %v5770_v21, 1  ;;  %v4621_v41 = vmax.f32 %v4540_v35, 0.0  ;;  %v12950_v28 = vpack.c.bf16 %v5770_v21, %v5753_v48 }
 0x1ab   : > { %v5786_v61 = vrot.slane %v5772_v3, %v11465_v33  ;;  %v4347_v51 = vpop.f32.mrf.mxu0  ;;  %v4542_v50 = vpop.f32.mrf.mxu1  ;;  %v12943_v34 = vpack.c.bf16 %v6571_v24, %v6554_v16 }
 0x1ac   : > { %v6109_v30 = vsel %vm6051_vm0, %v6107_v59, %v6108_v20  ;;  %v6111_v58 = vsel %vm6051_vm0, %v6108_v20, %v6110_v54  ;;  %v5151_v19 = vcombine.high %v4621_v41, %v4621_v41  ;;  %v5158_v37 = vrot.slane %v4621_v41, %v11465_v33  ;;  %14740 = vst [vmem:[#allocation9_spill] sm:$0xff] %v12950_v28 }
 0x1ad   : > { %v4543_v10 = vadd.f32 %v4542_v50, %v4342_v6  ;;  %v4349_v1 = vpop.f32.mrf.mxu0  ;;  %v12946_v26 = vcombine.low %v5779_v57, %v5786_v61  ;;  %v4544_v53 = vpop.f32.mrf.mxu1  ;;  %v12948_v15 = vpack.c.bf16 %v6111_v58, %v6109_v30  ;;  %v6580_v30 = vrot.slane %v6572_v56, %v11465_v33 }
 0x1ae   : > { %v5165_v49 = vrot.slane %v5151_v19, %v11465_v33  ;;  %v5166_v13 = vcombine.high %v5158_v37, %v5158_v37  ;;  %v6573_v3 = vcombine.low %v5150_v22, %v5158_v37 }
 0x1af   : > { %v4622_v35 = vmax.f32 %v4543_v10, 0.0  ;;  %v4350_v40 = vpop.f32.mrf.mxu0  ;;  %7662 = vmatprep.mubr.bf16.mxu0 %v12948_v15  ;;  %v6112_v50 = vrot.slane %v12946_v26, 1 }
 0x1b0   : > { %v5167_v16 = vcombine.high %v5165_v49, %v5165_v49  ;;  %v5788_v59 = vcombine.low %v5158_v37, %v5166_v13  ;;  %v6589_v20 = vcombine.low %v5166_v13, %v5165_v49  ;;  %v4547_v54 = vpop.f32.mrf.mxu1  ;;  %7663 = vmatmul.mubr.bf16.gmra.mxu0 %v12950_v28  ;;  %v12958_v21 = vrot.slane %v6573_v3, %v11465_v33 }
 0x1b1   : > { %v5168_v6 = vcombine.high %v4622_v35, %v4622_v35  ;;  %v4352_v24 = vpop.f32.mrf.mxu0  ;;  %v5175_v61 = vrot.slane %v4622_v35, %v11465_v33  ;;  %v4548_v48 = vadd.f32 %v4547_v54, %v4347_v51  ;;  %7896 = vmatprep.mubr.bf16.mxu0 %v12626_v36 }
 0x1b2   : > { %v5789_v22 = vcombine.low %v5165_v49, %v5167_v16  ;;  %v4549_v57 = vpop.f32.mrf.mxu1  ;;  %v5796_v51 = vrot.slane %v5788_v59, %v11465_v33  ;;  %v6588_v13 = vcombine.low %v6580_v30, %v12958_v21  ;;  %v10972_v30 = vld [vmem:[%s14708_s2 + $0x230] sm:$0xff]  }
 0x1b3   : > { %v12961_v41 = vrot.slane %v5168_v6, %v11465_v33  ;;  %v5183_v58 = vcombine.high %v5175_v61, %v5175_v61  ;;  %v6029_v19 = vrot.slane %v5175_v61, %v11465_v33  ;;  %v6590_v37 = vcombine.low %v5167_v16, %v5175_v61 }
 0x1b4   : > { %v4623_v10 = vmax.f32 %v4548_v48, 0.0  ;;  %v5803_v1 = vrot.slane %v5789_v22, %v11465_v33  ;;  %v4550_v49 = vpop.f32.mrf.mxu1  ;;  %v6597_v6 = vrot.slane %v6589_v20, %v11465_v33 }
 0x1b5   : > { %v5184_v53 = vcombine.high %v12961_v41, %v12961_v41  ;;  %v5805_v3 = vcombine.low %v5183_v58, %v12961_v41  ;;  %v4551_v54 = vadd.f32 %v4550_v49, %v4350_v40  ;;  %v6604_v61 = vrot.slane %v6590_v37, %v11465_v33 }
 0x1b6   : > { %v5185_v35 = vcombine.high %v4623_v10, %v4623_v10  ;;  %v5192_v56 = vrot.slane %v4623_v10, %v11465_v33  ;;  %v4552_v24 = vpop.f32.mrf.mxu1  ;;  %v5804_v59 = vcombine.low %v5796_v51, %v5803_v1  ;;  %v6115_v48 = vrot.slane %v6029_v19, 1 }
 0x1b7   : > { %v6606_v16 = vcombine.low %v12961_v41, %v5184_v53  ;;  %v4355_v21 = vpop.f32.mrf.mxu0  ;;  %v5813_v58 = vrot.slane %v5805_v3, %v11465_v33  ;;  %v4624_v20 = vmax.f32 %v4551_v54, 0.0  ;;  %v6605_v41 = vcombine.low %v6597_v6, %v6604_v61  ;;  %v10952_v61 = vld [vmem:[%s14708_s2 + $0xb8] sm:$0xff]  }
 0x1b8   : > { %v5199_v22 = vrot.slane %v5185_v35, %v11465_v33  ;;  %v5200_v57 = vcombine.high %v5192_v56, %v5192_v56  ;;  %v5806_v28 = vcombine.low %v5184_v53, %v5192_v56  ;;  %7897 = vmatmul.mubr.bf16.vlgmr.msra.gmra.mxu0 %v12457_v43  ;;  %v6113_v40 = vrot.slane %v5804_v59, 1 }
 0x1b9   : > { %v4357_v1 = vpop.f32.mrf.mxu0  ;;  %7904 = vmatprep.mubr.bf16.mxu0 %v12695_v45  ;;  %v5202_v53 = vcombine.high %v4624_v20, %v4624_v20  ;;  %v5209_v49 = vrot.slane %v4624_v20, %v11465_v33  ;;  %10592 = vmatpush3.bf16.msra.mxu0 %v12828_v23 }
 0x1ba   : > { %v5201_v10 = vcombine.high %v5199_v22, %v5199_v22  ;;  %v5820_v37 = vrot.slane %v5806_v28, %v11465_v33  ;;  %v5822_v19 = vcombine.low %v5200_v57, %v5199_v22  ;;  %v6607_v51 = vcombine.low %v5192_v56, %v5200_v57  ;;  %10593 = vmatprep.subr.bf16.mxu0 %v10972_v30 }
 0x1bb   : > { %v6114_v35 = vsel %vm6051_vm0, %v6112_v50, %v6113_v40  ;;  %v6116_v3 = vsel %vm6051_vm0, %v6113_v40, %v6115_v48  ;;  %v4358_v24 = vpop.f32.mrf.mxu0  ;;  %v12992_v56 = vpack.c.bf16 %v5804_v59, %v12946_v26  ;;  %v12998_v50 = vrot.slane %v5202_v53, %v11465_v33  ;;  %v10975_v59 = vld [vmem:[%s14708_s2 + $0x228] sm:$0xff]  }
 0x1bc   : > { %v5830_v43 = vrot.slane %v5822_v19, %v11465_v33  ;;  %v6623_v6 = vcombine.low %v5199_v22, %v5201_v10  ;;  %v4555_v54 = vpop.f32.mrf.mxu1  ;;  %v12989_v28 = vpack.c.bf16 %v6116_v3, %v6114_v35  ;;  %v5217_v48 = vcombine.high %v5209_v49, %v5209_v49  ;;  %v10953_v22 = vld [vmem:[%s14708_s2 + $0xf0] sm:$0xff]  }
 0x1bd   : > { %14741 = vst [vmem:[#allocation10_spill] sm:$0xff] %v12992_v56  ;;  %v5823_v23 = vcombine.low %v5201_v10, %v5209_v49  ;;  %v4556_v57 = vadd.f32 %v4555_v54, %v4355_v21  ;;  %v4360_v40 = vpop.f32.mrf.mxu0  ;;  %v5821_v26 = vcombine.low %v5813_v58, %v5820_v37  ;;  %v13007_v19 = vpack.c.bf16 %v6605_v41, %v6588_v13 }
 0x1be   : > { %v4557_v20 = vpop.f32.mrf.mxu1  ;;  %7670 = vmatprep.mubr.bf16.mxu1 %v12989_v28  ;;  %v13010_v1 = vrot.slane %v6606_v16, %v11465_v33  ;;  %v13013_v21 = vrot.slane %v6607_v51, %v11465_v33  ;;  %v13017_v10 = vcombine.high %v12998_v50, %v12998_v50  ;;  %v6036_v58 = vrot.slane %v5217_v48, %v11465_v33  ;;  %v10954_v16 = vld [vmem:[%s14708_s2 + $0xb0] sm:$0xff]  }
 0x1bf   : > { %v5837_v53 = vrot.slane %v5823_v23, %v11465_v33  ;;  %v6624_v37 = vcombine.low %v5209_v49, %v5217_v48  ;;  %7671 = vmatmul.mubr.bf16.vlgmr.msra.gmra.mxu1 %v12992_v56  ;;  %v4625_v35 = vmax.f32 %v4556_v57, 0.0  ;;  %10594 = vmatpush3.bf16.msra.mxu0 %v10972_v30  ;;  %v10955_v49 = vld [vmem:[%s14708_s2 + $0xe8] sm:$0xff]   ;;  %v6631_v54 = vrot.slane %v6623_v6, %v11465_v33 }
 0x1c0   : > { %v4558_v13 = vpop.f32.mrf.mxu1  ;;  %10232 = vmatpush3.bf16.msra.mxu1 %v10952_v61  ;;  %v6622_v41 = vcombine.low %v13010_v1, %v13013_v21  ;;  %7905 = vmatmul.mubr.bf16.gmra.mxu0 %v12545_v44  ;;  %v5839_v61 = vcombine.low %v12998_v50, %v13017_v10  ;;  %v6117_v57 = vrot.slane %v5821_v26, 1  ;;  %v6120_v20 = vrot.slane %v6036_v58, 1  ;;  %v10956_v21 = vld [vmem:[%s14708_s2 + $0xa8] sm:$0xff]  }
 0x1c1   : > { %v4559_v51 = vadd.f32 %v4558_v13, %v4358_v24  ;;  %10233 = vmatprep.subr.bf16.mxu1 %v10953_v22  ;;  %v5838_v3 = vcombine.low %v5830_v43, %v5837_v53  ;;  %v5219_v48 = vcombine.high %v4625_v35, %v4625_v35  ;;  %v5226_v30 = vrot.slane %v4625_v35, %v11465_v33  ;;  %v10978_v43 = vld [vmem:[%s14708_s2 + $0x220] sm:$0xff]  }
 0x1c2   : > { %v4560_v23 = vpop.f32.mrf.mxu1  ;;  %7912 = vmatprep.mubr.bf16.mxu0 %v12743_v5  ;;  %10595 = vmatprep.subr.bf16.mxu0 %v10975_v59  ;;  %v6638_v6 = vrot.slane %v6624_v37, %v11465_v33 }
 0x1c3   : > { %v4626_v24 = vmax.f32 %v4559_v51, 0.0  ;;  %v6118_v22 = vrot.slane %v5838_v3, 1  ;;  %v5233_v40 = vrot.slane %v5219_v48, %v11465_v33  ;;  %v5234_v50 = vcombine.high %v5226_v30, %v5226_v30  ;;  %10596 = vmatpush3.bf16.msra.mxu0 %v10975_v59 }
 0x1c4   : > { %v6640_v1 = vcombine.low %v13017_v10, %v5226_v30  ;;  %10234 = vmatpush3.bf16.msra.mxu1 %v10954_v16  ;;  %v4363_v13 = vpop.f32.mrf.mxu0  ;;  %v10957_v10 = vld [vmem:[%s14708_s2 + $0xe0] sm:$0xff]   ;;  %10597 = vmatprep.subr.bf16.mxu0 %v10978_v43  ;;  %v13056_v56 = vpack.c.bf16 %v5838_v3, %v5821_v26 }
 0x1c5   : > { %v5236_v53 = vcombine.high %v4626_v24, %v4626_v24  ;;  %v5243_v35 = vrot.slane %v4626_v24, %v11465_v33  ;;  %v6119_v51 = vsel %vm6051_vm0, %v6117_v57, %v6118_v22  ;;  %v6121_v58 = vsel %vm6051_vm0, %v6118_v22, %v6120_v20  ;;  %10235 = vmatprep.subr.bf16.mxu1 %v10955_v49  ;;  %v10958_v20 = vld [vmem:[%s14708_s2 + $0xa0] sm:$0xff]  }
 0x1c6   : > { %v5235_v37 = vcombine.high %v5233_v40, %v5233_v40  ;;  %v5840_v48 = vcombine.low %v5226_v30, %v5234_v50  ;;  %v6641_v23 = vcombine.low %v5234_v50, %v5233_v40  ;;  %v13048_v44 = vpack.c.bf16 %v6121_v58, %v6119_v51  ;;  %v4365_v24 = vpop.f32.mrf.mxu0  ;;  %v10981_v50 = vld [vmem:[%s14708_s2 + $0x218] sm:$0xff]  }
 0x1c7   : > { %v13054_v59 = vrot.slane %v5236_v53, %v11465_v33  ;;  %v5251_v16 = vcombine.high %v5243_v35, %v5243_v35  ;;  %v6639_v57 = vcombine.low %v6631_v54, %v6638_v6  ;;  %v5847_v53 = vrot.slane %v5839_v61, %v11465_v33  ;;  %v10959_v6 = vld [vmem:[%s14708_s2 + $0xd8] sm:$0xff]   ;;  %10598 = vmatpush3.bf16.msra.mxu0 %v10978_v43 }
 0x1c8   : > { %v5854_v49 = vrot.slane %v5840_v48, %v11465_v33  ;;  %v5856_v22 = vcombine.low %v5233_v40, %v5235_v37  ;;  %v6657_v30 = vcombine.low %v5235_v37, %v5243_v35  ;;  %7678 = vmatprep.mubr.bf16.mxu1 %v13048_v44  ;;  %10236 = vmatpush3.bf16.msra.mxu1 %v10956_v21  ;;  %v4366_v54 = vpop.f32.mrf.mxu0 }
 0x1c9   : > { %v5857_v26 = vcombine.low %v5243_v35, %v5251_v16  ;;  %v6658_v3 = vcombine.low %v5251_v16, %v13054_v59  ;;  %7679 = vmatmul.mubr.bf16.gmra.mxu1 %v13056_v56  ;;  %v6648_v40 = vrot.slane %v6640_v1, %v11465_v33  ;;  %v6043_v51 = vrot.slane %v13054_v59, %v11465_v33  ;;  %v4563_v58 = vpop.f32.mrf.mxu1 }
 0x1ca   : > { %v5864_v21 = vrot.slane %v5856_v22, %v11465_v33  ;;  %10237 = vmatprep.subr.bf16.mxu1 %v10957_v10  ;;  %7913 = vmatmul.mubr.bf16.gmra.mxu0 %v12605_v32  ;;  %v13077_v61 = vpack.c.bf16 %v6639_v57, %v6622_v41  ;;  %v4564_v37 = vadd.f32 %v4563_v58, %v4363_v13  ;;  %v4368_v48 = vpop.f32.mrf.mxu0  ;;  %v10960_v10 = vld [vmem:[%s14708_s2 + $0x98] sm:$0xff]   ;;  %v10984_v13 = vld [vmem:[%s14708_s2 + $0x210] sm:$0xff]  }
 0x1cb   : > { %v5871_v35 = vrot.slane %v5857_v26, %v11465_v33  ;;  %7920 = vmatprep.mubr.bf16.mxu0 %v12779_v11  ;;  %v6655_v1 = vrot.slane %v6641_v23, %v11465_v33  ;;  %v4565_v16 = vpop.f32.mrf.mxu1  ;;  %v5855_v24 = vcombine.low %v5847_v53, %v5854_v49  ;;  %v6665_v22 = vrot.slane %v6657_v30, %v11465_v33  ;;  %v10961_v23 = vld [vmem:[%s14708_s2 + $0xd0] sm:$0xff]  }
 0x1cc   : > { %10238 = vmatpush3.bf16.msra.mxu1 %v10958_v20  ;;  %v6672_v41 = vrot.slane %v6658_v3, %v11465_v33  ;;  %10599 = vmatprep.subr.bf16.mxu0 %v10981_v50  ;;  %v4627_v57 = vmax.f32 %v4564_v37, 0.0  ;;  %v13093_v49 = vpop.f32.mrf.mxu0  ;;  %v5252_v30 = vcombine.high %v13054_v59, %v13054_v59 }
 0x1cd   : > { %v5872_v43 = vcombine.low %v5864_v21, %v5871_v35  ;;  %10239 = vmatprep.subr.bf16.mxu1 %v10959_v6  ;;  %v6656_v20 = vcombine.low %v6648_v40, %v6655_v1  ;;  %v4566_v53 = vpop.f32.mrf.mxu1  ;;  %10600 = vmatpush3.bf16.msra.mxu0 %v10981_v50  ;;  %v6122_v21 = vrot.slane %v5855_v24, 1  ;;  %v6125_v35 = vrot.slane %v6043_v51, 1  ;;  %v10962_v40 = vld [vmem:[%s14708_s2 + $0x90] sm:$0xff]   ;;  %v10963_v50 = vld [vmem:[%s14708_s2 + $0xc8] sm:$0xff]  }
 0x1ce   : > { %v6673_v26 = vcombine.low %v6665_v22, %v6672_v41  ;;  %v5253_v3 = vcombine.high %v4627_v57, %v4627_v57  ;;  %v5260_v58 = vrot.slane %v4627_v57, %v11465_v33  ;;  %v4567_v48 = vadd.f32 %v4566_v53, %v4366_v54  ;;  %v4373_v37 = vpop.f32.mrf.mxu0  ;;  %10601 = vmatprep.subr.bf16.mxu0 %v10984_v13  ;;  %v10985_v51 = vld [vmem:[%s14708_s2 + $0x208] sm:$0xff]  }
 0x1cf   : > { %v6123_v16 = vrot.slane %v5872_v43, 1  ;;  %v4568_v6 = vpop.f32.mrf.mxu1 }
 0x1d0   : > { %10240 = vmatpush3.bf16.msra.mxu1 %v10960_v10  ;;  %v13101_v1 = vpack.c.bf16 %v6673_v26, %v6656_v20  ;;  %v5267_v59 = vrot.slane %v5253_v3, %v11465_v33  ;;  %v5268_v22 = vcombine.high %v5260_v58, %v5260_v58  ;;  %v4628_v41 = vmax.f32 %v4567_v48, 0.0  ;;  %v13107_v54 = vpop.f32.mrf.mxu0 }
 0x1d1   : > { %10241 = vmatprep.subr.bf16.mxu1 %v10961_v23  ;;  %v6124_v10 = vsel %vm6051_vm0, %v6122_v21, %v6123_v16  ;;  %v6126_v57 = vsel %vm6051_vm0, %v6123_v16, %v6125_v35  ;;  %v5873_v53 = vcombine.low %v5252_v30, %v5260_v58  ;;  %v10964_v21 = vld [vmem:[%s14708_s2 + $0x88] sm:$0xff]   ;;  %10602 = vmatpush3.bf16.msra.mxu0 %v10984_v13 }
 0x1d2   : > { %7921 = vmatmul.mubr.bf16.gmra.mxu0 %v12728_v42  ;;  %v5269_v20 = vcombine.high %v5267_v59, %v5267_v59  ;;  %v5874_v26 = vcombine.low %v5268_v22, %v5267_v59  ;;  %v6674_v23 = vcombine.low %v5260_v58, %v5268_v22  ;;  %v4376_v3 = vpop.f32.mrf.mxu0  ;;  %v5270_v48 = vcombine.high %v4628_v41, %v4628_v41  ;;  %v10965_v58 = vld [vmem:[%s14708_s2 + $0xc0] sm:$0xff]  }
 0x1d3   : > { %7928 = vmatprep.mubr.bf16.mxu0 %v12805_v52  ;;  %v5277_v37 = vrot.slane %v4628_v41, %v11465_v33  ;;  %v13117_v6 = vpack.c.bf16 %v6126_v57, %v6124_v10  ;;  %v13123_v30 = vpack.c.bf16 %v5872_v43, %v5855_v24  ;;  %10603 = vmatprep.subr.bf16.mxu0 %v10985_v51 }
 0x1d4   : > { %10242 = vmatpush3.bf16.msra.mxu1 %v10962_v40  ;;  %v5888_v16 = vrot.slane %v5874_v26, %v11465_v33  ;;  %v6675_v35 = vcombine.low %v5267_v59, %v5269_v20  ;;  %v5284_v22 = vrot.slane %v5270_v48, %v11465_v33  ;;  %v5881_v13 = vrot.slane %v5873_v53, %v11465_v33  ;;  %v10986_v59 = vld [vmem:[%s14708_s2 + $0x200] sm:$0xff]  }
 0x1d5   : > { %14742 = vst [vmem:[#allocation11_spill] sm:$0xff] %v13123_v30  ;;  %10243 = vmatprep.subr.bf16.mxu1 %v10963_v50  ;;  %v5285_v41 = vcombine.high %v5277_v37, %v5277_v37  ;;  %v5890_v40 = vcombine.low %v5269_v20, %v5277_v37  ;;  %7686 = vmatprep.mubr.bf16.mxu1 %v13117_v6  ;;  %v13130_v10 = vpop.f32.mrf.mxu0  ;;  %v10966_v20 = vld [vmem:[%s14708_s2 + $0x80] sm:$0xff]  }
 0x1d6   : > { %7687 = vmatmul.mubr.bf16.gmra.mxu1 %v13123_v30  ;;  %v6682_v24 = vrot.slane %v6674_v23, %v11465_v33  ;;  %v6689_v43 = vrot.slane %v6675_v35, %v11465_v33  ;;  %v5286_v50 = vcombine.high %v5284_v22, %v5284_v22  ;;  %v5889_v48 = vcombine.low %v5881_v13, %v5888_v16  ;;  %v10967_v23 = vld [vmem:[%s14708_s2 + $0x1f8] sm:$0xff]  }
 0x1d7   : > { %v5891_v57 = vcombine.low %v5285_v41, %v5284_v22  ;;  %v6691_v26 = vcombine.low %v5277_v37, %v5285_v41  ;;  %v4381_v3 = vpop.f32.mrf.mxu0  ;;  %v5898_v53 = vrot.slane %v5890_v40, %v11465_v33  ;;  %10604 = vmatpush3.bf16.msra.mxu0 %v10985_v51 }
 0x1d8   : > { %10244 = vmatpush3.bf16.msra.mxu1 %v10964_v21  ;;  %v4571_v35 = vpop.f32.mrf.mxu1  ;;  %v6690_v42 = vcombine.low %v6682_v24, %v6689_v43  ;;  %v6692_v37 = vcombine.low %v5284_v22, %v5286_v50  ;;  %v6050_v21 = vrot.slane %v5286_v50, %v11465_v33  ;;  %10605 = vmatprep.subr.bf16.mxu0 %v10986_v59  ;;  %v6127_v43 = vrot.slane %v5889_v48, 1 }
 0x1d9   : > { %10245 = vmatprep.subr.bf16.mxu1 %v10965_v58  ;;  %v5905_v32 = vrot.slane %v5891_v57, %v11465_v33  ;;  %v13149_v41 = vpop.f32.mrf.mxu0  ;;  %v4572_v40 = vadd.f32 %v4571_v35, %v13093_v49  ;;  %v6699_v50 = vrot.slane %v6691_v26, %v11465_v33 }
 0x1da   : > { %7929 = vmatmul.mubr.bf16.gmra.mxu0 %v12775_v47  ;;  %v4573_v16 = vpop.f32.mrf.mxu1  ;;  %v6706_v51 = vrot.slane %v6692_v37, %v11465_v33  ;;  %v6130_v3 = vrot.slane %v6050_v21, 1 }
 0x1db   : > { %7936 = vmatprep.mubr.bf16.mxu0 %v12816_v62  ;;  %v5906_v58 = vcombine.low %v5898_v53, %v5905_v32  ;;  %v4384_v13 = vpop.f32.mrf.mxu0  ;;  %v4629_v24 = vmax.f32 %v4572_v40, 0.0  ;;  %10606 = vmatpush3.bf16.msra.mxu0 %v10986_v59 }
 0x1dc   : > { %10246 = vmatpush3.bf16.msra.mxu1 %v10966_v20  ;;  %v4574_v22 = vpop.f32.mrf.mxu1  ;;  %v6707_v53 = vcombine.low %v6699_v50, %v6706_v51 }
 0x1dd   : > { %10455 = vmatprep.subr.bf16.mxu1 %v10967_v23  ;;  %v6128_v57 = vrot.slane %v5906_v58, 1  ;;  %v13155_v47 = vpop.f32.mrf.mxu0  ;;  %v5287_v49 = vcombine.high %v4629_v24, %v4629_v24  ;;  %v5294_v35 = vrot.slane %v4629_v24, %v11465_v33  ;;  %v4575_v32 = vadd.f32 %v4574_v22, %v13107_v54 }
 0x1de   : > { %v4576_v20 = vpop.f32.mrf.mxu1  ;;  %v13164_v13 = vpack.c.bf16 %v6707_v53, %v6690_v42  ;;  %v13166_v30 = vpack.c.bf16 %v5906_v58, %v5889_v48 }
 0x1df   : > { %v6129_v40 = vsel %vm6051_vm0, %v6127_v43, %v6128_v57  ;;  %v6131_v37 = vsel %vm6051_vm0, %v6128_v57, %v6130_v3  ;;  %v4389_v23 = vpop.f32.mrf.mxu0  ;;  %v5301_v16 = vrot.slane %v5287_v49, %v11465_v33  ;;  %v5302_v26 = vcombine.high %v5294_v35, %v5294_v35 }
 0x1e0   : > { %v13162_v59 = vpack.c.bf16 %v6131_v37, %v6129_v40  ;;  %v4630_v21 = vmax.f32 %v4575_v32, 0.0 }
 0x1e1   : > { %v4390_v54 = vpop.f32.mrf.mxu0  ;;  %v5303_v24 = vcombine.high %v5301_v16, %v5301_v16  ;;  %v6740_v51 = vcombine.low %v5294_v35, %v5302_v26  ;;  %v6790_v22 = vcombine.low %v5302_v26, %v5301_v16 }
 0x1e2   : > { %7937 = vmatmul.mubr.bf16.gmra.mxu0 %v12831_v4  ;;  %7694 = vmatprep.mubr.bf16.mxu1 %v13162_v59  ;;  %v5304_v43 = vcombine.high %v4630_v21, %v4630_v21  ;;  %v5311_v50 = vrot.slane %v4630_v21, %v11465_v33  ;;  %v10970_v21 = vld [vmem:[%s14708_s2 + $0x1f0] sm:$0xff]  }
 0x1e3   : > { %7944 = vmatprep.mubr.bf16.mxu0 %v12855_v46  ;;  %7695 = vmatmul.mubr.bf16.gmra.mxu1 %v13166_v30  ;;  %v4391_v57 = vpop.f32.mrf.mxu0  ;;  %v6741_v42 = vcombine.low %v5301_v16, %v5303_v24  ;;  %v6748_v48 = vrot.slane %v6740_v51, %v11465_v33  ;;  %v13181_v35 = vrot.slane %v6790_v22, %v11465_v33 }
 0x1e4   : > { %7735 = vmatprep.mubr.bf16.mxu1 %v12439_v55  ;;  %v13176_v58 = vrot.slane %v5304_v43, %v11465_v33  ;;  %v13178_v3 = vcombine.high %v5311_v50, %v5311_v50  ;;  %v6791_v49 = vcombine.low %v5303_v24, %v5311_v50  ;;  %v10968_v55 = vld [vmem:[%s14708_s2 + $0x1b8] sm:$0xff]   ;;  %v10971_v24 = vld [vmem:[%s14708_s2 + $0x1b0] sm:$0xff]   ;;  %v10973_v43 = vld [vmem:[%s14708_s2 + $0x1e8] sm:$0xff]  }
 0x1e5   : > { %v6755_v32 = vrot.slane %v6741_v42, %v11465_v33 }
 0x1e6   : > { %v13186_v20 = vcombine.high %v13176_v58, %v13176_v58  ;;  %v6757_v53 = vcombine.low %v5311_v50, %v13178_v3  ;;  %v13190_v40 = vrot.slane %v6791_v49, %v11465_v33 }
 0x1e7   : > { %v6756_v37 = vcombine.low %v6748_v48, %v6755_v32  ;;  %v10974_v48 = vld [vmem:[%s14708_s2 + $0x1a8] sm:$0xff]  }
 0x1e8   : > { %v6758_v23 = vcombine.low %v13176_v58, %v13186_v20  ;;  %v6765_v16 = vrot.slane %v6757_v53, %v11465_v33  ;;  %v10976_v53 = vld [vmem:[%s14708_s2 + $0x1e0] sm:$0xff]  }
 0x1e9   : > { %v6783_v51 = vrot.slane %v6756_v37, 1 }
 0x1ea   : > { %7945 = vmatmul.mubr.bf16.gmra.mxu0 %v12852_v17  ;;  %v6772_v54 = vrot.slane %v6758_v23, %v11465_v33  ;;  %v10977_v23 = vld [vmem:[%s14708_s2 + $0x1a0] sm:$0xff]  }
 0x1eb   : > { %7952 = vmatprep.mubr.bf16.mxu0 %v12876_v18  ;;  %7736 = vmatmul.mubr.bf16.vlgmr.msra.gmra.mxu1 %v12813_v29 }
 0x1ec   : > { %10456 = vmatpush3.bf16.msra.mxu1 %v10968_v55  ;;  %7743 = vmatprep.mubr.bf16.mxu1 %v12553_v25  ;;  %v13211_v22 = vcombine.low %v6765_v16, %v6772_v54 }
 0x1ed   : > { %10457 = vmatprep.subr.bf16.mxu1 %v10970_v21  ;;  %v10979_v21 = vld [vmem:[%s14708_s2 + $0x1d8] sm:$0xff]  }
 0x1ee   : > { %v14723_v57 = vrot.slane %v13211_v22, 1  ;;  %v13218_v29 = vpack.c.bf16 %v13211_v22, %v6756_v37 }
 0x1f0   : > { %10458 = vmatpush3.bf16.msra.mxu1 %v10971_v24  ;;  %v13228_v32 = vsel %vm6051_vm0, %v6783_v51, %v14723_v57  ;;  %v10989_v57 = vld [vmem:[%s14708_s2 + $0x1c0] sm:$0xff]  }
 0x1f1   : > { %10459 = vmatprep.subr.bf16.mxu1 %v10973_v43  ;;  %v10982_v43 = vld [vmem:[%s14708_s2 + $0x1d0] sm:$0xff]  }
 0x1f2   : > { %7953 = vmatmul.mubr.bf16.gmra.mxu0 %v12872_v31 }
 0x1f3   : > { %v10135_v50 = vpop.f32.mrf.mxu0  ;;  %7960 = vmatprep.mubr.bf16.mxu0 %v12895_v12  ;;  %7744 = vmatmul.mubr.bf16.gmra.mxu1 %v12626_v36  ;;  %v10980_v36 = vld [vmem:[%s14708_s2 + $0x198] sm:$0xff]  }
 0x1f4   : > { %7751 = vmatprep.mubr.bf16.mxu1 %v12603_v2  ;;  %10460 = vmatpush3.bf16.msra.mxu1 %v10974_v48  ;;  %v10987_v48 = vld [vmem:[%s14708_s2 + $0x1c8] sm:$0xff]  }
 0x1f5   : > { %v10136_v42 = vpop.f32.mrf.mxu0  ;;  %10461 = vmatprep.subr.bf16.mxu1 %v10976_v53 }
 0x1f6   : > { %v13223_v49 = vadd.f32 %v10136_v42, %v10135_v50  ;;  %v10983_v50 = vld [vmem:[%s14708_s2 + $0x190] sm:$0xff]  }
 0x1f7   : > { %v13234_v55 = vpop.f32.mrf.mxu0 }
 0x1f8   : > { %14743 = vst [vmem:[#allocation12_spill] sm:$0xff] %v13234_v55  ;;  %10462 = vmatpush3.bf16.msra.mxu1 %v10977_v23 }
 0x1f9   : > { %v13238_v37 = vpop.f32.mrf.mxu0  ;;  %10463 = vmatprep.subr.bf16.mxu1 %v10979_v21  ;;  %v6807_v21 = vcombine.low %v13178_v3, %v13176_v58 }
 0x1fa   : > { %14744 = vst [vmem:[#allocation13_spill] sm:$0xff] %v13238_v37  ;;  %7961 = vmatmul.mubr.bf16.gmra.mxu0 %v12897_v14 }
 0x1fb   : > { %v10141_v16 = vpop.f32.mrf.mxu0  ;;  %7968 = vmatprep.mubr.bf16.mxu0 %v12916_v60  ;;  %7752 = vmatmul.mubr.bf16.gmra.mxu1 %v12695_v45 }
 0x1fc   : > { %7759 = vmatprep.mubr.bf16.mxu1 %v12733_v8  ;;  %10464 = vmatpush3.bf16.msra.mxu1 %v10980_v36  ;;  %v10988_v36 = vld [vmem:[%s14708_s2 + $0x188] sm:$0xff]  }
 0x1fd   : > { %v10142_v54 = vpop.f32.mrf.mxu0  ;;  %10465 = vmatprep.subr.bf16.mxu1 %v10982_v43 }
 0x1fe   : > { %v13247_v24 = vadd.f32 %v10142_v54, %v10141_v16 }
 0x1ff   : > { %v13253_v51 = vpop.f32.mrf.mxu0 }
 0x200   : > { %14745 = vst [vmem:[#allocation14_spill] sm:$0xff] %v13247_v24  ;;  %14746 = vst [vmem:[#allocation15_spill] sm:$0xff] %v13253_v51  ;;  %10466 = vmatpush3.bf16.msra.mxu1 %v10983_v50 }
 0x201   : > { %v13264_v42 = vpop.f32.mrf.mxu0  ;;  %10467 = vmatprep.subr.bf16.mxu1 %v10987_v48 }
 0x202   : > { %14747 = vst [vmem:[#allocation16_spill] sm:$0xff] %v13264_v42  ;;  %v4579_v53 = vpop.f32.mrf.mxu1  ;;  %7969 = vmatmul.mubr.bf16.gmra.mxu0 %v12922_v7 }
 0x203   : > { %v4580_v23 = vadd.f32 %v4579_v53, %v13130_v10  ;;  %7976 = vmatprep.mubr.bf16.mxu0 %v12943_v34  ;;  %7760 = vmatmul.mubr.bf16.gmra.mxu1 %v12743_v5 }
 0x204   : > { %v10147_v16 = vpop.f32.mrf.mxu0  ;;  %v4581_v54 = vpop.f32.mrf.mxu1  ;;  %7767 = vmatprep.mubr.bf16.mxu1 %v12777_v39  ;;  %10468 = vmatpush3.bf16.msra.mxu1 %v10988_v36 }
 0x205   : > { %v4631_v43 = vmax.f32 %v4580_v23, 0.0  ;;  %v6815_v54 = vrot.slane %v6807_v21, %v11465_v33  ;;  %10469 = vmatprep.subr.bf16.mxu1 %v10989_v57 }
 0x206   : > { %v10148_v26 = vpop.f32.mrf.mxu0  ;;  %v4582_v58 = vpop.f32.mrf.mxu1 }
 0x207   : > { %v13280_v10 = vadd.f32 %v10148_v26, %v10147_v16  ;;  %v5321_v3 = vcombine.high %v4631_v43, %v4631_v43  ;;  %v5328_v50 = vrot.slane %v4631_v43, %v11465_v33  ;;  %v4583_v23 = vadd.f32 %v4582_v58, %v13149_v41  ;;  %v10990_v26 = vld [vmem:[%s14708_s2 + $0x180] sm:$0xff]  }
 0x208   : > { %v13284_v53 = vpop.f32.mrf.mxu0  ;;  %v4584_v48 = vpop.f32.mrf.mxu1  ;;  %10470 = vmatpush3.bf16.msra.mxu1 %v10990_v26 }
 0x209   : > { %14748 = vst [vmem:[#allocation17_spill] sm:$0xff] %v13280_v10  ;;  %14749 = vst [vmem:[#allocation18_spill] sm:$0xff] %v13284_v53  ;;  %v5335_v16 = vrot.slane %v5321_v3, %v11465_v33  ;;  %v5336_v10 = vcombine.high %v5328_v50, %v5328_v50  ;;  %v6782_v42 = vrot.slane %v5328_v50, %v11465_v33  ;;  %v4632_v41 = vmax.f32 %v4583_v23, 0.0 }
 0x20a   : > { %v6808_v43 = vcombine.low %v13186_v20, %v5328_v50  ;;  %v13295_v53 = vpop.f32.mrf.mxu0  ;;  %7977 = vmatmul.mubr.bf16.gmra.mxu0 %v12948_v15  ;;  %v14750_v50 = vrot.slane %v13211_v22, 1 }
 0x20b   : > { %v5337_v58 = vcombine.high %v5335_v16, %v5335_v16  ;;  %v6786_v48 = vrot.slane %v6782_v42, 1  ;;  %v6826_v51 = vcombine.low %v5336_v10, %v5335_v16  ;;  %v5338_v24 = vcombine.high %v4632_v41, %v4632_v41  ;;  %7984 = vmatprep.mubr.bf16.mxu0 %v13007_v19  ;;  %7768 = vmatmul.mubr.bf16.gmra.mxu1 %v12779_v11 }
 0x20c   : > { %v6822_v21 = vrot.slane %v6808_v43, %v11465_v33  ;;  %v5345_v37 = vrot.slane %v4632_v41, %v11465_v33  ;;  %7775 = vmatprep.mubr.bf16.mxu1 %v12818_v38 }
 0x20d   : > { %v10153_v36 = vpop.f32.mrf.mxu0  ;;  %v6834_v3 = vrot.slane %v6826_v51, %v11465_v33  ;;  %v6876_v55 = vcombine.low %v5335_v16, %v5337_v58  ;;  %v6787_v57 = vsel %vm6051_vm0, %v14750_v50, %v6786_v48  ;;  %v5352_v42 = vrot.slane %v5338_v24, %v11465_v33 }
 0x20e   : > { %v6823_v20 = vcombine.low %v6815_v54, %v6822_v21  ;;  %v5353_v10 = vcombine.high %v5345_v37, %v5345_v37  ;;  %v6827_v23 = vcombine.low %v5337_v58, %v5345_v37  ;;  %v13307_v41 = vpack.c.bf16 %v6787_v57, %v13228_v32 }
 0x20f   : > { %v10154_v43 = vpop.f32.mrf.mxu0  ;;  %v14751_v51 = vcombine.low %v13181_v35, %v13190_v40  ;;  %v6884_v48 = vrot.slane %v6876_v55, %v11465_v33  ;;  %v5354_v32 = vcombine.high %v5352_v42, %v5352_v42 }
 0x210   : > { %v13310_v26 = vadd.f32 %v10154_v43, %v10153_v36  ;;  %v6841_v54 = vrot.slane %v6827_v23, %v11465_v33  ;;  %v6843_v24 = vcombine.low %v5353_v10, %v5352_v42  ;;  %v6877_v16 = vcombine.low %v5345_v37, %v5353_v10 }
 0x211   : > { %v13315_v22 = vpack.c.bf16 %v6823_v20, %v14751_v51  ;;  %v4587_v58 = vpop.f32.mrf.mxu1  ;;  %v6893_v43 = vcombine.low %v5352_v42, %v5354_v32  ;;  %v13325_v23 = vpop.f32.mrf.mxu0 }
 0x212   : > { %v4588_v21 = vadd.f32 %v4587_v58, %v13155_v47  ;;  %v6891_v36 = vrot.slane %v6877_v16, %v11465_v33  ;;  %v13322_v57 = vcombine.low %v6834_v3, %v6841_v54  ;;  %7985 = vmatmul.mubr.bf16.gmra.mxu0 %v12989_v28  ;;  %v6851_v47 = vrot.slane %v6843_v24, %v11465_v33 }
 0x213   : > { %v4589_v50 = vpop.f32.mrf.mxu1  ;;  %7992 = vmatprep.mubr.bf16.mxu0 %v13077_v61  ;;  %7776 = vmatmul.mubr.bf16.gmra.mxu1 %v12805_v52  ;;  %v13334_v16 = vpop.f32.mrf.mxu0  ;;  %v6901_v58 = vrot.slane %v6893_v43, %v11465_v33 }
 0x214   : > { %v4633_v35 = vmax.f32 %v4588_v21, 0.0  ;;  %v6892_v40 = vcombine.low %v6884_v48, %v6891_v36  ;;  %7783 = vmatprep.mubr.bf16.mxu1 %v12847_v0  ;;  %v6869_v24 = vrot.slane %v13322_v57, 1 }
 0x215   : > { %v4590_v20 = vpop.f32.mrf.mxu1 }
 0x216   : > { %v5361_v37 = vrot.slane %v4633_v35, %v11465_v33 }
 0x217   : > { %v4591_v55 = vpop.f32.mrf.mxu1 }
 0x218   : > { %v5362_v10 = vcombine.high %v5361_v37, %v5361_v37  ;;  %v6844_v3 = vcombine.low %v5354_v32, %v5361_v37 }
 0x21a   : > { %v6858_v51 = vrot.slane %v6844_v3, %v11465_v33  ;;  %v6868_v54 = vrot.slane %v5362_v10, %v11465_v33  ;;  %v6894_v42 = vcombine.low %v5361_v37, %v5362_v10  ;;  %7993 = vmatmul.mubr.bf16.gmra.mxu0 %v13048_v44 }
 0x21b   : > { %8000 = vmatprep.mubr.bf16.mxu0 %v13101_v1  ;;  %7784 = vmatmul.mubr.bf16.gmra.mxu1 %v12816_v62 }
 0x21c   : > { %v6908_v48 = vrot.slane %v6894_v42, %v11465_v33  ;;  %v13338_v36 = vcombine.low %v6851_v47, %v6858_v51  ;;  %v6872_v50 = vrot.slane %v6868_v54, 1  ;;  %7791 = vmatprep.mubr.bf16.mxu1 %v12874_v63 }
 0x21d   : > { %v10159_v21 = vpop.f32.mrf.mxu0 }
 0x21e   : > { %v6909_v35 = vcombine.low %v6901_v58, %v6908_v48  ;;  %v6870_v20 = vrot.slane %v13338_v36, 1 }
 0x21f   : > { %v10160_v32 = vpop.f32.mrf.mxu0 }
 0x220   : > { %v13346_v43 = vadd.f32 %v10160_v32, %v10159_v21  ;;  %v13349_v55 = vpack.c.bf16 %v6909_v35, %v6892_v40  ;;  %v13352_v47 = vsel %vm6051_vm0, %v6869_v24, %v6870_v20  ;;  %v13355_v10 = vsel %vm6051_vm0, %v6870_v20, %v6872_v50  ;;  %v14752_v35 = vld [vmem:[#allocation9_spill] sm:$0xff] }
 0x221   : > { %v10162_v33 = vpop.f32.mrf.mxu0 }
 0x222   : > { %8001 = vmatmul.mubr.bf16.gmra.mxu0 %v13117_v6 }
 0x223   : > { %v10163_v51 = vpop.f32.mrf.mxu0  ;;  %8008 = vmatprep.mubr.bf16.mxu0 %v13164_v13  ;;  %7792 = vmatmul.mubr.bf16.gmra.mxu1 %v12855_v46 }
 0x224   : > { %v13360_v54 = vadd.f32 %v10163_v51, %v10162_v33  ;;  %7799 = vmatprep.mubr.bf16.mxu1 %v12899_v9 }
 0x228   : > { %v10165_v40 = vpop.f32.mrf.mxu0 }
 0x22a   : > { %v10166_v42 = vpop.f32.mrf.mxu0  ;;  %8009 = vmatmul.mubr.bf16.gmra.mxu0 %v13162_v59 }
 0x22b   : > { %v13366_v58 = vadd.f32 %v10166_v42, %v10165_v40  ;;  %8016 = vmatprep.mubr.bf16.mxu0 %v13315_v22  ;;  %7800 = vmatmul.mubr.bf16.gmra.mxu1 %v12876_v18 }
 0x22c   : > { %v10168_v48 = vpop.f32.mrf.mxu0  ;;  %7807 = vmatprep.mubr.bf16.mxu1 %v12927_v27 }
 0x22e   : > { %v10169_v21 = vpop.f32.mrf.mxu0 }
 0x22f   : > { %v13369_v24 = vadd.f32 %v10169_v21, %v10168_v48  ;;  %v14753_v48 = vld [vmem:[#allocation10_spill] sm:$0xff] }
 0x232   : > { %8017 = vmatmul.mubr.bf16.gmra.mxu0 %v13307_v41 }
 0x233   : > { %10607 = vmatprep.mubr.bf16.mxu0 %v12695_v45  ;;  %7808 = vmatmul.mubr.bf16.gmra.mxu1 %v12895_v12  ;;  %v10993_v45 = vld [vmem:[%s14709_s3 + $0xe4] ss:$16 sps:$4 sm:$0xff]  }
 0x234   : > { %7815 = vmatprep.mubr.bf16.mxu1 %v14752_v35  ;;  %8587 = vmatprep.subr.bf16.mxu1 %v10993_v45 }
 0x237   : > { %v10171_v50 = vpop.f32.mrf.mxu0 }
 0x239   : > { %v10172_v32 = vpop.f32.mrf.mxu0 }
 0x23a   : > { %v13378_v20 = vadd.f32 %v10172_v32, %v10171_v50  ;;  %10608 = vmatmul.mubr.bf16.vlgmr.msra.gmra.mxu0 %v12743_v5 }
 0x23b   : > { %v10174_v33 = vpop.f32.mrf.mxu0  ;;  %10611 = vmatprep.mubr.bf16.mxu0 %v12779_v11  ;;  %7816 = vmatmul.mubr.bf16.gmra.mxu1 %v12916_v60 }
 0x23c   : > { %7823 = vmatprep.mubr.bf16.mxu1 %v14753_v48 }
 0x23d   : > { %v10175_v51 = vpop.f32.mrf.mxu0 }
 0x23e   : > { %v13380_v40 = vadd.f32 %v10175_v51, %v10174_v33 }
 0x242   : > { %v10177_v42 = vpop.f32.mrf.mxu0  ;;  %10612 = vmatmul.mubr.bf16.gmra.mxu0 %v12805_v52  ;;  %v14757_v52 = vld [vmem:[#allocation11_spill] sm:$0xff] }
 0x243   : > { %10615 = vmatprep.mubr.bf16.mxu0 %v12816_v62  ;;  %7824 = vmatmul.mubr.bf16.gmra.mxu1 %v12943_v34 }
 0x244   : > { %v10178_v21 = vpop.f32.mrf.mxu0  ;;  %7831 = vmatprep.mubr.bf16.mxu1 %v13056_v56 }
 0x245   : > { %v13389_v50 = vadd.f32 %v10178_v21, %v10177_v42 }
 0x246   : > { %v10180_v32 = vpop.f32.mrf.mxu0 }
 0x247   : > { %14754 = vst [vmem:[#allocation9_spill] sm:$0xff] %v13389_v50 }
 0x248   : > { %v10181_v33 = vpop.f32.mrf.mxu0 }
 0x249   : > { %v13393_v5 = vadd.f32 %v10181_v33, %v10180_v32  ;;  %v14763_v33 = vld [vmem:[#allocation5_spill] sm:$0xff] }
 0x24a   : > { %10616 = vmatmul.mubr.bf16.gmra.mxu0 %v12855_v46 }
 0x24b   : > { %14755 = vst [vmem:[#allocation10_spill] sm:$0xff] %v13393_v5  ;;  %10619 = vmatprep.mubr.bf16.mxu0 %v12876_v18  ;;  %7832 = vmatmul.mubr.bf16.gmra.mxu1 %v13007_v19 }
 0x24c   : > { %v10183_v11 = vpop.f32.mrf.mxu0  ;;  %7839 = vmatprep.mubr.bf16.mxu1 %v14757_v52 }
 0x24e   : > { %v10184_v51 = vpop.f32.mrf.mxu0 }
 0x24f   : > { %v13399_v42 = vadd.f32 %v10184_v51, %v10183_v11  ;;  %v10991_v51 = vld [vmem:[%s14709_s3 + $0xe0] ss:$16 sps:$4 sm:$0xff]  }
 0x250   : > { %v13403_v45 = vpop.f32.mrf.mxu0 }
 0x251   : > { %14756 = vst [vmem:[#allocation19_spill] sm:$0xff] %v13399_v42  ;;  %14758 = vst [vmem:[#allocation11_spill] sm:$0xff] %v13403_v45  ;;  %v14783_v45 = vld [vmem:[#allocation13_spill] sm:$0xff] }
 0x252   : > { %v13405_v62 = vpop.f32.mrf.mxu0  ;;  %10620 = vmatmul.mubr.bf16.gmra.mxu0 %v12895_v12 }
 0x253   : > { %14759 = vst [vmem:[#allocation20_spill] sm:$0xff] %v13405_v62  ;;  %10623 = vmatprep.mubr.bf16.mxu0 %v12916_v60  ;;  %7840 = vmatmul.mubr.bf16.gmra.mxu1 %v13077_v61  ;;  %v14782_v62 = vld [vmem:[#allocation12_spill] sm:$0xff] }
 0x254   : > { %7847 = vmatprep.mubr.bf16.mxu1 %v13166_v30  ;;  %v10140_v42 = vadd.f32 %v14783_v45, %v14782_v62 }
 0x258   : > { %v10189_v46 = vpop.f32.mrf.mxu0 }
 0x25a   : > { %v10190_v18 = vpop.f32.mrf.mxu0  ;;  %10624 = vmatmul.mubr.bf16.gmra.mxu0 %v12943_v34 }
 0x25b   : > { %v13411_v21 = vadd.f32 %v10190_v18, %v10189_v46  ;;  %10627 = vmatprep.mubr.bf16.mxu0 %v13007_v19  ;;  %7848 = vmatmul.mubr.bf16.gmra.mxu1 %v13101_v1  ;;  %v10994_v18 = vld [vmem:[%s14709_s3 + $0xc0] ss:$16 sps:$4 sm:$0xff]  }
 0x25c   : > { %7855 = vmatprep.mubr.bf16.mxu1 %v13218_v29  ;;  %v13417_v32 = vpop.f32.mrf.mxu0 }
 0x25d   : > { %14760 = vst [vmem:[#allocation21_spill] sm:$0xff] %v13411_v21  ;;  %14761 = vst [vmem:[#allocation22_spill] sm:$0xff] %v13417_v32 }
 0x25e   : > { %v13420_v12 = vpop.f32.mrf.mxu0 }
 0x25f   : > { %14762 = vst [vmem:[#allocation23_spill] sm:$0xff] %v13420_v12 }
 0x262   : > { %10628 = vmatmul.mubr.bf16.gmra.mxu0 %v13077_v61  ;;  %v10996_v61 = vld [vmem:[%s14709_s3 + $0xc4] ss:$16 sps:$4 sm:$0xff]  }
 0x263   : > { %10631 = vmatprep.mubr.bf16.mxu0 %v13101_v1  ;;  %7856 = vmatmul.mubr.bf16.gmra.mxu1 %v13164_v13  ;;  %v14766_v1 = vld [vmem:[#allocation6_spill] sm:$0xff] }
 0x264   : > { %8057 = vmatprep.mubr.bf16.mxu1 %v14763_v33 }
 0x265   : > { %v10195_v60 = vpop.f32.mrf.mxu0 }
 0x267   : > { %v10196_v34 = vpop.f32.mrf.mxu0 }
 0x268   : > { %v13425_v11 = vadd.f32 %v10196_v34, %v10195_v60  ;;  %v14768_v34 = vmov 0  }
 0x269   : > { %v13427_v19 = vpop.f32.mrf.mxu0 }
 0x26a   : > { %14764 = vst [vmem:[#allocation5_spill] sm:$0xff] %v13425_v11  ;;  %14765 = vst [vmem:[#allocation24_spill] sm:$0xff] %v13427_v19  ;;  %10632 = vmatmul.mubr.bf16.gmra.mxu0 %v13164_v13  ;;  %v10999_v13 = vld [vmem:[%s14709_s3 + $0xa4] ss:$16 sps:$4 sm:$0xff]  }
 0x26b   : > { %10635 = vmatprep.mubr.bf16.mxu0 %v13315_v22  ;;  %8058 = vmatmul.mubr.bf16.vlgmr.msra.gmra.mxu1 %v12553_v25  ;;  %v13439_v46 = vpop.f32.mrf.mxu0  ;;  %v10997_v25 = vld [vmem:[%s14709_s3 + $0xa0] ss:$16 sps:$4 sm:$0xff]   ;;  %v11002_v22 = vld [vmem:[%s14709_s3 + $0x84] ss:$16 sps:$4 sm:$0xff]  }
 0x26c   : > { %8065 = vmatprep.mubr.bf16.mxu1 %v14766_v1  ;;  %14767 = vst [vmem:[#allocation6_spill] sm:$0xff] %v13439_v46  ;;  %8588 = vmatpush1.bf16.msra.mxu1 %v10991_v51 }
 0x26d   : > { %8589 = vmatprep.subr.bf16.mxu1 %v10996_v61  ;;  %v14770_v61 = vld [vmem:[#allocation7_spill] sm:$0xff] }
 0x270   : > { %v10201_v60 = vpop.f32.mrf.mxu0  ;;  %8590 = vmatpush1.bf16.msra.mxu1 %v10994_v18 }
 0x271   : > { %8591 = vmatprep.subr.bf16.mxu1 %v10999_v13 }
 0x272   : > { %10636 = vmatmul.mubr.bf16.gmra.mxu0 %v13349_v55  ;;  %v10202_v33 = vpop.f32.mrf.mxu0  ;;  %v11000_v55 = vld [vmem:[%s14709_s3 + $0x80] ss:$16 sps:$4 sm:$0xff]  }
 0x273   : > { %8812 = vmatprep.mubr.bf16.mxu0 %v14768_v34  ;;  %8066 = vmatmul.mubr.bf16.gmra.mxu1 %v12603_v2  ;;  %v13456_v51 = vadd.f32 %v10202_v33, %v10201_v60  ;;  %v14773_v60 = vld [vmem:[#allocation8_spill] sm:$0xff] }
 0x274   : > { %8073 = vmatprep.mubr.bf16.mxu1 %v14770_v61  ;;  %v13459_v1 = vpop.f32.mrf.mxu0  ;;  %8592 = vmatpush1.bf16.msra.mxu1 %v10997_v25  ;;  %v11003_v25 = vld [vmem:[%s14709_s3 + $0x60] ss:$16 sps:$4 sm:$0xff]   ;;  %v11006_v61 = vld [vmem:[%s14709_s3 + $0xe8] ss:$16 sps:$4 sm:$0xff]  }
 0x275   : > { %14769 = vst [vmem:[#allocation25_spill] sm:$0xff] %v13456_v51  ;;  %14771 = vst [vmem:[#allocation7_spill] sm:$0xff] %v13459_v1  ;;  %8593 = vmatprep.subr.bf16.mxu1 %v11002_v22  ;;  %v11005_v22 = vld [vmem:[%s14709_s3 + $0x64] ss:$16 sps:$4 sm:$0xff]  }
 0x276   : > { %v13464_v18 = vpop.f32.mrf.mxu0 }
 0x277   : > { %14772 = vst [vmem:[#allocation26_spill] sm:$0xff] %v13464_v18 }
 0x278   : > { %v10359_v13 = vpop.f32.mrf.mxu0  ;;  %8594 = vmatpush1.bf16.msra.mxu1 %v11000_v55 }
 0x279   : > { %8595 = vmatprep.subr.bf16.mxu1 %v11005_v22  ;;  %v11011_v22 = vld [vmem:[%s14709_s3 + $0xcc] ss:$16 sps:$4 sm:$0xff]  }
 0x27a   : > { %v10360_v37 = vpop.f32.mrf.mxu0 }
 0x27b   : > { %8074 = vmatmul.mubr.bf16.gmra.mxu1 %v12733_v8  ;;  %v13467_v2 = vadd.f32 %v10360_v37, %v10359_v13  ;;  %v11008_v8 = vld [vmem:[%s14709_s3 + $0xec] ss:$16 sps:$4 sm:$0xff]  }
 0x27c   : > { %8081 = vmatprep.mubr.bf16.mxu1 %v14773_v60  ;;  %v13470_v33 = vpop.f32.mrf.mxu0  ;;  %8780 = vmatprep.subr.bf16.mxu0 %v11008_v8 }
 0x27d   : > { %8596 = vmatpush1.bf16.msra.mxu1 %v11003_v25  ;;  %8781 = vmatpush1.bf16.msra.mxu0 %v11006_v61  ;;  %v11009_v25 = vld [vmem:[%s14709_s3 + $0xc8] ss:$16 sps:$4 sm:$0xff]  }
 0x27e   : > { %v13484_v55 = vpop.f32.mrf.mxu0  ;;  %8782 = vmatprep.subr.bf16.mxu0 %v11011_v22 }
 0x27f   : > { %v10207_v37 = vpop.f32.mrf.mxu1 }
 0x280   : > { %v10365_v60 = vpop.f32.mrf.mxu0 }
 0x281   : > { %v10208_v13 = vpop.f32.mrf.mxu1  ;;  %8783 = vmatpush1.bf16.msra.mxu0 %v11009_v25 }
 0x282   : > { %v13486_v3 = vadd.f32 %v10208_v13, %v10207_v37  ;;  %v10366_v1 = vpop.f32.mrf.mxu0 }
 0x283   : > { %v10210_v18 = vpop.f32.mrf.mxu1  ;;  %8082 = vmatmul.mubr.bf16.gmra.mxu1 %v12777_v39  ;;  %v13489_v51 = vadd.f32 %v10366_v1, %v10365_v60 }
 0x284   : > { %14774 = vst [vmem:[#allocation8_spill] sm:$0xff] %v13486_v3  ;;  %8089 = vmatprep.mubr.bf16.mxu1 %v12831_v4  ;;  %v13492_v19 = vpop.f32.mrf.mxu0 }
 0x285   : > { %v10211_v46 = vpop.f32.mrf.mxu1 }
 0x286   : > { %v13500_v61 = vadd.f32 %v10211_v46, %v10210_v18  ;;  %v13502_v8 = vpop.f32.mrf.mxu0  ;;  %v11012_v46 = vld [vmem:[%s14709_s3 + $0x40] ss:$16 sps:$4 sm:$0xff]   ;;  %v11014_v18 = vld [vmem:[%s14709_s3 + $0x44] ss:$16 sps:$4 sm:$0xff]  }
 0x287   : > { %8597 = vmatprep.subr.bf16.mxu1 %v11014_v18 }
 0x288   : > { %14775 = vst [vmem:[#allocation27_spill] sm:$0xff] %v13500_v61  ;;  %8598 = vmatpush1.bf16.msra.mxu1 %v11012_v46  ;;  %v11018_v61 = vld [vmem:[%s14709_s3 + $0x88] ss:$16 sps:$4 sm:$0xff]  }
 0x289   : > { %v10213_v39 = vpop.f32.mrf.mxu1 }
 0x28a   : > { %v10371_v1 = vpop.f32.mrf.mxu0 }
 0x28b   : > { %v10214_v4 = vpop.f32.mrf.mxu1  ;;  %8090 = vmatmul.mubr.bf16.gmra.mxu1 %v12818_v38  ;;  %v11015_v38 = vld [vmem:[%s14709_s3 + $0xa8] ss:$16 sps:$4 sm:$0xff]  }
 0x28c   : > { %v13505_v37 = vadd.f32 %v10214_v4, %v10213_v39  ;;  %v10372_v13 = vpop.f32.mrf.mxu0  ;;  %8097 = vmatprep.mubr.bf16.mxu1 %v12852_v17  ;;  %v11017_v17 = vld [vmem:[%s14709_s3 + $0xac] ss:$16 sps:$4 sm:$0xff]  }
 0x28d   : > { %v10216_v60 = vpop.f32.mrf.mxu1  ;;  %v13508_v3 = vadd.f32 %v10372_v13, %v10371_v1  ;;  %8784 = vmatprep.subr.bf16.mxu0 %v11017_v17 }
 0x28e   : > { %14776 = vst [vmem:[#allocation28_spill] sm:$0xff] %v13505_v37  ;;  %v13519_v25 = vpop.f32.mrf.mxu0  ;;  %8785 = vmatpush1.bf16.msra.mxu0 %v11015_v38 }
 0x28f   : > { %v10217_v22 = vpop.f32.mrf.mxu1 }
 0x290   : > { %v13524_v39 = vadd.f32 %v10217_v22, %v10216_v60  ;;  %v13526_v1 = vpop.f32.mrf.mxu0  ;;  %v11020_v60 = vld [vmem:[%s14709_s3 + $0x8c] ss:$16 sps:$4 sm:$0xff]  }
 0x291   : > { %8786 = vmatprep.subr.bf16.mxu0 %v11020_v60  ;;  %v11021_v60 = vld [vmem:[%s14709_s3 + $0x20] ss:$16 sps:$4 sm:$0xff]  }
 0x292   : > { %14777 = vst [vmem:[#allocation29_spill] sm:$0xff] %v13524_v39  ;;  %v10377_v4 = vpop.f32.mrf.mxu0  ;;  %8787 = vmatpush1.bf16.msra.mxu0 %v11018_v61  ;;  %v11023_v61 = vld [vmem:[%s14709_s3 + $0x24] ss:$16 sps:$4 sm:$0xff]  }
 0x293   : > { %8098 = vmatmul.mubr.bf16.gmra.mxu1 %v12847_v0  ;;  %8599 = vmatprep.subr.bf16.mxu1 %v11023_v61  ;;  %v11029_v61 = vld [vmem:[%s14709_s3 + $0x4c] ss:$16 sps:$4 sm:$0xff]  }
 0x294   : > { %v10378_v13 = vpop.f32.mrf.mxu0  ;;  %8105 = vmatprep.mubr.bf16.mxu1 %v12872_v31  ;;  %8600 = vmatpush1.bf16.msra.mxu1 %v11021_v60 }
 0x295   : > { %v13530_v37 = vadd.f32 %v10378_v13, %v10377_v4 }
 0x296   : > { %v13538_v18 = vpop.f32.mrf.mxu0  ;;  %v10219_v46 = vpop.f32.mrf.mxu1 }
 0x298   : > { %v13540_v38 = vpop.f32.mrf.mxu0  ;;  %v10220_v0 = vpop.f32.mrf.mxu1 }
 0x299   : > { %v13542_v17 = vadd.f32 %v10220_v0, %v10219_v46  ;;  %v11024_v46 = vld [vmem:[%s14709_s3 + $0x68] ss:$16 sps:$4 sm:$0xff]  }
 0x29a   : > { %v10383_v31 = vpop.f32.mrf.mxu0  ;;  %v10222_v22 = vpop.f32.mrf.mxu1 }
 0x29b   : > { %14778 = vst [vmem:[#allocation30_spill] sm:$0xff] %v13542_v17  ;;  %8106 = vmatmul.mubr.bf16.gmra.mxu1 %v12874_v63 }
 0x29c   : > { %v10384_v4 = vpop.f32.mrf.mxu0  ;;  %8113 = vmatprep.mubr.bf16.mxu1 %v12897_v14  ;;  %v10223_v13 = vpop.f32.mrf.mxu1  ;;  %v11026_v14 = vld [vmem:[%s14709_s3 + $0x6c] ss:$16 sps:$4 sm:$0xff]  }
 0x29d   : > { %v13546_v39 = vadd.f32 %v10384_v4, %v10383_v31  ;;  %v13557_v0 = vadd.f32 %v10223_v13, %v10222_v22  ;;  %8788 = vmatprep.subr.bf16.mxu0 %v11026_v14  ;;  %v11027_v13 = vld [vmem:[%s14709_s3 + $0x48] ss:$16 sps:$4 sm:$0xff]  }
 0x29e   : > { %v13559_v63 = vpop.f32.mrf.mxu0  ;;  %8789 = vmatpush1.bf16.msra.mxu0 %v11024_v46 }
 0x29f   : > { %14779 = vst [vmem:[#allocation31_spill] sm:$0xff] %v13557_v0  ;;  %8790 = vmatprep.subr.bf16.mxu0 %v11029_v61  ;;  %v11033_v61 = vld [vmem:[%s14709_s3 + $0x28] ss:$16 sps:$4 sm:$0xff]  }
 0x2a0   : > { %v13564_v31 = vpop.f32.mrf.mxu0 }
 0x2a2   : > { %v10389_v4 = vpop.f32.mrf.mxu0  ;;  %8791 = vmatpush1.bf16.msra.mxu0 %v11027_v13  ;;  %v11032_v13 = vld [vmem:[%s14709_s3 + $0x4] ss:$16 sps:$4 sm:$0xff]  }
 0x2a3   : > { %v10225_v17 = vpop.f32.mrf.mxu1  ;;  %8114 = vmatmul.mubr.bf16.gmra.mxu1 %v12899_v9  ;;  %8601 = vmatprep.subr.bf16.mxu1 %v11032_v13  ;;  %v10364_v13 = vadd.f32 %v13484_v55, %v13470_v33  ;;  %v14786_v33 = vld [vmem:[#allocation16_spill] sm:$0xff] }
 0x2a4   : > { %v10390_v11 = vpop.f32.mrf.mxu0  ;;  %8121 = vmatprep.mubr.bf16.mxu1 %v12922_v7 }
 0x2a5   : > { %v13568_v22 = vadd.f32 %v10390_v11, %v10389_v4  ;;  %v10226_v14 = vpop.f32.mrf.mxu1 }
 0x2a6   : > { %v13576_v60 = vpop.f32.mrf.mxu0  ;;  %v13578_v46 = vadd.f32 %v10226_v14, %v10225_v17  ;;  %v11030_v17 = vld [vmem:[%s14709_s3] ss:$16 sps:$4 sm:$0xff]  }
 0x2a7   : > { %v10228_v9 = vpop.f32.mrf.mxu1  ;;  %8602 = vmatpush1.bf16.msra.mxu1 %v11030_v17 }
 0x2a8   : > { %14780 = vst [vmem:[#allocation32_spill] sm:$0xff] %v13578_v46  ;;  %v13580_v0 = vpop.f32.mrf.mxu0 }
 0x2a9   : > { %v10229_v7 = vpop.f32.mrf.mxu1 }
 0x2aa   : > { %v10395_v11 = vpop.f32.mrf.mxu0  ;;  %v13582_v4 = vadd.f32 %v10229_v7, %v10228_v9 }
 0x2ab   : > { %v10247_v12 = vpop.f32.mrf.mxu1  ;;  %8122 = vmatmul.mubr.bf16.gmra.mxu1 %v12927_v27  ;;  %v11035_v27 = vld [vmem:[%s14709_s3 + $0x2c] ss:$16 sps:$4 sm:$0xff]  }
 0x2ac   : > { %14781 = vst [vmem:[#allocation33_spill] sm:$0xff] %v13582_v4  ;;  %v10396_v32 = vpop.f32.mrf.mxu0  ;;  %8129 = vmatprep.mubr.bf16.mxu1 %v12948_v15  ;;  %8792 = vmatprep.subr.bf16.mxu0 %v11035_v27  ;;  %v14784_v27 = vld [vmem:[#allocation14_spill] sm:$0xff] }
 0x2ad   : > { %v13586_v21 = vadd.f32 %v10396_v32, %v10395_v11  ;;  %v10248_v14 = vpop.f32.mrf.mxu1  ;;  %8793 = vmatpush1.bf16.msra.mxu0 %v11033_v61 }
 0x2ae   : > { %v13597_v9 = vpop.f32.mrf.mxu0  ;;  %v10249_v15 = vadd.f32 %v10248_v14, %v10247_v12 }
 0x2af   : > { %v10250_v32 = vpop.f32.mrf.mxu1 }
 0x2b0   : > { %v13602_v7 = vpop.f32.mrf.mxu0  ;;  %v7738_v11 = vadd.f32 %v10249_v15, %v13223_v49 }
 0x2b1   : > { %v10251_v4 = vpop.f32.mrf.mxu1 }
 0x2b2   : > { %v10401_v46 = vpop.f32.mrf.mxu0  ;;  %v10252_v5 = vadd.f32 %v10251_v4, %v10250_v32  ;;  %v13608_v50 = vadd.f32 %v13467_v2, %v7738_v11  ;;  %v14785_v11 = vld [vmem:[#allocation15_spill] sm:$0xff] }
 0x2b3   : > { %v10253_v34 = vpop.f32.mrf.mxu1  ;;  %8130 = vmatmul.mubr.bf16.gmra.mxu1 %v14752_v35 }
 0x2b4   : > { %v10402_v12 = vpop.f32.mrf.mxu0  ;;  %v7741_v17 = vadd.f32 %v10252_v5, %v10140_v42  ;;  %8137 = vmatprep.mubr.bf16.mxu1 %v12989_v28  ;;  %v10146_v5 = vadd.f32 %v14786_v33, %v14785_v11  ;;  %v11036_v28 = vld [vmem:[%s14709_s3 + $0x8] ss:$16 sps:$4 sm:$0xff]  }
 0x2b5   : > { %v13614_v49 = vadd.f32 %v10402_v12, %v10401_v46  ;;  %v10254_v61 = vpop.f32.mrf.mxu1 }
 0x2b6   : > { %v13616_v14 = vpop.f32.mrf.mxu0  ;;  %v10255_v45 = vadd.f32 %v10254_v61, %v10253_v34  ;;  %v13618_v62 = vadd.f32 %v10364_v13, %v7741_v17  ;;  %v11038_v34 = vld [vmem:[%s14709_s3 + $0xc] ss:$16 sps:$4 sm:$0xff]   ;;  %v10370_v13 = vadd.f32 %v13502_v8, %v13492_v19 }
 0x2b7   : > { %v10256_v2 = vpop.f32.mrf.mxu1  ;;  %8794 = vmatprep.subr.bf16.mxu0 %v11038_v34  ;;  %v14788_v8 = vld [vmem:[#allocation18_spill] sm:$0xff]  ;;  %v10376_v34 = vadd.f32 %v13526_v1, %v13519_v25  ;;  %v10158_v25 = vadd.f32 %v13334_v16, %v13325_v23 }
 0x2b8   : > { %v13620_v4 = vpop.f32.mrf.mxu0  ;;  %v7746_v35 = vadd.f32 %v10255_v45, %v14784_v27  ;;  %8795 = vmatpush1.bf16.msra.mxu0 %v11036_v28 }
 0x2b9   : > { %v10257_v15 = vpop.f32.mrf.mxu1 }
 0x2ba   : > { %v10407_v32 = vpop.f32.mrf.mxu0  ;;  %v10258_v42 = vadd.f32 %v10257_v15, %v10256_v2  ;;  %v13632_v55 = vadd.f32 %v13489_v51, %v7746_v35 }
 0x2bb   : > { %v10259_v46 = vpop.f32.mrf.mxu1  ;;  %8138 = vmatmul.mubr.bf16.gmra.mxu1 %v14753_v48  ;;  %v14787_v48 = vld [vmem:[#allocation17_spill] sm:$0xff] }
 0x2bc   : > { %v10408_v12 = vpop.f32.mrf.mxu0  ;;  %v7749_v17 = vadd.f32 %v10258_v42, %v10146_v5  ;;  %8145 = vmatprep.mubr.bf16.mxu1 %v13048_v44  ;;  %v10152_v44 = vadd.f32 %v13295_v53, %v14788_v8 }
 0x2bd   : > { %v13638_v61 = vadd.f32 %v10408_v12, %v10407_v32  ;;  %v10260_v45 = vpop.f32.mrf.mxu1 }
 0x2be   : > { %v13640_v2 = vpop.f32.mrf.mxu0  ;;  %v10261_v27 = vadd.f32 %v10260_v45, %v10259_v46  ;;  %v13642_v51 = vadd.f32 %v10370_v13, %v7749_v17 }
 0x2bf   : > { %v10262_v35 = vpop.f32.mrf.mxu1 }
 0x2c0   : > { %v13644_v15 = vpop.f32.mrf.mxu0  ;;  %v7754_v11 = vadd.f32 %v10261_v27, %v14787_v48 }
 0x2c1   : > { %v10263_v33 = vpop.f32.mrf.mxu1 }
 0x2c2   : > { %v10413_v19 = vpop.f32.mrf.mxu0  ;;  %v10264_v32 = vadd.f32 %v10263_v33, %v10262_v35  ;;  %v13650_v5 = vadd.f32 %v13508_v3, %v7754_v11 }
 0x2c3   : > { %v10265_v42 = vpop.f32.mrf.mxu1  ;;  %8146 = vmatmul.mubr.bf16.gmra.mxu1 %v13056_v56 }
 0x2c4   : > { %v10414_v28 = vpop.f32.mrf.mxu0  ;;  %v7757_v46 = vadd.f32 %v10264_v32, %v10152_v44  ;;  %8153 = vmatprep.mubr.bf16.mxu1 %v13117_v6 }
 0x2c5   : > { %v13656_v12 = vadd.f32 %v10414_v28, %v10413_v19  ;;  %v10266_v13 = vpop.f32.mrf.mxu1  ;;  %v10382_v19 = vadd.f32 %v13540_v38, %v13538_v18 }
 0x2c6   : > { %v13658_v17 = vpop.f32.mrf.mxu0  ;;  %v10267_v53 = vadd.f32 %v10266_v13, %v10265_v42  ;;  %v13660_v45 = vadd.f32 %v10376_v34, %v7757_v46  ;;  %v10388_v13 = vadd.f32 %v13564_v31, %v13559_v63 }
 0x2c7   : > { %v10268_v3 = vpop.f32.mrf.mxu1 }
 0x2c8   : > { %v13662_v27 = vpop.f32.mrf.mxu0  ;;  %v7762_v56 = vadd.f32 %v10267_v53, %v13310_v26 }
 0x2c9   : > { %v10269_v35 = vpop.f32.mrf.mxu1 }
 0x2ca   : > { %v10419_v48 = vpop.f32.mrf.mxu0  ;;  %v10270_v1 = vadd.f32 %v10269_v35, %v10268_v3  ;;  %v13668_v6 = vadd.f32 %v13530_v37, %v7762_v56 }
 0x2cb   : > { %v10271_v11 = vpop.f32.mrf.mxu1  ;;  %8154 = vmatmul.mubr.bf16.gmra.mxu1 %v14757_v52 }
 0x2cc   : > { %v10420_v33 = vpop.f32.mrf.mxu0  ;;  %v7765_v8 = vadd.f32 %v10270_v1, %v10158_v25  ;;  %8161 = vmatprep.mubr.bf16.mxu1 %v13162_v59 }
 0x2cd   : > { %v13674_v26 = vadd.f32 %v10420_v33, %v10419_v48  ;;  %v10272_v44 = vpop.f32.mrf.mxu1  ;;  %v10394_v33 = vadd.f32 %v13580_v0, %v13576_v60 }
 0x2ce   : > { %v13676_v32 = vpop.f32.mrf.mxu0  ;;  %v10273_v23 = vadd.f32 %v10272_v44, %v10271_v11  ;;  %v13678_v16 = vadd.f32 %v10382_v19, %v7765_v8  ;;  %v14789_v8 = vpack.c.bf16 %v13355_v10, %v13352_v47  ;;  %v14790_v10 = vpack.c.bf16 %v13338_v36, %v13322_v57 }
 0x2cf   : > { %v10274_v37 = vpop.f32.mrf.mxu1 }
 0x2d0   : > { %v13680_v42 = vpop.f32.mrf.mxu0  ;;  %v7770_v52 = vadd.f32 %v10273_v23, %v13346_v43 }
 0x2d1   : > { %v10275_v28 = vpop.f32.mrf.mxu1 }
 0x2d2   : > { %v10425_v34 = vpop.f32.mrf.mxu0  ;;  %v10276_v46 = vadd.f32 %v10275_v28, %v10274_v37  ;;  %v13684_v18 = vadd.f32 %v13546_v39, %v7770_v52 }
 0x2d3   : > { %v10277_v59 = vpop.f32.mrf.mxu1  ;;  %8162 = vmatmul.mubr.bf16.gmra.mxu1 %v13166_v30 }
 0x2d4   : > { %v10426_v38 = vpop.f32.mrf.mxu0  ;;  %v7773_v53 = vadd.f32 %v10276_v46, %v13360_v54  ;;  %8169 = vmatprep.mubr.bf16.mxu1 %v13307_v41 }
 0x2d5   : > { %v13691_v3 = vadd.f32 %v10426_v38, %v10425_v34  ;;  %v10278_v43 = vpop.f32.mrf.mxu1  ;;  %v10400_v38 = vadd.f32 %v13602_v7, %v13597_v9 }
 0x2d6   : > { %v13693_v56 = vpop.f32.mrf.mxu0  ;;  %v10279_v35 = vadd.f32 %v10278_v43, %v10277_v59  ;;  %v13695_v48 = vadd.f32 %v10388_v13, %v7773_v53  ;;  %v14791_v53 = vmov 0  }
 0x2d7   : > { %v10280_v39 = vpop.f32.mrf.mxu1 }
 0x2d8   : > { %v13697_v25 = vpop.f32.mrf.mxu0  ;;  %v7778_v30 = vadd.f32 %v10279_v35, %v13366_v58 }
 0x2d9   : > { %v10281_v1 = vpop.f32.mrf.mxu1 }
 0x2da   : > { %v10431_v11 = vpop.f32.mrf.mxu0  ;;  %v10282_v63 = vadd.f32 %v10281_v1, %v10280_v39  ;;  %v13701_v54 = vadd.f32 %v13568_v22, %v7778_v30 }
 0x2db   : > { %v10283_v41 = vpop.f32.mrf.mxu1  ;;  %8170 = vmatmul.mubr.bf16.gmra.mxu1 %v13218_v29 }
 0x2dc   : > { %v10432_v31 = vpop.f32.mrf.mxu0  ;;  %v7781_v19 = vadd.f32 %v10282_v63, %v13369_v24  ;;  %8177 = vmatprep.mubr.bf16.mxu1 %v14789_v8 }
 0x2dd   : > { %v13710_v58 = vadd.f32 %v10432_v31, %v10431_v11  ;;  %v10284_v44 = vpop.f32.mrf.mxu1  ;;  %v14792_v11 = vld [vmem:[#allocation9_spill] sm:$0xff] }
 0x2de   : > { %v10434_v23 = vpop.f32.mrf.mxu0  ;;  %v10285_v37 = vadd.f32 %v10284_v44, %v10283_v41  ;;  %v13712_v22 = vadd.f32 %v10394_v33, %v7781_v19  ;;  %v10406_v33 = vadd.f32 %v13620_v4, %v13616_v14  ;;  %v14793_v19 = vld [vmem:[#allocation10_spill] sm:$0xff] }
 0x2df   : > { %v10286_v52 = vpop.f32.mrf.mxu1 }
 0x2e0   : > { %v10435_v28 = vpop.f32.mrf.mxu0  ;;  %v7786_v29 = vadd.f32 %v10285_v37, %v13378_v20 }
 0x2e1   : > { %v13715_v34 = vadd.f32 %v10435_v28, %v10434_v23  ;;  %v10287_v0 = vpop.f32.mrf.mxu1 }
 0x2e2   : > { %v10437_v60 = vpop.f32.mrf.mxu0  ;;  %v10288_v24 = vadd.f32 %v10287_v0, %v10286_v52  ;;  %v13718_v46 = vadd.f32 %v13586_v21, %v7786_v29 }
 0x2e3   : > { %v10289_v47 = vpop.f32.mrf.mxu1  ;;  %8178 = vmatmul.mubr.bf16.gmra.mxu1 %v14790_v10 }
 0x2e4   : > { %v10438_v59 = vpop.f32.mrf.mxu0  ;;  %v7789_v13 = vadd.f32 %v10288_v24, %v13380_v40  ;;  %8619 = vmatprep.mubr.bf16.mxu1 %v14791_v53 }
 0x2e5   : > { %v13726_v20 = vadd.f32 %v10438_v59, %v10437_v60  ;;  %v10290_v43 = vpop.f32.mrf.mxu1  ;;  %v14794_v60 = vld [vmem:[#allocation19_spill] sm:$0xff] }
 0x2e6   : > { %v10440_v35 = vpop.f32.mrf.mxu0  ;;  %v10291_v39 = vadd.f32 %v10290_v43, %v10289_v47  ;;  %v13729_v21 = vadd.f32 %v10400_v38, %v7789_v13  ;;  %v14795_v59 = vld [vmem:[#allocation11_spill] sm:$0xff]  ;;  %v14796_v38 = vld [vmem:[#allocation20_spill] sm:$0xff] }
 0x2e7   : > { %v10292_v30 = vpop.f32.mrf.mxu1  ;;  %v10188_v14 = vadd.f32 %v14796_v38, %v14795_v59  ;;  %v14800_v59 = vld [vmem:[#allocation5_spill] sm:$0xff] }
 0x2e8   : > { %v10441_v1 = vpop.f32.mrf.mxu0  ;;  %v7794_v57 = vadd.f32 %v10291_v39, %v14792_v11  ;;  %v10412_v39 = vadd.f32 %v13644_v15, %v13640_v2 }
 0x2e9   : > { %v13732_v36 = vadd.f32 %v10441_v1, %v10440_v35  ;;  %v10293_v63 = vpop.f32.mrf.mxu1 }
 0x2ea   : > { %v10443_v41 = vpop.f32.mrf.mxu0  ;;  %v10294_v9 = vadd.f32 %v10293_v63, %v10292_v30  ;;  %v13735_v40 = vadd.f32 %v13614_v49, %v7794_v57 }
 0x2eb   : > { %v10295_v7 = vpop.f32.mrf.mxu1 }
 0x2ec   : > { %v10444_v31 = vpop.f32.mrf.mxu0  ;;  %v7797_v8 = vadd.f32 %v10294_v9, %v14793_v19 }
 0x2ed   : > { %v13740_v44 = vadd.f32 %v10444_v31, %v10443_v41  ;;  %v10296_v23 = vpop.f32.mrf.mxu1  ;;  %v14797_v31 = vld [vmem:[#allocation21_spill] sm:$0xff] }
 0x2ee   : > { %v10446_v37 = vpop.f32.mrf.mxu0  ;;  %v10297_v52 = vadd.f32 %v10296_v23, %v10295_v7  ;;  %v13742_v28 = vadd.f32 %v10406_v33, %v7797_v8  ;;  %v14798_v8 = vld [vmem:[#allocation22_spill] sm:$0xff]  ;;  %v14799_v23 = vld [vmem:[#allocation23_spill] sm:$0xff] }
 0x2ef   : > { %v10298_v29 = vpop.f32.mrf.mxu1 }
 0x2f0   : > { %v10447_v0 = vpop.f32.mrf.mxu0  ;;  %v7802_v24 = vadd.f32 %v10297_v52, %v14794_v60 }
 0x2f1   : > { %v13745_v49 = vadd.f32 %v10447_v0, %v10446_v37  ;;  %v10299_v47 = vpop.f32.mrf.mxu1  ;;  %v10194_v37 = vadd.f32 %v14799_v23, %v14798_v8  ;;  %v14805_v8 = vld [vmem:[#allocation26_spill] sm:$0xff] }
 0x2f2   : > { %v10449_v10 = vpop.f32.mrf.mxu0  ;;  %v10300_v4 = vadd.f32 %v10299_v47, %v10298_v29  ;;  %v13750_v13 = vadd.f32 %v13638_v61, %v7802_v24  ;;  %v10418_v29 = vadd.f32 %v13662_v27, %v13658_v17  ;;  %v10424_v17 = vadd.f32 %v13680_v42, %v13676_v32 }
 0x2f3   : > { %v10301_v43 = vpop.f32.mrf.mxu1  ;;  %v10430_v32 = vadd.f32 %v13697_v25, %v13693_v56 }
 0x2f4   : > { %v10450_v35 = vpop.f32.mrf.mxu0  ;;  %v7805_v30 = vadd.f32 %v10300_v4, %v10188_v14  ;;  %v14801_v4 = vld [vmem:[#allocation24_spill] sm:$0xff] }
 0x2f5   : > { %v13754_v1 = vadd.f32 %v10450_v35, %v10449_v10  ;;  %v10302_v11 = vpop.f32.mrf.mxu1 }
 0x2f6   : > { %v10452_v57 = vpop.f32.mrf.mxu0  ;;  %v10303_v63 = vadd.f32 %v10302_v11, %v10301_v43  ;;  %v13756_v41 = vadd.f32 %v10412_v39, %v7805_v30  ;;  %v14802_v43 = vld [vmem:[#allocation6_spill] sm:$0xff] }
 0x2f7   : > { %v10304_v9 = vpop.f32.mrf.mxu1  ;;  %v10200_v35 = vadd.f32 %v14802_v43, %v14801_v4 }
 0x2f8   : > { %v10453_v7 = vpop.f32.mrf.mxu0  ;;  %v7810_v33 = vadd.f32 %v10303_v63, %v14797_v31 }
 0x2f9   : > { %v13759_v19 = vadd.f32 %v10453_v7, %v10452_v57  ;;  %v10305_v61 = vpop.f32.mrf.mxu1  ;;  %v14803_v7 = vld [vmem:[#allocation25_spill] sm:$0xff] }
 0x2fa   : > { %v10306_v52 = vadd.f32 %v10305_v61, %v10304_v9  ;;  %v13764_v2 = vadd.f32 %v13656_v12, %v7810_v33  ;;  %v14804_v61 = vld [vmem:[#allocation7_spill] sm:$0xff] }
 0x2fb   : > { %v10307_v15 = vpop.f32.mrf.mxu1  ;;  %v10206_v23 = vadd.f32 %v14805_v8, %v14804_v61 }
 0x2fc   : > { %v7813_v0 = vadd.f32 %v10306_v52, %v10194_v37 }
 0x2fd   : > { %v10308_v60 = vpop.f32.mrf.mxu1 }
 0x2fe   : > { %v10309_v24 = vadd.f32 %v10308_v60, %v10307_v15  ;;  %v13768_v47 = vadd.f32 %v10418_v29, %v7813_v0 }
 0x2ff   : > { %v10310_v10 = vpop.f32.mrf.mxu1 }
 0x300   : > { %v7818_v38 = vadd.f32 %v10309_v24, %v14800_v59  ;;  %v14806_v24 = vld [vmem:[#allocation8_spill] sm:$0xff] }
 0x301   : > { %v10311_v14 = vpop.f32.mrf.mxu1 }
 0x302   : > { %v10312_v39 = vadd.f32 %v10311_v14, %v10310_v10  ;;  %v13774_v12 = vadd.f32 %v13674_v26, %v7818_v38 }
 0x303   : > { %v10313_v30 = vpop.f32.mrf.mxu1 }
 0x304   : > { %v7821_v27 = vadd.f32 %v10312_v39, %v10200_v35 }
 0x305   : > { %v10314_v11 = vpop.f32.mrf.mxu1 }
 0x306   : > { %v10315_v57 = vadd.f32 %v10314_v11, %v10313_v30  ;;  %v13778_v63 = vadd.f32 %v10424_v17, %v7821_v27  ;;  %v14808_v30 = vld [vmem:[#allocation28_spill] sm:$0xff] }
 0x307   : > { %v10316_v9 = vpop.f32.mrf.mxu1 }
 0x308   : > { %v7826_v31 = vadd.f32 %v10315_v57, %v14803_v7  ;;  %v14809_v7 = vld [vmem:[#allocation29_spill] sm:$0xff] }
 0x309   : > { %v10317_v33 = vpop.f32.mrf.mxu1 }
 0x30a   : > { %v10318_v37 = vadd.f32 %v10317_v33, %v10316_v9  ;;  %v13784_v26 = vadd.f32 %v13691_v3, %v7826_v31  ;;  %v14807_v3 = vld [vmem:[#allocation27_spill] sm:$0xff] }
 0x30b   : > { %v10319_v52 = vpop.f32.mrf.mxu1 }
 0x30c   : > { %v7829_v42 = vadd.f32 %v10318_v37, %v10206_v23  ;;  %v14810_v23 = vld [vmem:[#allocation30_spill] sm:$0xff] }
 0x30d   : > { %v10320_v15 = vpop.f32.mrf.mxu1 }
 0x30e   : > { %v10321_v29 = vadd.f32 %v10320_v15, %v10319_v52  ;;  %v13788_v0 = vadd.f32 %v10430_v32, %v7829_v42  ;;  %v14811_v15 = vld [vmem:[#allocation31_spill] sm:$0xff] }
 0x30f   : > { %v10322_v60 = vpop.f32.mrf.mxu1 }
 0x310   : > { %v7834_v10 = vadd.f32 %v10321_v29, %v14806_v24 }
 0x311   : > { %v10323_v59 = vpop.f32.mrf.mxu1 }
 0x312   : > { %v10324_v38 = vadd.f32 %v10323_v59, %v10322_v60  ;;  %v13792_v14 = vadd.f32 %v13710_v58, %v7834_v10  ;;  %v14812_v59 = vld [vmem:[#allocation32_spill] sm:$0xff] }
 0x313   : > { %v10325_v4 = vpop.f32.mrf.mxu1 }
 0x314   : > { %v7837_v43 = vadd.f32 %v10324_v38, %v14807_v3  ;;  %v10609_v38 = vpop.f32.mrf.mxu0 }
 0x315   : > { %v10326_v35 = vpop.f32.mrf.mxu1 }
 0x316   : > { %v10327_v39 = vadd.f32 %v10326_v35, %v10325_v4  ;;  %v13796_v56 = vadd.f32 %v13715_v34, %v7837_v43 }
 0x317   : > { %v10328_v25 = vpop.f32.mrf.mxu1 }
 0x318   : > { %v7842_v17 = vadd.f32 %v10327_v39, %v14808_v30 }
 0x319   : > { %v10329_v27 = vpop.f32.mrf.mxu1 }
 0x31a   : > { %v10330_v11 = vadd.f32 %v10329_v27, %v10328_v25  ;;  %v13800_v57 = vadd.f32 %v13726_v20, %v7842_v17  ;;  %v8220_v25 = vpop.f32.mrf.mxu0 }
 0x31b   : > { %v10331_v9 = vpop.f32.mrf.mxu1 }
 0x31c   : > { %v7845_v58 = vadd.f32 %v10330_v11, %v14809_v7 }
 0x31d   : > { %v10332_v31 = vpop.f32.mrf.mxu1 }
 0x31e   : > { %v10333_v33 = vadd.f32 %v10332_v31, %v10331_v9  ;;  %v13804_v61 = vadd.f32 %v13732_v36, %v7845_v58  ;;  %v10610_v9 = vpop.f32.mrf.mxu0 }
 0x31f   : > { %v10334_v8 = vpop.f32.mrf.mxu1 }
 0x320   : > { %v7850_v34 = vadd.f32 %v10333_v33, %v14810_v23 }
 0x321   : > { %v10335_v37 = vpop.f32.mrf.mxu1 }
 0x322   : > { %v10336_v52 = vadd.f32 %v10335_v37, %v10334_v8  ;;  %v13808_v32 = vadd.f32 %v13740_v44, %v7850_v34  ;;  %v14813_v44 = vld [vmem:[#allocation33_spill] sm:$0xff]  ;;  %v8223_v8 = vpop.f32.mrf.mxu0 }
 0x323   : > { %v10337_v42 = vpop.f32.mrf.mxu1 }
 0x324   : > { %v7853_v20 = vadd.f32 %v10336_v52, %v14811_v15 }
 0x325   : > { %v10338_v29 = vpop.f32.mrf.mxu1 }
 0x326   : > { %v10339_v60 = vadd.f32 %v10338_v29, %v10337_v42  ;;  %v13812_v24 = vadd.f32 %v13745_v49, %v7853_v20  ;;  %v10613_v20 = vpop.f32.mrf.mxu0 }
 0x327   : > { %v10340_v10 = vpop.f32.mrf.mxu1 }
 0x328   : > { %v7858_v36 = vadd.f32 %v10339_v60, %v14812_v59 }
 0x329   : > { %v10341_v4 = vpop.f32.mrf.mxu1 }
 0x32a   : > { %v10342_v3 = vadd.f32 %v10341_v4, %v10340_v10  ;;  %v13816_v43 = vadd.f32 %v13754_v1, %v7858_v36 }
 0x32b   : > { %v10471_v35 = vpop.f32.mrf.mxu1 }
 0x32c   : > { %v7861_v39 = vadd.f32 %v10342_v3, %v14813_v44 }
 0x32d   : > { %v10472_v30 = vpop.f32.mrf.mxu1 }
 0x32e   : > { %v10473_v17 = vadd.f32 %v10472_v30, %v10471_v35  ;;  %v13820_v27 = vadd.f32 %v13759_v19, %v7861_v39 }
 0x32f   : > { %v10474_v49 = vpop.f32.mrf.mxu1 }
 0x330   : > { %v8060_v11 = vadd.f32 %v10473_v17, %v13608_v50 }
 0x331   : > { %v10475_v7 = vpop.f32.mrf.mxu1 }
 0x332   : > { %v10476_v58 = vadd.f32 %v10475_v7, %v10474_v49  ;;  %v8221_v33 = vadd.f32 %v8220_v25, %v8060_v11 }
 0x333   : > { %v10477_v31 = vpop.f32.mrf.mxu1 }
 0x334   : > { %v8063_v1 = vadd.f32 %v10476_v58, %v13618_v62  ;;  %v8347_v42 = vmax.f32 %v8221_v33, 0.0  ;;  %v8236_v62 = vpop.f32.mrf.mxu0 }
 0x335   : > { %v10478_v23 = vpop.f32.mrf.mxu1 }
 0x336   : > { %v8224_v34 = vadd.f32 %v8223_v8, %v8063_v1  ;;  %v10479_v37 = vadd.f32 %v10478_v23, %v10477_v31  ;;  %v10614_v30 = vpop.f32.mrf.mxu0 }
 0x337   : > { %v10480_v52 = vpop.f32.mrf.mxu1 }
 0x338   : > { %v8348_v15 = vmax.f32 %v8224_v34, 0.0  ;;  %v8068_v19 = vadd.f32 %v10479_v37, %v13632_v55  ;;  %v8239_v58 = vpop.f32.mrf.mxu0 }
 0x339   : > { %v10481_v29 = vpop.f32.mrf.mxu1 }
 0x33a   : > { %v8379_v60 = vpack.c.bf16 %v8348_v15, %v8347_v42  ;;  %v10482_v50 = vadd.f32 %v10481_v29, %v10480_v52  ;;  %v8229_v59 = vadd.f32 %v10609_v38, %v8068_v19  ;;  %v10617_v34 = vpop.f32.mrf.mxu0 }
 0x33b   : > { %v10483_v10 = vpop.f32.mrf.mxu1 }
 0x33c   : > { %v8071_v36 = vadd.f32 %v10482_v50, %v13642_v51  ;;  %8620 = vmatmul.mubr.bf16.vlgmr.msra.gmra.mxu1 %v8379_v60  ;;  %8813 = vmatmul.mubr.bf16.vlgmr.msra.gmra.mxu0 %v8379_v60  ;;  %v8349_v55 = vmax.f32 %v8229_v59, 0.0  ;;  %v8252_v29 = vpop.f32.mrf.mxu0 }
 0x33d   : > { %v10484_v4 = vpop.f32.mrf.mxu1  ;;  %8629 = vmatprep.mubr.bf16.mxu1 %v14791_v53  ;;  %8822 = vmatprep.mubr.bf16.mxu0 %v14791_v53 }
 0x33e   : > { %v8232_v3 = vadd.f32 %v10610_v9, %v8071_v36  ;;  %v10485_v35 = vadd.f32 %v10484_v4, %v10483_v10  ;;  %v10618_v4 = vpop.f32.mrf.mxu0 }
 0x33f   : > { %v10486_v44 = vpop.f32.mrf.mxu1 }
 0x340   : > { %v8350_v39 = vmax.f32 %v8232_v3, 0.0  ;;  %v8076_v25 = vadd.f32 %v10485_v35, %v13650_v5 }
 0x341   : > { %v10487_v17 = vpop.f32.mrf.mxu1 }
 0x342   : > { %v10488_v38 = vadd.f32 %v10487_v17, %v10486_v44  ;;  %v8380_v49 = vpack.c.bf16 %v8350_v39, %v8349_v55  ;;  %v8237_v11 = vadd.f32 %v8236_v62, %v8076_v25  ;;  %v8255_v39 = vpop.f32.mrf.mxu0 }
 0x343   : > { %v10489_v51 = vpop.f32.mrf.mxu1 }
 0x344   : > { %v8079_v7 = vadd.f32 %v10488_v38, %v13660_v45  ;;  %8630 = vmatmul.mubr.bf16.gmra.mxu1 %v8380_v49  ;;  %8823 = vmatmul.mubr.bf16.gmra.mxu0 %v8380_v49  ;;  %v8351_v5 = vmax.f32 %v8237_v11, 0.0  ;;  %v10621_v11 = vpop.f32.mrf.mxu0 }
 0x345   : > { %v10490_v31 = vpop.f32.mrf.mxu1  ;;  %8639 = vmatprep.mubr.bf16.mxu1 %v14791_v53  ;;  %8832 = vmatprep.mubr.bf16.mxu0 %v14791_v53 }
 0x346   : > { %v8240_v9 = vadd.f32 %v8239_v58, %v8079_v7  ;;  %v10491_v33 = vadd.f32 %v10490_v31, %v10489_v51 }
 0x347   : > { %v10492_v1 = vpop.f32.mrf.mxu1 }
 0x348   : > { %v8352_v8 = vmax.f32 %v8240_v9, 0.0  ;;  %v8084_v23 = vadd.f32 %v10491_v33, %v13668_v6 }
 0x349   : > { %v10493_v37 = vpop.f32.mrf.mxu1 }
 0x34a   : > { %v10494_v52 = vadd.f32 %v10493_v37, %v10492_v1  ;;  %v8381_v42 = vpack.c.bf16 %v8352_v8, %v8351_v5  ;;  %v8245_v15 = vadd.f32 %v10613_v20, %v8084_v23  ;;  %v8268_v1 = vpop.f32.mrf.mxu0 }
 0x34b   : > { %v10495_v45 = vpop.f32.mrf.mxu1 }
 0x34c   : > { %v8087_v19 = vadd.f32 %v10494_v52, %v13678_v16  ;;  %8640 = vmatmul.mubr.bf16.gmra.mxu1 %v8381_v42  ;;  %8833 = vmatmul.mubr.bf16.gmra.mxu0 %v8381_v42  ;;  %v8353_v6 = vmax.f32 %v8245_v15, 0.0 }
 0x34d   : > { %v10496_v60 = vpop.f32.mrf.mxu1  ;;  %8649 = vmatprep.mubr.bf16.mxu1 %v14791_v53  ;;  %8842 = vmatprep.mubr.bf16.mxu0 %v14791_v53 }
 0x34e   : > { %v8248_v50 = vadd.f32 %v10614_v30, %v8087_v19  ;;  %v10497_v10 = vadd.f32 %v10496_v60, %v10495_v45  ;;  %v10622_v45 = vpop.f32.mrf.mxu0 }
 0x34f   : > { %v10498_v59 = vpop.f32.mrf.mxu1 }
 0x350   : > { %v8354_v36 = vmax.f32 %v8248_v50, 0.0  ;;  %v8092_v62 = vadd.f32 %v10497_v10, %v13684_v18  ;;  %v8271_v50 = vpop.f32.mrf.mxu0 }
 0x351   : > { %v10499_v3 = vpop.f32.mrf.mxu1 }
 0x352   : > { %v10500_v20 = vadd.f32 %v10499_v3, %v10498_v59  ;;  %v8382_v35 = vpack.c.bf16 %v8354_v36, %v8353_v6  ;;  %v8253_v44 = vadd.f32 %v8252_v29, %v8092_v62  ;;  %v10625_v3 = vpop.f32.mrf.mxu0 }
 0x353   : > { %v10501_v16 = vpop.f32.mrf.mxu1 }
 0x354   : > { %v8095_v55 = vadd.f32 %v10500_v20, %v13695_v48  ;;  %8650 = vmatmul.mubr.bf16.gmra.mxu1 %v8382_v35  ;;  %8843 = vmatmul.mubr.bf16.gmra.mxu0 %v8382_v35  ;;  %v8355_v18 = vmax.f32 %v8253_v44, 0.0 }
 0x355   : > { %v10502_v25 = vpop.f32.mrf.mxu1  ;;  %8659 = vmatprep.mubr.bf16.mxu1 %v14791_v53  ;;  %8852 = vmatprep.mubr.bf16.mxu0 %v14791_v53 }
 0x356   : > { %v8256_v30 = vadd.f32 %v8255_v39, %v8095_v55  ;;  %v10503_v17 = vadd.f32 %v10502_v25, %v10501_v16  ;;  %v8284_v39 = vpop.f32.mrf.mxu0 }
 0x357   : > { %v10504_v38 = vpop.f32.mrf.mxu1 }
 0x358   : > { %v8356_v49 = vmax.f32 %v8256_v30, 0.0  ;;  %v8100_v51 = vadd.f32 %v10503_v17, %v13701_v54 }
 0x359   : > { %v10505_v7 = vpop.f32.mrf.mxu1 }
 0x35a   : > { %v8383_v58 = vpack.c.bf16 %v8356_v49, %v8355_v18  ;;  %v10506_v31 = vadd.f32 %v10505_v7, %v10504_v38  ;;  %v8261_v9 = vadd.f32 %v10617_v34, %v8100_v51  ;;  %v10626_v51 = vpop.f32.mrf.mxu0 }
 0x35b   : > { %v10507_v48 = vpop.f32.mrf.mxu1 }
 0x35c   : > { %v8103_v33 = vadd.f32 %v10506_v31, %v13712_v22  ;;  %8660 = vmatmul.mubr.bf16.gmra.mxu1 %v8383_v58  ;;  %8853 = vmatmul.mubr.bf16.gmra.mxu0 %v8383_v58  ;;  %v8357_v54 = vmax.f32 %v8261_v9, 0.0  ;;  %v8287_v9 = vpop.f32.mrf.mxu0 }
 0x35d   : > { %v10508_v5 = vpop.f32.mrf.mxu1  ;;  %8669 = vmatprep.mubr.bf16.mxu1 %v14791_v53  ;;  %8862 = vmatprep.mubr.bf16.mxu0 %v14791_v53 }
 0x35e   : > { %v8264_v8 = vadd.f32 %v10618_v4, %v8103_v33  ;;  %v10509_v23 = vadd.f32 %v10508_v5, %v10507_v48 }
 0x35f   : > { %v10510_v37 = vpop.f32.mrf.mxu1 }
 0x360   : > { %v8358_v52 = vmax.f32 %v8264_v8, 0.0  ;;  %v8108_v42 = vadd.f32 %v10509_v23, %v13718_v46 }
 0x361   : > { %v10511_v15 = vpop.f32.mrf.mxu1 }
 0x362   : > { %v8384_v34 = vpack.c.bf16 %v8358_v52, %v8357_v54  ;;  %v10512_v19 = vadd.f32 %v10511_v15, %v10510_v37  ;;  %v8269_v29 = vadd.f32 %v8268_v1, %v8108_v42  ;;  %v10629_v54 = vpop.f32.mrf.mxu0 }
 0x363   : > { %v10513_v22 = vpop.f32.mrf.mxu1 }
 0x364   : > { %v8111_v60 = vadd.f32 %v10512_v19, %v13729_v21  ;;  %8670 = vmatmul.mubr.bf16.gmra.mxu1 %v8384_v34  ;;  %8863 = vmatmul.mubr.bf16.gmra.mxu0 %v8384_v34  ;;  %v8359_v46 = vmax.f32 %v8269_v29, 0.0  ;;  %v8300_v19 = vpop.f32.mrf.mxu0 }
 0x365   : > { %v10514_v10 = vpop.f32.mrf.mxu1  ;;  %8679 = vmatprep.mubr.bf16.mxu1 %v14791_v53  ;;  %8872 = vmatprep.mubr.bf16.mxu0 %v14791_v53 }
 0x366   : > { %v8272_v59 = vadd.f32 %v8271_v50, %v8111_v60  ;;  %v10515_v6 = vadd.f32 %v10514_v10, %v10513_v22 }
 0x367   : > { %v10516_v36 = vpop.f32.mrf.mxu1 }
 0x368   : > { %v8360_v62 = vmax.f32 %v8272_v59, 0.0  ;;  %v8116_v4 = vadd.f32 %v10515_v6, %v13735_v40  ;;  %v10630_v6 = vpop.f32.mrf.mxu0 }
 0x369   : > { %v10517_v20 = vpop.f32.mrf.mxu1 }
 0x36a   : > { %v8385_v35 = vpack.c.bf16 %v8360_v62, %v8359_v46  ;;  %v10518_v16 = vadd.f32 %v10517_v20, %v10516_v36  ;;  %v8277_v44 = vadd.f32 %v10621_v11, %v8116_v4  ;;  %v8303_v20 = vpop.f32.mrf.mxu0 }
 0x36b   : > { %v10519_v21 = vpop.f32.mrf.mxu1 }
 0x36c   : > { %v8119_v55 = vadd.f32 %v10518_v16, %v13742_v28  ;;  %8680 = vmatmul.mubr.bf16.gmra.mxu1 %v8385_v35  ;;  %8873 = vmatmul.mubr.bf16.gmra.mxu0 %v8385_v35  ;;  %v8361_v40 = vmax.f32 %v8277_v44, 0.0 }
 0x36d   : > { %v10520_v25 = vpop.f32.mrf.mxu1  ;;  %8689 = vmatprep.mubr.bf16.mxu1 %v14791_v53  ;;  %8882 = vmatprep.mubr.bf16.mxu0 %v14791_v53 }
 0x36e   : > { %v8280_v30 = vadd.f32 %v10622_v45, %v8119_v55  ;;  %v10521_v17 = vadd.f32 %v10520_v25, %v10519_v21  ;;  %v10633_v25 = vpop.f32.mrf.mxu0 }
 0x36f   : > { %v10522_v38 = vpop.f32.mrf.mxu1 }
 0x370   : > { %v8362_v18 = vmax.f32 %v8280_v30, 0.0  ;;  %v8124_v49 = vadd.f32 %v10521_v17, %v13750_v13 }
 0x371   : > { %v10523_v7 = vpop.f32.mrf.mxu1 }
 0x372   : > { %v8386_v11 = vpack.c.bf16 %v8362_v18, %v8361_v40  ;;  %v10524_v58 = vadd.f32 %v10523_v7, %v10522_v38  ;;  %v8285_v31 = vadd.f32 %v8284_v39, %v8124_v49  ;;  %v8316_v49 = vpop.f32.mrf.mxu0 }
 0x373   : > { %v10525_v28 = vpop.f32.mrf.mxu1 }
 0x374   : > { %v8127_v48 = vadd.f32 %v10524_v58, %v13756_v41  ;;  %8690 = vmatmul.mubr.bf16.gmra.mxu1 %v8386_v11  ;;  %8883 = vmatmul.mubr.bf16.gmra.mxu0 %v8386_v11  ;;  %v8363_v13 = vmax.f32 %v8285_v31, 0.0 }
 0x375   : > { %v10526_v33 = vpop.f32.mrf.mxu1  ;;  %8699 = vmatprep.mubr.bf16.mxu1 %v14791_v53  ;;  %8892 = vmatprep.mubr.bf16.mxu0 %v14791_v53 }
 0x376   : > { %v8288_v1 = vadd.f32 %v8287_v9, %v8127_v48  ;;  %v10527_v5 = vadd.f32 %v10526_v33, %v10525_v28  ;;  %v10634_v48 = vpop.f32.mrf.mxu0 }
 0x377   : > { %v10528_v8 = vpop.f32.mrf.mxu1 }
 0x378   : > { %v8364_v23 = vmax.f32 %v8288_v1, 0.0  ;;  %v8132_v37 = vadd.f32 %v10527_v5, %v13764_v2 }
 0x379   : > { %v10529_v52 = vpop.f32.mrf.mxu1 }
 0x37a   : > { %v8387_v42 = vpack.c.bf16 %v8364_v23, %v8363_v13  ;;  %v10530_v45 = vadd.f32 %v10529_v52, %v10528_v8  ;;  %v8293_v15 = vadd.f32 %v10625_v3, %v8132_v37  ;;  %v8319_v13 = vpop.f32.mrf.mxu0 }
 0x37b   : > { %v10531_v41 = vpop.f32.mrf.mxu1 }
 0x37c   : > { %v8135_v34 = vadd.f32 %v10530_v45, %v13768_v47  ;;  %8700 = vmatmul.mubr.bf16.gmra.mxu1 %v8387_v42  ;;  %8893 = vmatmul.mubr.bf16.gmra.mxu0 %v8387_v42  ;;  %v8365_v2 = vmax.f32 %v8293_v15, 0.0 }
 0x37d   : > { %v10532_v22 = vpop.f32.mrf.mxu1  ;;  %8709 = vmatprep.mubr.bf16.mxu1 %v14791_v53  ;;  %8902 = vmatprep.mubr.bf16.mxu0 %v14791_v53 }
 0x37e   : > { %v8296_v29 = vadd.f32 %v10626_v51, %v8135_v34  ;;  %v10533_v60 = vadd.f32 %v10532_v22, %v10531_v41  ;;  %v10637_v41 = vpop.f32.mrf.mxu0 }
 0x37f   : > { %v10534_v50 = vpop.f32.mrf.mxu1 }
 0x380   : > { %v8366_v10 = vmax.f32 %v8296_v29, 0.0  ;;  %v8140_v59 = vadd.f32 %v10533_v60, %v13774_v12  ;;  %v8332_v60 = vpop.f32.mrf.mxu0 }
 0x381   : > { %v10535_v36 = vpop.f32.mrf.mxu1 }
 0x382   : > { %v8388_v46 = vpack.c.bf16 %v8366_v10, %v8365_v2  ;;  %v10536_v62 = vadd.f32 %v10535_v36, %v10534_v50  ;;  %v8301_v4 = vadd.f32 %v8300_v19, %v8140_v59 }
 0x383   : > { %v10537_v47 = vpop.f32.mrf.mxu1 }
 0x384   : > { %v8143_v3 = vadd.f32 %v10536_v62, %v13778_v63  ;;  %8710 = vmatmul.mubr.bf16.gmra.mxu1 %v8388_v46  ;;  %8903 = vmatmul.mubr.bf16.gmra.mxu0 %v8388_v46  ;;  %v8367_v12 = vmax.f32 %v8301_v4, 0.0  ;;  %v10638_v46 = vpop.f32.mrf.mxu0 }
 0x385   : > { %v10538_v35 = vpop.f32.mrf.mxu1  ;;  %8719 = vmatprep.mubr.bf16.mxu1 %v14791_v53  ;;  %8912 = vmatprep.mubr.bf16.mxu0 %v14791_v53 }
 0x386   : > { %v8304_v16 = vadd.f32 %v8303_v20, %v8143_v3  ;;  %v10539_v21 = vadd.f32 %v10538_v35, %v10537_v47  ;;  %v8335_v35 = vpop.f32.mrf.mxu0 }
 0x387   : > { %v10540_v44 = vpop.f32.mrf.mxu1 }
 0x388   : > { %v8368_v55 = vmax.f32 %v8304_v16, 0.0  ;;  %v8148_v39 = vadd.f32 %v10539_v21, %v13784_v26 }
 0x389   : > { %v10541_v30 = vpop.f32.mrf.mxu1 }
 0x38a   : > { %v8389_v17 = vpack.c.bf16 %v8368_v55, %v8367_v12  ;;  %v10542_v38 = vadd.f32 %v10541_v30, %v10540_v44  ;;  %v8309_v40 = vadd.f32 %v10629_v54, %v8148_v39 }
 0x38b   : > { %v10543_v63 = vpop.f32.mrf.mxu1 }
 0x38c   : > { %v8151_v18 = vadd.f32 %v10542_v38, %v13788_v0  ;;  %8720 = vmatmul.mubr.bf16.gmra.mxu1 %v8389_v17  ;;  %8913 = vmatmul.mubr.bf16.gmra.mxu0 %v8389_v17  ;;  %v8369_v26 = vmax.f32 %v8309_v40, 0.0 }
 0x38d   : > { %v10544_v51 = vpop.f32.mrf.mxu1  ;;  %8729 = vmatprep.mubr.bf16.mxu1 %v14791_v53  ;;  %8922 = vmatprep.mubr.bf16.mxu0 %v14791_v53 }
 0x38e   : > { %v8312_v7 = vadd.f32 %v10630_v6, %v8151_v18  ;;  %v10545_v11 = vadd.f32 %v10544_v51, %v10543_v63 }
 0x38f   : > { %v10546_v58 = vpop.f32.mrf.mxu1 }
 0x390   : > { %v8370_v28 = vmax.f32 %v8312_v7, 0.0  ;;  %v8156_v31 = vadd.f32 %v10545_v11, %v13792_v14  ;;  %v11041_v11 = vld [vmem:[%s11443_s5 + $0x70] sm:$0xff] }
 0x391   : > { %v10547_v9 = vpop.f32.mrf.mxu1 }
 0x392   : > { %v8390_v33 = vpack.c.bf16 %v8370_v28, %v8369_v26  ;;  %v10548_v1 = vadd.f32 %v10547_v9, %v10546_v58  ;;  %v8317_v5 = vadd.f32 %v8316_v49, %v8156_v31  ;;  %v11039_v49 = vld [vmem:[%s11443_s5 + $0x60] sm:$0xff]  ;;  %v8979_v58 = vrot.slane %v11041_v11, 1  ;;  %v11042_v26 = vld [vmem:[%s11443_s5 + $0x90] sm:$0xff] }
 0x393   : > { %v10549_v0 = vpop.f32.mrf.mxu1  ;;  %v8973_v51 = vrot.slane %v11039_v49, 1  ;;  %v8980_v28 = vrot.slane %v11042_v26, 1 }
 0x394   : > { %v8159_v8 = vadd.f32 %v10548_v1, %v13796_v56  ;;  %8730 = vmatmul.mubr.bf16.gmra.mxu1 %v8390_v33  ;;  %8923 = vmatmul.mubr.bf16.gmra.mxu0 %v8390_v33  ;;  %v8371_v14 = vmax.f32 %v8317_v5, 0.0  ;;  %v11045_v33 = vld [vmem:[%s11443_s5 + $0x78] sm:$0xff] }
 0x395   : > { %v10550_v23 = vpop.f32.mrf.mxu1  ;;  %8739 = vmatprep.mubr.bf16.mxu1 %v14791_v53  ;;  %8932 = vmatprep.mubr.bf16.mxu0 %v14791_v53  ;;  %v8982_v1 = vrot.slane %v11045_v33, 1  ;;  %v11068_v33 = vld [vmem:[%s11443_s5 + $0x148] sm:$0xff] }
 0x396   : > { %v8320_v37 = vadd.f32 %v8319_v13, %v8159_v8  ;;  %v10551_v54 = vadd.f32 %v10550_v23, %v10549_v0  ;;  %v11046_v0 = vld [vmem:[%s11443_s5 + $0x98] sm:$0xff]  ;;  %v13896_v13 = vsel %vm6051_vm0, %v8979_v58, %v8980_v28 }
 0x397   : > { %v10552_v52 = vpop.f32.mrf.mxu1  ;;  %v8983_v5 = vrot.slane %v11046_v0, 1  ;;  %v11069_v0 = vld [vmem:[%s11443_s5 + $0x138] sm:$0xff] }
 0x398   : > { %v8372_v42 = vmax.f32 %v8320_v37, 0.0  ;;  %v8164_v45 = vadd.f32 %v10551_v54, %v13800_v57  ;;  %v11047_v54 = vld [vmem:[%s11443_s5 + $0xa0] sm:$0x3] }
 0x399   : > { %v10553_v15 = vpop.f32.mrf.mxu1  ;;  %v13902_v37 = vsel %vm6051_vm0, %v8982_v1, %v8983_v5  ;;  %v9017_v1 = vrot.slane %v11068_v33, 1 }
 0x39a   : > { %v8391_v34 = vpack.c.bf16 %v8372_v42, %v8371_v14  ;;  %v10554_v19 = vadd.f32 %v10553_v15, %v10552_v52  ;;  %v8325_v22 = vadd.f32 %v10633_v25, %v8164_v45  ;;  %v8985_v52 = vrot.slane %v11047_v54, 1  ;;  %v11048_v14 = vld [vmem:[%s11443_s5 + $0xb0] sm:$0x3]  ;;  %v11049_v45 = vld [vmem:[%s11443_s5 + $0xa8] sm:$0x3]  ;;  %v11070_v54 = vld [vmem:[%s11443_s5 + $0x158] sm:$0xff] }
 0x39b   : > { %v10555_v56 = vpop.f32.mrf.mxu1  ;;  %v8989_v42 = vrot.slane %v11048_v14, 1  ;;  %v11050_v15 = vld [vmem:[%s11443_s5 + $0xb8] sm:$0x3]  ;;  %v11071_v14 = vld [vmem:[%s11443_s5 + $0x160] sm:$0x3] }
 0x39c   : > { %v8167_v29 = vadd.f32 %v10554_v19, %v13804_v61  ;;  %8740 = vmatmul.mubr.bf16.gmra.mxu1 %v8391_v34  ;;  %8933 = vmatmul.mubr.bf16.gmra.mxu0 %v8391_v34  ;;  %v8373_v57 = vmax.f32 %v8325_v22, 0.0  ;;  %v8991_v34 = vrot.slane %v11050_v15, 1  ;;  %v11051_v19 = vld [vmem:[%s11443_s5 + $0xc0] sm:$0xff]  ;;  %v11073_v15 = vld [vmem:[%s11443_s5 + $0x168] sm:$0x3] }
 0x39d   : > { %v10556_v50 = vpop.f32.mrf.mxu1  ;;  %8749 = vmatprep.mubr.bf16.mxu1 %v14791_v53  ;;  %8942 = vmatprep.mubr.bf16.mxu0 %v14791_v53  ;;  %v11052_v22 = vld [vmem:[%s11443_s5 + $0xe0] sm:$0xff] }
 0x39e   : > { %v8328_v2 = vadd.f32 %v10634_v48, %v8167_v29  ;;  %v10557_v10 = vadd.f32 %v10556_v50, %v10555_v56  ;;  %v11044_v48 = vld [vmem:[%s11443_s5 + $0x88] sm:$0xff]  ;;  %v8993_v56 = vrot.slane %v11051_v19, 1  ;;  %v8994_v29 = vrot.slane %v11052_v22, 1  ;;  %v11074_v19 = vld [vmem:[%s11443_s5 + $0x178] sm:$0x3]  ;;  %v11075_v22 = vld [vmem:[%s11443_s5 + $0x180] sm:$0xff] }
 0x39f   : > { %v10558_v59 = vpop.f32.mrf.mxu1  ;;  %v8977_v9 = vrot.slane %v11044_v48, 1 }
 0x3a0   : > { %v8374_v6 = vmax.f32 %v8328_v2, 0.0  ;;  %v8172_v36 = vadd.f32 %v10557_v10, %v13808_v32  ;;  %v11054_v2 = vld [vmem:[%s11443_s5 + $0xf0] sm:$0xff]  ;;  %v13940_v49 = vsel %vm6051_vm0, %v8993_v56, %v8994_v29  ;;  %v9031_v56 = vrot.slane %v11074_v19, 1 }
 0x3a1   : > { %v10559_v62 = vpop.f32.mrf.mxu1  ;;  %v9000_v10 = vrot.slane %v11054_v2, 1  ;;  %v11077_v2 = vld [vmem:[%s11443_s5 + $0x190] sm:$0xff] }
 0x3a2   : > { %v8392_v47 = vpack.c.bf16 %v8374_v6, %v8373_v57  ;;  %v10560_v4 = vadd.f32 %v10559_v62, %v10558_v59  ;;  %v8333_v3 = vadd.f32 %v8332_v60, %v8172_v36  ;;  %v11053_v60 = vld [vmem:[%s11443_s5 + $0xd0] sm:$0xff]  ;;  %v11055_v59 = vld [vmem:[%s11443_s5 + $0xc8] sm:$0xff] }
 0x3a3   : > { %v10561_v61 = vpop.f32.mrf.mxu1  ;;  %v8999_v50 = vrot.slane %v11053_v60, 1  ;;  %v8996_v57 = vrot.slane %v11055_v59, 1  ;;  %v11056_v6 = vld [vmem:[%s11443_s5 + $0xe8] sm:$0xff]  ;;  %v11076_v60 = vld [vmem:[%s11443_s5 + $0x1a0] sm:$0xff]  ;;  %v11078_v59 = vld [vmem:[%s11443_s5 + $0x1b0] sm:$0xff] }
 0x3a4   : > { %v8175_v20 = vadd.f32 %v10560_v4, %v13812_v24  ;;  %8750 = vmatmul.mubr.bf16.gmra.mxu1 %v8392_v47  ;;  %8943 = vmatmul.mubr.bf16.gmra.mxu0 %v8392_v47  ;;  %v8375_v32 = vmax.f32 %v8333_v3, 0.0  ;;  %v8997_v36 = vrot.slane %v11056_v6, 1  ;;  %v11058_v47 = vld [vmem:[%s11443_s5 + $0xf8] sm:$0xff]  ;;  %v11079_v6 = vld [vmem:[%s11443_s5 + $0x188] sm:$0xff] }
 0x3a5   : > { %v10562_v16 = vpop.f32.mrf.mxu1  ;;  %8759 = vmatprep.mubr.bf16.mxu1 %v14791_v53  ;;  %8952 = vmatprep.mubr.bf16.mxu0 %v14791_v53  ;;  %v9003_v4 = vrot.slane %v11058_v47, 1  ;;  %v11081_v47 = vld [vmem:[%s11443_s5 + $0x198] sm:$0xff] }
 0x3a6   : > { %v8336_v21 = vadd.f32 %v8335_v35, %v8175_v20  ;;  %v10563_v44 = vadd.f32 %v10562_v16, %v10561_v61  ;;  %v11059_v61 = vld [vmem:[%s11443_s5 + $0x100] sm:$0x3]  ;;  %v11060_v20 = vld [vmem:[%s11443_s5 + $0x110] sm:$0x3]  ;;  %v11061_v16 = vld [vmem:[%s11443_s5 + $0x108] sm:$0x3] }
 0x3a7   : > { %v10564_v12 = vpop.f32.mrf.mxu1  ;;  %v9005_v3 = vrot.slane %v11059_v61, 1  ;;  %v9009_v35 = vrot.slane %v11060_v20, 1  ;;  %v11082_v61 = vld [vmem:[%s11443_s5 + $0x1b8] sm:$0xff] }
 0x3a8   : > { %v8376_v55 = vmax.f32 %v8336_v21, 0.0  ;;  %v8180_v39 = vadd.f32 %v10563_v44, %v13816_v43  ;;  %v9007_v21 = vrot.slane %v11061_v16, 1  ;;  %v11062_v44 = vld [vmem:[%s11443_s5 + $0x118] sm:$0x3] }
 0x3a9   : > { %v10565_v25 = vpop.f32.mrf.mxu1  ;;  %v13952_v11 = vsel %vm6051_vm0, %v8994_v29, %v9005_v3  ;;  %v13955_v58 = vsel %vm6051_vm0, %v9000_v10, %v9009_v35  ;;  %v9033_v29 = vrot.slane %v11075_v22, 1  ;;  %v9043_v3 = vrot.slane %v11082_v61, 1  ;;  %v11083_v35 = vld [vmem:[%s11443_s5 + $0x1c0] sm:$0x3]  ;;  %v11091_v61 = vld [vmem:[%s11443_s5 + $0x1e8] sm:$0xff] }
 0x3aa   : > { %v8393_v30 = vpack.c.bf16 %v8376_v55, %v8375_v32  ;;  %v10566_v24 = vadd.f32 %v10565_v25, %v10564_v12  ;;  %v8341_v17 = vadd.f32 %v10637_v41, %v8180_v39  ;;  %v8987_v41 = vrot.slane %v11049_v45, 1  ;;  %v11063_v32 = vld [vmem:[%s11443_s5 + $0x120] sm:$0xff]  ;;  %v11072_v45 = vld [vmem:[%s11443_s5 + $0x170] sm:$0x3] }
 0x3ab   : > { %v9011_v12 = vrot.slane %v11062_v44, 1  ;;  %v9013_v55 = vrot.slane %v11063_v32, 1  ;;  %v13922_v39 = vld [vmem:[%s11443_s5 + $0x140] sm:$0xff]  ;;  %v13958_v26 = vsel %vm6051_vm0, %v8997_v36, %v9007_v21  ;;  %v9045_v16 = vrot.slane %v11083_v35, 1  ;;  %v11084_v21 = vld [vmem:[%s11443_s5 + $0x1d0] sm:$0x3] }
 0x3ac   : > { %v8183_v38 = vadd.f32 %v10566_v24, %v13820_v27  ;;  %8760 = vmatmul.mubr.bf16.gmra.mxu1 %v8393_v30  ;;  %8953 = vmatmul.mubr.bf16.gmra.mxu0 %v8393_v30  ;;  %v8377_v43 = vmax.f32 %v8341_v17, 0.0  ;;  %v11040_v27 = vld [vmem:[%s11443_s5 + $0x80] sm:$0xff]  ;;  %v9014_v25 = vrot.slane %v13922_v39, 1  ;;  %v13929_v24 = vsel %vm6051_vm0, %v8980_v28, %v8989_v42  ;;  %v11065_v17 = vld [vmem:[%s11443_s5 + $0x130] sm:$0xff]  ;;  %v11092_v35 = vld [vmem:[%s11443_s5 + $0x208] sm:$0xff] }
 0x3ad   : > { %8769 = vmatprep.mubr.bf16.mxu1 %v14791_v53  ;;  %8962 = vmatprep.mubr.bf16.mxu0 %v14791_v53  ;;  %v8974_v7 = vrot.slane %v11040_v27, 1  ;;  %v11043_v53 = vld [vmem:[%s11443_s5 + $0x68] sm:$0xff]  ;;  %v13946_v27 = vsel %vm6051_vm0, %v8996_v57, %v8997_v36  ;;  %v13961_v28 = vsel %vm6051_vm0, %v9003_v4, %v9011_v12  ;;  %v9025_v42 = vrot.slane %v11071_v14, 1 }
 0x3ae   : > { %v8344_v63 = vadd.f32 %v10638_v46, %v8183_v38  ;;  %v8976_v31 = vrot.slane %v11043_v53, 1  ;;  %v11057_v46 = vld [vmem:[%s11443_s5 + $0xd8] sm:$0xff]  ;;  %v9019_v38 = vrot.slane %v11065_v17, 1  ;;  %v13964_v53 = vsel %vm6051_vm0, %v9013_v55, %v9014_v25  ;;  %v11085_v12 = vld [vmem:[%s11443_s5 + $0x1c8] sm:$0x3] }
 0x3af   : > { %v13893_v8 = vsel %vm6051_vm0, %v8973_v51, %v8974_v7  ;;  %v9002_v62 = vrot.slane %v11057_v46, 1  ;;  %v13926_v30 = vsel %vm6051_vm0, %v8974_v7, %v8985_v52  ;;  %v13943_v51 = vsel %vm6051_vm0, %v8999_v50, %v9000_v10  ;;  %v11080_v46 = vld [vmem:[%s11443_s5 + $0x1a8] sm:$0xff] }
 0x3b0   : > { %v8378_v40 = vmax.f32 %v8344_v63, 0.0  ;;  %v13899_v23 = vsel %vm6051_vm0, %v8976_v31, %v8977_v9  ;;  %v11066_v63 = vld [vmem:[%s11443_s5 + $0x150] sm:$0xff]  ;;  %v11067_v31 = vld [vmem:[%s11443_s5 + $0x128] sm:$0xff]  ;;  %v9023_v52 = vrot.slane %v11070_v54, 1  ;;  %v9034_v50 = vrot.slane %v11076_v60, 1 }
 0x3b1   : > { %v13949_v7 = vsel %vm6051_vm0, %v9002_v62, %v9003_v4  ;;  %v9016_v48 = vrot.slane %v11067_v31, 1  ;;  %v9039_v10 = vrot.slane %v11077_v2, 1  ;;  %v9040_v57 = vrot.slane %v11078_v59, 1  ;;  %v11088_v2 = vld [vmem:[%s11443_s5 + $0x200] sm:$0xff]  ;;  %v11089_v59 = vld [vmem:[%s11443_s5 + $0x1f0] sm:$0xff] }
 0x3b2   : > { %v8394_v18 = vpack.c.bf16 %v8378_v40, %v8377_v43  ;;  %v9020_v43 = vrot.slane %v11066_v63, 1  ;;  %v13934_v40 = vsel %vm6051_vm0, %v8977_v9, %v8987_v41  ;;  %v9029_v41 = vrot.slane %v11072_v45, 1 }
 0x3b3   : > { %v9036_v36 = vrot.slane %v11079_v6, 1  ;;  %v9037_v62 = vrot.slane %v11080_v46, 1  ;;  %v9042_v4 = vrot.slane %v11081_v47, 1  ;;  %v13987_v20 = vsel %vm6051_vm0, %v9016_v48, %v9017_v1  ;;  %v11090_v6 = vld [vmem:[%s11443_s5 + $0x210] sm:$0xff] }
 0x3b4   : > { %8770 = vmatmul.mubr.bf16.gmra.mxu1 %v8394_v18  ;;  %8963 = vmatmul.mubr.bf16.gmra.mxu0 %v8394_v18  ;;  %v13937_v18 = vsel %vm6051_vm0, %v8983_v5, %v8991_v34  ;;  %v13968_v9 = vsel %vm6051_vm0, %v9019_v38, %v9020_v43  ;;  %v9022_v5 = vrot.slane %v11069_v0, 1  ;;  %v9027_v34 = vrot.slane %v11073_v15, 1 }
 0x3b5   : > { %v9049_v44 = vrot.slane %v11084_v21, 1  ;;  %v9047_v32 = vrot.slane %v11085_v12, 1  ;;  %v14000_v39 = vsel %vm6051_vm0, %v9014_v25, %v9025_v42  ;;  %v14003_v17 = vsel %vm6051_vm0, %v9020_v43, %v9029_v41  ;;  %v11086_v25 = vld [vmem:[%s11443_s5 + $0x1d8] sm:$0x3] }
 0x3b6   : > { %v13997_v55 = vsel %vm6051_vm0, %v9022_v5, %v9023_v52  ;;  %v14006_v38 = vsel %vm6051_vm0, %v9017_v1, %v9027_v34  ;;  %v14009_v48 = vsel %vm6051_vm0, %v9023_v52, %v9031_v56  ;;  %v14012_v33 = vsel %vm6051_vm0, %v9033_v29, %v9034_v50  ;;  %v11093_v21 = vld [vmem:[%s11443_s5 + $0x1f8] sm:$0xff] }
 0x3b7   : > { %v14015_v0 = vsel %vm6051_vm0, %v9039_v10, %v9040_v57  ;;  %v9051_v5 = vrot.slane %v11086_v25, 1  ;;  %v14021_v1 = vsel %vm6051_vm0, %v9036_v36, %v9037_v62  ;;  %v14024_v14 = vsel %vm6051_vm0, %v9042_v4, %v9043_v3  ;;  %v11094_v12 = vld [vmem:[%s11443_s5 + $0x218] sm:$0xff] }
 0x3b8   : > { %v14027_v45 = vsel %vm6051_vm0, %v9034_v50, %v9045_v16  ;;  %v14030_v41 = vsel %vm6051_vm0, %v9040_v57, %v9049_v44  ;;  %v9054_v10 = vrot.slane %v11088_v2, 1  ;;  %v9059_v57 = vrot.slane %v11089_v59, 1 }
 0x3b9   : > { %v14039_v50 = vsel %vm6051_vm0, %v9043_v3, %v9051_v5  ;;  %v9060_v36 = vrot.slane %v11090_v6, 1  ;;  %v9056_v3 = vrot.slane %v11091_v61, 1  ;;  %v9057_v16 = vrot.slane %v11092_v35, 1  ;;  %v11098_v6 = vld [vmem:[%s11443_s5 + $0x238] sm:$0x3] }
 0x3ba   : > { %v9062_v44 = vrot.slane %v11093_v21, 1 }
 0x3bb   : > { %v14073_v2 = vsel %vm6051_vm0, %v9056_v3, %v9057_v16  ;;  %v11099_v3 = vld [vmem:[%s11443_s5 + $0x240] sm:$0xff] }
 0x3bc   : > { %v9073_v35 = vrot.slane %v11099_v3, 1 }
 0x3fc   : > { %v8621_v63 = vpop.f32.mrf.mxu1  ;;  %v8814_v31 = vpop.f32.mrf.mxu0 }
 0x3fd   : > { %v9421_v43 = vadd.f32 %v13893_v8, %v8621_v63  ;;  %v9423_v54 = vadd.f32 %v13896_v13, %v8814_v31  ;;  %v14033_v8 = vsel %vm6051_vm0, %v9037_v62, %v9047_v32  ;;  %v11087_v13 = vld [vmem:[%s11443_s5 + $0x1e0] sm:$0xff]  ;;  %v9063_v32 = vrot.slane %v11094_v12, 1 }
 0x3fe   : > { %v8623_v52 = vpop.f32.mrf.mxu1  ;;  %v8816_v42 = vpop.f32.mrf.mxu0  ;;  %v9053_v15 = vrot.slane %v11087_v13, 1 }
 0x3ff   : > { %v9549_v34 = vmax.f32 %v9421_v43, 0.0  ;;  %v9551_v19 = vmax.f32 %v9423_v54, 0.0  ;;  %v9422_v56 = vadd.f32 %v13899_v23, %v8623_v52  ;;  %v9424_v22 = vadd.f32 %v13902_v37, %v8816_v42  ;;  %v11095_v54 = vld [vmem:[%s11443_s5 + $0x220] sm:$0x3]  ;;  %v11096_v42 = vld [vmem:[%s11443_s5 + $0x230] sm:$0x3] }
 0x400   : > { %v8625_v29 = vpop.f32.mrf.mxu1  ;;  %v8818_v60 = vpop.f32.mrf.mxu0  ;;  %v14060_v43 = vsel %vm6051_vm0, %v9053_v15, %v9054_v10  ;;  %v9065_v52 = vrot.slane %v11095_v54, 1  ;;  %v9069_v13 = vrot.slane %v11096_v42, 1  ;;  %v14076_v59 = vsel %vm6051_vm0, %v9062_v44, %v9063_v32  ;;  %v11103_v42 = vld [vmem:[%s11443_s5 + $0x248] sm:$0xff] }
 0x401   : > { %9677 = vst [vmem:[%s14045_s6] sm:$0xff] %v9549_v34  ;;  %9679 = vst [vmem:[%s14045_s6 + $0x10] sm:$0xff] %v9551_v19  ;;  %v9550_v23 = vmax.f32 %v9422_v56, 0.0  ;;  %v9552_v37 = vmax.f32 %v9424_v22, 0.0  ;;  %v9425_v46 = vadd.f32 %v13926_v30, %v8625_v29  ;;  %v9427_v62 = vadd.f32 %v13929_v24, %v8818_v60  ;;  %v11097_v34 = vld [vmem:[%s11443_s5 + $0x228] sm:$0x3] }
 0x402   : > { %v8627_v47 = vpop.f32.mrf.mxu1  ;;  %v8820_v4 = vpop.f32.mrf.mxu0  ;;  %v9067_v19 = vrot.slane %v11097_v34, 1  ;;  %v14070_v60 = vsel %vm6051_vm0, %v9059_v57, %v9060_v36  ;;  %v11104_v34 = vld [vmem:[%s11443_s5 + $0x268] sm:$0xff] }
 0x403   : > { %9678 = vst [vmem:[%s14045_s6 + $0x8] sm:$0xff] %v9550_v23  ;;  %9680 = vst [vmem:[%s14045_s6 + $0x18] sm:$0xff] %v9552_v37  ;;  %v9553_v30 = vmax.f32 %v9425_v46, 0.0  ;;  %v9555_v63 = vmax.f32 %v9427_v62, 0.0  ;;  %v9426_v24 = vadd.f32 %v13934_v40, %v8627_v47  ;;  %v9428_v31 = vadd.f32 %v13937_v18, %v8820_v4 }
 0x404   : > { %v8631_v25 = vpop.f32.mrf.mxu1  ;;  %v8824_v5 = vpop.f32.mrf.mxu0  ;;  %v9071_v23 = vrot.slane %v11098_v6, 1  ;;  %v14084_v47 = vsel %vm6051_vm0, %v9054_v10, %v9065_v52  ;;  %v14087_v4 = vsel %vm6051_vm0, %v9060_v36, %v9069_v13  ;;  %v14090_v61 = vsel %vm6051_vm0, %v9057_v16, %v9067_v19  ;;  %v11100_v16 = vld [vmem:[%s11443_s5 + $0x260] sm:$0xff] }
 0x405   : > { %9681 = vst [vmem:[%s14045_s6 + $0x20] sm:$0xff] %v9553_v30  ;;  %9683 = vst [vmem:[%s14045_s6 + $0x30] sm:$0xff] %v9555_v63  ;;  %v9554_v56 = vmax.f32 %v9426_v24, 0.0  ;;  %v9556_v40 = vmax.f32 %v9428_v31, 0.0  ;;  %v9429_v18 = vadd.f32 %v13940_v49, %v8631_v25  ;;  %v9431_v22 = vadd.f32 %v13943_v51, %v8824_v5  ;;  %v11101_v63 = vld [vmem:[%s11443_s5 + $0x250] sm:$0xff] }
 0x406   : > { %v8633_v29 = vpop.f32.mrf.mxu1  ;;  %v8826_v15 = vpop.f32.mrf.mxu0  ;;  %v14098_v36 = vsel %vm6051_vm0, %v9063_v32, %v9071_v23  ;;  %v9074_v30 = vrot.slane %v11100_v16, 1  ;;  %v9079_v24 = vrot.slane %v11101_v63, 1  ;;  %v11102_v31 = vld [vmem:[%s11443_s5 + $0x270] sm:$0xff]  ;;  %v9076_v13 = vrot.slane %v11103_v42, 1  ;;  %v11110_v16 = vld [vmem:[%s11443_s5 + $0x298] sm:$0x3] }
 0x407   : > { %9682 = vst [vmem:[%s14045_s6 + $0x28] sm:$0xff] %v9554_v56  ;;  %9684 = vst [vmem:[%s14045_s6 + $0x38] sm:$0xff] %v9556_v40  ;;  %v9557_v49 = vmax.f32 %v9429_v18, 0.0  ;;  %v9559_v51 = vmax.f32 %v9431_v22, 0.0  ;;  %v9430_v37 = vadd.f32 %v13946_v27, %v8633_v29  ;;  %v9432_v57 = vadd.f32 %v13949_v7, %v8826_v15  ;;  %v11105_v56 = vld [vmem:[%s11443_s5 + $0x258] sm:$0xff] }
 0x408   : > { %v8635_v46 = vpop.f32.mrf.mxu1  ;;  %v8828_v62 = vpop.f32.mrf.mxu0  ;;  %v9080_v25 = vrot.slane %v11102_v31, 1  ;;  %v9077_v19 = vrot.slane %v11104_v34, 1  ;;  %v9082_v40 = vrot.slane %v11105_v56, 1  ;;  %v11106_v18 = vld [vmem:[%s11443_s5 + $0x278] sm:$0xff]  ;;  %v9091_v63 = vrot.slane %v11110_v16, 1 }
 0x409   : > { %9685 = vst [vmem:[%s14045_s6 + $0x40] sm:$0xff] %v9557_v49  ;;  %9687 = vst [vmem:[%s14045_s6 + $0x50] sm:$0xff] %v9559_v51  ;;  %v9558_v27 = vmax.f32 %v9430_v37, 0.0  ;;  %v9560_v7 = vmax.f32 %v9432_v57, 0.0  ;;  %v9433_v21 = vadd.f32 %v13952_v11, %v8635_v46  ;;  %v9435_v10 = vadd.f32 %v13955_v58, %v8828_v62  ;;  %v11107_v51 = vld [vmem:[%s11443_s5 + $0x280] sm:$0x3] }
 0x40a   : > { %v8637_v44 = vpop.f32.mrf.mxu1  ;;  %v8830_v12 = vpop.f32.mrf.mxu0  ;;  %v9083_v22 = vrot.slane %v11106_v18, 1  ;;  %v14116_v49 = vsel %vm6051_vm0, %v9073_v35, %v9074_v30  ;;  %v9085_v37 = vrot.slane %v11107_v51, 1  ;;  %v11108_v57 = vld [vmem:[%s11443_s5 + $0x290] sm:$0x3]  ;;  %v11109_v62 = vld [vmem:[%s11443_s5 + $0x288] sm:$0x3] }
 0x40b   : > { %9686 = vst [vmem:[%s14045_s6 + $0x48] sm:$0xff] %v9558_v27  ;;  %9688 = vst [vmem:[%s14045_s6 + $0x58] sm:$0xff] %v9560_v7  ;;  %v9561_v11 = vmax.f32 %v9433_v21, 0.0  ;;  %v9563_v58 = vmax.f32 %v9435_v10, 0.0  ;;  %v9434_v5 = vadd.f32 %v13958_v26, %v8637_v44  ;;  %v9436_v32 = vadd.f32 %v13961_v28, %v8830_v12  ;;  %v11113_v18 = vld [vmem:[%s11443_s5 + $0x2b0] sm:$0xff]  ;;  %v11115_v51 = vld [vmem:[%s11443_s5 + $0x2a8] sm:$0xff] }
 0x40c   : > { %v8641_v54 = vpop.f32.mrf.mxu1  ;;  %v8834_v52 = vpop.f32.mrf.mxu0  ;;  %v9089_v46 = vrot.slane %v11108_v57, 1  ;;  %v9087_v3 = vrot.slane %v11109_v62, 1  ;;  %v14126_v10 = vsel %vm6051_vm0, %v9079_v24, %v9080_v25  ;;  %v14129_v44 = vsel %vm6051_vm0, %v9076_v13, %v9077_v19  ;;  %v11116_v57 = vld [vmem:[%s11443_s5 + $0x2c8] sm:$0xff]  ;;  %v11117_v62 = vld [vmem:[%s11443_s5 + $0x2b8] sm:$0xff] }
 0x40d   : > { %9689 = vst [vmem:[%s14045_s6 + $0x60] sm:$0xff] %v9561_v11  ;;  %9691 = vst [vmem:[%s14045_s6 + $0x70] sm:$0xff] %v9563_v58  ;;  %v9562_v26 = vmax.f32 %v9434_v5, 0.0  ;;  %v9564_v29 = vmax.f32 %v9436_v32, 0.0  ;;  %v9437_v28 = vadd.f32 %v13964_v53, %v8641_v54  ;;  %v9439_v15 = vadd.f32 %v13968_v9, %v8834_v52  ;;  %v11111_v52 = vld [vmem:[%s11443_s5 + $0x2a0] sm:$0xff] }
 0x40e   : > { %v8643_v6 = vpop.f32.mrf.mxu1  ;;  %v8836_v23 = vpop.f32.mrf.mxu0  ;;  %v14132_v12 = vsel %vm6051_vm0, %v9082_v40, %v9083_v22  ;;  %v14140_v5 = vsel %vm6051_vm0, %v9074_v30, %v9085_v37  ;;  %v14143_v32 = vsel %vm6051_vm0, %v9080_v25, %v9089_v46  ;;  %v14146_v54 = vsel %vm6051_vm0, %v9077_v19, %v9087_v3  ;;  %v11112_v19 = vld [vmem:[%s11443_s5 + $0x2c0] sm:$0xff] }
 0x40f   : > { %9690 = vst [vmem:[%s14045_s6 + $0x68] sm:$0xff] %v9562_v26  ;;  %9692 = vst [vmem:[%s14045_s6 + $0x78] sm:$0xff] %v9564_v29  ;;  %v9565_v27 = vmax.f32 %v9437_v28, 0.0  ;;  %v9567_v53 = vmax.f32 %v9439_v15, 0.0  ;;  %v9438_v9 = vadd.f32 %v13987_v20, %v8643_v6  ;;  %v9440_v7 = vadd.f32 %v13997_v55, %v8836_v23  ;;  %v11114_v29 = vld [vmem:[%s11443_s5 + $0x2d0] sm:$0xff] }
 0x410   : > { %v8645_v21 = vpop.f32.mrf.mxu1  ;;  %v8838_v35 = vpop.f32.mrf.mxu0  ;;  %v9093_v42 = vrot.slane %v11111_v52, 1  ;;  %v14154_v25 = vsel %vm6051_vm0, %v9083_v22, %v9091_v63  ;;  %v9094_v40 = vrot.slane %v11112_v19, 1  ;;  %v9099_v26 = vrot.slane %v11113_v18, 1  ;;  %v11119_v63 = vld [vmem:[%s11443_s5 + $0x2e0] sm:$0x3] }
 0x411   : > { %9693 = vst [vmem:[%s14045_s6 + $0x80] sm:$0xff] %v9565_v27  ;;  %9695 = vst [vmem:[%s14045_s6 + $0x90] sm:$0xff] %v9567_v53  ;;  %v9566_v20 = vmax.f32 %v9438_v9, 0.0  ;;  %v9568_v55 = vmax.f32 %v9440_v7, 0.0  ;;  %v9441_v31 = vadd.f32 %v14000_v39, %v8645_v21  ;;  %v9443_v24 = vadd.f32 %v14003_v17, %v8838_v35  ;;  %v11118_v27 = vld [vmem:[%s11443_s5 + $0x2d8] sm:$0xff] }
 0x412   : > { %v8647_v11 = vpop.f32.mrf.mxu1  ;;  %v8840_v58 = vpop.f32.mrf.mxu0  ;;  %v9100_v28 = vrot.slane %v11114_v29, 1  ;;  %v9096_v37 = vrot.slane %v11115_v51, 1  ;;  %v9097_v46 = vrot.slane %v11116_v57, 1  ;;  %v9102_v3 = vrot.slane %v11117_v62, 1  ;;  %v11124_v57 = vld [vmem:[%s11443_s5 + $0x320] sm:$0xff]  ;;  %v11125_v62 = vld [vmem:[%s11443_s5 + $0x310] sm:$0xff] }
 0x413   : > { %9694 = vst [vmem:[%s14045_s6 + $0x88] sm:$0xff] %v9566_v20  ;;  %9696 = vst [vmem:[%s14045_s6 + $0x98] sm:$0xff] %v9568_v55  ;;  %v9569_v39 = vmax.f32 %v9441_v31, 0.0  ;;  %v9571_v17 = vmax.f32 %v9443_v24, 0.0  ;;  %v9442_v13 = vadd.f32 %v14006_v38, %v8647_v11  ;;  %v9444_v30 = vadd.f32 %v14009_v48, %v8840_v58  ;;  %v11120_v55 = vld [vmem:[%s11443_s5 + $0x2f0] sm:$0x3] }
 0x414   : > { %v8651_v34 = vpop.f32.mrf.mxu1  ;;  %v8844_v56 = vpop.f32.mrf.mxu0  ;;  %v9103_v53 = vrot.slane %v11118_v27, 1  ;;  %v14172_v16 = vsel %vm6051_vm0, %v9093_v42, %v9094_v40  ;;  %v9105_v20 = vrot.slane %v11119_v63, 1  ;;  %v9109_v31 = vrot.slane %v11120_v55, 1  ;;  %v11121_v24 = vld [vmem:[%s11443_s5 + $0x2e8] sm:$0x3]  ;;  %v11126_v27 = vld [vmem:[%s11443_s5 + $0x330] sm:$0xff] }
 0x415   : > { %9697 = vst [vmem:[%s14045_s6 + $0xa0] sm:$0xff] %v9569_v39  ;;  %9699 = vst [vmem:[%s14045_s6 + $0xb0] sm:$0xff] %v9571_v17  ;;  %v9570_v38 = vmax.f32 %v9442_v13, 0.0  ;;  %v9572_v48 = vmax.f32 %v9444_v30, 0.0  ;;  %v9445_v15 = vadd.f32 %v14012_v33, %v8651_v34  ;;  %v9447_v22 = vadd.f32 %v14015_v0, %v8844_v56  ;;  %v11122_v34 = vld [vmem:[%s11443_s5 + $0x2f8] sm:$0x3] }
 0x416   : > { %v8653_v6 = vpop.f32.mrf.mxu1  ;;  %v8846_v23 = vpop.f32.mrf.mxu0  ;;  %v9107_v11 = vrot.slane %v11121_v24, 1  ;;  %v14182_v17 = vsel %vm6051_vm0, %v9099_v26, %v9100_v28  ;;  %v14185_v13 = vsel %vm6051_vm0, %v9096_v37, %v9097_v46  ;;  %v14188_v30 = vsel %vm6051_vm0, %v9102_v3, %v9103_v53  ;;  %v11128_v63 = vld [vmem:[%s11443_s5 + $0x328] sm:$0xff]  ;;  %v11129_v55 = vld [vmem:[%s11443_s5 + $0x318] sm:$0xff] }
 0x417   : > { %9698 = vst [vmem:[%s14045_s6 + $0xa8] sm:$0xff] %v9570_v38  ;;  %9700 = vst [vmem:[%s14045_s6 + $0xb8] sm:$0xff] %v9572_v48  ;;  %v9573_v33 = vmax.f32 %v9445_v15, 0.0  ;;  %v9575_v9 = vmax.f32 %v9447_v22, 0.0  ;;  %v9446_v0 = vadd.f32 %v14021_v1, %v8653_v6  ;;  %v9448_v7 = vadd.f32 %v14024_v14, %v8846_v23  ;;  %v11123_v22 = vld [vmem:[%s11443_s5 + $0x300] sm:$0xff]  ;;  %v11130_v24 = vld [vmem:[%s11443_s5 + $0x338] sm:$0xff] }
 0x418   : > { %v8655_v21 = vpop.f32.mrf.mxu1  ;;  %v8848_v35 = vpop.f32.mrf.mxu0  ;;  %v9111_v56 = vrot.slane %v11122_v34, 1  ;;  %v14196_v38 = vsel %vm6051_vm0, %v9094_v40, %v9105_v20  ;;  %v14199_v48 = vsel %vm6051_vm0, %v9100_v28, %v9109_v31  ;;  %v14202_v15 = vsel %vm6051_vm0, %v9097_v46, %v9107_v11 }
 0x419   : > { %9701 = vst [vmem:[%s14045_s6 + $0xc0] sm:$0xff] %v9573_v33  ;;  %9703 = vst [vmem:[%s14045_s6 + $0xd0] sm:$0xff] %v9575_v9  ;;  %v9574_v58 = vmax.f32 %v9446_v0, 0.0  ;;  %v9576_v1 = vmax.f32 %v9448_v7, 0.0  ;;  %v9449_v14 = vadd.f32 %v14027_v45, %v8655_v21  ;;  %v9451_v52 = vadd.f32 %v14030_v41, %v8848_v35  ;;  %v11127_v21 = vld [vmem:[%s11443_s5 + $0x308] sm:$0xff] }
 0x41a   : > { %v8657_v39 = vpop.f32.mrf.mxu1  ;;  %v8850_v42 = vpop.f32.mrf.mxu0  ;;  %v9113_v6 = vrot.slane %v11123_v22, 1  ;;  %v14210_v28 = vsel %vm6051_vm0, %v9103_v53, %v9111_v56  ;;  %v9114_v46 = vrot.slane %v11124_v57, 1  ;;  %v9119_v3 = vrot.slane %v11125_v62, 1  ;;  %v11132_v56 = vld [vmem:[%s11443_s5 + $0x350] sm:$0x3] }
 0x41b   : > { %9702 = vst [vmem:[%s14045_s6 + $0xc8] sm:$0xff] %v9574_v58  ;;  %9704 = vst [vmem:[%s14045_s6 + $0xd8] sm:$0xff] %v9576_v1  ;;  %v9577_v45 = vmax.f32 %v9449_v14, 0.0  ;;  %v9579_v41 = vmax.f32 %v9451_v52, 0.0  ;;  %v9450_v19 = vadd.f32 %v14033_v8, %v8657_v39  ;;  %v9452_v18 = vadd.f32 %v14039_v50, %v8850_v42  ;;  %v11131_v42 = vld [vmem:[%s11443_s5 + $0x340] sm:$0x3] }
 0x41c   : > { %v8661_v26 = vpop.f32.mrf.mxu1  ;;  %v8854_v29 = vpop.f32.mrf.mxu0  ;;  %v9120_v33 = vrot.slane %v11126_v27, 1  ;;  %v9116_v35 = vrot.slane %v11127_v21, 1  ;;  %v9117_v20 = vrot.slane %v11128_v63, 1  ;;  %v9122_v31 = vrot.slane %v11129_v55, 1  ;;  %v11136_v21 = vld [vmem:[%s11443_s5 + $0x380] sm:$0xff]  ;;  %v11137_v63 = vld [vmem:[%s11443_s5 + $0x370] sm:$0xff] }
 0x41d   : > { %9705 = vst [vmem:[%s14045_s6 + $0xe0] sm:$0xff] %v9577_v45  ;;  %9707 = vst [vmem:[%s14045_s6 + $0xf0] sm:$0xff] %v9579_v41  ;;  %v9578_v8 = vmax.f32 %v9450_v19, 0.0  ;;  %v9580_v50 = vmax.f32 %v9452_v18, 0.0  ;;  %v9453_v23 = vadd.f32 %v14060_v43, %v8661_v26  ;;  %v9455_v40 = vadd.f32 %v14070_v60, %v8854_v29  ;;  %v11133_v41 = vld [vmem:[%s11443_s5 + $0x348] sm:$0x3] }
 0x41e   : > { %v8663_v51 = vpop.f32.mrf.mxu1  ;;  %v8856_v37 = vpop.f32.mrf.mxu0  ;;  %v9123_v11 = vrot.slane %v11130_v24, 1  ;;  %v14228_v39 = vsel %vm6051_vm0, %v9113_v6, %v9114_v46  ;;  %v9125_v34 = vrot.slane %v11131_v42, 1  ;;  %v9129_v45 = vrot.slane %v11132_v56, 1  ;;  %v11138_v55 = vld [vmem:[%s11443_s5 + $0x390] sm:$0xff]  ;;  %v11141_v42 = vld [vmem:[%s11443_s5 + $0x378] sm:$0xff] }
 0x41f   : > { %9706 = vst [vmem:[%s14045_s6 + $0xe8] sm:$0xff] %v9578_v8  ;;  %9708 = vst [vmem:[%s14045_s6 + $0xf8] sm:$0xff] %v9580_v50  ;;  %v9581_v43 = vmax.f32 %v9453_v23, 0.0  ;;  %v9583_v60 = vmax.f32 %v9455_v40, 0.0  ;;  %v9454_v9 = vadd.f32 %v14073_v2, %v8663_v51  ;;  %v9456_v53 = vadd.f32 %v14076_v59, %v8856_v37  ;;  %v11134_v23 = vld [vmem:[%s11443_s5 + $0x358] sm:$0x3] }
 0x420   : > { %v8665_v0 = vpop.f32.mrf.mxu1  ;;  %v8858_v7 = vpop.f32.mrf.mxu0  ;;  %v9127_v19 = vrot.slane %v11133_v41, 1  ;;  %v14238_v6 = vsel %vm6051_vm0, %v9119_v3, %v9120_v33  ;;  %v14241_v8 = vsel %vm6051_vm0, %v9116_v35, %v9117_v20  ;;  %v14244_v50 = vsel %vm6051_vm0, %v9122_v31, %v9123_v11  ;;  %v11142_v56 = vld [vmem:[%s11443_s5 + $0x398] sm:$0xff] }
 0x421   : > { %9709 = vst [vmem:[%s14045_s6 + $0x100] sm:$0xff] %v9581_v43  ;;  %9711 = vst [vmem:[%s14045_s6 + $0x110] sm:$0xff] %v9583_v60  ;;  %v9582_v2 = vmax.f32 %v9454_v9, 0.0  ;;  %v9584_v58 = vmax.f32 %v9456_v53, 0.0  ;;  %v9457_v59 = vadd.f32 %v14084_v47, %v8665_v0  ;;  %v9459_v1 = vadd.f32 %v14087_v4, %v8858_v7  ;;  %v11135_v60 = vld [vmem:[%s11443_s5 + $0x360] sm:$0xff] }
 0x422   : > { %v8667_v14 = vpop.f32.mrf.mxu1  ;;  %v8860_v52 = vpop.f32.mrf.mxu0  ;;  %v9131_v40 = vrot.slane %v11134_v23, 1  ;;  %v14252_v3 = vsel %vm6051_vm0, %v9114_v46, %v9125_v34  ;;  %v14255_v27 = vsel %vm6051_vm0, %v9120_v33, %v9129_v45  ;;  %v14258_v43 = vsel %vm6051_vm0, %v9117_v20, %v9127_v19 }
 0x423   : > { %9710 = vst [vmem:[%s14045_s6 + $0x108] sm:$0xff] %v9582_v2  ;;  %9712 = vst [vmem:[%s14045_s6 + $0x118] sm:$0xff] %v9584_v58  ;;  %v9585_v18 = vmax.f32 %v9457_v59, 0.0  ;;  %v9587_v47 = vmax.f32 %v9459_v1, 0.0  ;;  %v9458_v4 = vadd.f32 %v14090_v61, %v8667_v14  ;;  %v9460_v26 = vadd.f32 %v14098_v36, %v8860_v52  ;;  %v11139_v59 = vld [vmem:[%s11443_s5 + $0x368] sm:$0xff] }
 0x424   : > { %v8671_v29 = vpop.f32.mrf.mxu1  ;;  %v8864_v22 = vpop.f32.mrf.mxu0  ;;  %v9133_v9 = vrot.slane %v11135_v60, 1  ;;  %v14266_v33 = vsel %vm6051_vm0, %v9123_v11, %v9131_v40  ;;  %v9134_v35 = vrot.slane %v11136_v21, 1  ;;  %v9139_v20 = vrot.slane %v11137_v63, 1  ;;  %v11140_v14 = vld [vmem:[%s11443_s5 + $0x388] sm:$0xff] }
 0x425   : > { %9713 = vst [vmem:[%s14045_s6 + $0x120] sm:$0xff] %v9585_v18  ;;  %9715 = vst [vmem:[%s14045_s6 + $0x130] sm:$0xff] %v9587_v47  ;;  %v9586_v61 = vmax.f32 %v9458_v4, 0.0  ;;  %v9588_v36 = vmax.f32 %v9460_v26, 0.0  ;;  %v9461_v51 = vadd.f32 %v14116_v49, %v8671_v29  ;;  %v9463_v37 = vadd.f32 %v14126_v10, %v8864_v22  ;;  %v11143_v26 = vld [vmem:[%s11443_s5 + $0x3a0] sm:$0x3] }
 0x426   : > { %v8673_v57 = vpop.f32.mrf.mxu1  ;;  %v8866_v62 = vpop.f32.mrf.mxu0  ;;  %v9140_v31 = vrot.slane %v11138_v55, 1  ;;  %v9136_v1 = vrot.slane %v11139_v59, 1  ;;  %v9137_v52 = vrot.slane %v11140_v14, 1  ;;  %v9142_v34 = vrot.slane %v11141_v42, 1  ;;  %v11144_v22 = vld [vmem:[%s11443_s5 + $0x3b0] sm:$0x3] }
 0x427   : > { %9714 = vst [vmem:[%s14045_s6 + $0x128] sm:$0xff] %v9586_v61  ;;  %9716 = vst [vmem:[%s14045_s6 + $0x138] sm:$0xff] %v9588_v36  ;;  %v9589_v49 = vmax.f32 %v9461_v51, 0.0  ;;  %v9591_v10 = vmax.f32 %v9463_v37, 0.0  ;;  %v9462_v53 = vadd.f32 %v14129_v44, %v8673_v57  ;;  %v9464_v46 = vadd.f32 %v14132_v12, %v8866_v62  ;;  %v11145_v40 = vld [vmem:[%s11443_s5 + $0x3a8] sm:$0x3] }
 0x428   : > { %v8675_v0 = vpop.f32.mrf.mxu1  ;;  %v8868_v7 = vpop.f32.mrf.mxu0  ;;  %v9143_v45 = vrot.slane %v11142_v56, 1  ;;  %v14284_v4 = vsel %vm6051_vm0, %v9133_v9, %v9134_v35  ;;  %v9145_v29 = vrot.slane %v11143_v26, 1  ;;  %v9149_v23 = vrot.slane %v11144_v22, 1  ;;  %v11147_v55 = vld [vmem:[%s11443_s5 + $0x3c0] sm:$0xff]  ;;  %v11149_v59 = vld [vmem:[%s11443_s5 + $0x3d0] sm:$0xff]  ;;  %v11154_v26 = vld [vmem:[%s11443_s5 + $0x3f8] sm:$0xff] }
 0x429   : > { %9717 = vst [vmem:[%s14045_s6 + $0x140] sm:$0xff] %v9589_v49  ;;  %9719 = vst [vmem:[%s14045_s6 + $0x150] sm:$0xff] %v9591_v10  ;;  %v9590_v44 = vmax.f32 %v9462_v53, 0.0  ;;  %v9592_v12 = vmax.f32 %v9464_v46, 0.0  ;;  %v9465_v24 = vadd.f32 %v14140_v5, %v8675_v0  ;;  %v9467_v11 = vadd.f32 %v14143_v32, %v8868_v7  ;;  %v11146_v49 = vld [vmem:[%s11443_s5 + $0x3b8] sm:$0x3] }
 0x42a   : > { %v8677_v2 = vpop.f32.mrf.mxu1  ;;  %v8870_v58 = vpop.f32.mrf.mxu0  ;;  %v9147_v61 = vrot.slane %v11145_v40, 1  ;;  %v14294_v62 = vsel %vm6051_vm0, %v9139_v20, %v9140_v31  ;;  %v14297_v60 = vsel %vm6051_vm0, %v9136_v1, %v9137_v52  ;;  %v14300_v9 = vsel %vm6051_vm0, %v9142_v34, %v9143_v45  ;;  %v11150_v14 = vld [vmem:[%s11443_s5 + $0x3f0] sm:$0xff] }
 0x42b   : > { %9718 = vst [vmem:[%s14045_s6 + $0x148] sm:$0xff] %v9590_v44  ;;  %9720 = vst [vmem:[%s14045_s6 + $0x158] sm:$0xff] %v9592_v12  ;;  %v9593_v5 = vmax.f32 %v9465_v24, 0.0  ;;  %v9595_v41 = vmax.f32 %v9467_v11, 0.0  ;;  %v9466_v32 = vadd.f32 %v14146_v54, %v8677_v2  ;;  %v9468_v19 = vadd.f32 %v14154_v25, %v8870_v58  ;;  %v11148_v2 = vld [vmem:[%s11443_s5 + $0x3e0] sm:$0xff] }
 0x42c   : > { %v8681_v18 = vpop.f32.mrf.mxu1  ;;  %v8874_v47 = vpop.f32.mrf.mxu0  ;;  %v9151_v10 = vrot.slane %v11146_v49, 1  ;;  %v14308_v21 = vsel %vm6051_vm0, %v9134_v35, %v9145_v29  ;;  %v14311_v63 = vsel %vm6051_vm0, %v9140_v31, %v9149_v23  ;;  %v14314_v20 = vsel %vm6051_vm0, %v9137_v52, %v9147_v61 }
 0x42d   : > { %9721 = vst [vmem:[%s14045_s6 + $0x160] sm:$0xff] %v9593_v5  ;;  %9723 = vst [vmem:[%s14045_s6 + $0x170] sm:$0xff] %v9595_v41  ;;  %v9594_v36 = vmax.f32 %v9466_v32, 0.0  ;;  %v9596_v54 = vmax.f32 %v9468_v19, 0.0  ;;  %v9469_v25 = vadd.f32 %v14172_v16, %v8681_v18  ;;  %v9471_v51 = vadd.f32 %v14182_v17, %v8874_v47  ;;  %v11151_v5 = vld [vmem:[%s11443_s5 + $0x3c8] sm:$0xff]  ;;  %v11153_v18 = vld [vmem:[%s11443_s5 + $0x3d8] sm:$0xff] }
 0x42e   : > { %v8683_v37 = vpop.f32.mrf.mxu1  ;;  %v8876_v57 = vpop.f32.mrf.mxu0  ;;  %v9153_v44 = vrot.slane %v11147_v55, 1  ;;  %v14322_v31 = vsel %vm6051_vm0, %v9143_v45, %v9151_v10  ;;  %v9154_v58 = vrot.slane %v11148_v2, 1  ;;  %v9159_v1 = vrot.slane %v11149_v59, 1  ;;  %v11152_v32 = vld [vmem:[%s11443_s5 + $0x3e8] sm:$0xff]  ;;  %v11158_v55 = vld [vmem:[%s11443_s5 + $0x418] sm:$0x3] }
 0x42f   : > { %9722 = vst [vmem:[%s14045_s6 + $0x168] sm:$0xff] %v9594_v36  ;;  %9724 = vst [vmem:[%s14045_s6 + $0x178] sm:$0xff] %v9596_v54  ;;  %v9597_v16 = vmax.f32 %v9469_v25, 0.0  ;;  %v9599_v17 = vmax.f32 %v9471_v51, 0.0  ;;  %v9470_v53 = vadd.f32 %v14185_v13, %v8683_v37  ;;  %v9472_v46 = vadd.f32 %v14188_v30, %v8876_v57  ;;  %v11155_v54 = vld [vmem:[%s11443_s5 + $0x400] sm:$0x3] }
 0x430   : > { %v8685_v0 = vpop.f32.mrf.mxu1  ;;  %v8878_v7 = vpop.f32.mrf.mxu0  ;;  %v9160_v52 = vrot.slane %v11150_v14, 1  ;;  %v9156_v41 = vrot.slane %v11151_v5, 1  ;;  %v9157_v19 = vrot.slane %v11152_v32, 1  ;;  %v9162_v47 = vrot.slane %v11153_v18, 1  ;;  %v11156_v51 = vld [vmem:[%s11443_s5 + $0x410] sm:$0x3] }
 0x431   : > { %9725 = vst [vmem:[%s14045_s6 + $0x180] sm:$0xff] %v9597_v16  ;;  %9727 = vst [vmem:[%s14045_s6 + $0x190] sm:$0xff] %v9599_v17  ;;  %v9598_v13 = vmax.f32 %v9470_v53, 0.0  ;;  %v9600_v30 = vmax.f32 %v9472_v46, 0.0  ;;  %v9473_v12 = vadd.f32 %v14196_v38, %v8685_v0  ;;  %v9475_v35 = vadd.f32 %v14199_v48, %v8878_v7  ;;  %v11157_v57 = vld [vmem:[%s11443_s5 + $0x408] sm:$0x3] }
 0x432   : > { %v8687_v24 = vpop.f32.mrf.mxu1  ;;  %v8880_v11 = vpop.f32.mrf.mxu0  ;;  %v9163_v29 = vrot.slane %v11154_v26, 1  ;;  %v14340_v36 = vsel %vm6051_vm0, %v9153_v44, %v9154_v58  ;;  %v9165_v25 = vrot.slane %v11155_v54, 1  ;;  %v9169_v37 = vrot.slane %v11156_v51, 1  ;;  %v11159_v59 = vld [vmem:[%s11443_s5 + $0x420] sm:$0xff]  ;;  %v11162_v5 = vld [vmem:[%s11443_s5 + $0x450] sm:$0xff]  ;;  %v11163_v26 = vld [vmem:[%s11443_s5 + $0x428] sm:$0xff] }
 0x433   : > { %9726 = vst [vmem:[%s14045_s6 + $0x188] sm:$0xff] %v9598_v13  ;;  %9728 = vst [vmem:[%s14045_s6 + $0x198] sm:$0xff] %v9600_v30  ;;  %v9601_v38 = vmax.f32 %v9473_v12, 0.0  ;;  %v9603_v48 = vmax.f32 %v9475_v35, 0.0  ;;  %v9474_v42 = vadd.f32 %v14202_v15, %v8687_v24  ;;  %v9476_v34 = vadd.f32 %v14210_v28, %v8880_v11 }
 0x434   : > { %v8691_v56 = vpop.f32.mrf.mxu1  ;;  %v8884_v45 = vpop.f32.mrf.mxu0  ;;  %v9167_v49 = vrot.slane %v11157_v57, 1  ;;  %v14350_v46 = vsel %vm6051_vm0, %v9159_v1, %v9160_v52  ;;  %v14353_v0 = vsel %vm6051_vm0, %v9156_v41, %v9157_v19  ;;  %v14356_v7 = vsel %vm6051_vm0, %v9162_v47, %v9163_v29 }
 0x435   : > { %9729 = vst [vmem:[%s14045_s6 + $0x1a0] sm:$0xff] %v9601_v38  ;;  %9731 = vst [vmem:[%s14045_s6 + $0x1b0] sm:$0xff] %v9603_v48  ;;  %v9602_v15 = vmax.f32 %v9474_v42, 0.0  ;;  %v9604_v22 = vmax.f32 %v9476_v34, 0.0  ;;  %v9477_v28 = vadd.f32 %v14228_v39, %v8691_v56  ;;  %v9479_v23 = vadd.f32 %v14238_v6, %v8884_v45  ;;  %v11160_v42 = vld [vmem:[%s11443_s5 + $0x440] sm:$0xff]  ;;  %v11161_v56 = vld [vmem:[%s11443_s5 + $0x430] sm:$0xff] }
 0x436   : > { %v8693_v40 = vpop.f32.mrf.mxu1  ;;  %v8886_v61 = vpop.f32.mrf.mxu0  ;;  %v9171_v44 = vrot.slane %v11158_v55, 1  ;;  %v14364_v24 = vsel %vm6051_vm0, %v9154_v58, %v9165_v25  ;;  %v14367_v11 = vsel %vm6051_vm0, %v9160_v52, %v9169_v37  ;;  %v14370_v2 = vsel %vm6051_vm0, %v9157_v19, %v9167_v49  ;;  %v11167_v49 = vld [vmem:[%s11443_s5 + $0x460] sm:$0x3] }
 0x437   : > { %9730 = vst [vmem:[%s14045_s6 + $0x1a8] sm:$0xff] %v9602_v15  ;;  %9732 = vst [vmem:[%s14045_s6 + $0x1b8] sm:$0xff] %v9604_v22  ;;  %v9605_v10 = vmax.f32 %v9477_v28, 0.0  ;;  %v9607_v39 = vmax.f32 %v9479_v23, 0.0  ;;  %v9478_v6 = vadd.f32 %v14241_v8, %v8693_v40  ;;  %v9480_v16 = vadd.f32 %v14244_v50, %v8886_v61  ;;  %v11164_v15 = vld [vmem:[%s11443_s5 + $0x448] sm:$0xff]  ;;  %v11165_v28 = vld [vmem:[%s11443_s5 + $0x438] sm:$0xff] }
 0x438   : > { %v8695_v17 = vpop.f32.mrf.mxu1  ;;  %v8888_v53 = vpop.f32.mrf.mxu0  ;;  %v9173_v1 = vrot.slane %v11159_v59, 1  ;;  %v14378_v52 = vsel %vm6051_vm0, %v9163_v29, %v9171_v44  ;;  %v9174_v34 = vrot.slane %v11160_v42, 1  ;;  %v9179_v45 = vrot.slane %v11161_v56, 1  ;;  %v11166_v40 = vld [vmem:[%s11443_s5 + $0x458] sm:$0xff] }
 0x439   : > { %9733 = vst [vmem:[%s14045_s6 + $0x1c0] sm:$0xff] %v9605_v10  ;;  %9735 = vst [vmem:[%s14045_s6 + $0x1d0] sm:$0xff] %v9607_v39  ;;  %v9606_v8 = vmax.f32 %v9478_v6, 0.0  ;;  %v9608_v50 = vmax.f32 %v9480_v16, 0.0  ;;  %v9481_v13 = vadd.f32 %v14252_v3, %v8695_v17  ;;  %v9483_v30 = vadd.f32 %v14255_v27, %v8888_v53  ;;  %v11168_v39 = vld [vmem:[%s11443_s5 + $0x470] sm:$0x3] }
 0x43a   : > { %v8697_v12 = vpop.f32.mrf.mxu1  ;;  %v8890_v35 = vpop.f32.mrf.mxu0  ;;  %v9180_v41 = vrot.slane %v11162_v5, 1  ;;  %v9176_v29 = vrot.slane %v11163_v26, 1  ;;  %v9177_v22 = vrot.slane %v11164_v15, 1  ;;  %v9182_v23 = vrot.slane %v11165_v28, 1  ;;  %v11169_v16 = vld [vmem:[%s11443_s5 + $0x468] sm:$0x3] }
 0x43b   : > { %9734 = vst [vmem:[%s14045_s6 + $0x1c8] sm:$0xff] %v9606_v8  ;;  %9736 = vst [vmem:[%s14045_s6 + $0x1d8] sm:$0xff] %v9608_v50  ;;  %v9609_v3 = vmax.f32 %v9481_v13, 0.0  ;;  %v9611_v27 = vmax.f32 %v9483_v30, 0.0  ;;  %v9482_v14 = vadd.f32 %v14258_v43, %v8697_v12  ;;  %v9484_v58 = vadd.f32 %v14266_v33, %v8890_v35  ;;  %v11170_v12 = vld [vmem:[%s11443_s5 + $0x478] sm:$0x3] }
 0x43c   : > { %v8701_v38 = vpop.f32.mrf.mxu1  ;;  %v8894_v48 = vpop.f32.mrf.mxu0  ;;  %v9183_v61 = vrot.slane %v11166_v40, 1  ;;  %v14396_v57 = vsel %vm6051_vm0, %v9173_v1, %v9174_v34  ;;  %v9185_v10 = vrot.slane %v11167_v49, 1  ;;  %v9189_v6 = vrot.slane %v11168_v39, 1  ;;  %v11175_v28 = vld [vmem:[%s11443_s5 + $0x488] sm:$0xff] }
 0x43d   : > { %9737 = vst [vmem:[%s14045_s6 + $0x1e0] sm:$0xff] %v9609_v3  ;;  %9739 = vst [vmem:[%s14045_s6 + $0x1f0] sm:$0xff] %v9611_v27  ;;  %v9610_v43 = vmax.f32 %v9482_v14, 0.0  ;;  %v9612_v33 = vmax.f32 %v9484_v58, 0.0  ;;  %v9485_v32 = vadd.f32 %v14284_v4, %v8701_v38  ;;  %v9487_v19 = vadd.f32 %v14294_v62, %v8894_v48  ;;  %v11171_v48 = vld [vmem:[%s11443_s5 + $0x480] sm:$0xff]  ;;  %v11176_v40 = vld [vmem:[%s11443_s5 + $0x4a8] sm:$0xff] }
 0x43e   : > { %v8703_v18 = vpop.f32.mrf.mxu1  ;;  %v8896_v47 = vpop.f32.mrf.mxu0  ;;  %v9187_v17 = vrot.slane %v11169_v16, 1  ;;  %v14406_v50 = vsel %vm6051_vm0, %v9179_v45, %v9180_v41  ;;  %v14409_v13 = vsel %vm6051_vm0, %v9176_v29, %v9177_v22  ;;  %v14412_v30 = vsel %vm6051_vm0, %v9182_v23, %v9183_v61 }
 0x43f   : > { %9738 = vst [vmem:[%s14045_s6 + $0x1e8] sm:$0xff] %v9610_v43  ;;  %9740 = vst [vmem:[%s14045_s6 + $0x1f8] sm:$0xff] %v9612_v33  ;;  %v9613_v4 = vmax.f32 %v9485_v32, 0.0  ;;  %v9615_v54 = vmax.f32 %v9487_v19, 0.0  ;;  %v9486_v62 = vadd.f32 %v14297_v60, %v8703_v18  ;;  %v9488_v25 = vadd.f32 %v14300_v9, %v8896_v47  ;;  %v11172_v43 = vld [vmem:[%s11443_s5 + $0x4a0] sm:$0xff]  ;;  %v11173_v32 = vld [vmem:[%s11443_s5 + $0x490] sm:$0xff] }
 0x440   : > { %v8705_v51 = vpop.f32.mrf.mxu1  ;;  %v8898_v37 = vpop.f32.mrf.mxu0  ;;  %v9191_v35 = vrot.slane %v11170_v12, 1  ;;  %v14420_v14 = vsel %vm6051_vm0, %v9174_v34, %v9185_v10  ;;  %v14423_v58 = vsel %vm6051_vm0, %v9180_v41, %v9189_v6  ;;  %v14426_v38 = vsel %vm6051_vm0, %v9177_v22, %v9187_v17  ;;  %v11174_v18 = vld [vmem:[%s11443_s5 + $0x4b0] sm:$0xff]  ;;  %v11179_v6 = vld [vmem:[%s11443_s5 + $0x4c0] sm:$0x3] }
 0x441   : > { %9741 = vst [vmem:[%s14045_s6 + $0x200] sm:$0xff] %v9613_v4  ;;  %9743 = vst [vmem:[%s14045_s6 + $0x210] sm:$0xff] %v9615_v54  ;;  %v9614_v53 = vmax.f32 %v9486_v62, 0.0  ;;  %v9616_v60 = vmax.f32 %v9488_v25, 0.0  ;;  %v9489_v9 = vadd.f32 %v14308_v21, %v8705_v51  ;;  %v9491_v55 = vadd.f32 %v14311_v63, %v8898_v37  ;;  %v11177_v4 = vld [vmem:[%s11443_s5 + $0x498] sm:$0xff] }
 0x442   : > { %v8707_v44 = vpop.f32.mrf.mxu1  ;;  %v8900_v8 = vpop.f32.mrf.mxu0  ;;  %v9193_v42 = vrot.slane %v11171_v48, 1  ;;  %v14434_v41 = vsel %vm6051_vm0, %v9183_v61, %v9191_v35  ;;  %v9194_v33 = vrot.slane %v11172_v43, 1  ;;  %v9199_v19 = vrot.slane %v11173_v32, 1  ;;  %v11178_v62 = vld [vmem:[%s11443_s5 + $0x4b8] sm:$0xff]  ;;  %v11180_v17 = vld [vmem:[%s11443_s5 + $0x4d0] sm:$0x3] }
 0x443   : > { %9742 = vst [vmem:[%s14045_s6 + $0x208] sm:$0xff] %v9614_v53  ;;  %9744 = vst [vmem:[%s14045_s6 + $0x218] sm:$0xff] %v9616_v60  ;;  %v9617_v21 = vmax.f32 %v9489_v9, 0.0  ;;  %v9619_v63 = vmax.f32 %v9491_v55, 0.0  ;;  %v9490_v59 = vadd.f32 %v14314_v20, %v8707_v44  ;;  %v9492_v1 = vadd.f32 %v14322_v31, %v8900_v8  ;;  %v11181_v60 = vld [vmem:[%s11443_s5 + $0x4c8] sm:$0x3] }
 0x444   : > { %v8711_v3 = vpop.f32.mrf.mxu1  ;;  %v8904_v27 = vpop.f32.mrf.mxu0  ;;  %v9200_v47 = vrot.slane %v11174_v18, 1  ;;  %v9196_v23 = vrot.slane %v11175_v28, 1  ;;  %v9197_v61 = vrot.slane %v11176_v40, 1  ;;  %v9202_v54 = vrot.slane %v11177_v4, 1  ;;  %v11184_v18 = vld [vmem:[%s11443_s5 + $0x500] sm:$0xff]  ;;  %v11187_v40 = vld [vmem:[%s11443_s5 + $0x4e8] sm:$0xff] }
 0x445   : > { %9745 = vst [vmem:[%s14045_s6 + $0x220] sm:$0xff] %v9617_v21  ;;  %9747 = vst [vmem:[%s14045_s6 + $0x230] sm:$0xff] %v9619_v63  ;;  %v9618_v20 = vmax.f32 %v9490_v59, 0.0  ;;  %v9620_v31 = vmax.f32 %v9492_v1, 0.0  ;;  %v9493_v56 = vadd.f32 %v14340_v36, %v8711_v3  ;;  %v9495_v34 = vadd.f32 %v14350_v46, %v8904_v27  ;;  %v11182_v59 = vld [vmem:[%s11443_s5 + $0x4d8] sm:$0x3] }
 0x446   : > { %v8713_v45 = vpop.f32.mrf.mxu1  ;;  %v8906_v5 = vpop.f32.mrf.mxu0  ;;  %v9203_v25 = vrot.slane %v11178_v62, 1  ;;  %v14452_v39 = vsel %vm6051_vm0, %v9193_v42, %v9194_v33  ;;  %v9205_v16 = vrot.slane %v11179_v6, 1  ;;  %v9209_v53 = vrot.slane %v11180_v17, 1  ;;  %v11188_v4 = vld [vmem:[%s11443_s5 + $0x508] sm:$0xff]  ;;  %v11189_v62 = vld [vmem:[%s11443_s5 + $0x4f8] sm:$0xff] }
 0x447   : > { %9746 = vst [vmem:[%s14045_s6 + $0x228] sm:$0xff] %v9618_v20  ;;  %9748 = vst [vmem:[%s14045_s6 + $0x238] sm:$0xff] %v9620_v31  ;;  %v9621_v36 = vmax.f32 %v9493_v56, 0.0  ;;  %v9623_v46 = vmax.f32 %v9495_v34, 0.0  ;;  %v9494_v26 = vadd.f32 %v14353_v0, %v8713_v45  ;;  %v9496_v29 = vadd.f32 %v14356_v7, %v8906_v5  ;;  %v11183_v34 = vld [vmem:[%s11443_s5 + $0x4e0] sm:$0xff] }
 0x448   : > { %v8715_v15 = vpop.f32.mrf.mxu1  ;;  %v8908_v22 = vpop.f32.mrf.mxu0  ;;  %v9207_v9 = vrot.slane %v11181_v60, 1  ;;  %v14462_v35 = vsel %vm6051_vm0, %v9199_v19, %v9200_v47  ;;  %v14465_v21 = vsel %vm6051_vm0, %v9196_v23, %v9197_v61  ;;  %v14468_v63 = vsel %vm6051_vm0, %v9202_v54, %v9203_v25 }
 0x449   : > { %9749 = vst [vmem:[%s14045_s6 + $0x240] sm:$0xff] %v9621_v36  ;;  %9751 = vst [vmem:[%s14045_s6 + $0x250] sm:$0xff] %v9623_v46  ;;  %v9622_v0 = vmax.f32 %v9494_v26, 0.0  ;;  %v9624_v51 = vmax.f32 %v9496_v29, 0.0  ;;  %v9497_v7 = vadd.f32 %v14364_v24, %v8715_v15  ;;  %v9499_v37 = vadd.f32 %v14367_v11, %v8908_v22  ;;  %v11185_v36 = vld [vmem:[%s11443_s5 + $0x4f0] sm:$0xff] }
 0x44a   : > { %v8717_v49 = vpop.f32.mrf.mxu1  ;;  %v8910_v10 = vpop.f32.mrf.mxu0  ;;  %v9211_v1 = vrot.slane %v11182_v59, 1  ;;  %v14476_v20 = vsel %vm6051_vm0, %v9194_v33, %v9205_v16  ;;  %v14479_v31 = vsel %vm6051_vm0, %v9200_v47, %v9209_v53  ;;  %v14482_v56 = vsel %vm6051_vm0, %v9197_v61, %v9207_v9  ;;  %v11186_v26 = vld [vmem:[%s11443_s5 + $0x510] sm:$0xff]  ;;  %v11191_v16 = vld [vmem:[%s11443_s5 + $0x520] sm:$0x3]  ;;  %v11193_v9 = vld [vmem:[%s11443_s5 + $0x528] sm:$0x3] }
 0x44b   : > { %9750 = vst [vmem:[%s14045_s6 + $0x248] sm:$0xff] %v9622_v0  ;;  %9752 = vst [vmem:[%s14045_s6 + $0x258] sm:$0xff] %v9624_v51  ;;  %v9625_v55 = vmax.f32 %v9497_v7, 0.0  ;;  %v9627_v24 = vmax.f32 %v9499_v37, 0.0  ;;  %v9498_v11 = vadd.f32 %v14370_v2, %v8717_v49  ;;  %v9500_v44 = vadd.f32 %v14378_v52, %v8910_v10  ;;  %v11190_v0 = vld [vmem:[%s11443_s5 + $0x518] sm:$0xff] }
 0x44c   : > { %v8721_v8 = vpop.f32.mrf.mxu1  ;;  %v8914_v12 = vpop.f32.mrf.mxu0  ;;  %v9213_v45 = vrot.slane %v11183_v34, 1  ;;  %v14490_v19 = vsel %vm6051_vm0, %v9203_v25, %v9211_v1  ;;  %v9214_v47 = vrot.slane %v11184_v18, 1  ;;  %v9219_v46 = vrot.slane %v11185_v36, 1  ;;  %v11192_v53 = vld [vmem:[%s11443_s5 + $0x530] sm:$0x3]  ;;  %v11196_v36 = vld [vmem:[%s11443_s5 + $0x560] sm:$0xff] }
 0x44d   : > { %9753 = vst [vmem:[%s14045_s6 + $0x260] sm:$0xff] %v9625_v55  ;;  %9755 = vst [vmem:[%s14045_s6 + $0x270] sm:$0xff] %v9627_v24  ;;  %v9626_v2 = vmax.f32 %v9498_v11, 0.0  ;;  %v9628_v52 = vmax.f32 %v9500_v44, 0.0  ;;  %v9501_v3 = vadd.f32 %v14396_v57, %v8721_v8  ;;  %v9503_v27 = vadd.f32 %v14406_v50, %v8914_v12 }
 0x44e   : > { %v8723_v48 = vpop.f32.mrf.mxu1  ;;  %v8916_v42 = vpop.f32.mrf.mxu0  ;;  %v9220_v29 = vrot.slane %v11186_v26, 1  ;;  %v9216_v61 = vrot.slane %v11187_v40, 1  ;;  %v9217_v54 = vrot.slane %v11188_v4, 1  ;;  %v9222_v25 = vrot.slane %v11189_v62, 1  ;;  %v11197_v26 = vld [vmem:[%s11443_s5 + $0x550] sm:$0xff]  ;;  %v11199_v40 = vld [vmem:[%s11443_s5 + $0x548] sm:$0xff] }
 0x44f   : > { %9754 = vst [vmem:[%s14045_s6 + $0x268] sm:$0xff] %v9626_v2  ;;  %9756 = vst [vmem:[%s14045_s6 + $0x278] sm:$0xff] %v9628_v52  ;;  %v9629_v57 = vmax.f32 %v9501_v3, 0.0  ;;  %v9631_v50 = vmax.f32 %v9503_v27, 0.0  ;;  %v9502_v5 = vadd.f32 %v14409_v13, %v8723_v48  ;;  %v9504_v43 = vadd.f32 %v14412_v30, %v8916_v42  ;;  %v11194_v2 = vld [vmem:[%s11443_s5 + $0x538] sm:$0x3] }
 0x450   : > { %v8725_v33 = vpop.f32.mrf.mxu1  ;;  %v8918_v32 = vpop.f32.mrf.mxu0  ;;  %v9223_v51 = vrot.slane %v11190_v0, 1  ;;  %v14508_v6 = vsel %vm6051_vm0, %v9213_v45, %v9214_v47  ;;  %v9225_v17 = vrot.slane %v11191_v16, 1  ;;  %v9229_v60 = vrot.slane %v11192_v53, 1  ;;  %v11200_v4 = vld [vmem:[%s11443_s5 + $0x568] sm:$0xff]  ;;  %v11201_v62 = vld [vmem:[%s11443_s5 + $0x558] sm:$0xff] }
 0x451   : > { %9757 = vst [vmem:[%s14045_s6 + $0x280] sm:$0xff] %v9629_v57  ;;  %9759 = vst [vmem:[%s14045_s6 + $0x290] sm:$0xff] %v9631_v50  ;;  %v9630_v13 = vmax.f32 %v9502_v5, 0.0  ;;  %v9632_v30 = vmax.f32 %v9504_v43, 0.0  ;;  %v9505_v15 = vadd.f32 %v14420_v14, %v8725_v33  ;;  %v9507_v22 = vadd.f32 %v14423_v58, %v8918_v32  ;;  %v11195_v50 = vld [vmem:[%s11443_s5 + $0x540] sm:$0xff]  ;;  %v11202_v0 = vld [vmem:[%s11443_s5 + $0x578] sm:$0xff] }
 0x452   : > { %v8727_v28 = vpop.f32.mrf.mxu1  ;;  %v8920_v23 = vpop.f32.mrf.mxu0  ;;  %v9227_v55 = vrot.slane %v11193_v9, 1  ;;  %v9221_v12 = vsel %vm6051_vm0, %v9219_v46, %v9220_v29  ;;  %v14519_v59 = vsel %vm6051_vm0, %v9216_v61, %v9217_v54  ;;  %v14522_v1 = vsel %vm6051_vm0, %v9222_v25, %v9223_v51 }
 0x453   : > { %9758 = vst [vmem:[%s14045_s6 + $0x288] sm:$0xff] %v9630_v13  ;;  %9760 = vst [vmem:[%s14045_s6 + $0x298] sm:$0xff] %v9632_v30  ;;  %v9633_v14 = vmax.f32 %v9505_v15, 0.0  ;;  %v9635_v7 = vmax.f32 %v9507_v22, 0.0  ;;  %v9506_v58 = vadd.f32 %v14426_v38, %v8727_v28  ;;  %v9508_v37 = vadd.f32 %v14434_v41, %v8920_v23  ;;  %v11198_v13 = vld [vmem:[%s11443_s5 + $0x570] sm:$0xff] }
 0x454   : > { %v8731_v49 = vpop.f32.mrf.mxu1  ;;  %v8924_v10 = vpop.f32.mrf.mxu0  ;;  %v9231_v52 = vrot.slane %v11194_v2, 1  ;;  %v14530_v34 = vsel %vm6051_vm0, %v9214_v47, %v9225_v17  ;;  %v14533_v45 = vsel %vm6051_vm0, %v9220_v29, %v9229_v60  ;;  %v14536_v57 = vsel %vm6051_vm0, %v9217_v54, %v9227_v55  ;;  %v11204_v17 = vld [vmem:[%s11443_s5 + $0x590] sm:$0x3]  ;;  %v11205_v60 = vld [vmem:[%s11443_s5 + $0x588] sm:$0x3] }
 0x455   : > { %9761 = vst [vmem:[%s14045_s6 + $0x2a0] sm:$0xff] %v9633_v14  ;;  %9763 = vst [vmem:[%s14045_s6 + $0x2b0] sm:$0xff] %v9635_v7  ;;  %v9634_v24 = vmax.f32 %v9506_v58, 0.0  ;;  %v9636_v38 = vmax.f32 %v9508_v37, 0.0  ;;  %v9509_v41 = vadd.f32 %v14452_v39, %v8731_v49  ;;  %v9511_v11 = vadd.f32 %v14462_v35, %v8924_v10  ;;  %v11203_v10 = vld [vmem:[%s11443_s5 + $0x580] sm:$0x3] }
 0x456   : > { %v8733_v44 = vpop.f32.mrf.mxu1  ;;  %v8926_v8 = vpop.f32.mrf.mxu0  ;;  %v9233_v5 = vrot.slane %v11195_v50, 1  ;;  %v14544_v47 = vsel %vm6051_vm0, %v9223_v51, %v9231_v52  ;;  %v9234_v46 = vrot.slane %v11196_v36, 1  ;;  %v9239_v29 = vrot.slane %v11197_v26, 1  ;;  %v11206_v2 = vld [vmem:[%s11443_s5 + $0x598] sm:$0x3]  ;;  %v11208_v36 = vld [vmem:[%s11443_s5 + $0x5c0] sm:$0xff] }
 0x457   : > { %9762 = vst [vmem:[%s14045_s6 + $0x2a8] sm:$0xff] %v9634_v24  ;;  %9764 = vst [vmem:[%s14045_s6 + $0x2b8] sm:$0xff] %v9636_v38  ;;  %v9637_v39 = vmax.f32 %v9509_v41, 0.0  ;;  %v9639_v3 = vmax.f32 %v9511_v11, 0.0  ;;  %v9510_v35 = vadd.f32 %v14465_v21, %v8733_v44  ;;  %v9512_v27 = vadd.f32 %v14468_v63, %v8926_v8  ;;  %v11209_v26 = vld [vmem:[%s11443_s5 + $0x5b0] sm:$0xff] }
 0x458   : > { %v8735_v48 = vpop.f32.mrf.mxu1  ;;  %v8928_v42 = vpop.f32.mrf.mxu0  ;;  %v9240_v30 = vrot.slane %v11198_v13, 1  ;;  %v9236_v61 = vrot.slane %v11199_v40, 1  ;;  %v9237_v54 = vrot.slane %v11200_v4, 1  ;;  %v9242_v25 = vrot.slane %v11201_v62, 1  ;;  %v11210_v13 = vld [vmem:[%s11443_s5 + $0x5d0] sm:$0xff]  ;;  %v11212_v40 = vld [vmem:[%s11443_s5 + $0x5c8] sm:$0xff] }
 0x459   : > { %9765 = vst [vmem:[%s14045_s6 + $0x2c0] sm:$0xff] %v9637_v39  ;;  %9767 = vst [vmem:[%s14045_s6 + $0x2d0] sm:$0xff] %v9639_v3  ;;  %v9638_v21 = vmax.f32 %v9510_v35, 0.0  ;;  %v9640_v63 = vmax.f32 %v9512_v27, 0.0  ;;  %v9513_v43 = vadd.f32 %v14476_v20, %v8735_v48  ;;  %v9515_v33 = vadd.f32 %v14479_v31, %v8928_v42  ;;  %v11213_v4 = vld [vmem:[%s11443_s5 + $0x5b8] sm:$0xff] }
 0x45a   : > { %v8737_v32 = vpop.f32.mrf.mxu1  ;;  %v8930_v18 = vpop.f32.mrf.mxu0  ;;  %v9243_v51 = vrot.slane %v11202_v0, 1  ;;  %v9235_v49 = vsel %vm6051_vm0, %v9233_v5, %v9234_v46  ;;  %v9245_v16 = vrot.slane %v11203_v10, 1  ;;  %v9249_v53 = vrot.slane %v11204_v17, 1  ;;  %v11207_v5 = vld [vmem:[%s11443_s5 + $0x5a0] sm:$0xff]  ;;  %v11214_v62 = vld [vmem:[%s11443_s5 + $0x5d8] sm:$0xff] }
 0x45b   : > { %9766 = vst [vmem:[%s14045_s6 + $0x2c8] sm:$0xff] %v9638_v21  ;;  %9768 = vst [vmem:[%s14045_s6 + $0x2d8] sm:$0xff] %v9640_v63  ;;  %v9641_v20 = vmax.f32 %v9513_v43, 0.0  ;;  %v9643_v31 = vmax.f32 %v9515_v33, 0.0  ;;  %v9514_v15 = vadd.f32 %v14482_v56, %v8737_v32  ;;  %v9516_v22 = vadd.f32 %v14490_v19, %v8930_v18  ;;  %v11216_v10 = vld [vmem:[%s11443_s5 + $0x5f0] sm:$0x3] }
 0x45c   : > { %v8741_v28 = vpop.f32.mrf.mxu1  ;;  %v8934_v23 = vpop.f32.mrf.mxu0  ;;  %v9247_v9 = vrot.slane %v11205_v60, 1  ;;  %v9241_v44 = vsel %vm6051_vm0, %v9239_v29, %v9240_v30  ;;  %v9238_v8 = vsel %vm6051_vm0, %v9236_v61, %v9237_v54  ;;  %v9251_v52 = vrot.slane %v11206_v2, 1  ;;  %v11217_v17 = vld [vmem:[%s11443_s5 + $0x5e8] sm:$0x3] }
 0x45d   : > { %9769 = vst [vmem:[%s14045_s6 + $0x2e0] sm:$0xff] %v9641_v20  ;;  %9771 = vst [vmem:[%s14045_s6 + $0x2f0] sm:$0xff] %v9643_v31  ;;  %v9642_v56 = vmax.f32 %v9514_v15, 0.0  ;;  %v9644_v14 = vmax.f32 %v9516_v22, 0.0  ;;  %v9517_v19 = vadd.f32 %v14508_v6, %v8741_v28  ;;  %v9519_v7 = vadd.f32 %v9221_v12, %v8934_v23  ;;  %v11211_v28 = vld [vmem:[%s11443_s5 + $0x5a8] sm:$0xff] }
 0x45e   : > { %v8743_v58 = vpop.f32.mrf.mxu1  ;;  %v8936_v37 = vpop.f32.mrf.mxu0  ;;  %v9244_v12 = vsel %vm6051_vm0, %v9242_v25, %v9243_v51  ;;  %v9246_v48 = vsel %vm6051_vm0, %v9234_v46, %v9245_v16  ;;  %v9250_v42 = vsel %vm6051_vm0, %v9240_v30, %v9249_v53  ;;  %v14579_v50 = vsel %vm6051_vm0, %v9237_v54, %v9247_v9 }
 0x45f   : > { %9770 = vst [vmem:[%s14045_s6 + $0x2e8] sm:$0xff] %v9642_v56  ;;  %9772 = vst [vmem:[%s14045_s6 + $0x2f8] sm:$0xff] %v9644_v14  ;;  %v9645_v55 = vmax.f32 %v9517_v19, 0.0  ;;  %v9647_v24 = vmax.f32 %v9519_v7, 0.0  ;;  %v9518_v6 = vadd.f32 %v14519_v59, %v8743_v58  ;;  %v9520_v38 = vadd.f32 %v14522_v1, %v8936_v37  ;;  %v11215_v37 = vld [vmem:[%s11443_s5 + $0x5e0] sm:$0x3] }
 0x460   : > { %v8745_v41 = vpop.f32.mrf.mxu1  ;;  %v8938_v11 = vpop.f32.mrf.mxu0  ;;  %v9253_v21 = vrot.slane %v11207_v5, 1  ;;  %v9252_v18 = vsel %vm6051_vm0, %v9243_v51, %v9251_v52  ;;  %v9254_v46 = vrot.slane %v11208_v36, 1  ;;  %v9259_v29 = vrot.slane %v11209_v26, 1  ;;  %v11221_v36 = vld [vmem:[%s11443_s5 + $0x610] sm:$0xff] }
 0x461   : > { %9773 = vst [vmem:[%s14045_s6 + $0x300] sm:$0xff] %v9645_v55  ;;  %9775 = vst [vmem:[%s14045_s6 + $0x310] sm:$0xff] %v9647_v24  ;;  %v9646_v39 = vmax.f32 %v9518_v6, 0.0  ;;  %v9648_v3 = vmax.f32 %v9520_v38, 0.0  ;;  %v9521_v59 = vadd.f32 %v14530_v34, %v8745_v41  ;;  %v9523_v1 = vadd.f32 %v14533_v45, %v8938_v11  ;;  %v11222_v26 = vld [vmem:[%s11443_s5 + $0x630] sm:$0xff] }
 0x462   : > { %v8747_v35 = vpop.f32.mrf.mxu1  ;;  %v8940_v27 = vpop.f32.mrf.mxu0  ;;  %v9260_v30 = vrot.slane %v11210_v13, 1  ;;  %v9256_v23 = vrot.slane %v11211_v28, 1  ;;  %v9257_v61 = vrot.slane %v11212_v40, 1  ;;  %v9262_v54 = vrot.slane %v11213_v4, 1  ;;  %v11224_v28 = vld [vmem:[%s11443_s5 + $0x628] sm:$0xff]  ;;  %v11225_v40 = vld [vmem:[%s11443_s5 + $0x618] sm:$0xff] }
 0x463   : > { %9774 = vst [vmem:[%s14045_s6 + $0x308] sm:$0xff] %v9646_v39  ;;  %9776 = vst [vmem:[%s14045_s6 + $0x318] sm:$0xff] %v9648_v3  ;;  %v9649_v34 = vmax.f32 %v9521_v59, 0.0  ;;  %v9651_v45 = vmax.f32 %v9523_v1, 0.0  ;;  %v9522_v63 = vadd.f32 %v14536_v57, %v8747_v35  ;;  %v9524_v43 = vadd.f32 %v14544_v47, %v8940_v27  ;;  %v11226_v4 = vld [vmem:[%s11443_s5 + $0x638] sm:$0xff] }
 0x464   : > { %v8751_v33 = vpop.f32.mrf.mxu1  ;;  %v8944_v32 = vpop.f32.mrf.mxu0  ;;  %v9263_v25 = vrot.slane %v11214_v62, 1  ;;  %v9255_v58 = vsel %vm6051_vm0, %v9253_v21, %v9254_v46  ;;  %v9269_v16 = vrot.slane %v11216_v10, 1  ;;  %v9267_v53 = vrot.slane %v11217_v17, 1 }
 0x465   : > { %9777 = vst [vmem:[%s14045_s6 + $0x320] sm:$0xff] %v9649_v34  ;;  %9779 = vst [vmem:[%s14045_s6 + $0x330] sm:$0xff] %v9651_v45  ;;  %v9650_v57 = vmax.f32 %v9522_v63, 0.0  ;;  %v9652_v47 = vmax.f32 %v9524_v43, 0.0  ;;  %v9525_v20 = vadd.f32 %v9235_v49, %v8751_v33  ;;  %v9527_v31 = vadd.f32 %v9241_v44, %v8944_v32  ;;  %v11220_v32 = vld [vmem:[%s11443_s5 + $0x620] sm:$0xff] }
 0x466   : > { %v8753_v15 = vpop.f32.mrf.mxu1  ;;  %v8946_v22 = vpop.f32.mrf.mxu0  ;;  %v9265_v49 = vrot.slane %v11215_v37, 1  ;;  %v9261_v41 = vsel %vm6051_vm0, %v9259_v29, %v9260_v30  ;;  %v9258_v11 = vsel %vm6051_vm0, %v9256_v23, %v9257_v61  ;;  %v9264_v44 = vsel %vm6051_vm0, %v9262_v54, %v9263_v25 }
 0x467   : > { %9778 = vst [vmem:[%s14045_s6 + $0x328] sm:$0xff] %v9650_v57  ;;  %9780 = vst [vmem:[%s14045_s6 + $0x338] sm:$0xff] %v9652_v47  ;;  %v9653_v0 = vmax.f32 %v9525_v20, 0.0  ;;  %v9655_v51 = vmax.f32 %v9527_v31, 0.0  ;;  %v9526_v56 = vadd.f32 %v9238_v8, %v8753_v15  ;;  %v9528_v14 = vadd.f32 %v9244_v12, %v8946_v22  ;;  %v11218_v8 = vld [vmem:[%s11443_s5 + $0x5f8] sm:$0x3] }
 0x468   : > { %v8755_v19 = vpop.f32.mrf.mxu1  ;;  %v8948_v7 = vpop.f32.mrf.mxu0  ;;  %v9271_v12 = vrot.slane %v11218_v8, 1  ;;  %v9266_v35 = vsel %vm6051_vm0, %v9254_v46, %v9265_v49  ;;  %v9270_v27 = vsel %vm6051_vm0, %v9260_v30, %v9269_v16  ;;  %v9279_v46 = vrot.slane %v11221_v36, 1  ;;  %v11223_v15 = vld [vmem:[%s11443_s5 + $0x608] sm:$0xff]  ;;  %v11228_v49 = vld [vmem:[%s11443_s5 + $0x650] sm:$0x3] }
 0x469   : > { %9781 = vst [vmem:[%s14045_s6 + $0x340] sm:$0xff] %v9653_v0  ;;  %9783 = vst [vmem:[%s14045_s6 + $0x350] sm:$0xff] %v9655_v51  ;;  %v9654_v60 = vmax.f32 %v9526_v56, 0.0  ;;  %v9656_v9 = vmax.f32 %v9528_v14, 0.0  ;;  %v9529_v55 = vadd.f32 %v9246_v48, %v8755_v19  ;;  %v9531_v24 = vadd.f32 %v9250_v42, %v8948_v7  ;;  %v11219_v42 = vld [vmem:[%s11443_s5 + $0x600] sm:$0xff] }
 0x46a   : > { %v8757_v6 = vpop.f32.mrf.mxu1  ;;  %v8950_v38 = vpop.f32.mrf.mxu0  ;;  %v9268_v48 = vsel %vm6051_vm0, %v9257_v61, %v9267_v53  ;;  %v9273_v5 = vrot.slane %v11219_v42, 1  ;;  %v9272_v33 = vsel %vm6051_vm0, %v9263_v25, %v9271_v12  ;;  %v9280_v29 = vrot.slane %v11222_v26, 1 }
 0x46b   : > { %9782 = vst [vmem:[%s14045_s6 + $0x348] sm:$0xff] %v9654_v60  ;;  %9784 = vst [vmem:[%s14045_s6 + $0x358] sm:$0xff] %v9656_v9  ;;  %v9657_v2 = vmax.f32 %v9529_v55, 0.0  ;;  %v9659_v52 = vmax.f32 %v9531_v24, 0.0  ;;  %v9530_v39 = vadd.f32 %v14579_v50, %v8757_v6  ;;  %v9532_v3 = vadd.f32 %v9252_v18, %v8950_v38  ;;  %v11229_v38 = vld [vmem:[%s11443_s5 + $0x648] sm:$0x3] }
 0x46c   : > { %v8761_v59 = vpop.f32.mrf.mxu1  ;;  %v8954_v1 = vpop.f32.mrf.mxu0  ;;  %v9274_v18 = vrot.slane %v11220_v32, 1  ;;  %v9276_v22 = vrot.slane %v11223_v15, 1  ;;  %v9277_v23 = vrot.slane %v11224_v28, 1  ;;  %v9282_v61 = vrot.slane %v11225_v40, 1 }
 0x46d   : > { %9785 = vst [vmem:[%s14045_s6 + $0x360] sm:$0xff] %v9657_v2  ;;  %9787 = vst [vmem:[%s14045_s6 + $0x370] sm:$0xff] %v9659_v52  ;;  %v9658_v21 = vmax.f32 %v9530_v39, 0.0  ;;  %v9660_v50 = vmax.f32 %v9532_v3, 0.0  ;;  %v9533_v34 = vadd.f32 %v9255_v58, %v8761_v59  ;;  %v9535_v45 = vadd.f32 %v9261_v41, %v8954_v1  ;;  %v11227_v58 = vld [vmem:[%s11443_s5 + $0x640] sm:$0x3] }
 0x46e   : > { %v8763_v63 = vpop.f32.mrf.mxu1  ;;  %v8956_v43 = vpop.f32.mrf.mxu0  ;;  %v9283_v54 = vrot.slane %v11226_v4, 1  ;;  %v9275_v19 = vsel %vm6051_vm0, %v9273_v5, %v9274_v18  ;;  %v9281_v7 = vsel %vm6051_vm0, %v9279_v46, %v9280_v29  ;;  %v9285_v37 = vrot.slane %v11227_v58, 1 }
 0x46f   : > { %9786 = vst [vmem:[%s14045_s6 + $0x368] sm:$0xff] %v9658_v21  ;;  %9788 = vst [vmem:[%s14045_s6 + $0x378] sm:$0xff] %v9660_v50  ;;  %v9661_v13 = vmax.f32 %v9533_v34, 0.0  ;;  %v9663_v30 = vmax.f32 %v9535_v45, 0.0  ;;  %v9534_v57 = vadd.f32 %v9258_v11, %v8763_v63  ;;  %v9536_v47 = vadd.f32 %v9264_v44, %v8956_v43  ;;  %v11230_v11 = vld [vmem:[%s11443_s5 + $0x658] sm:$0x3] }
 0x470   : > { %v8765_v20 = vpop.f32.mrf.mxu1  ;;  %v8958_v31 = vpop.f32.mrf.mxu0  ;;  %v9289_v10 = vrot.slane %v11228_v49, 1  ;;  %v9278_v24 = vsel %vm6051_vm0, %v9276_v22, %v9277_v23  ;;  %v9284_v6 = vsel %vm6051_vm0, %v9282_v61, %v9283_v54  ;;  %v9287_v41 = vrot.slane %v11229_v38, 1  ;;  %s10118_s5 = sshll.u32 %s11344_s19, 14  ;;  %s14666_s19 = scalar_lea.sflag [#allocation3], %s188_s29 }
 0x471   : > { %9789 = vst [vmem:[%s14045_s6 + $0x380] sm:$0xff] %v9661_v13  ;;  %9791 = vst [vmem:[%s14045_s6 + $0x390] sm:$0xff] %v9663_v30  ;;  %v9662_v62 = vmax.f32 %v9534_v57, 0.0  ;;  %v9664_v25 = vmax.f32 %v9536_v47, 0.0  ;;  %v9537_v0 = vadd.f32 %v9266_v35, %v8765_v20  ;;  %v9539_v51 = vadd.f32 %v9270_v27, %v8958_v31  ;;  %s14656_s10 = scalar_lea.hbm %s14710_s4, %s10118_s5 }
 0x472   : > { %v8767_v56 = vpop.f32.mrf.mxu1  ;;  %v8960_v14 = vpop.f32.mrf.mxu0  ;;  %v9291_v44 = vrot.slane %v11230_v11, 1  ;;  %v9286_v59 = vsel %vm6051_vm0, %v9274_v18, %v9285_v37  ;;  %v9290_v1 = vsel %vm6051_vm0, %v9280_v29, %v9289_v10  ;;  %v9288_v50 = vsel %vm6051_vm0, %v9277_v23, %v9287_v41 }
 0x473   : > { %9790 = vst [vmem:[%s14045_s6 + $0x388] sm:$0xff] %v9662_v62  ;;  %9792 = vst [vmem:[%s14045_s6 + $0x398] sm:$0xff] %v9664_v25  ;;  %v9665_v16 = vmax.f32 %v9537_v0, 0.0  ;;  %v9667_v17 = vmax.f32 %v9539_v51, 0.0  ;;  %v9538_v53 = vadd.f32 %v9268_v48, %v8767_v56  ;;  %v9540_v60 = vadd.f32 %v9272_v33, %v8960_v14 }
 0x474   : > { %v8771_v9 = vpop.f32.mrf.mxu1  ;;  %v8964_v55 = vpop.f32.mrf.mxu0  ;;  %v9292_v34 = vsel %vm6051_vm0, %v9283_v54, %v9291_v44 }
 0x475   : > { %9793 = vst [vmem:[%s14045_s6 + $0x3a0] sm:$0xff] %v9665_v16  ;;  %9795 = vst [vmem:[%s14045_s6 + $0x3b0] sm:$0xff] %v9667_v17  ;;  %v9666_v8 = vmax.f32 %v9538_v53, 0.0  ;;  %v9668_v12 = vmax.f32 %v9540_v60, 0.0  ;;  %v9541_v2 = vadd.f32 %v9275_v19, %v8771_v9  ;;  %v9543_v52 = vadd.f32 %v9281_v7, %v8964_v55 }
 0x476   : > { %v8773_v39 = vpop.f32.mrf.mxu1  ;;  %v8966_v3 = vpop.f32.mrf.mxu0 }
 0x477   : > { %9794 = vst [vmem:[%s14045_s6 + $0x3a8] sm:$0xff] %v9666_v8  ;;  %9796 = vst [vmem:[%s14045_s6 + $0x3b8] sm:$0xff] %v9668_v12  ;;  %v9669_v35 = vmax.f32 %v9541_v2, 0.0  ;;  %v9671_v27 = vmax.f32 %v9543_v52, 0.0  ;;  %v9542_v48 = vadd.f32 %v9278_v24, %v8773_v39  ;;  %v9544_v42 = vadd.f32 %v9284_v6, %v8966_v3 }
 0x478   : > { %v8775_v5 = vpop.f32.mrf.mxu1  ;;  %v8968_v21 = vpop.f32.mrf.mxu0 }
 0x479   : > { %9797 = vst [vmem:[%s14045_s6 + $0x3c0] sm:$0xff] %v9669_v35  ;;  %9799 = vst [vmem:[%s14045_s6 + $0x3d0] sm:$0xff] %v9671_v27  ;;  %v9670_v45 = vmax.f32 %v9542_v48, 0.0  ;;  %v9672_v63 = vmax.f32 %v9544_v42, 0.0  ;;  %v9545_v43 = vadd.f32 %v9286_v59, %v8775_v5  ;;  %v9547_v33 = vadd.f32 %v9290_v1, %v8968_v21 }
 0x47a   : > { %v8777_v32 = vpop.f32.mrf.mxu1  ;;  %v8970_v18 = vpop.f32.mrf.mxu0 }
 0x47b   : > { %9798 = vst [vmem:[%s14045_s6 + $0x3c8] sm:$0xff] %v9670_v45  ;;  %9800 = vst [vmem:[%s14045_s6 + $0x3d8] sm:$0xff] %v9672_v63  ;;  %v9673_v36 = vmax.f32 %v9545_v43, 0.0  ;;  %v9675_v46 = vmax.f32 %v9547_v33, 0.0  ;;  %v9546_v26 = vadd.f32 %v9288_v50, %v8777_v32  ;;  %v9548_v29 = vadd.f32 %v9292_v34, %v8970_v18 }
 0x47d   : > { %9801 = vst [vmem:[%s14045_s6 + $0x3e0] sm:$0xff] %v9673_v36  ;;  %9803 = vst [vmem:[%s14045_s6 + $0x3f0] sm:$0xff] %v9675_v46  ;;  %v9674_v13 = vmax.f32 %v9546_v26, 0.0  ;;  %v9676_v30 = vmax.f32 %v9548_v29, 0.0 }
 0x47f   : > { %9802 = vst [vmem:[%s14045_s6 + $0x3e8] sm:$0xff] %v9674_v13  ;;  %9804 = vst [vmem:[%s14045_s6 + $0x3f8] sm:$0xff] %v9676_v30 }
 0x480   : > { %11244 = shalt.err (!%p11241_p3)
}
 0x481   : > { %s11245_s20 = scalar_lea.hbm %s14656_s10, 16384  ;;  %s11249_s27 = scalar_lea.hbm %s14710_s4, 32768 }
 0x482   : > { %p11246_p4 = scmp.ne.s32.totalorder %s14656_s10, %s11245_s20  ;;  %p11250_p9 = scmp.lt.s32.totalorder %s14656_s10, %s14710_s4 }
 0x483   : > { %p11251_p10 = scmp.lt.s32.totalorder %s11249_s27, %s11245_s20 }
 0x484   : > { %p11247_p7 = pnand %p11246_p4, %p11361_p5 }
 0x485   : > { %p11252_p11 = por %p11251_p10, %p11250_p9 }
 0x486   : > { %p11248_p8 = pneg %p11247_p7 }
 0x488   : > { %p11253_p12 = pnand %p11252_p11, %p11248_p8 }
 0x48a   : > { %11256 = shalt.err (!%p11253_p12)
}
 0x48b   : > { %s11296_s30 = smov 512   ;;  %s11297_s6 = smov 32  }
 0x48c   : > { %10656 = dma.vmem_to_hbm [thread:$0]  (%p11361_p5), %s14658_s7, 16384, %s14656_s10, %s14666_s19, %s11296_s30, %s11296_s30, %s11297_s6  }
 0x48d PF: > { %p10662_p13 = scmp.ge.s32.totalorder %s11291_s18, 2  ;;  %s9834_s5 = sand.u32 1, %s11279_s15  }
 0x48e   : > { %s9835_s8 = scalar_lea.sflag [#allocation3], %s9834_s5 }
 0x48f   : > { %p10659_p0 = pnand %p10662_p13, %p11365_p6 }
 0x491   : > { %p10660_p1 = pneg %p10659_p0 }
 0x493   : > { %11274 = dma.done.wait (%p10660_p1), %s9835_s8, 16384  }
 0x494   : > { %11276 = vsyncadd (%p10660_p1), %s9835_s8, 4294950912  ;;  %p14_p2 = scmp.ge.s32.totalorder %s11348_s21, 4   ;;  %s14814_s15 = smov %s11283_s16 }
 0x495   : > { %s14815_s16 = smov %s11287_s17  ;;  %s14816_s17 = smov %s11359_s24 }
 0x496   : > { %s14817_s18 = smov %s11348_s21  ;;  %16 = sbr.rel (!%p14_p2) target bundleno = 3 (0x3), region = 71 }
 0x49b   :  { %9840 = vsyncpa [#allocation3], 1 }
 0x49c   :  { %9842 = vsyncpa [#allocation3 + $0x1], 1 }

</bundles_post_ra>
